<compile_context>
chip_gen: v6e
topology: v6e:2x2x1
jax: 0.10.0
libtpu: 0.0.40
codegen_flags: <defaults>
</compile_context>

<pallas_src>
import numpy as np
import jax
import jax.numpy as jnp
from jax.experimental import pallas as pl
from jax.experimental.pallas import tpu as pltpu


# ----------------------------------------------------------------------------
# Config (stand-ins for `ini` values; fc_in = C3*10*10 requires a 20x20 frame).
# ----------------------------------------------------------------------------
C1, C2, C3 = 8, 8, 8          # cnn_b{1,2,3}_channels
HIDDEN = 32                   # cnnr_hidden_size
OUT_SIZE = 4                  # output_size
IN_CH, IN_H, IN_W = 3, 20, 20
UP = 4                        # upsample scale factor
EMB = 128                     # fc_cnn output / LSTM input size

N1 = IN_H * UP                # 80  (conv block 1 spatial size)
N2 = N1 // 2                  # 40
N3 = N2 // 2                  # 20
HALF3 = N3 // 2               # 10
FC_IN = C3 * HALF3 * HALF3    # 800

assert IN_H == IN_W, "square frames only (one bicubic matrix reused for both axes)"


# ----------------------------------------------------------------------------
# Fused forward kernel
# ----------------------------------------------------------------------------
def _forward_kernel(x2d_ref, u_ref, g_ref,
                    m1_ref, b1_ref, rc1_ref, cc1_ref,
                    m2_ref, b2_ref, rc2_ref, cc2_ref,
                    m3_ref, b3_ref, rc3_ref, cc3_ref,
                    wfc_ref, bfc_ref,
                    wihh_ref, bg_ref,
                    wo_ref, bo_ref, h0_ref, c0_ref,
                    out_ref, hn_ref, cn_ref,
                    xb1, xb2, xb3):
    f32 = jnp.float32
    bf16 = jnp.bfloat16

    # ---- bicubic x4 upsample; u/g carry the conv-1 zero padding, so one aligned
    # ---- full-ref store emits the padded (82, 246) activation buffer directly.
    t = jnp.dot(u_ref[...], x2d_ref[...], preferred_element_type=f32)        # (82, 60)
    xb1[...] = jnp.dot(t.astype(bf16), g_ref[...],
                       preferred_element_type=f32).astype(bf16)              # (82, 246)

    def conv_relu_pool(xb, m_ref, b_ref, rc_ref, cc_ref, n, cout):
        # 3x3 conv (padding=1) = 3 row-shifted banded bf16 matmuls, f32 accumulation.
        acc = jnp.dot(xb[0:n, :], m_ref[0], preferred_element_type=f32)
        acc = acc + jnp.dot(xb[1:n + 1, :], m_ref[1], preferred_element_type=f32)
        acc = acc + jnp.dot(xb[2:n + 2, :], m_ref[2], preferred_element_type=f32)
        y = jnp.maximum(acc + b_ref[...], 0.0)                               # (n, cout*n)
        # 2x2 / stride-2 max pool: pairwise max over rows then over w-blocks,
        # then exact 0/1 bf16 selection matmuls that compact the stride-2 grid
        # and (for blocks 1/2) fold in the next block's zero padding.
        p = jnp.maximum(y[:n - 1, :], y[1:, :])                              # (n-1, cout*n)
        p = jnp.maximum(p[:, :cout * (n - 1)], p[:, cout:]).astype(bf16)     # (n-1, cout*(n-1))
        a = jnp.dot(rc_ref[...], p, preferred_element_type=f32).astype(bf16)
        return jnp.dot(a, cc_ref[...], preferred_element_type=f32)

    xb2[...] = conv_relu_pool(xb1, m1_ref, b1_ref, rc1_ref, cc1_ref,
                              N1, C1).astype(bf16)                           # (42, 336)
    xb3[...] = conv_relu_pool(xb2, m2_ref, b2_ref, rc2_ref, cc2_ref,
                              N2, C2).astype(bf16)                           # (22, 176)
    z3 = conv_relu_pool(xb3, m3_ref, b3_ref, rc3_ref, cc3_ref,
                        N3, C3).astype(bf16)                                 # (10, 80)
    # z3[u, co*10 + v] == pooled feature[channel co, row u, col v]

    # ---- Flatten (CHW order folded into the wfc row permutation) + Linear + ReLU.
    # All ten M=1 dots are emitted before any add; tree-sum keeps them independent
    # so the MXU result pipeline can overlap the passes.
    parts = [jnp.dot(z3[i:i + 1, :], wfc_ref[i], preferred_element_type=f32)
             for i in range(HALF3)]
    while len(parts) > 1:
        nxt = [parts[k] + parts[k + 1] for k in range(0, len(parts) - 1, 2)]
        if len(parts) % 2:
            nxt.append(parts[-1])
        parts = nxt
    emb = jnp.maximum(parts[0] + bfc_ref[...], 0.0)                          # (1, 128)

    # ---- single-step LSTM (PyTorch gate order i, f, g, o): one fused bf16 matmul
    # ---- for all 4 gates of both the input and the recurrent contributions.
    eh = jnp.concatenate([emb, h0_ref[...]], axis=1).astype(bf16)            # (1, 160)
    gates = jnp.dot(eh, wihh_ref[...], preferred_element_type=f32) + bg_ref[...]
    i_g = jax.nn.sigmoid(gates[:, 0:HIDDEN])
    f_g = jax.nn.sigmoid(gates[:, HIDDEN:2 * HIDDEN])
    g_g = jnp.tanh(gates[:, 2 * HIDDEN:3 * HIDDEN])
    o_g = jax.nn.sigmoid(gates[:, 3 * HIDDEN:4 * HIDDEN])
    c_new = f_g * c0_ref[...] + i_g * g_g
    h_new = o_g * jnp.tanh(c_new)
    cn_ref[...] = c_new
    hn_ref[...] = h_new
    out_ref[...] = (jnp.dot(h_new.astype(bf16), wo_ref[...],
                            preferred_element_type=f32) + bo_ref[...])


def _full_spec(shape):
    nd = len(shape)
    return pl.BlockSpec(shape, lambda i, _nd=nd: (0,) * _nd)


@jax.jit
def forward(params, x_chw, hidden=None):
    # host glue: (3, 20, 20) -> (20, 60) with columns ordered (w, c)
    x2d = jnp.transpose(x_chw, (1, 2, 0)).reshape(IN_H, IN_W * IN_CH).astype(jnp.bfloat16)
    if hidden is None:
        h0 = jnp.zeros((1, HIDDEN), jnp.float32)
        c0 = jnp.zeros((1, HIDDEN), jnp.float32)
    else:
        h0, c0 = hidden

    args = (x2d, params['u'], params['g'],
            params['m1'], params['b1'], params['rc1'], params['cc1'],
            params['m2'], params['b2'], params['rc2'], params['cc2'],
            params['m3'], params['b3'], params['rc3'], params['cc3'],
            params['wfc'], params['bfc'],
            params['wihh'], params['bg'],
            params['wo'], params['bo'], h0, c0)

    out_shapes = (jax.ShapeDtypeStruct((1, OUT_SIZE), jnp.float32),
                  jax.ShapeDtypeStruct((1, HIDDEN), jnp.float32),
                  jax.ShapeDtypeStruct((1, HIDDEN), jnp.float32))

    fn = pl.pallas_call(
        _forward_kernel,
        out_shape=out_shapes,
        grid=(1,),
        in_specs=[_full_spec(a.shape) for a in args],
        out_specs=[_full_spec(s.shape) for s in out_shapes],
        scratch_shapes=[
            pltpu.VMEM((N1 + 2, IN_CH * (N1 + 2)), jnp.bfloat16),   # (82, 246)
            pltpu.VMEM((N2 + 2, C1 * (N2 + 2)), jnp.bfloat16),      # (42, 336)
            pltpu.VMEM((N3 + 2, C2 * (N3 + 2)), jnp.bfloat16),      # (22, 176)
        ],
        compiler_params=pltpu.CompilerParams(
            dimension_semantics=("arbitrary",),
            vmem_limit_bytes=32 * 1024 * 1024),
        cost_estimate=pl.CostEstimate(flops=133_000_000, transcendentals=200,
                                      bytes_accessed=2_800_000),
    )
    out, hn, cn = fn(*args)
    # TODO(synk): stats/log bookkeeping and the persistent self.hidden state are
    # host-side Python; the recurrent state is returned explicitly instead.
    # TODO(synk): batching multiple frames per call (grid over batch, "parallel")
    # would amortize the weight DMA and use both v7x TensorCores, but the module
    # forward is a single frame per step.
    return out, (hn, cn)


# ----------------------------------------------------------------------------
# Host-side parameter packing
# ----------------------------------------------------------------------------
def bicubic_upsample_matrix(in_size, scale, a=-0.75):
    """Matrix U (out, in) matching nn.Upsample(mode='bicubic', align_corners=False)."""
    out_size = in_size * scale
    u = np.zeros((out_size, in_size), dtype=np.float64)

    def cc1(x):  # |x| <= 1
        return ((a + 2.0) * x - (a + 3.0)) * x * x + 1.0

    def cc2(x):  # 1 < |x| < 2
        return ((a * x - 5.0 * a) * x + 8.0 * a) * x - 4.0 * a

    for i in range(out_size):
        src = (i + 0.5) / scale - 0.5
        i0 = int(np.floor(src))
        t = src - i0
        coeffs = [cc2(t + 1.0), cc1(t), cc1(1.0 - t), cc2(2.0 - t)]
        for k in range(4):
            idx = min(max(i0 - 1 + k, 0), in_size - 1)
            u[i, idx] += coeffs[k]
    return u.astype(np.float32)


def _banded_conv_matrices(w, n, cin, cout):
    """w: torch conv weight (cout, cin, 3, 3).  Returns M (3, cin*(n+2), cout*n) so
    that y[i, j*cout+co] = sum_t (Xpad[t:t+n] @ M[t])[i, j*cout+co], where
    Xpad[r, (wcol+1)*cin + ci] = x[ci, r-1, wcol] (zero outside)."""
    m = np.zeros((3, cin * (n + 2), cout * n), dtype=np.float32)
    for t in range(3):
        for s in range(3):
            wt = np.asarray(w[:, :, t, s]).T            # (cin, cout)
            for j in range(n):
                m[t, (j + s) * cin:(j + s + 1) * cin,
                  j * cout:(j + 1) * cout] = wt
    return m


def _pool_select_matrices(n, cout, pad_out=True, channel_major_out=False):
    """0/1 matrices compacting the stride-2 valid grid after the pairwise maxes.
    With pad_out=True the matrices also emit the next block's zero pad rows/cols."""
    half = n // 2
    r_off = 1 if pad_out else 0
    rc = np.zeros((half + 2 * r_off, n - 1), np.float32)
    rc[np.arange(half) + r_off, 2 * np.arange(half)] = 1.0
    cc = np.zeros((cout * (n - 1), cout * (half + 2 * r_off)), np.float32)
    for v in range(half):
        for co in range(cout):
            oc = (co * half + v) if channel_major_out else ((v + r_off) * cout + co)
            cc[2 * v * cout + co, oc] = 1.0
    return rc, cc


def init_params(key):
    keys = jax.random.split(key, 16)

    def unif(k, shape, fan_in):
        bound = 1.0 / np.sqrt(fan_in)
        return np.asarray(jax.random.uniform(k, shape, jnp.float32, -bound, bound))

    p = {}
    # upsample operators, extended with the conv-1 zero-padding rows/cols:
    # U_pad for rows, G_pad = [0 | kron(U^T, I3) | 0] for the (w, c) lane axis.
    u = bicubic_upsample_matrix(IN_H, UP)                       # (80, 20)
    u_pad = np.zeros((N1 + 2, IN_H), np.float32)
    u_pad[1:N1 + 1] = u
    g = np.kron(u.T, np.eye(IN_CH, dtype=np.float32))           # (60, 240)
    g_pad = np.zeros((IN_W * IN_CH, IN_CH * (N1 + 2)), np.float32)
    g_pad[:, IN_CH:IN_CH * (N1 + 1)] = g
    p['u'] = jnp.asarray(u_pad, jnp.bfloat16)
    p['g'] = jnp.asarray(g_pad, jnp.bfloat16)

    def conv_block(kw, kb, cin, cout, n, last=False):
        w = unif(kw, (cout, cin, 3, 3), cin * 9)                # torch layout
        b = unif(kb, (cout,), cin * 9)
        m = _banded_conv_matrices(w, n, cin, cout)
        rc, cc = _pool_select_matrices(n, cout, pad_out=not last,
                                       channel_major_out=last)
        return (jnp.asarray(m, jnp.bfloat16),
                jnp.asarray(np.tile(b, n)[None, :], jnp.float32),
                jnp.asarray(rc, jnp.bfloat16),
                jnp.asarray(cc, jnp.bfloat16))

    p['m1'], p['b1'], p['rc1'], p['cc1'] = conv_block(keys[0], keys[1], IN_CH, C1, N1)
    p['m2'], p['b2'], p['rc2'], p['cc2'] = conv_block(keys[2], keys[3], C1, C2, N2)
    p['m3'], p['b3'], p['rc3'], p['cc3'] = conv_block(keys[4], keys[5], C2, C3, N3,
                                                      last=True)

    # fc_cnn: Linear(800, 128); rows permuted from torch's CHW flatten order to the
    # kernel's (row, channel, col) extraction order, packed (10, 80, 128) so each
    # per-row weight slab load is tile-aligned.
    fc_w = unif(keys[6], (EMB, FC_IN), FC_IN)                   # torch (out, in)
    fc_b = unif(keys[7], (EMB,), FC_IN)
    perm = np.zeros(FC_IN, np.int64)
    for uu in range(HALF3):
        for co in range(C3):
            for v in range(HALF3):
                perm[uu * (C3 * HALF3) + co * HALF3 + v] = (co * HALF3 * HALF3
                                                            + uu * HALF3 + v)
    p['wfc'] = jnp.asarray(fc_w[:, perm].T.reshape(HALF3, C3 * HALF3, EMB),
                           jnp.bfloat16)                        # (10, 80, 128)
    p['bfc'] = jnp.asarray(fc_b[None, :], jnp.float32)

    # LSTM (1 layer, batch_first), gate order i, f, g, o; input & recurrent weights
    # stacked into one (160, 4H) bf16 matrix so all gates are one MXU pass.
    w_ih = unif(keys[8], (4 * HIDDEN, EMB), HIDDEN)
    w_hh = unif(keys[9], (4 * HIDDEN, HIDDEN), HIDDEN)
    b_ih = unif(keys[10], (4 * HIDDEN,), HIDDEN)
    b_hh = unif(keys[11], (4 * HIDDEN,), HIDDEN)
    p['wihh'] = jnp.asarray(np.concatenate([w_ih.T, w_hh.T], axis=0), jnp.bfloat16)
    p['bg'] = jnp.asarray((b_ih + b_hh)[None, :], jnp.float32)  # (1, 4H)

    wo = unif(keys[12], (OUT_SIZE, HIDDEN), HIDDEN)
    p['wo'] = jnp.asarray(wo.T, jnp.bfloat16)                   # (H, out)
    p['bo'] = jnp.asarray(unif(keys[13], (OUT_SIZE,), HIDDEN)[None, :], jnp.float32)
    return p


if __name__ == "__main__":
    key = jax.random.PRNGKey(0)
    pkey, xkey = jax.random.split(key)
    params = init_params(pkey)
    # input frame: (3, 20, 20) -> upsample x4 -> 3 conv/pool blocks -> 10x10 features
    x = jax.random.normal(xkey, (IN_CH, IN_H, IN_W), jnp.float32)

    out, hidden = forward(params, x)
    jax.block_until_ready(out)
    jax.block_until_ready(hidden)
    assert out.shape == (1, OUT_SIZE)
    assert hidden[0].shape == (1, HIDDEN) and hidden[1].shape == (1, HIDDEN)
    print("KERNEL_OK")
</pallas_src>

<mosaic_0001>
module attributes {stable_mosaic.version = 11 : i64} {
  func.func @_forward_kernel(%arg0: i32, %arg1: memref<20x60xbf16, #tpu.memory_space<vmem>>, %arg2: memref<82x20xbf16, #tpu.memory_space<vmem>>, %arg3: memref<60x246xbf16, #tpu.memory_space<vmem>>, %arg4: memref<3x246x640xbf16, #tpu.memory_space<vmem>>, %arg5: memref<1x640xf32, #tpu.memory_space<vmem>>, %arg6: memref<42x79xbf16, #tpu.memory_space<vmem>>, %arg7: memref<632x336xbf16, #tpu.memory_space<vmem>>, %arg8: memref<3x336x320xbf16, #tpu.memory_space<vmem>>, %arg9: memref<1x320xf32, #tpu.memory_space<vmem>>, %arg10: memref<22x39xbf16, #tpu.memory_space<vmem>>, %arg11: memref<312x176xbf16, #tpu.memory_space<vmem>>, %arg12: memref<3x176x160xbf16, #tpu.memory_space<vmem>>, %arg13: memref<1x160xf32, #tpu.memory_space<vmem>>, %arg14: memref<10x19xbf16, #tpu.memory_space<vmem>>, %arg15: memref<152x80xbf16, #tpu.memory_space<vmem>>, %arg16: memref<10x80x128xbf16, #tpu.memory_space<vmem>>, %arg17: memref<1x128xf32, #tpu.memory_space<vmem>>, %arg18: memref<160x128xbf16, #tpu.memory_space<vmem>>, %arg19: memref<1x128xf32, #tpu.memory_space<vmem>>, %arg20: memref<32x4xbf16, #tpu.memory_space<vmem>>, %arg21: memref<1x4xf32, #tpu.memory_space<vmem>>, %arg22: memref<1x32xf32, #tpu.memory_space<vmem>>, %arg23: memref<1x32xf32, #tpu.memory_space<vmem>>, %arg24: memref<1x4xf32, #tpu.memory_space<vmem>>, %arg25: memref<1x32xf32, #tpu.memory_space<vmem>>, %arg26: memref<1x32xf32, #tpu.memory_space<vmem>>, %arg27: memref<82x246xbf16, #tpu.memory_space<vmem>>, %arg28: memref<42x336xbf16, #tpu.memory_space<vmem>>, %arg29: memref<22x176xbf16, #tpu.memory_space<vmem>>) attributes {dimension_semantics = [#tpu.dimension_semantics<arbitrary>], iteration_bounds = array<i64: 1>, scalar_prefetch = 0 : i64, scratch_operands = 3 : i64, tpu.core_type = #tpu.core_type<tc>, window_params = [{pipeline_mode = #tpu.pipeline_mode<synchronous>, transform_indices = @transform_0, window_bounds = array<i64: 20, 60>}, {pipeline_mode = #tpu.pipeline_mode<synchronous>, transform_indices = @transform_1, window_bounds = array<i64: 82, 20>}, {pipeline_mode = #tpu.pipeline_mode<synchronous>, transform_indices = @transform_2, window_bounds = array<i64: 60, 246>}, {pipeline_mode = #tpu.pipeline_mode<synchronous>, transform_indices = @transform_3, window_bounds = array<i64: 3, 246, 640>}, {pipeline_mode = #tpu.pipeline_mode<synchronous>, transform_indices = @transform_4, window_bounds = array<i64: 1, 640>}, {pipeline_mode = #tpu.pipeline_mode<synchronous>, transform_indices = @transform_5, window_bounds = array<i64: 42, 79>}, {pipeline_mode = #tpu.pipeline_mode<synchronous>, transform_indices = @transform_6, window_bounds = array<i64: 632, 336>}, {pipeline_mode = #tpu.pipeline_mode<synchronous>, transform_indices = @transform_7, window_bounds = array<i64: 3, 336, 320>}, {pipeline_mode = #tpu.pipeline_mode<synchronous>, transform_indices = @transform_8, window_bounds = array<i64: 1, 320>}, {pipeline_mode = #tpu.pipeline_mode<synchronous>, transform_indices = @transform_9, window_bounds = array<i64: 22, 39>}, {pipeline_mode = #tpu.pipeline_mode<synchronous>, transform_indices = @transform_10, window_bounds = array<i64: 312, 176>}, {pipeline_mode = #tpu.pipeline_mode<synchronous>, transform_indices = @transform_11, window_bounds = array<i64: 3, 176, 160>}, {pipeline_mode = #tpu.pipeline_mode<synchronous>, transform_indices = @transform_12, window_bounds = array<i64: 1, 160>}, {pipeline_mode = #tpu.pipeline_mode<synchronous>, transform_indices = @transform_13, window_bounds = array<i64: 10, 19>}, {pipeline_mode = #tpu.pipeline_mode<synchronous>, transform_indices = @transform_14, window_bounds = array<i64: 152, 80>}, {pipeline_mode = #tpu.pipeline_mode<synchronous>, transform_indices = @transform_15, window_bounds = array<i64: 10, 80, 128>}, {pipeline_mode = #tpu.pipeline_mode<synchronous>, transform_indices = @transform_16, window_bounds = array<i64: 1, 128>}, {pipeline_mode = #tpu.pipeline_mode<synchronous>, transform_indices = @transform_17, window_bounds = array<i64: 160, 128>}, {pipeline_mode = #tpu.pipeline_mode<synchronous>, transform_indices = @transform_18, window_bounds = array<i64: 1, 128>}, {pipeline_mode = #tpu.pipeline_mode<synchronous>, transform_indices = @transform_19, window_bounds = array<i64: 32, 4>}, {pipeline_mode = #tpu.pipeline_mode<synchronous>, transform_indices = @transform_20, window_bounds = array<i64: 1, 4>}, {pipeline_mode = #tpu.pipeline_mode<synchronous>, transform_indices = @transform_21, window_bounds = array<i64: 1, 32>}, {pipeline_mode = #tpu.pipeline_mode<synchronous>, transform_indices = @transform_22, window_bounds = array<i64: 1, 32>}, {pipeline_mode = #tpu.pipeline_mode<synchronous>, transform_indices = @transform_23, window_bounds = array<i64: 1, 4>}, {pipeline_mode = #tpu.pipeline_mode<synchronous>, transform_indices = @transform_24, window_bounds = array<i64: 1, 32>}, {pipeline_mode = #tpu.pipeline_mode<synchronous>, transform_indices = @transform_25, window_bounds = array<i64: 1, 32>}]} {
    %c0 = arith.constant 0 : index
    %c0_0 = arith.constant 0 : index
    %0 = vector.load %arg2[%c0, %c0_0] : memref<82x20xbf16, #tpu.memory_space<vmem>>, vector<82x20xbf16>
    %c0_1 = arith.constant 0 : index
    %c0_2 = arith.constant 0 : index
    %1 = vector.load %arg1[%c0_1, %c0_2] : memref<20x60xbf16, #tpu.memory_space<vmem>>, vector<20x60xbf16>
    %cst = arith.constant dense<0.000000e+00> : vector<82x60xf32>
    %2 = tpu.matmul %0, %1, %cst {dimension_numbers = #tpu.dot_dimension_numbers<[1], [0], [0], [1], [0, 0, 1, 1], [], []>} : vector<82x20xbf16>, vector<20x60xbf16>, vector<82x60xf32> -> vector<82x60xf32>
    %3 = arith.truncf %2 : vector<82x60xf32> to vector<82x60xbf16>
    %c0_3 = arith.constant 0 : index
    %c0_4 = arith.constant 0 : index
    %4 = vector.load %arg3[%c0_3, %c0_4] : memref<60x246xbf16, #tpu.memory_space<vmem>>, vector<60x246xbf16>
    %cst_5 = arith.constant dense<0.000000e+00> : vector<82x246xf32>
    %5 = tpu.matmul %3, %4, %cst_5 {dimension_numbers = #tpu.dot_dimension_numbers<[1], [0], [0], [1], [0, 0, 1, 1], [], []>} : vector<82x60xbf16>, vector<60x246xbf16>, vector<82x246xf32> -> vector<82x246xf32>
    %6 = arith.truncf %5 : vector<82x246xf32> to vector<82x246xbf16>
    %c0_6 = arith.constant 0 : index
    %c0_7 = arith.constant 0 : index
    %7 = vector.load %arg27[%c0_6, %c0_7] : memref<82x246xbf16, #tpu.memory_space<vmem>>, vector<82x246xbf16>
    tpu.vector_store %arg27[%c0_6, %c0_7], %6 {strides = array<i32>} : memref<82x246xbf16, #tpu.memory_space<vmem>>, vector<82x246xbf16>,
    %c0_8 = arith.constant 0 : index
    %c0_9 = arith.constant 0 : index
    %8 = vector.load %arg27[%c0_8, %c0_9] : memref<82x246xbf16, #tpu.memory_space<vmem>>, vector<80x246xbf16>
    %c0_10 = arith.constant 0 : index
    %c0_11 = arith.constant 0 : index
    %c0_12 = arith.constant 0 : index
    %9 = vector.load %arg4[%c0_10, %c0_11, %c0_12] : memref<3x246x640xbf16, #tpu.memory_space<vmem>>, vector<1x246x640xbf16>
    %10 = vector.shape_cast %9 : vector<1x246x640xbf16> to vector<246x640xbf16>
    %cst_13 = arith.constant dense<0.000000e+00> : vector<80x640xf32>
    %11 = tpu.matmul %8, %10, %cst_13 {dimension_numbers = #tpu.dot_dimension_numbers<[1], [0], [0], [1], [0, 0, 1, 1], [], []>} : vector<80x246xbf16>, vector<246x640xbf16>, vector<80x640xf32> -> vector<80x640xf32>
    %c1 = arith.constant 1 : index
    %c0_14 = arith.constant 0 : index
    %12 = vector.load %arg27[%c1, %c0_14] : memref<82x246xbf16, #tpu.memory_space<vmem>>, vector<80x246xbf16>
    %c1_15 = arith.constant 1 : index
    %c0_16 = arith.constant 0 : index
    %c0_17 = arith.constant 0 : index
    %13 = vector.load %arg4[%c1_15, %c0_16, %c0_17] : memref<3x246x640xbf16, #tpu.memory_space<vmem>>, vector<1x246x640xbf16>
    %14 = vector.shape_cast %13 : vector<1x246x640xbf16> to vector<246x640xbf16>
    %cst_18 = arith.constant dense<0.000000e+00> : vector<80x640xf32>
    %15 = tpu.matmul %12, %14, %cst_18 {dimension_numbers = #tpu.dot_dimension_numbers<[1], [0], [0], [1], [0, 0, 1, 1], [], []>} : vector<80x246xbf16>, vector<246x640xbf16>, vector<80x640xf32> -> vector<80x640xf32>
    %16 = arith.addf %11, %15 : vector<80x640xf32>
    %c2 = arith.constant 2 : index
    %c0_19 = arith.constant 0 : index
    %17 = vector.load %arg27[%c2, %c0_19] : memref<82x246xbf16, #tpu.memory_space<vmem>>, vector<80x246xbf16>
    %c2_20 = arith.constant 2 : index
    %c0_21 = arith.constant 0 : index
    %c0_22 = arith.constant 0 : index
    %18 = vector.load %arg4[%c2_20, %c0_21, %c0_22] : memref<3x246x640xbf16, #tpu.memory_space<vmem>>, vector<1x246x640xbf16>
    %19 = vector.shape_cast %18 : vector<1x246x640xbf16> to vector<246x640xbf16>
    %cst_23 = arith.constant dense<0.000000e+00> : vector<80x640xf32>
    %20 = tpu.matmul %17, %19, %cst_23 {dimension_numbers = #tpu.dot_dimension_numbers<[1], [0], [0], [1], [0, 0, 1, 1], [], []>} : vector<80x246xbf16>, vector<246x640xbf16>, vector<80x640xf32> -> vector<80x640xf32>
    %21 = arith.addf %16, %20 : vector<80x640xf32>
    %c0_24 = arith.constant 0 : index
    %c0_25 = arith.constant 0 : index
    %22 = vector.load %arg5[%c0_24, %c0_25] : memref<1x640xf32, #tpu.memory_space<vmem>>, vector<1x640xf32>
    %23 = vector.broadcast %22 : vector<1x640xf32> to vector<80x640xf32>
    %24 = arith.addf %21, %23 : vector<80x640xf32>
    %cst_26 = arith.constant 0.000000e+00 : f32
    %25 = vector.broadcast %cst_26 : f32 to vector<80x640xf32>
    %26 = arith.maximumf %24, %25 : vector<80x640xf32>
    %27 = vector.extract_strided_slice %26 {offsets = [0, 0], sizes = [79, 640], strides = [1, 1]} : vector<80x640xf32> to vector<79x640xf32>
    %28 = vector.extract_strided_slice %26 {offsets = [1, 0], sizes = [79, 640], strides = [1, 1]} : vector<80x640xf32> to vector<79x640xf32>
    %29 = arith.maximumf %27, %28 : vector<79x640xf32>
    %30 = vector.extract_strided_slice %29 {offsets = [0, 0], sizes = [79, 632], strides = [1, 1]} : vector<79x640xf32> to vector<79x632xf32>
    %31 = vector.extract_strided_slice %29 {offsets = [0, 8], sizes = [79, 632], strides = [1, 1]} : vector<79x640xf32> to vector<79x632xf32>
    %32 = arith.maximumf %30, %31 : vector<79x632xf32>
    %33 = arith.truncf %32 : vector<79x632xf32> to vector<79x632xbf16>
    %c0_27 = arith.constant 0 : index
    %c0_28 = arith.constant 0 : index
    %34 = vector.load %arg6[%c0_27, %c0_28] : memref<42x79xbf16, #tpu.memory_space<vmem>>, vector<42x79xbf16>
    %cst_29 = arith.constant dense<0.000000e+00> : vector<42x632xf32>
    %35 = tpu.matmul %34, %33, %cst_29 {dimension_numbers = #tpu.dot_dimension_numbers<[1], [0], [0], [1], [0, 0, 1, 1], [], []>} : vector<42x79xbf16>, vector<79x632xbf16>, vector<42x632xf32> -> vector<42x632xf32>
    %36 = arith.truncf %35 : vector<42x632xf32> to vector<42x632xbf16>
    %c0_30 = arith.constant 0 : index
    %c0_31 = arith.constant 0 : index
    %37 = vector.load %arg7[%c0_30, %c0_31] : memref<632x336xbf16, #tpu.memory_space<vmem>>, vector<632x336xbf16>
    %cst_32 = arith.constant dense<0.000000e+00> : vector<42x336xf32>
    %38 = tpu.matmul %36, %37, %cst_32 {dimension_numbers = #tpu.dot_dimension_numbers<[1], [0], [0], [1], [0, 0, 1, 1], [], []>} : vector<42x632xbf16>, vector<632x336xbf16>, vector<42x336xf32> -> vector<42x336xf32>
    %39 = arith.truncf %38 : vector<42x336xf32> to vector<42x336xbf16>
    %c0_33 = arith.constant 0 : index
    %c0_34 = arith.constant 0 : index
    %40 = vector.load %arg28[%c0_33, %c0_34] : memref<42x336xbf16, #tpu.memory_space<vmem>>, vector<42x336xbf16>
    tpu.vector_store %arg28[%c0_33, %c0_34], %39 {strides = array<i32>} : memref<42x336xbf16, #tpu.memory_space<vmem>>, vector<42x336xbf16>,
    %c0_35 = arith.constant 0 : index
    %c0_36 = arith.constant 0 : index
    %41 = vector.load %arg28[%c0_35, %c0_36] : memref<42x336xbf16, #tpu.memory_space<vmem>>, vector<40x336xbf16>
    %c0_37 = arith.constant 0 : index
    %c0_38 = arith.constant 0 : index
    %c0_39 = arith.constant 0 : index
    %42 = vector.load %arg8[%c0_37, %c0_38, %c0_39] : memref<3x336x320xbf16, #tpu.memory_space<vmem>>, vector<1x336x320xbf16>
    %43 = vector.shape_cast %42 : vector<1x336x320xbf16> to vector<336x320xbf16>
    %cst_40 = arith.constant dense<0.000000e+00> : vector<40x320xf32>
    %44 = tpu.matmul %41, %43, %cst_40 {dimension_numbers = #tpu.dot_dimension_numbers<[1], [0], [0], [1], [0, 0, 1, 1], [], []>} : vector<40x336xbf16>, vector<336x320xbf16>, vector<40x320xf32> -> vector<40x320xf32>
    %c1_41 = arith.constant 1 : index
    %c0_42 = arith.constant 0 : index
    %45 = vector.load %arg28[%c1_41, %c0_42] : memref<42x336xbf16, #tpu.memory_space<vmem>>, vector<40x336xbf16>
    %c1_43 = arith.constant 1 : index
    %c0_44 = arith.constant 0 : index
    %c0_45 = arith.constant 0 : index
    %46 = vector.load %arg8[%c1_43, %c0_44, %c0_45] : memref<3x336x320xbf16, #tpu.memory_space<vmem>>, vector<1x336x320xbf16>
    %47 = vector.shape_cast %46 : vector<1x336x320xbf16> to vector<336x320xbf16>
    %cst_46 = arith.constant dense<0.000000e+00> : vector<40x320xf32>
    %48 = tpu.matmul %45, %47, %cst_46 {dimension_numbers = #tpu.dot_dimension_numbers<[1], [0], [0], [1], [0, 0, 1, 1], [], []>} : vector<40x336xbf16>, vector<336x320xbf16>, vector<40x320xf32> -> vector<40x320xf32>
    %49 = arith.addf %44, %48 : vector<40x320xf32>
    %c2_47 = arith.constant 2 : index
    %c0_48 = arith.constant 0 : index
    %50 = vector.load %arg28[%c2_47, %c0_48] : memref<42x336xbf16, #tpu.memory_space<vmem>>, vector<40x336xbf16>
    %c2_49 = arith.constant 2 : index
    %c0_50 = arith.constant 0 : index
    %c0_51 = arith.constant 0 : index
    %51 = vector.load %arg8[%c2_49, %c0_50, %c0_51] : memref<3x336x320xbf16, #tpu.memory_space<vmem>>, vector<1x336x320xbf16>
    %52 = vector.shape_cast %51 : vector<1x336x320xbf16> to vector<336x320xbf16>
    %cst_52 = arith.constant dense<0.000000e+00> : vector<40x320xf32>
    %53 = tpu.matmul %50, %52, %cst_52 {dimension_numbers = #tpu.dot_dimension_numbers<[1], [0], [0], [1], [0, 0, 1, 1], [], []>} : vector<40x336xbf16>, vector<336x320xbf16>, vector<40x320xf32> -> vector<40x320xf32>
    %54 = arith.addf %49, %53 : vector<40x320xf32>
    %c0_53 = arith.constant 0 : index
    %c0_54 = arith.constant 0 : index
    %55 = vector.load %arg9[%c0_53, %c0_54] : memref<1x320xf32, #tpu.memory_space<vmem>>, vector<1x320xf32>
    %56 = vector.broadcast %55 : vector<1x320xf32> to vector<40x320xf32>
    %57 = arith.addf %54, %56 : vector<40x320xf32>
    %cst_55 = arith.constant 0.000000e+00 : f32
    %58 = vector.broadcast %cst_55 : f32 to vector<40x320xf32>
    %59 = arith.maximumf %57, %58 : vector<40x320xf32>
    %60 = vector.extract_strided_slice %59 {offsets = [0, 0], sizes = [39, 320], strides = [1, 1]} : vector<40x320xf32> to vector<39x320xf32>
    %61 = vector.extract_strided_slice %59 {offsets = [1, 0], sizes = [39, 320], strides = [1, 1]} : vector<40x320xf32> to vector<39x320xf32>
    %62 = arith.maximumf %60, %61 : vector<39x320xf32>
    %63 = vector.extract_strided_slice %62 {offsets = [0, 0], sizes = [39, 312], strides = [1, 1]} : vector<39x320xf32> to vector<39x312xf32>
    %64 = vector.extract_strided_slice %62 {offsets = [0, 8], sizes = [39, 312], strides = [1, 1]} : vector<39x320xf32> to vector<39x312xf32>
    %65 = arith.maximumf %63, %64 : vector<39x312xf32>
    %66 = arith.truncf %65 : vector<39x312xf32> to vector<39x312xbf16>
    %c0_56 = arith.constant 0 : index
    %c0_57 = arith.constant 0 : index
    %67 = vector.load %arg10[%c0_56, %c0_57] : memref<22x39xbf16, #tpu.memory_space<vmem>>, vector<22x39xbf16>
    %cst_58 = arith.constant dense<0.000000e+00> : vector<22x312xf32>
    %68 = tpu.matmul %67, %66, %cst_58 {dimension_numbers = #tpu.dot_dimension_numbers<[1], [0], [0], [1], [0, 0, 1, 1], [], []>} : vector<22x39xbf16>, vector<39x312xbf16>, vector<22x312xf32> -> vector<22x312xf32>
    %69 = arith.truncf %68 : vector<22x312xf32> to vector<22x312xbf16>
    %c0_59 = arith.constant 0 : index
    %c0_60 = arith.constant 0 : index
    %70 = vector.load %arg11[%c0_59, %c0_60] : memref<312x176xbf16, #tpu.memory_space<vmem>>, vector<312x176xbf16>
    %cst_61 = arith.constant dense<0.000000e+00> : vector<22x176xf32>
    %71 = tpu.matmul %69, %70, %cst_61 {dimension_numbers = #tpu.dot_dimension_numbers<[1], [0], [0], [1], [0, 0, 1, 1], [], []>} : vector<22x312xbf16>, vector<312x176xbf16>, vector<22x176xf32> -> vector<22x176xf32>
    %72 = arith.truncf %71 : vector<22x176xf32> to vector<22x176xbf16>
    %c0_62 = arith.constant 0 : index
    %c0_63 = arith.constant 0 : index
    %73 = vector.load %arg29[%c0_62, %c0_63] : memref<22x176xbf16, #tpu.memory_space<vmem>>, vector<22x176xbf16>
    tpu.vector_store %arg29[%c0_62, %c0_63], %72 {strides = array<i32>} : memref<22x176xbf16, #tpu.memory_space<vmem>>, vector<22x176xbf16>,
    %c0_64 = arith.constant 0 : index
    %c0_65 = arith.constant 0 : index
    %74 = vector.load %arg29[%c0_64, %c0_65] : memref<22x176xbf16, #tpu.memory_space<vmem>>, vector<20x176xbf16>
    %c0_66 = arith.constant 0 : index
    %c0_67 = arith.constant 0 : index
    %c0_68 = arith.constant 0 : index
    %75 = vector.load %arg12[%c0_66, %c0_67, %c0_68] : memref<3x176x160xbf16, #tpu.memory_space<vmem>>, vector<1x176x160xbf16>
    %76 = vector.shape_cast %75 : vector<1x176x160xbf16> to vector<176x160xbf16>
    %cst_69 = arith.constant dense<0.000000e+00> : vector<20x160xf32>
    %77 = tpu.matmul %74, %76, %cst_69 {dimension_numbers = #tpu.dot_dimension_numbers<[1], [0], [0], [1], [0, 0, 1, 1], [], []>} : vector<20x176xbf16>, vector<176x160xbf16>, vector<20x160xf32> -> vector<20x160xf32>
    %c1_70 = arith.constant 1 : index
    %c0_71 = arith.constant 0 : index
    %78 = vector.load %arg29[%c1_70, %c0_71] : memref<22x176xbf16, #tpu.memory_space<vmem>>, vector<20x176xbf16>
    %c1_72 = arith.constant 1 : index
    %c0_73 = arith.constant 0 : index
    %c0_74 = arith.constant 0 : index
    %79 = vector.load %arg12[%c1_72, %c0_73, %c0_74] : memref<3x176x160xbf16, #tpu.memory_space<vmem>>, vector<1x176x160xbf16>
    %80 = vector.shape_cast %79 : vector<1x176x160xbf16> to vector<176x160xbf16>
    %cst_75 = arith.constant dense<0.000000e+00> : vector<20x160xf32>
    %81 = tpu.matmul %78, %80, %cst_75 {dimension_numbers = #tpu.dot_dimension_numbers<[1], [0], [0], [1], [0, 0, 1, 1], [], []>} : vector<20x176xbf16>, vector<176x160xbf16>, vector<20x160xf32> -> vector<20x160xf32>
    %82 = arith.addf %77, %81 : vector<20x160xf32>
    %c2_76 = arith.constant 2 : index
    %c0_77 = arith.constant 0 : index
    %83 = vector.load %arg29[%c2_76, %c0_77] : memref<22x176xbf16, #tpu.memory_space<vmem>>, vector<20x176xbf16>
    %c2_78 = arith.constant 2 : index
    %c0_79 = arith.constant 0 : index
    %c0_80 = arith.constant 0 : index
    %84 = vector.load %arg12[%c2_78, %c0_79, %c0_80] : memref<3x176x160xbf16, #tpu.memory_space<vmem>>, vector<1x176x160xbf16>
    %85 = vector.shape_cast %84 : vector<1x176x160xbf16> to vector<176x160xbf16>
    %cst_81 = arith.constant dense<0.000000e+00> : vector<20x160xf32>
    %86 = tpu.matmul %83, %85, %cst_81 {dimension_numbers = #tpu.dot_dimension_numbers<[1], [0], [0], [1], [0, 0, 1, 1], [], []>} : vector<20x176xbf16>, vector<176x160xbf16>, vector<20x160xf32> -> vector<20x160xf32>
    %87 = arith.addf %82, %86 : vector<20x160xf32>
    %c0_82 = arith.constant 0 : index
    %c0_83 = arith.constant 0 : index
    %88 = vector.load %arg13[%c0_82, %c0_83] : memref<1x160xf32, #tpu.memory_space<vmem>>, vector<1x160xf32>
    %89 = vector.broadcast %88 : vector<1x160xf32> to vector<20x160xf32>
    %90 = arith.addf %87, %89 : vector<20x160xf32>
    %cst_84 = arith.constant 0.000000e+00 : f32
    %91 = vector.broadcast %cst_84 : f32 to vector<20x160xf32>
    %92 = arith.maximumf %90, %91 : vector<20x160xf32>
    %93 = vector.extract_strided_slice %92 {offsets = [0, 0], sizes = [19, 160], strides = [1, 1]} : vector<20x160xf32> to vector<19x160xf32>
    %94 = vector.extract_strided_slice %92 {offsets = [1, 0], sizes = [19, 160], strides = [1, 1]} : vector<20x160xf32> to vector<19x160xf32>
    %95 = arith.maximumf %93, %94 : vector<19x160xf32>
    %96 = vector.extract_strided_slice %95 {offsets = [0, 0], sizes = [19, 152], strides = [1, 1]} : vector<19x160xf32> to vector<19x152xf32>
    %97 = vector.extract_strided_slice %95 {offsets = [0, 8], sizes = [19, 152], strides = [1, 1]} : vector<19x160xf32> to vector<19x152xf32>
    %98 = arith.maximumf %96, %97 : vector<19x152xf32>
    %99 = arith.truncf %98 : vector<19x152xf32> to vector<19x152xbf16>
    %c0_85 = arith.constant 0 : index
    %c0_86 = arith.constant 0 : index
    %100 = vector.load %arg14[%c0_85, %c0_86] : memref<10x19xbf16, #tpu.memory_space<vmem>>, vector<10x19xbf16>
    %cst_87 = arith.constant dense<0.000000e+00> : vector<10x152xf32>
    %101 = tpu.matmul %100, %99, %cst_87 {dimension_numbers = #tpu.dot_dimension_numbers<[1], [0], [0], [1], [0, 0, 1, 1], [], []>} : vector<10x19xbf16>, vector<19x152xbf16>, vector<10x152xf32> -> vector<10x152xf32>
    %102 = arith.truncf %101 : vector<10x152xf32> to vector<10x152xbf16>
    %c0_88 = arith.constant 0 : index
    %c0_89 = arith.constant 0 : index
    %103 = vector.load %arg15[%c0_88, %c0_89] : memref<152x80xbf16, #tpu.memory_space<vmem>>, vector<152x80xbf16>
    %cst_90 = arith.constant dense<0.000000e+00> : vector<10x80xf32>
    %104 = tpu.matmul %102, %103, %cst_90 {dimension_numbers = #tpu.dot_dimension_numbers<[1], [0], [0], [1], [0, 0, 1, 1], [], []>} : vector<10x152xbf16>, vector<152x80xbf16>, vector<10x80xf32> -> vector<10x80xf32>
    %105 = arith.truncf %104 : vector<10x80xf32> to vector<10x80xbf16>
    %106 = vector.extract_strided_slice %105 {offsets = [0, 0], sizes = [1, 80], strides = [1, 1]} : vector<10x80xbf16> to vector<1x80xbf16>
    %c0_91 = arith.constant 0 : index
    %c0_92 = arith.constant 0 : index
    %c0_93 = arith.constant 0 : index
    %107 = vector.load %arg16[%c0_91, %c0_92, %c0_93] : memref<10x80x128xbf16, #tpu.memory_space<vmem>>, vector<1x80x128xbf16>
    %108 = vector.shape_cast %107 : vector<1x80x128xbf16> to vector<80x128xbf16>
    %cst_94 = arith.constant dense<0.000000e+00> : vector<1x128xf32>
    %109 = tpu.matmul %106, %108, %cst_94 {dimension_numbers = #tpu.dot_dimension_numbers<[1], [0], [0], [1], [0, 0, 1, 1], [], []>} : vector<1x80xbf16>, vector<80x128xbf16>, vector<1x128xf32> -> vector<1x128xf32>
    %110 = vector.extract_strided_slice %105 {offsets = [1, 0], sizes = [1, 80], strides = [1, 1]} : vector<10x80xbf16> to vector<1x80xbf16>
    %c1_95 = arith.constant 1 : index
    %c0_96 = arith.constant 0 : index
    %c0_97 = arith.constant 0 : index
    %111 = vector.load %arg16[%c1_95, %c0_96, %c0_97] : memref<10x80x128xbf16, #tpu.memory_space<vmem>>, vector<1x80x128xbf16>
    %112 = vector.shape_cast %111 : vector<1x80x128xbf16> to vector<80x128xbf16>
    %cst_98 = arith.constant dense<0.000000e+00> : vector<1x128xf32>
    %113 = tpu.matmul %110, %112, %cst_98 {dimension_numbers = #tpu.dot_dimension_numbers<[1], [0], [0], [1], [0, 0, 1, 1], [], []>} : vector<1x80xbf16>, vector<80x128xbf16>, vector<1x128xf32> -> vector<1x128xf32>
    %114 = vector.extract_strided_slice %105 {offsets = [2, 0], sizes = [1, 80], strides = [1, 1]} : vector<10x80xbf16> to vector<1x80xbf16>
    %c2_99 = arith.constant 2 : index
    %c0_100 = arith.constant 0 : index
    %c0_101 = arith.constant 0 : index
    %115 = vector.load %arg16[%c2_99, %c0_100, %c0_101] : memref<10x80x128xbf16, #tpu.memory_space<vmem>>, vector<1x80x128xbf16>
    %116 = vector.shape_cast %115 : vector<1x80x128xbf16> to vector<80x128xbf16>
    %cst_102 = arith.constant dense<0.000000e+00> : vector<1x128xf32>
    %117 = tpu.matmul %114, %116, %cst_102 {dimension_numbers = #tpu.dot_dimension_numbers<[1], [0], [0], [1], [0, 0, 1, 1], [], []>} : vector<1x80xbf16>, vector<80x128xbf16>, vector<1x128xf32> -> vector<1x128xf32>
    %118 = vector.extract_strided_slice %105 {offsets = [3, 0], sizes = [1, 80], strides = [1, 1]} : vector<10x80xbf16> to vector<1x80xbf16>
    %c3 = arith.constant 3 : index
    %c0_103 = arith.constant 0 : index
    %c0_104 = arith.constant 0 : index
    %119 = vector.load %arg16[%c3, %c0_103, %c0_104] : memref<10x80x128xbf16, #tpu.memory_space<vmem>>, vector<1x80x128xbf16>
    %120 = vector.shape_cast %119 : vector<1x80x128xbf16> to vector<80x128xbf16>
    %cst_105 = arith.constant dense<0.000000e+00> : vector<1x128xf32>
    %121 = tpu.matmul %118, %120, %cst_105 {dimension_numbers = #tpu.dot_dimension_numbers<[1], [0], [0], [1], [0, 0, 1, 1], [], []>} : vector<1x80xbf16>, vector<80x128xbf16>, vector<1x128xf32> -> vector<1x128xf32>
    %122 = vector.extract_strided_slice %105 {offsets = [4, 0], sizes = [1, 80], strides = [1, 1]} : vector<10x80xbf16> to vector<1x80xbf16>
    %c4 = arith.constant 4 : index
    %c0_106 = arith.constant 0 : index
    %c0_107 = arith.constant 0 : index
    %123 = vector.load %arg16[%c4, %c0_106, %c0_107] : memref<10x80x128xbf16, #tpu.memory_space<vmem>>, vector<1x80x128xbf16>
    %124 = vector.shape_cast %123 : vector<1x80x128xbf16> to vector<80x128xbf16>
    %cst_108 = arith.constant dense<0.000000e+00> : vector<1x128xf32>
    %125 = tpu.matmul %122, %124, %cst_108 {dimension_numbers = #tpu.dot_dimension_numbers<[1], [0], [0], [1], [0, 0, 1, 1], [], []>} : vector<1x80xbf16>, vector<80x128xbf16>, vector<1x128xf32> -> vector<1x128xf32>
    %126 = vector.extract_strided_slice %105 {offsets = [5, 0], sizes = [1, 80], strides = [1, 1]} : vector<10x80xbf16> to vector<1x80xbf16>
    %c5 = arith.constant 5 : index
    %c0_109 = arith.constant 0 : index
    %c0_110 = arith.constant 0 : index
    %127 = vector.load %arg16[%c5, %c0_109, %c0_110] : memref<10x80x128xbf16, #tpu.memory_space<vmem>>, vector<1x80x128xbf16>
    %128 = vector.shape_cast %127 : vector<1x80x128xbf16> to vector<80x128xbf16>
    %cst_111 = arith.constant dense<0.000000e+00> : vector<1x128xf32>
    %129 = tpu.matmul %126, %128, %cst_111 {dimension_numbers = #tpu.dot_dimension_numbers<[1], [0], [0], [1], [0, 0, 1, 1], [], []>} : vector<1x80xbf16>, vector<80x128xbf16>, vector<1x128xf32> -> vector<1x128xf32>
    %130 = vector.extract_strided_slice %105 {offsets = [6, 0], sizes = [1, 80], strides = [1, 1]} : vector<10x80xbf16> to vector<1x80xbf16>
    %c6 = arith.constant 6 : index
    %c0_112 = arith.constant 0 : index
    %c0_113 = arith.constant 0 : index
    %131 = vector.load %arg16[%c6, %c0_112, %c0_113] : memref<10x80x128xbf16, #tpu.memory_space<vmem>>, vector<1x80x128xbf16>
    %132 = vector.shape_cast %131 : vector<1x80x128xbf16> to vector<80x128xbf16>
    %cst_114 = arith.constant dense<0.000000e+00> : vector<1x128xf32>
    %133 = tpu.matmul %130, %132, %cst_114 {dimension_numbers = #tpu.dot_dimension_numbers<[1], [0], [0], [1], [0, 0, 1, 1], [], []>} : vector<1x80xbf16>, vector<80x128xbf16>, vector<1x128xf32> -> vector<1x128xf32>
    %134 = vector.extract_strided_slice %105 {offsets = [7, 0], sizes = [1, 80], strides = [1, 1]} : vector<10x80xbf16> to vector<1x80xbf16>
    %c7 = arith.constant 7 : index
    %c0_115 = arith.constant 0 : index
    %c0_116 = arith.constant 0 : index
    %135 = vector.load %arg16[%c7, %c0_115, %c0_116] : memref<10x80x128xbf16, #tpu.memory_space<vmem>>, vector<1x80x128xbf16>
    %136 = vector.shape_cast %135 : vector<1x80x128xbf16> to vector<80x128xbf16>
    %cst_117 = arith.constant dense<0.000000e+00> : vector<1x128xf32>
    %137 = tpu.matmul %134, %136, %cst_117 {dimension_numbers = #tpu.dot_dimension_numbers<[1], [0], [0], [1], [0, 0, 1, 1], [], []>} : vector<1x80xbf16>, vector<80x128xbf16>, vector<1x128xf32> -> vector<1x128xf32>
    %138 = vector.extract_strided_slice %105 {offsets = [8, 0], sizes = [1, 80], strides = [1, 1]} : vector<10x80xbf16> to vector<1x80xbf16>
    %c8 = arith.constant 8 : index
    %c0_118 = arith.constant 0 : index
    %c0_119 = arith.constant 0 : index
    %139 = vector.load %arg16[%c8, %c0_118, %c0_119] : memref<10x80x128xbf16, #tpu.memory_space<vmem>>, vector<1x80x128xbf16>
    %140 = vector.shape_cast %139 : vector<1x80x128xbf16> to vector<80x128xbf16>
    %cst_120 = arith.constant dense<0.000000e+00> : vector<1x128xf32>
    %141 = tpu.matmul %138, %140, %cst_120 {dimension_numbers = #tpu.dot_dimension_numbers<[1], [0], [0], [1], [0, 0, 1, 1], [], []>} : vector<1x80xbf16>, vector<80x128xbf16>, vector<1x128xf32> -> vector<1x128xf32>
    %142 = vector.extract_strided_slice %105 {offsets = [9, 0], sizes = [1, 80], strides = [1, 1]} : vector<10x80xbf16> to vector<1x80xbf16>
    %c9 = arith.constant 9 : index
    %c0_121 = arith.constant 0 : index
    %c0_122 = arith.constant 0 : index
    %143 = vector.load %arg16[%c9, %c0_121, %c0_122] : memref<10x80x128xbf16, #tpu.memory_space<vmem>>, vector<1x80x128xbf16>
    %144 = vector.shape_cast %143 : vector<1x80x128xbf16> to vector<80x128xbf16>
    %cst_123 = arith.constant dense<0.000000e+00> : vector<1x128xf32>
    %145 = tpu.matmul %142, %144, %cst_123 {dimension_numbers = #tpu.dot_dimension_numbers<[1], [0], [0], [1], [0, 0, 1, 1], [], []>} : vector<1x80xbf16>, vector<80x128xbf16>, vector<1x128xf32> -> vector<1x128xf32>
    %146 = arith.addf %109, %113 : vector<1x128xf32>
    %147 = arith.addf %117, %121 : vector<1x128xf32>
    %148 = arith.addf %125, %129 : vector<1x128xf32>
    %149 = arith.addf %133, %137 : vector<1x128xf32>
    %150 = arith.addf %141, %145 : vector<1x128xf32>
    %151 = arith.addf %146, %147 : vector<1x128xf32>
    %152 = arith.addf %148, %149 : vector<1x128xf32>
    %153 = arith.addf %151, %152 : vector<1x128xf32>
    %154 = arith.addf %153, %150 : vector<1x128xf32>
    %c0_124 = arith.constant 0 : index
    %c0_125 = arith.constant 0 : index
    %155 = vector.load %arg17[%c0_124, %c0_125] : memref<1x128xf32, #tpu.memory_space<vmem>>, vector<1x128xf32>
    %156 = arith.addf %154, %155 : vector<1x128xf32>
    %cst_126 = arith.constant 0.000000e+00 : f32
    %157 = vector.broadcast %cst_126 : f32 to vector<1x128xf32>
    %158 = arith.maximumf %156, %157 : vector<1x128xf32>
    %c0_127 = arith.constant 0 : index
    %c0_128 = arith.constant 0 : index
    %159 = vector.load %arg22[%c0_127, %c0_128] : memref<1x32xf32, #tpu.memory_space<vmem>>, vector<1x32xf32>
    %160 = tpu.concatenate %158, %159 in 1 : vector<1x128xf32>, vector<1x32xf32> -> vector<1x160xf32>
    %161 = arith.truncf %160 : vector<1x160xf32> to vector<1x160xbf16>
    %c0_129 = arith.constant 0 : index
    %c0_130 = arith.constant 0 : index
    %162 = vector.load %arg18[%c0_129, %c0_130] : memref<160x128xbf16, #tpu.memory_space<vmem>>, vector<160x128xbf16>
    %cst_131 = arith.constant dense<0.000000e+00> : vector<1x128xf32>
    %163 = tpu.matmul %161, %162, %cst_131 {dimension_numbers = #tpu.dot_dimension_numbers<[1], [0], [0], [1], [0, 0, 1, 1], [], []>} : vector<1x160xbf16>, vector<160x128xbf16>, vector<1x128xf32> -> vector<1x128xf32>
    %c0_132 = arith.constant 0 : index
    %c0_133 = arith.constant 0 : index
    %164 = vector.load %arg19[%c0_132, %c0_133] : memref<1x128xf32, #tpu.memory_space<vmem>>, vector<1x128xf32>
    %165 = arith.addf %163, %164 : vector<1x128xf32>
    %166 = vector.extract_strided_slice %165 {offsets = [0, 0], sizes = [1, 32], strides = [1, 1]} : vector<1x128xf32> to vector<1x32xf32>
    %167 = arith.negf %166 : vector<1x32xf32>
    %168 = math.exp %167 : vector<1x32xf32>
    %cst_134 = arith.constant 1.000000e+00 : f32
    %169 = vector.broadcast %cst_134 : f32 to vector<1x32xf32>
    %170 = arith.addf %169, %168 : vector<1x32xf32>
    %171 = arith.divf %169, %170 : vector<1x32xf32>
    %172 = vector.extract_strided_slice %165 {offsets = [0, 32], sizes = [1, 32], strides = [1, 1]} : vector<1x128xf32> to vector<1x32xf32>
    %173 = arith.negf %172 : vector<1x32xf32>
    %174 = math.exp %173 : vector<1x32xf32>
    %cst_135 = arith.constant 1.000000e+00 : f32
    %175 = vector.broadcast %cst_135 : f32 to vector<1x32xf32>
    %176 = arith.addf %175, %174 : vector<1x32xf32>
    %177 = arith.divf %175, %176 : vector<1x32xf32>
    %178 = vector.extract_strided_slice %165 {offsets = [0, 64], sizes = [1, 32], strides = [1, 1]} : vector<1x128xf32> to vector<1x32xf32>
    %179 = math.tanh %178 : vector<1x32xf32>
    %180 = vector.extract_strided_slice %165 {offsets = [0, 96], sizes = [1, 32], strides = [1, 1]} : vector<1x128xf32> to vector<1x32xf32>
    %181 = arith.negf %180 : vector<1x32xf32>
    %182 = math.exp %181 : vector<1x32xf32>
    %cst_136 = arith.constant 1.000000e+00 : f32
    %183 = vector.broadcast %cst_136 : f32 to vector<1x32xf32>
    %184 = arith.addf %183, %182 : vector<1x32xf32>
    %185 = arith.divf %183, %184 : vector<1x32xf32>
    %c0_137 = arith.constant 0 : index
    %c0_138 = arith.constant 0 : index
    %186 = vector.load %arg23[%c0_137, %c0_138] : memref<1x32xf32, #tpu.memory_space<vmem>>, vector<1x32xf32>
    %187 = arith.mulf %177, %186 : vector<1x32xf32>
    %188 = arith.mulf %171, %179 : vector<1x32xf32>
    %189 = arith.addf %187, %188 : vector<1x32xf32>
    %190 = math.tanh %189 : vector<1x32xf32>
    %191 = arith.mulf %185, %190 : vector<1x32xf32>
    %c0_139 = arith.constant 0 : index
    %c0_140 = arith.constant 0 : index
    %192 = vector.load %arg26[%c0_139, %c0_140] : memref<1x32xf32, #tpu.memory_space<vmem>>, vector<1x32xf32>
    tpu.vector_store %arg26[%c0_139, %c0_140], %189 {strides = array<i32>} : memref<1x32xf32, #tpu.memory_space<vmem>>, vector<1x32xf32>,
    %c0_141 = arith.constant 0 : index
    %c0_142 = arith.constant 0 : index
    %193 = vector.load %arg25[%c0_141, %c0_142] : memref<1x32xf32, #tpu.memory_space<vmem>>, vector<1x32xf32>
    tpu.vector_store %arg25[%c0_141, %c0_142], %191 {strides = array<i32>} : memref<1x32xf32, #tpu.memory_space<vmem>>, vector<1x32xf32>,
    %194 = arith.truncf %191 : vector<1x32xf32> to vector<1x32xbf16>
    %c0_143 = arith.constant 0 : index
    %c0_144 = arith.constant 0 : index
    %195 = vector.load %arg20[%c0_143, %c0_144] : memref<32x4xbf16, #tpu.memory_space<vmem>>, vector<32x4xbf16>
    %cst_145 = arith.constant dense<0.000000e+00> : vector<1x4xf32>
    %196 = tpu.matmul %194, %195, %cst_145 {dimension_numbers = #tpu.dot_dimension_numbers<[1], [0], [0], [1], [0, 0, 1, 1], [], []>} : vector<1x32xbf16>, vector<32x4xbf16>, vector<1x4xf32> -> vector<1x4xf32>
    %c0_146 = arith.constant 0 : index
    %c0_147 = arith.constant 0 : index
    %197 = vector.load %arg21[%c0_146, %c0_147] : memref<1x4xf32, #tpu.memory_space<vmem>>, vector<1x4xf32>
    %198 = arith.addf %196, %197 : vector<1x4xf32>
    %c0_148 = arith.constant 0 : index
    %c0_149 = arith.constant 0 : index
    %199 = vector.load %arg24[%c0_148, %c0_149] : memref<1x4xf32, #tpu.memory_space<vmem>>, vector<1x4xf32>
    tpu.vector_store %arg24[%c0_148, %c0_149], %198 {strides = array<i32>} : memref<1x4xf32, #tpu.memory_space<vmem>>, vector<1x4xf32>,
    return
  }
  func.func @transform_0(%arg0: i32) -> (i32, i32) {
    %c0_i32 = arith.constant 0 : i32
    %c0_i32_0 = arith.constant 0 : i32
    %c0_i32_1 = arith.constant 0 : i32
    return %c0_i32, %c0_i32_0 : i32, i32
  }
  func.func @transform_1(%arg0: i32) -> (i32, i32) {
    %c0_i32 = arith.constant 0 : i32
    %c0_i32_0 = arith.constant 0 : i32
    %c0_i32_1 = arith.constant 0 : i32
    return %c0_i32, %c0_i32_0 : i32, i32
  }
  func.func @transform_2(%arg0: i32) -> (i32, i32) {
    %c0_i32 = arith.constant 0 : i32
    %c0_i32_0 = arith.constant 0 : i32
    %c0_i32_1 = arith.constant 0 : i32
    return %c0_i32, %c0_i32_0 : i32, i32
  }
  func.func @transform_3(%arg0: i32) -> (i32, i32, i32) {
    %c0_i32 = arith.constant 0 : i32
    %c0_i32_0 = arith.constant 0 : i32
    %c0_i32_1 = arith.constant 0 : i32
    %c0_i32_2 = arith.constant 0 : i32
    return %c0_i32, %c0_i32_0, %c0_i32_1 : i32, i32, i32
  }
  func.func @transform_4(%arg0: i32) -> (i32, i32) {
    %c0_i32 = arith.constant 0 : i32
    %c0_i32_0 = arith.constant 0 : i32
    %c0_i32_1 = arith.constant 0 : i32
    return %c0_i32, %c0_i32_0 : i32, i32
  }
  func.func @transform_5(%arg0: i32) -> (i32, i32) {
    %c0_i32 = arith.constant 0 : i32
    %c0_i32_0 = arith.constant 0 : i32
    %c0_i32_1 = arith.constant 0 : i32
    return %c0_i32, %c0_i32_0 : i32, i32
  }
  func.func @transform_6(%arg0: i32) -> (i32, i32) {
    %c0_i32 = arith.constant 0 : i32
    %c0_i32_0 = arith.constant 0 : i32
    %c0_i32_1 = arith.constant 0 : i32
    return %c0_i32, %c0_i32_0 : i32, i32
  }
  func.func @transform_7(%arg0: i32) -> (i32, i32, i32) {
    %c0_i32 = arith.constant 0 : i32
    %c0_i32_0 = arith.constant 0 : i32
    %c0_i32_1 = arith.constant 0 : i32
    %c0_i32_2 = arith.constant 0 : i32
    return %c0_i32, %c0_i32_0, %c0_i32_1 : i32, i32, i32
  }
  func.func @transform_8(%arg0: i32) -> (i32, i32) {
    %c0_i32 = arith.constant 0 : i32
    %c0_i32_0 = arith.constant 0 : i32
    %c0_i32_1 = arith.constant 0 : i32
    return %c0_i32, %c0_i32_0 : i32, i32
  }
  func.func @transform_9(%arg0: i32) -> (i32, i32) {
    %c0_i32 = arith.constant 0 : i32
    %c0_i32_0 = arith.constant 0 : i32
    %c0_i32_1 = arith.constant 0 : i32
    return %c0_i32, %c0_i32_0 : i32, i32
  }
  func.func @transform_10(%arg0: i32) -> (i32, i32) {
    %c0_i32 = arith.constant 0 : i32
    %c0_i32_0 = arith.constant 0 : i32
    %c0_i32_1 = arith.constant 0 : i32
    return %c0_i32, %c0_i32_0 : i32, i32
  }
  func.func @transform_11(%arg0: i32) -> (i32, i32, i32) {
    %c0_i32 = arith.constant 0 : i32
    %c0_i32_0 = arith.constant 0 : i32
    %c0_i32_1 = arith.constant 0 : i32
    %c0_i32_2 = arith.constant 0 : i32
    return %c0_i32, %c0_i32_0, %c0_i32_1 : i32, i32, i32
  }
  func.func @transform_12(%arg0: i32) -> (i32, i32) {
    %c0_i32 = arith.constant 0 : i32
    %c0_i32_0 = arith.constant 0 : i32
    %c0_i32_1 = arith.constant 0 : i32
    return %c0_i32, %c0_i32_0 : i32, i32
  }
  func.func @transform_13(%arg0: i32) -> (i32, i32) {
    %c0_i32 = arith.constant 0 : i32
    %c0_i32_0 = arith.constant 0 : i32
    %c0_i32_1 = arith.constant 0 : i32
    return %c0_i32, %c0_i32_0 : i32, i32
  }
  func.func @transform_14(%arg0: i32) -> (i32, i32) {
    %c0_i32 = arith.constant 0 : i32
    %c0_i32_0 = arith.constant 0 : i32
    %c0_i32_1 = arith.constant 0 : i32
    return %c0_i32, %c0_i32_0 : i32, i32
  }
  func.func @transform_15(%arg0: i32) -> (i32, i32, i32) {
    %c0_i32 = arith.constant 0 : i32
    %c0_i32_0 = arith.constant 0 : i32
    %c0_i32_1 = arith.constant 0 : i32
    %c0_i32_2 = arith.constant 0 : i32
    return %c0_i32, %c0_i32_0, %c0_i32_1 : i32, i32, i32
  }
  func.func @transform_16(%arg0: i32) -> (i32, i32) {
    %c0_i32 = arith.constant 0 : i32
    %c0_i32_0 = arith.constant 0 : i32
    %c0_i32_1 = arith.constant 0 : i32
    return %c0_i32, %c0_i32_0 : i32, i32
  }
  func.func @transform_17(%arg0: i32) -> (i32, i32) {
    %c0_i32 = arith.constant 0 : i32
    %c0_i32_0 = arith.constant 0 : i32
    %c0_i32_1 = arith.constant 0 : i32
    return %c0_i32, %c0_i32_0 : i32, i32
  }
  func.func @transform_18(%arg0: i32) -> (i32, i32) {
    %c0_i32 = arith.constant 0 : i32
    %c0_i32_0 = arith.constant 0 : i32
    %c0_i32_1 = arith.constant 0 : i32
    return %c0_i32, %c0_i32_0 : i32, i32
  }
  func.func @transform_19(%arg0: i32) -> (i32, i32) {
    %c0_i32 = arith.constant 0 : i32
    %c0_i32_0 = arith.constant 0 : i32
    %c0_i32_1 = arith.constant 0 : i32
    return %c0_i32, %c0_i32_0 : i32, i32
  }
  func.func @transform_20(%arg0: i32) -> (i32, i32) {
    %c0_i32 = arith.constant 0 : i32
    %c0_i32_0 = arith.constant 0 : i32
    %c0_i32_1 = arith.constant 0 : i32
    return %c0_i32, %c0_i32_0 : i32, i32
  }
  func.func @transform_21(%arg0: i32) -> (i32, i32) {
    %c0_i32 = arith.constant 0 : i32
    %c0_i32_0 = arith.constant 0 : i32
    %c0_i32_1 = arith.constant 0 : i32
    return %c0_i32, %c0_i32_0 : i32, i32
  }
  func.func @transform_22(%arg0: i32) -> (i32, i32) {
    %c0_i32 = arith.constant 0 : i32
    %c0_i32_0 = arith.constant 0 : i32
    %c0_i32_1 = arith.constant 0 : i32
    return %c0_i32, %c0_i32_0 : i32, i32
  }
  func.func @transform_23(%arg0: i32) -> (i32, i32) {
    %c0_i32 = arith.constant 0 : i32
    %c0_i32_0 = arith.constant 0 : i32
    %c0_i32_1 = arith.constant 0 : i32
    return %c0_i32, %c0_i32_0 : i32, i32
  }
  func.func @transform_24(%arg0: i32) -> (i32, i32) {
    %c0_i32 = arith.constant 0 : i32
    %c0_i32_0 = arith.constant 0 : i32
    %c0_i32_1 = arith.constant 0 : i32
    return %c0_i32, %c0_i32_0 : i32, i32
  }
  func.func @transform_25(%arg0: i32) -> (i32, i32) {
    %c0_i32 = arith.constant 0 : i32
    %c0_i32_0 = arith.constant 0 : i32
    %c0_i32_1 = arith.constant 0 : i32
    return %c0_i32, %c0_i32_0 : i32, i32
  }
}

</mosaic_0001>

<bundles_post_ra>
// kernel: forward.1
= control target key start
LH: loop header
LB: loop body
LE: loop exit
PB: predicated region body
PF: predicated region fallthrough
CT: control target
= control target key end

     0   :  { %s18203_s0 = inlined_call_operand.vmem [shape: bf16[20,60], index: 0, kind: input, shape index: {}]   ;;  %s18204_s1 = inlined_call_operand.vmem [shape: bf16[82,20], index: 1, kind: input, shape index: {}]   ;;  %s18205_s2 = inlined_call_operand.vmem [shape: bf16[60,246], index: 2, kind: input, shape index: {}]   ;;  %s18206_s3 = inlined_call_operand.vmem [shape: bf16[3,246,640], index: 3, kind: input, shape index: {}]   ;;  %s18207_s4 = inlined_call_operand.vmem [shape: f32[1,640], index: 4, kind: input, shape index: {}]   ;;  %s18208_s5 = inlined_call_operand.vmem [shape: bf16[42,79], index: 5, kind: input, shape index: {}]   ;;  %s18209_s6 = inlined_call_operand.vmem [shape: bf16[632,336], index: 6, kind: input, shape index: {}]   ;;  %s18210_s7 = inlined_call_operand.vmem [shape: bf16[3,336,320], index: 7, kind: input, shape index: {}]   ;;  %s18211_s8 = inlined_call_operand.vmem [shape: f32[1,320], index: 8, kind: input, shape index: {}]   ;;  %s18212_s9 = inlined_call_operand.vmem [shape: bf16[22,39], index: 9, kind: input, shape index: {}]   ;;  %s18213_s10 = inlined_call_operand.vmem [shape: bf16[312,176], index: 10, kind: input, shape index: {}]   ;;  %s18214_s11 = inlined_call_operand.vmem [shape: bf16[3,176,160], index: 11, kind: input, shape index: {}]   ;;  %s18215_s12 = inlined_call_operand.vmem [shape: f32[1,160], index: 12, kind: input, shape index: {}]   ;;  %s18216_s13 = inlined_call_operand.vmem [shape: bf16[10,19], index: 13, kind: input, shape index: {}]   ;;  %s18217_s14 = inlined_call_operand.vmem [shape: bf16[152,80], index: 14, kind: input, shape index: {}]   ;;  %s18218_s15 = inlined_call_operand.vmem [shape: bf16[10,80,128], index: 15, kind: input, shape index: {}]   ;;  %s18219_s16 = inlined_call_operand.vmem [shape: f32[1,128], index: 16, kind: input, shape index: {}]   ;;  %s18220_s17 = inlined_call_operand.vmem [shape: bf16[160,128], index: 17, kind: input, shape index: {}]   ;;  %s18221_s18 = inlined_call_operand.vmem [shape: f32[1,128], index: 18, kind: input, shape index: {}]   ;;  %s18222_s19 = inlined_call_operand.vmem [shape: bf16[32,4], index: 19, kind: input, shape index: {}]   ;;  %s18223_s20 = inlined_call_operand.vmem [shape: f32[1,4], index: 20, kind: input, shape index: {}]   ;;  %s18224_s21 = inlined_call_operand.vmem [shape: f32[1,32], index: 21, kind: input, shape index: {}, may-alias: {21,22}]   ;;  %s18225_s22 = inlined_call_operand.vmem [shape: f32[1,32], index: 22, kind: input, shape index: {}, may-alias: {21,22}]   ;;  %s18226_s23 = inlined_call_operand.hbm [shape: f32[1,4], index: 23, kind: output, shape index: {0}]   ;;  %s18227_s24 = inlined_call_operand.hbm [shape: f32[1,32], index: 24, kind: output, shape index: {1}]   ;;  %s18228_s25 = inlined_call_operand.hbm [shape: f32[1,32], index: 25, kind: output, shape index: {2}]  }
   0x1   :  { %18276 = sst [smem:[#allocation57_spill]] %s18203_s0 }
   0x2   :  { %18277 = sst [smem:[#allocation58_spill]] %s18204_s1 }
   0x3   :  { %18278 = sst [smem:[#allocation59_spill]] %s18205_s2 }
   0x4   :  { %18279 = sst [smem:[#allocation60_spill]] %s18206_s3 }
   0x5   :  { %18280 = sst [smem:[#allocation61_spill]] %s18207_s4 }
   0x6   :  { %18281 = sst [smem:[#allocation62_spill]] %s18208_s5 }
   0x7   :  { %18282 = sst [smem:[#allocation63_spill]] %s18209_s6 }
   0x8   :  { %18283 = sst [smem:[#allocation64_spill]] %s18210_s7 }
   0x9   :  { %18284 = sst [smem:[#allocation65_spill]] %s18211_s8 }
   0xa   :  { %18285 = sst [smem:[#allocation66_spill]] %s18212_s9 }
   0xb   :  { %31 = vsyncpa [#allocation6], 0  ;;  %s18286_s6 = sld [smem:[#allocation57_spill]]  ;;  %vm150_vm0 = vcmask 1041408   ;;  %vm131_vm1 = vcmask 162816   ;;  %vm305_vm2 = vcmask 1045504  }
   0xc   :  { %s18287_s1 = sld [smem:[#allocation58_spill]]  ;;  %v18237_v18 = vmov 0   ;;  %vm286_vm3 = vcmask 490496   ;;  %vm1244_vm4 = vcmask 1042432  }
   0xd   :  { %s18288_s0 = sld [smem:[#allocation59_spill]]  ;;  %344 = vmatprep.mubr.bf16.mxu1 %v18237_v18 }
   0xe   :  { %s18289_s27 = sld [smem:[#allocation60_spill]] }
  0x11   :  { %v12512_v0 = vld [vmem:[%s18286_s6 + $0x8] ss:$0 sps:$4 sm:$0x33]   ;;  %v12513_v1 = vld [vmem:[%s18286_s6] sm:$0xff]  }
  0x12   :  { %12322 = vmatprep.subr.msk.bf16.mxu0 %vm150_vm0, %v12512_v0  ;;  %v152_v2 = vsel %vm150_vm0, %v12512_v0, 0  ;;  %v12514_v3 = vld [vmem:[%s18287_s1] sm:$0xff]   ;;  %v12515_v4 = vld [vmem:[%s18287_s1 + $0x8] sm:$0xff]   ;;  %v12516_v5 = vld [vmem:[%s18287_s1 + $0x10] sm:$0xff]  }
  0x13   :  { %12033 = vmatpush3.bf16.msra.mxu0 %v152_v2  ;;  %12036 = vmatprep.mubr.msk.bf16.mxu0 %vm131_vm1, %v12514_v3  ;;  %v12520_v6 = vld [vmem:[%s18288_s0 + $0x34] ss:$8 sps:$4 sm:$0x3f]   ;;  %v12522_v7 = vld [vmem:[%s18288_s0 + $0x30] ss:$8 sps:$4 sm:$0x3f]  }
  0x14   :  { %12034 = vmatprep.subr.bf16.mxu0 %v12513_v1  ;;  %v12523_v8 = vld [vmem:[%s18288_s0 + $0x24] ss:$8 sps:$4 sm:$0xff]   ;;  %10174 = vmatprep.subr.msk.bf16.mxu1 %vm305_vm2, %v12520_v6  ;;  %v12525_v9 = vld [vmem:[%s18288_s0 + $0x20] ss:$8 sps:$4 sm:$0xff]   ;;  %v12517_v10 = vld [vmem:[%s18287_s1 + $0x18] sm:$0xff]   ;;  %v307_v11 = vsel %vm305_vm2, %v12522_v7, 0 }
  0x15   :  { %v12518_v12 = vld [vmem:[%s18287_s1 + $0x20] sm:$0xff]   ;;  %321 = vmatpush1.bf16.msra.mxu1 %v307_v11  ;;  %v12519_v13 = vld [vmem:[%s18287_s1 + $0x28] ss:$0 sps:$4 sm:$0x11]   ;;  %v12526_v14 = vld [vmem:[%s18288_s0 + $0x14] ss:$8 sps:$4 sm:$0xff]  }
  0x16   :  { %322 = vmatprep.subr.bf16.mxu1 %v12523_v8  ;;  %v12528_v15 = vld [vmem:[%s18288_s0 + $0x10] ss:$8 sps:$4 sm:$0xff]   ;;  %v12529_v16 = vld [vmem:[%s18288_s0 + $0x4] ss:$8 sps:$4 sm:$0xff]   ;;  %v12531_v17 = vld [vmem:[%s18288_s0] ss:$8 sps:$4 sm:$0xff]  }
  0x17   :  { %12035 = vmatpush3.bf16.msra.mxu0 %v12513_v1  ;;  %v12534_v19 = vld [vmem:[%s18289_s27 + $0x390] ss:$20 sps:$4 sm:$0xff]   ;;  %v12537_v21 = vld [vmem:[%s18289_s27 + $0x388] ss:$20 sps:$4 sm:$0xff]   ;;  %v12543_v22 = vld [vmem:[%s18289_s27 + $0x360] ss:$20 sps:$4 sm:$0xff]  }
  0x18   :  { %v12535_v20 = vld [vmem:[%s18289_s27 + $0x384] ss:$20 sps:$4 sm:$0xff]   ;;  %1260 = vmatprep.subr.bf16.mxu0 %v12537_v21  ;;  %v12541_v23 = vld [vmem:[%s18289_s27 + $0x35c] ss:$20 sps:$4 sm:$0xff]   ;;  %v12547_v25 = vld [vmem:[%s18289_s27 + $0x334] ss:$20 sps:$4 sm:$0xff]  }
  0x19   :  { %323 = vmatpush1.bf16.msra.mxu1 %v12525_v9  ;;  %v12549_v24 = vld [vmem:[%s18289_s27 + $0x338] ss:$20 sps:$4 sm:$0xff]   ;;  %v12555_v26 = vld [vmem:[%s18289_s27 + $0x310] ss:$20 sps:$4 sm:$0xff]   ;;  %v12561_v28 = vld [vmem:[%s18289_s27 + $0x2e8] ss:$20 sps:$4 sm:$0xff]  }
  0x1a   :  { %12037 = vmatmul.mubr.msk.bf16.vlgmr.msra.gmra.mxu0 %vm131_vm1, %v12515_v4  ;;  %324 = vmatprep.subr.bf16.mxu1 %v12526_v14  ;;  %v12553_v27 = vld [vmem:[%s18289_s27 + $0x30c] ss:$20 sps:$4 sm:$0xff]   ;;  %v12559_v29 = vld [vmem:[%s18289_s27 + $0x2e4] ss:$20 sps:$4 sm:$0xff]   ;;  %v12565_v31 = vld [vmem:[%s18289_s27 + $0x2bc] ss:$20 sps:$4 sm:$0xff]  }
  0x1b   :  { %12040 = vmatprep.mubr.msk.bf16.mxu0 %vm131_vm1, %v12516_v5  ;;  %1261 = vmatpush1.bf16.msra.mxu0 %v12535_v20  ;;  %v12567_v30 = vld [vmem:[%s18289_s27 + $0x2c0] ss:$20 sps:$4 sm:$0xff]   ;;  %v12573_v32 = vld [vmem:[%s18289_s27 + $0x298] ss:$20 sps:$4 sm:$0xff]   ;;  %v12579_v34 = vld [vmem:[%s18289_s27 + $0x270] ss:$20 sps:$4 sm:$0xff]  }
  0x1c   :  { %1262 = vmatprep.subr.bf16.mxu0 %v12543_v22  ;;  %v12571_v33 = vld [vmem:[%s18289_s27 + $0x294] ss:$20 sps:$4 sm:$0xff]   ;;  %v12577_v35 = vld [vmem:[%s18289_s27 + $0x26c] ss:$20 sps:$4 sm:$0xff]   ;;  %v12538_v44 = vld [vmem:[%s18289_s27 + $0x364] ss:$20 sps:$4 sm:$0xff]  }
  0x1d   :  { %325 = vmatpush1.bf16.msra.mxu1 %v12528_v15  ;;  %v12532_v39 = vld [vmem:[%s18289_s27 + $0x38c] ss:$20 sps:$4 sm:$0xff]   ;;  %v12540_v40 = vld [vmem:[%s18289_s27 + $0x368] ss:$20 sps:$4 sm:$0xff]   ;;  %v12558_v54 = vld [vmem:[%s18289_s27 + $0x2f0] ss:$20 sps:$4 sm:$0xff]  }
  0x1e   :  { %326 = vmatprep.subr.bf16.mxu1 %v12529_v16  ;;  %v12546_v45 = vld [vmem:[%s18289_s27 + $0x340] ss:$20 sps:$4 sm:$0xff]   ;;  %v12544_v48 = vld [vmem:[%s18289_s27 + $0x33c] ss:$20 sps:$4 sm:$0xff]   ;;  %v12552_v49 = vld [vmem:[%s18289_s27 + $0x318] ss:$20 sps:$4 sm:$0xff]  }
  0x1f   :  { %1263 = vmatpush1.bf16.msra.mxu0 %v12541_v23  ;;  %v12550_v53 = vld [vmem:[%s18289_s27 + $0x314] ss:$20 sps:$4 sm:$0xff]   ;;  %v12556_v57 = vld [vmem:[%s18289_s27 + $0x2ec] ss:$20 sps:$4 sm:$0xff]   ;;  %v12562_v60 = vld [vmem:[%s18289_s27 + $0x2c4] ss:$20 sps:$4 sm:$0xff]  }
  0x20   :  { %1264 = vmatprep.subr.bf16.mxu0 %v12549_v24  ;;  %v12564_v58 = vld [vmem:[%s18289_s27 + $0x2c8] ss:$20 sps:$4 sm:$0xff]   ;;  %v12570_v61 = vld [vmem:[%s18289_s27 + $0x2a0] ss:$20 sps:$4 sm:$0xff]   ;;  %v12576_v63 = vld [vmem:[%s18289_s27 + $0x278] ss:$20 sps:$4 sm:$0xff]  }
  0x21   :  { %327 = vmatpush1.bf16.msra.mxu1 %v12531_v17  ;;  %v12568_v62 = vld [vmem:[%s18289_s27 + $0x29c] ss:$20 sps:$4 sm:$0xff]   ;;  %v12574_v1 = vld [vmem:[%s18289_s27 + $0x274] ss:$20 sps:$4 sm:$0xff]   ;;  %v12583_v14 = vld [vmem:[%s18289_s27 + $0x4a4] ss:$20 sps:$4 sm:$0xff]  }
  0x22   :  { %12041 = vmatmul.mubr.msk.bf16.gmra.mxu0 %vm131_vm1, %v12517_v10  ;;  %1343 = vmatprep.subr.bf16.mxu1 %v12534_v19  ;;  %v10283_v5 = vld [vmem:[%s18289_s27 + $0x4cc] sm:$0x77]  ;;  %v10282_v7 = vld [vmem:[%s18289_s27 + $0x4c4] sm:$0x77]  ;;  %v12588_v15 = vld [vmem:[%s18289_s27 + $0x4a0] ss:$20 sps:$4 sm:$0xff]  }
  0x23   :  { %12044 = vmatprep.mubr.msk.bf16.mxu0 %vm131_vm1, %v12518_v12  ;;  %1265 = vmatpush1.bf16.msra.mxu0 %v12547_v25  ;;  %v10375_v6 = vcombine.high %v10283_v5, %v10283_v5  ;;  %v10374_v8 = vcombine.low %v10283_v5, %v10283_v5  ;;  %v10373_v9 = vcombine.high %v10282_v7, %v10282_v7  ;;  %v12586_v16 = vld [vmem:[%s18289_s27 + $0x49c] ss:$20 sps:$4 sm:$0xff]   ;;  %v12591_v17 = vld [vmem:[%s18289_s27 + $0x480] ss:$20 sps:$4 sm:$0xff]   ;;  %v12594_v20 = vld [vmem:[%s18289_s27 + $0x478] ss:$20 sps:$4 sm:$0xff]  }
  0x24   :  { %1266 = vmatprep.subr.bf16.mxu0 %v12555_v26  ;;  %v10372_v10 = vcombine.low %v10282_v7, %v10282_v7  ;;  %v12589_v19 = vld [vmem:[%s18289_s27 + $0x47c] ss:$20 sps:$4 sm:$0xff]   ;;  %v12592_v21 = vld [vmem:[%s18289_s27 + $0x474] ss:$20 sps:$4 sm:$0xff]   ;;  %v12597_v22 = vld [vmem:[%s18289_s27 + $0x458] ss:$20 sps:$4 sm:$0xff]  }
  0x25   :  { %v1252_v11 = vsel %vm1244_vm4, %v10374_v8, 0  ;;  %v12595_v23 = vld [vmem:[%s18289_s27 + $0x454] ss:$20 sps:$4 sm:$0xff]   ;;  %v12600_v24 = vld [vmem:[%s18289_s27 + $0x450] ss:$20 sps:$4 sm:$0xff]  }
  0x26   :  { %v1246_v12 = vsel %vm1244_vm4, %v10372_v10, 0  ;;  %v12598_v25 = vld [vmem:[%s18289_s27 + $0x44c] ss:$20 sps:$4 sm:$0xff]   ;;  %v12603_v26 = vld [vmem:[%s18289_s27 + $0x430] ss:$20 sps:$4 sm:$0xff]  }
  0x27   :  { %1267 = vmatpush1.bf16.msra.mxu0 %v12553_v27  ;;  %v12601_v27 = vld [vmem:[%s18289_s27 + $0x42c] ss:$20 sps:$4 sm:$0xff]  }
  0x28   :  { %1268 = vmatprep.subr.bf16.mxu0 %v12561_v28  ;;  %v12606_v28 = vld [vmem:[%s18289_s27 + $0x428] ss:$20 sps:$4 sm:$0xff]  }
  0x2a   :  { %12045 = vmatmul.mubr.msk.bf16.gmra.mxu0 %vm131_vm1, %v12519_v13  ;;  %v12585_v13 = vld [vmem:[%s18289_s27 + $0x4a8] ss:$20 sps:$4 sm:$0xff]  }
  0x2b   :  { %1269 = vmatpush1.bf16.msra.mxu0 %v12559_v29  ;;  %v12604_v29 = vld [vmem:[%s18289_s27 + $0x424] ss:$20 sps:$4 sm:$0xff]  }
  0x2c   :  { %1270 = vmatprep.subr.bf16.mxu0 %v12567_v30  ;;  %v12609_v30 = vld [vmem:[%s18289_s27 + $0x408] ss:$20 sps:$4 sm:$0xff]  }
  0x2f   :  { %1271 = vmatpush1.bf16.msra.mxu0 %v12565_v31  ;;  %v12607_v31 = vld [vmem:[%s18289_s27 + $0x404] ss:$20 sps:$4 sm:$0xff]  }
  0x30   :  { %1272 = vmatprep.subr.bf16.mxu0 %v12573_v32  ;;  %v12612_v32 = vld [vmem:[%s18289_s27 + $0x400] ss:$20 sps:$4 sm:$0xff]  }
  0x33   :  { %1273 = vmatpush1.bf16.msra.mxu0 %v12571_v33  ;;  %v12610_v33 = vld [vmem:[%s18289_s27 + $0x3fc] ss:$20 sps:$4 sm:$0xff]  }
  0x34   :  { %1274 = vmatprep.subr.bf16.mxu0 %v12579_v34  ;;  %v12615_v34 = vld [vmem:[%s18289_s27 + $0x3e0] ss:$20 sps:$4 sm:$0xff]  }
  0x37   :  { %1275 = vmatpush1.bf16.msra.mxu0 %v12577_v35  ;;  %v12613_v35 = vld [vmem:[%s18289_s27 + $0x3dc] ss:$20 sps:$4 sm:$0xff]  }
  0x38   :  { %10377 = vmatprep.subr.msk.bf16.mxu0 %vm1244_vm4, %v10373_v9 }
  0x3b   :  { %1277 = vmatpush2.bf16.msra.mxu0 %v1246_v12 }
  0x3c   :  { %1278 = vmatprep.subr.bf16.mxu0 %v12588_v15 }
  0x3f   :  { %1279 = vmatpush2.bf16.msra.mxu0 %v12586_v16 }
  0x40   :  { %1280 = vmatprep.subr.bf16.mxu0 %v12594_v20 }
  0x43   :  { %1281 = vmatpush2.bf16.msra.mxu0 %v12592_v21 }
  0x44   :  { %1282 = vmatprep.subr.bf16.mxu0 %v12600_v24 }
  0x47   :  { %1283 = vmatpush2.bf16.msra.mxu0 %v12598_v25 }
  0x48   :  { %1284 = vmatprep.subr.bf16.mxu0 %v12606_v28 }
  0x4b   :  { %1285 = vmatpush2.bf16.msra.mxu0 %v12604_v29 }
  0x4c   :  { %1286 = vmatprep.subr.bf16.mxu0 %v12612_v32 }
  0x4f   :  { %1287 = vmatpush2.bf16.msra.mxu0 %v12610_v33 }
  0xda   :  { %v12038_v36 = vpop.f32.mrf.mxu0 }
  0xdc   :  { %v188_v37 = vpop.f32.mrf.mxu0 }
  0xde   :  { %v12039_v38 = vpop.f32.mrf.mxu0 }
  0xdf   :  { %v235_v51 = vpack.c.bf16 %v12039_v38, %v12038_v36  ;;  %v12618_v36 = vld [vmem:[%s18289_s27 + $0x3d8] ss:$20 sps:$4 sm:$0xff]  }
  0xe0   :  { %v191_v41 = vpop.f32.mrf.mxu0  ;;  %1288 = vmatprep.subr.bf16.mxu0 %v12618_v36  ;;  %v12621_v38 = vld [vmem:[%s18289_s27 + $0x3b8] ss:$20 sps:$4 sm:$0xff]  }
  0xe1   :  { %v234_v42 = vpack.c.bf16 %v191_v41, %v188_v37  ;;  %v12616_v37 = vld [vmem:[%s18289_s27 + $0x3d4] ss:$20 sps:$4 sm:$0xff]   ;;  %v12622_v41 = vld [vmem:[%s18289_s27 + $0x3ac] ss:$20 sps:$4 sm:$0xff]  }
  0xe2   :  { %v12042_v43 = vpop.f32.mrf.mxu0  ;;  %1289 = vmatpush2.bf16.msra.mxu0 %v12616_v37 }
  0xe3   :  { %10175 = vmatmul.mubr.msk.bf16.vlgmr.msra.gmra.mxu1 %vm286_vm3, %v234_v42  ;;  %v12632_v42 = vld [vmem:[%s18289_s27 + $0x11c] ss:$20 sps:$4 sm:$0xff]  }
  0xe4   :  { %v204_v46 = vpop.f32.mrf.mxu0  ;;  %354 = vmatprep.mubr.bf16.mxu1 %v18237_v18  ;;  %1344 = vmatpush1.bf16.msra.mxu1 %v12532_v39  ;;  %v12619_v39 = vld [vmem:[%s18289_s27 + $0x3b4] ss:$20 sps:$4 sm:$0xff]  }
  0xe5   :  { %1345 = vmatprep.subr.bf16.mxu1 %v12540_v40  ;;  %v12624_v40 = vld [vmem:[%s18289_s27 + $0x3b0] ss:$20 sps:$4 sm:$0xff]  }
  0xe6   :  { %v12043_v47 = vpop.f32.mrf.mxu0  ;;  %1290 = vmatprep.subr.bf16.mxu0 %v12624_v40 }
  0xe7   :  { %v237_v0 = vpack.c.bf16 %v12043_v47, %v12042_v43  ;;  %1291 = vmatpush2.bf16.msra.mxu0 %v12622_v41  ;;  %v12638_v43 = vld [vmem:[%s18289_s27 + $0x4d4] ss:$0 sps:$4 sm:$0x77]  }
  0xe8   :  { %v207_v50 = vpop.f32.mrf.mxu0  ;;  %1346 = vmatpush1.bf16.msra.mxu1 %v12538_v44  ;;  %12323 = vmatprep.subr.msk.bf16.mxu0 %vm1244_vm4, %v12638_v43 }
  0xe9   :  { %1347 = vmatprep.subr.bf16.mxu1 %v12546_v45  ;;  %v236_v59 = vpack.c.bf16 %v207_v50, %v204_v46 }
  0xea   :  { %v12046_v52 = vpop.f32.mrf.mxu0 }
  0xeb   :  { %10176 = vmatmul.mubr.msk.bf16.gmra.mxu1 %vm286_vm3, %v235_v51  ;;  %v239_v4 = vpack.c.bf16 %v12046_v52, %v12046_v52 }
  0xec   :  { %364 = vmatprep.mubr.bf16.mxu1 %v18237_v18  ;;  %v220_v55 = vpop.f32.mrf.mxu0  ;;  %1348 = vmatpush1.bf16.msra.mxu1 %v12544_v48 }
  0xed   :  { %1349 = vmatprep.subr.bf16.mxu1 %v12552_v49 }
  0xee   :  { %v12047_v56 = vpop.f32.mrf.mxu0 }
  0xf0   :  { %1350 = vmatpush1.bf16.msra.mxu1 %v12550_v53  ;;  %v223_v2 = vpop.f32.mrf.mxu0 }
  0xf1   :  { %1351 = vmatprep.subr.bf16.mxu1 %v12558_v54  ;;  %v238_v3 = vpack.c.bf16 %v223_v2, %v220_v55 }
  0xf3   :  { %10177 = vmatmul.mubr.msk.bf16.gmra.mxu1 %vm286_vm3, %v236_v59 }
  0xf4   :  { %374 = vmatprep.mubr.bf16.mxu1 %v18237_v18  ;;  %1352 = vmatpush1.bf16.msra.mxu1 %v12556_v57 }
  0xf5   :  { %1353 = vmatprep.subr.bf16.mxu1 %v12564_v58 }
  0xf8   :  { %1354 = vmatpush1.bf16.msra.mxu1 %v12562_v60 }
  0xf9   :  { %1355 = vmatprep.subr.bf16.mxu1 %v12570_v61 }
  0xfb   :  { %10178 = vmatmul.mubr.msk.bf16.gmra.mxu1 %vm286_vm3, %v237_v0 }
  0xfc   :  { %384 = vmatprep.mubr.bf16.mxu1 %v18237_v18  ;;  %1356 = vmatpush1.bf16.msra.mxu1 %v12568_v62 }
  0xfd   :  { %1357 = vmatprep.subr.bf16.mxu1 %v12576_v63 }
 0x100   :  { %1358 = vmatpush1.bf16.msra.mxu1 %v12574_v1 }
 0x101   :  { %10383 = vmatprep.subr.msk.bf16.mxu1 %vm1244_vm4, %v10375_v6 }
 0x103   :  { %10179 = vmatmul.mubr.msk.bf16.gmra.mxu1 %vm286_vm3, %v238_v3 }
 0x104   :  { %394 = vmatprep.mubr.bf16.mxu1 %v18237_v18  ;;  %1360 = vmatpush2.bf16.msra.mxu1 %v1252_v11 }
 0x105   :  { %1361 = vmatprep.subr.bf16.mxu1 %v12585_v13 }
 0x108   :  { %1362 = vmatpush2.bf16.msra.mxu1 %v12583_v14 }
 0x109   :  { %1363 = vmatprep.subr.bf16.mxu1 %v12591_v17 }
 0x10b   :  { %10180 = vmatmul.mubr.msk.bf16.gmra.mxu1 %vm286_vm3, %v239_v4 }
 0x10c   :  { %1364 = vmatpush2.bf16.msra.mxu1 %v12589_v19 }
 0x10d   :  { %1365 = vmatprep.subr.bf16.mxu1 %v12597_v22 }
 0x110   :  { %1366 = vmatpush2.bf16.msra.mxu1 %v12595_v23 }
 0x111   :  { %1367 = vmatprep.subr.bf16.mxu1 %v12603_v26 }
 0x114   :  { %1368 = vmatpush2.bf16.msra.mxu1 %v12601_v27 }
 0x115   :  { %1369 = vmatprep.subr.bf16.mxu1 %v12609_v30 }
 0x118   :  { %1370 = vmatpush2.bf16.msra.mxu1 %v12607_v31 }
 0x119   :  { %1371 = vmatprep.subr.bf16.mxu1 %v12615_v34 }
 0x11c   :  { %1372 = vmatpush2.bf16.msra.mxu1 %v12613_v35 }
 0x11d   :  { %1373 = vmatprep.subr.bf16.mxu1 %v12621_v38 }
 0x120   :  { %1374 = vmatpush2.bf16.msra.mxu1 %v12619_v39 }
 0x121   :  { %1932 = vmatprep.subr.bf16.mxu1 %v12632_v42 }
 0x122   :  { %32 = vsyncpa [#allocation8], 0  ;;  %vm471_vm5 = vcmask 1043456   ;;  %vm472_vm6 = vcmask 965636   ;;  %vm731_vm8 = vsmask.f32 7424 }
 0x123   :  { %vm14022_vm7 = vmor %vm472_vm6, %vm471_vm5  ;;  %vm1228_vm9 = vcmask 965632   ;;  %v12630_v22 = vld [vmem:[%s18289_s27 + $0x118] ss:$20 sps:$4 sm:$0xff]   ;;  %v12643_v23 = vld [vmem:[%s18289_s27 + $0x394] ss:$20 sps:$4 sm:$0xff]   ;;  %vm484_vm10 = vcmask 1040384  }
 0x124   :  { %v12635_v27 = vld [vmem:[%s18289_s27 + $0xf4] ss:$20 sps:$4 sm:$0xff]   ;;  %v12644_v28 = vld [vmem:[%s18289_s27 + $0x4ac] ss:$20 sps:$4 sm:$0xff]   ;;  %v12633_v33 = vld [vmem:[%s18289_s27 + $0xf0] ss:$20 sps:$4 sm:$0xff]  }
 0x125   :  { %v12641_v34 = vld [vmem:[%s18289_s27 + $0xcc] ss:$20 sps:$4 sm:$0xff]   ;;  %v12651_v41 = vld [vmem:[%s18289_s27 + $0x484] ss:$20 sps:$4 sm:$0xff]   ;;  %vm485_vm11 = vcmask 962564   ;;  %vm2271_vm13 = vcmask 1046528  }
 0x126   :  { %v12648_v35 = vld [vmem:[%s18289_s27 + $0x36c] ss:$20 sps:$4 sm:$0xff]   ;;  %vm486_vm12 = vmor %vm485_vm11, %vm484_vm10  ;;  %s18327_s0 = sld [smem:[#allocation61_spill]]  ;;  %s13616_s2 = smov 120   ;;  %vm13618_vm14 = vmmov 0   ;;  %vm3544_vm15 = vcmask 982016  }
 0x127   :  { %vm3741_vm1 = vcmask 1047552   ;;  %s18438_s7 = sld [smem:[#allocation62_spill]]  ;;  %vm3731_vm2 = vcmask 646144   ;;  %vm5186_vm3 = vcmask 650240   ;;  %vm5197_vm6 = vcmask 647168   ;;  %s13620_s1 = smov 32  }
 0x128   :  { %s18456_s9 = sld [smem:[#allocation63_spill]]  ;;  %vm7951_vm11 = vcmask 457728   ;;  %s13622_s28 = smov 96  }
 0x129   :  { %s18460_s26 = sld [smem:[#allocation65_spill]] }
 0x12a   :  { %s18466_s4 = sld [smem:[#allocation66_spill]] }
 0x1a3   :  { %v346_v44 = vpop.f32.mrf.mxu1 }
 0x1a5   :  { %v348_v45 = vpop.f32.mrf.mxu1 }
 0x1a6   :  { %v11579_v47 = vpack.c.bf16 %v348_v45, %v346_v44 }
 0x1a7   :  { %v350_v48 = vpop.f32.mrf.mxu1 }
 0x1a8   :  { %474 = vst.msk [vmem:[#allocation2] sm:$0xff] %vm14022_vm7, %v11579_v47 }
 0x1a9   :  { %v352_v49 = vpop.f32.mrf.mxu1 }
 0x1aa   :  { %v11580_v50 = vpack.c.bf16 %v352_v49, %v350_v48  ;;  %v12639_v49 = vld [vmem:[%s18289_s27 + $0xc8] ss:$20 sps:$4 sm:$0xff]  }
 0x1ab   :  { %v356_v51 = vpop.f32.mrf.mxu1 }
 0x1ac   :  { %475 = vst.msk [vmem:[#allocation2 + $0x8] sm:$0xff] %vm14022_vm7, %v11580_v50  ;;  %v12656_v50 = vld [vmem:[%s18289_s27 + $0x344] ss:$20 sps:$4 sm:$0xff]  }
 0x1ad   :  { %v358_v52 = vpop.f32.mrf.mxu1 }
 0x1ae   :  { %v11581_v53 = vpack.c.bf16 %v358_v52, %v356_v51 }
 0x1af   :  { %v360_v54 = vpop.f32.mrf.mxu1  ;;  %v488_v58 = vld [vmem:[#allocation2] sm:$0xff] }
 0x1b0   :  { %476 = vst.msk [vmem:[#allocation2 + $0x10] sm:$0xff] %vm14022_vm7, %v11581_v53 }
 0x1b1   :  { %v362_v55 = vpop.f32.mrf.mxu1 }
 0x1b2   :  { %v11582_v56 = vpack.c.bf16 %v362_v55, %v360_v54  ;;  %v12647_v54 = vld [vmem:[%s18289_s27 + $0xa4] ss:$20 sps:$4 sm:$0xff]   ;;  %v12657_v55 = vld [vmem:[%s18289_s27 + $0x45c] ss:$20 sps:$4 sm:$0xff]  }
 0x1b3   :  { %v366_v57 = vpop.f32.mrf.mxu1  ;;  %v14032_v59 = vld [vmem:[#allocation2 + $0x8] sm:$0xff] }
 0x1b4   :  { %477 = vst.msk [vmem:[#allocation2 + $0x18] sm:$0xff] %vm14022_vm7, %v11582_v56  ;;  %v14037_v60 = vcombine.low %v488_v58, %v14032_v59  ;;  %v14040_v61 = vcombine.high %v488_v58, %v14032_v59 }
 0x1b5   :  { %v368_v62 = vpop.f32.mrf.mxu1 }
 0x1b6   :  { %v11583_v63 = vpack.c.bf16 %v368_v62, %v366_v57  ;;  %v747_v0 = vshll.u32 %v14040_v61, 16  ;;  %v735_v2 = vshll.u32 %v14037_v60, 16  ;;  %v745_v11 = vshrl.u32 %v14040_v61, 16 }
 0x1b7   :  { %v370_v1 = vpop.f32.mrf.mxu1  ;;  %v733_v13 = vshrl.u32 %v14037_v60, 16 }
 0x1b8   :  { %478 = vst.msk [vmem:[#allocation2 + $0x20] sm:$0xff] %vm14022_vm7, %v11583_v63  ;;  %v749_v5 = vrot.slane %v747_v0, 1  ;;  %v737_v9 = vrot.slane %v735_v2, 1  ;;  %v12645_v63 = vld [vmem:[%s18289_s27 + $0xa0] ss:$20 sps:$4 sm:$0xff]  }
 0x1b9   :  { %v372_v3 = vpop.f32.mrf.mxu1  ;;  %v12654_v0 = vld [vmem:[%s18289_s27 + $0x7c] ss:$20 sps:$4 sm:$0xff]  }
 0x1ba   :  { %v11584_v4 = vpack.c.bf16 %v372_v3, %v370_v1  ;;  %v750_v17 = vor.u32 %v749_v5, %v745_v11  ;;  %v738_v20 = vor.u32 %v737_v9, %v733_v13  ;;  %v12661_v1 = vld [vmem:[%s18289_s27 + $0x31c] ss:$20 sps:$4 sm:$0xff]  }
 0x1bb   :  { %v376_v6 = vpop.f32.mrf.mxu1  ;;  %v14046_v7 = vld [vmem:[#allocation2 + $0x10] ss:$8 sps:$4 sm:$0xff]   ;;  %v14048_v8 = vld [vmem:[#allocation2 + $0x14] ss:$8 sps:$4 sm:$0xff]  }
 0x1bc   :  { %479 = vst.msk [vmem:[#allocation2 + $0x28] sm:$0xff] %vm14022_vm7, %v11584_v4  ;;  %v752_v12 = vshll.u32 %v14048_v8, 16  ;;  %v740_v14 = vshll.u32 %v14046_v7, 16  ;;  %v764_v37 = vshrl.u32 %v14048_v8, 16  ;;  %v756_v39 = vshrl.u32 %v14046_v7, 16 }
 0x1bd   :  { %v378_v10 = vpop.f32.mrf.mxu1 }
 0x1be   :  { %v11585_v15 = vpack.c.bf16 %v378_v10, %v376_v6  ;;  %v754_v19 = vrot.slane %v752_v12, 1  ;;  %v742_v21 = vrot.slane %v740_v14, 1  ;;  %v12664_v6 = vld [vmem:[%s18289_s27 + $0x434] ss:$20 sps:$4 sm:$0xff]  }
 0x1bf   :  { %v380_v16 = vpop.f32.mrf.mxu1 }
 0x1c0   :  { %480 = vst.msk [vmem:[#allocation2 + $0x30] sm:$0xff] %vm14022_vm7, %v11585_v15  ;;  %v14065_v25 = vsel %vm731_vm8, %v750_v17, %v754_v19  ;;  %v14068_v26 = vsel %vm731_vm8, %v738_v20, %v742_v21  ;;  %v766_v44 = vor.u32 %v764_v37, %v754_v19  ;;  %v758_v47 = vor.u32 %v756_v39, %v742_v21  ;;  %v12652_v15 = vld [vmem:[%s18289_s27 + $0x78] ss:$20 sps:$4 sm:$0xff]   ;;  %v12660_v21 = vld [vmem:[%s18289_s27 + $0x54] ss:$20 sps:$4 sm:$0xff]  }
 0x1c1   :  { %v382_v24 = vpop.f32.mrf.mxu1  ;;  %10378 = vmatprep.mubr.msk.bf16.mxu0 %vm1228_vm9, %v14065_v25  ;;  %10384 = vmatprep.mubr.msk.bf16.mxu1 %vm1228_vm9, %v14065_v25 }
 0x1c2   :  { %v11586_v29 = vpack.c.bf16 %v382_v24, %v380_v16  ;;  %1293 = vmatmul.mubr.bf16.vlgmr.msra.gmra.mxu0 %v14068_v26  ;;  %1376 = vmatmul.mubr.bf16.vlgmr.msra.gmra.mxu1 %v14068_v26  ;;  %v12669_v16 = vld [vmem:[%s18289_s27 + $0x2f4] ss:$20 sps:$4 sm:$0xff]  }
 0x1c3   :  { %v386_v30 = vpop.f32.mrf.mxu1  ;;  %v14082_v31 = vld [vmem:[#allocation2 + $0x24] ss:$8 sps:$4 sm:$0xff]   ;;  %v14084_v32 = vld [vmem:[#allocation2 + $0x20] ss:$8 sps:$4 sm:$0xff]   ;;  %1933 = vmatpush1.bf16.msra.mxu1 %v12630_v22  ;;  %11614 = vmatpush3.bf16.msra.mxu0 %v12643_v23 }
 0x1c4   :  { %481 = vst.msk [vmem:[#allocation2 + $0x38] sm:$0xff] %vm14022_vm7, %v11586_v29  ;;  %1934 = vmatprep.subr.bf16.mxu1 %v12635_v27  ;;  %v768_v38 = vshll.u32 %v14082_v31, 16  ;;  %v760_v40 = vshll.u32 %v14084_v32, 16  ;;  %11615 = vmatprep.subr.bf16.mxu0 %v12644_v28  ;;  %v780_v46 = vshrl.u32 %v14082_v31, 16  ;;  %v772_v4 = vshrl.u32 %v14084_v32, 16 }
 0x1c5   :  { %v388_v36 = vpop.f32.mrf.mxu1  ;;  %v12671_v22 = vld [vmem:[%s18289_s27 + $0x40c] ss:$20 sps:$4 sm:$0xff]   ;;  %v12658_v27 = vld [vmem:[%s18289_s27 + $0x50] ss:$20 sps:$4 sm:$0xff]  }
 0x1c6   :  { %v11587_v42 = vpack.c.bf16 %v388_v36, %v386_v30  ;;  %v770_v45 = vrot.slane %v768_v38, 1  ;;  %v762_v48 = vrot.slane %v760_v40, 1  ;;  %v12667_v28 = vld [vmem:[%s18289_s27 + $0x2c] ss:$20 sps:$4 sm:$0xff]   ;;  %v12676_v36 = vld [vmem:[%s18289_s27 + $0x3e4] ss:$20 sps:$4 sm:$0xff]  }
 0x1c7   :  { %v390_v43 = vpop.f32.mrf.mxu1  ;;  %1935 = vmatpush1.bf16.msra.mxu1 %v12633_v33  ;;  %11616 = vmatpush3.bf16.msra.mxu0 %v12648_v35  ;;  %v12675_v29 = vld [vmem:[%s18289_s27 + $0x2cc] ss:$20 sps:$4 sm:$0xff]  }
 0x1c8   :  { %482 = vst.msk [vmem:[#allocation2 + $0x40] sm:$0xff] %vm14022_vm7, %v11587_v42  ;;  %v14113_v52 = vsel %vm731_vm8, %v766_v44, %v770_v45  ;;  %1936 = vmatprep.subr.bf16.mxu1 %v12641_v34  ;;  %v14116_v53 = vsel %vm731_vm8, %v758_v47, %v762_v48  ;;  %11617 = vmatprep.subr.bf16.mxu0 %v12651_v41  ;;  %v12665_v42 = vld [vmem:[%s18289_s27 + $0x28] ss:$20 sps:$4 sm:$0xff]  }
 0x1c9   :  { %v392_v51 = vpop.f32.mrf.mxu1  ;;  %10379 = vmatprep.mubr.msk.bf16.mxu0 %vm1228_vm9, %v14113_v52  ;;  %10385 = vmatprep.mubr.msk.bf16.mxu1 %vm1228_vm9, %v14113_v52  ;;  %v782_v11 = vor.u32 %v780_v46, %v770_v45  ;;  %v774_v13 = vor.u32 %v772_v4, %v762_v48  ;;  %v12679_v45 = vld [vmem:[%s18289_s27 + $0x2a4] ss:$20 sps:$4 sm:$0xff]  }
 0x1ca   :  { %v11588_v56 = vpack.c.bf16 %v392_v51, %v390_v43  ;;  %1303 = vmatmul.mubr.bf16.gmra.mxu0 %v14116_v53  ;;  %1386 = vmatmul.mubr.bf16.gmra.mxu1 %v14116_v53 }
 0x1cb   :  { %v396_v57 = vpop.f32.mrf.mxu1  ;;  %v14130_v58 = vld [vmem:[#allocation2 + $0x34] ss:$8 sps:$4 sm:$0xff]   ;;  %v14132_v62 = vld [vmem:[#allocation2 + $0x30] ss:$8 sps:$4 sm:$0xff]   ;;  %1937 = vmatpush1.bf16.msra.mxu1 %v12639_v49  ;;  %11618 = vmatpush3.bf16.msra.mxu0 %v12656_v50 }
 0x1cc   :  { %483 = vst.msk [vmem:[#allocation2 + $0x48] sm:$0xff] %vm14022_vm7, %v11588_v56  ;;  %1938 = vmatprep.subr.bf16.mxu1 %v12647_v54  ;;  %v784_v3 = vshll.u32 %v14130_v58, 16  ;;  %v776_v5 = vshll.u32 %v14132_v62, 16  ;;  %11619 = vmatprep.subr.bf16.mxu0 %v12657_v55  ;;  %v796_v30 = vshrl.u32 %v14130_v58, 16  ;;  %v788_v34 = vshrl.u32 %v14132_v62, 16 }
 0x1cd   :  { %v398_v2 = vpop.f32.mrf.mxu1  ;;  %v12674_v49 = vld [vmem:[%s18289_s27 + $0x4] ss:$20 sps:$4 sm:$0xff]   ;;  %v12681_v50 = vld [vmem:[%s18289_s27 + $0x3bc] ss:$20 sps:$4 sm:$0xff]   ;;  %vm5830_vm7 = vcmask 654336  }
 0x1ce   :  { %v11589_v9 = vpack.c.bf16 %v398_v2, %v396_v57  ;;  %v786_v12 = vrot.slane %v784_v3, 1  ;;  %v778_v14 = vrot.slane %v776_v5, 1  ;;  %v588_v55 = vld [vmem:[%s18289_s27 + $0x258] sm:$0x77] }
 0x1cf   :  { %v400_v10 = vpop.f32.mrf.mxu1  ;;  %1939 = vmatpush1.bf16.msra.mxu1 %v12645_v63  ;;  %11620 = vmatpush3.bf16.msra.mxu0 %v12661_v1  ;;  %v12685_v1 = vld [vmem:[%s18289_s27 + $0x27c] ss:$20 sps:$4 sm:$0xff]   ;;  %v10470_v2 = vcombine.high %v588_v55, %v588_v55  ;;  %v10469_v46 = vcombine.low %v588_v55, %v588_v55  ;;  %v12691_v3 = vld [vmem:[%s18289_s27 + $0x124] ss:$20 sps:$4 sm:$0xff]  }
 0x1d0   :  { %487 = vst.msk [vmem:[#allocation2 + $0x50] sm:$0x11] %vm486_vm12, %v11589_v9  ;;  %v14160_v19 = vsel %vm731_vm8, %v782_v11, %v786_v12  ;;  %1940 = vmatprep.subr.bf16.mxu1 %v12654_v0  ;;  %v14163_v20 = vsel %vm731_vm8, %v774_v13, %v778_v14  ;;  %11621 = vmatprep.subr.bf16.mxu0 %v12664_v6  ;;  %v12672_v0 = vld [vmem:[%s18289_s27] ss:$20 sps:$4 sm:$0xff]   ;;  %v12682_v13 = vld [vmem:[%s18289_s27 + $0x230] ss:$20 sps:$4 sm:$0xff]  }
 0x1d1   :  { %v401_v17 = vpop.f32.mrf.mxu1  ;;  %10380 = vmatprep.mubr.msk.bf16.mxu0 %vm1228_vm9, %v14160_v19  ;;  %10386 = vmatprep.mubr.msk.bf16.mxu1 %vm1228_vm9, %v14160_v19  ;;  %v798_v37 = vor.u32 %v796_v30, %v786_v12  ;;  %v790_v39 = vor.u32 %v788_v34, %v778_v14  ;;  %v1918_v10 = vsel %vm1244_vm4, %v10469_v46, 0  ;;  %v12684_v11 = vld [vmem:[%s18289_s27 + $0x234] ss:$20 sps:$4 sm:$0xff]   ;;  %v12688_v14 = vld [vmem:[%s18289_s27 + $0x20c] ss:$20 sps:$4 sm:$0xff]   ;;  %vm8086_vm12 = vcmask 392196  }
 0x1d2   :  { %1313 = vmatmul.mubr.bf16.gmra.mxu0 %v14163_v20  ;;  %1396 = vmatmul.mubr.bf16.gmra.mxu1 %v14163_v20  ;;  %v12697_v17 = vld [vmem:[%s18289_s27 + $0xfc] ss:$20 sps:$4 sm:$0xff]   ;;  %v12709_v30 = vld [vmem:[%s18289_s27 + $0xac] ss:$20 sps:$4 sm:$0xff]   ;;  %v12740_v46 = vld [vmem:[%s18289_s27 + $0x214] ss:$20 sps:$4 sm:$0xff]  }
 0x1d3   :  { %v14177_v23 = vld [vmem:[#allocation2 + $0x44] ss:$8 sps:$4 sm:$0xff]   ;;  %v14179_v24 = vld [vmem:[#allocation2 + $0x40] ss:$8 sps:$4 sm:$0xff]   ;;  %1941 = vmatpush1.bf16.msra.mxu1 %v12652_v15  ;;  %11622 = vmatpush3.bf16.msra.mxu0 %v12669_v16 }
 0x1d4   :  { %1942 = vmatprep.subr.bf16.mxu1 %v12660_v21  ;;  %v800_v33 = vshll.u32 %v14177_v23, 16  ;;  %v792_v35 = vshll.u32 %v14179_v24, 16  ;;  %11623 = vmatprep.subr.bf16.mxu0 %v12671_v22  ;;  %v812_v51 = vshrl.u32 %v14177_v23, 16  ;;  %v804_v5 = vshrl.u32 %v14179_v24, 16  ;;  %v12686_v15 = vld [vmem:[%s18289_s27 + $0x208] ss:$20 sps:$4 sm:$0xff]  }
 0x1d5   :  { %v12694_v16 = vld [vmem:[%s18289_s27 + $0x1e4] ss:$20 sps:$4 sm:$0xff]   ;;  %v12692_v21 = vld [vmem:[%s18289_s27 + $0x1e0] ss:$20 sps:$4 sm:$0xff]   ;;  %v12707_v34 = vld [vmem:[%s18289_s27 + $0xa8] ss:$20 sps:$4 sm:$0xff]  }
 0x1d6   :  { %v802_v38 = vrot.slane %v800_v33, 1  ;;  %v794_v40 = vrot.slane %v792_v35, 1  ;;  %v12695_v22 = vld [vmem:[%s18289_s27 + $0xf8] ss:$20 sps:$4 sm:$0xff]   ;;  %v12704_v33 = vld [vmem:[%s18289_s27 + $0x190] ss:$20 sps:$4 sm:$0xff]  }
 0x1d7   :  { %v591_v41 = vld [vmem:[#allocation2 + $0x50] sm:$0x11]  ;;  %1943 = vmatpush1.bf16.msra.mxu1 %v12658_v27  ;;  %11624 = vmatpush3.bf16.msra.mxu0 %v12675_v29  ;;  %v12712_v35 = vld [vmem:[%s18289_s27 + $0x16c] ss:$20 sps:$4 sm:$0xff]  }
 0x1d8   :  { %v14200_v43 = vcombine.high %v591_v41, %v591_v41  ;;  %v14202_v44 = vcombine.low %v591_v41, %v591_v41  ;;  %v14208_v47 = vsel %vm731_vm8, %v798_v37, %v802_v38  ;;  %1944 = vmatprep.subr.bf16.mxu1 %v12667_v28  ;;  %v14211_v48 = vsel %vm731_vm8, %v790_v39, %v794_v40  ;;  %v12700_v27 = vld [vmem:[%s18289_s27 + $0x1bc] ss:$20 sps:$4 sm:$0xff]   ;;  %v12698_v28 = vld [vmem:[%s18289_s27 + $0x1b8] ss:$20 sps:$4 sm:$0xff]   ;;  %v12706_v29 = vld [vmem:[%s18289_s27 + $0x194] ss:$20 sps:$4 sm:$0xff]  }
 0x1d9   :  { %11625 = vmatprep.subr.bf16.mxu0 %v12676_v36  ;;  %10381 = vmatprep.mubr.msk.bf16.mxu0 %vm1228_vm9, %v14208_v47  ;;  %v814_v57 = vor.u32 %v812_v51, %v802_v38  ;;  %v806_v9 = vor.u32 %v804_v5, %v794_v40  ;;  %v12710_v36 = vld [vmem:[%s18289_s27 + $0x168] ss:$20 sps:$4 sm:$0xff]   ;;  %v12718_v37 = vld [vmem:[%s18289_s27 + $0x144] ss:$20 sps:$4 sm:$0xff]   ;;  %v12716_v39 = vld [vmem:[%s18289_s27 + $0x140] ss:$20 sps:$4 sm:$0xff]  }
 0x1da   :  { %10387 = vmatprep.mubr.msk.bf16.mxu1 %vm1228_vm9, %v14208_v47  ;;  %v816_v54 = vshll.u32 %v14200_v43, 16  ;;  %v808_v56 = vshll.u32 %v14202_v44, 16  ;;  %1323 = vmatmul.mubr.bf16.gmra.mxu0 %v14211_v48  ;;  %v12721_v38 = vld [vmem:[%s18289_s27 + $0x5c] ss:$20 sps:$4 sm:$0xff]   ;;  %v12719_v40 = vld [vmem:[%s18289_s27 + $0x58] ss:$20 sps:$4 sm:$0xff]  }
 0x1db   :  { %1406 = vmatmul.mubr.bf16.gmra.mxu1 %v14211_v48  ;;  %11626 = vmatpush3.bf16.msra.mxu0 %v12679_v45  ;;  %v12724_v41 = vld [vmem:[%s18289_s27 + $0x34] ss:$20 sps:$4 sm:$0xff]   ;;  %v12727_v45 = vld [vmem:[%s18289_s27 + $0xc] ss:$20 sps:$4 sm:$0xff]   ;;  %v12746_v5 = vld [vmem:[%s18289_s27 + $0xb0] ss:$20 sps:$4 sm:$0xff]  }
 0x1dc   :  { %1945 = vmatpush1.bf16.msra.mxu1 %v12665_v42  ;;  %v818_v63 = vrot.slane %v816_v54, 1  ;;  %11627 = vmatprep.subr.bf16.mxu0 %v12681_v50  ;;  %v810_v6 = vrot.slane %v808_v56, 1  ;;  %v12722_v42 = vld [vmem:[%s18289_s27 + $0x30] ss:$20 sps:$4 sm:$0xff]   ;;  %v12732_v50 = vld [vmem:[%s18289_s27 + $0x240] ss:$20 sps:$4 sm:$0xff]  }
 0x1dd   :  { %1946 = vmatprep.subr.bf16.mxu1 %v12674_v49  ;;  %v12730_v49 = vld [vmem:[%s18289_s27 + $0x128] ss:$20 sps:$4 sm:$0xff]  }
 0x1de   :  { %v14241_v4 = vsel %vm731_vm8, %v814_v57, %v818_v63  ;;  %v14254_v12 = vsel %vm731_vm8, %v806_v9, %v810_v6  ;;  %v12725_v51 = vld [vmem:[%s18289_s27 + $0x8] ss:$20 sps:$4 sm:$0xff]   ;;  %v12737_v63 = vld [vmem:[%s18289_s27 + $0x218] ss:$20 sps:$4 sm:$0xff]  }
 0x1df   :  { %10382 = vmatprep.mubr.msk.bf16.mxu0 %vm1228_vm9, %v14241_v4  ;;  %10388 = vmatprep.mubr.msk.bf16.mxu1 %vm1228_vm9, %v14241_v4  ;;  %v12735_v57 = vld [vmem:[%s18289_s27 + $0x23c] ss:$20 sps:$4 sm:$0xff]  }
 0x1e0   :  { %1947 = vmatpush1.bf16.msra.mxu1 %v12672_v0  ;;  %11628 = vmatpush3.bf16.msra.mxu0 %v12685_v1  ;;  %v12741_v0 = vld [vmem:[%s18289_s27 + $0xd8] ss:$20 sps:$4 sm:$0xff]   ;;  %v12747_v6 = vld [vmem:[%s18289_s27 + $0x1c8] ss:$20 sps:$4 sm:$0xff]  }
 0x1e1   :  { %10474 = vmatprep.subr.msk.bf16.mxu1 %vm1244_vm4, %v10470_v2  ;;  %2015 = vmatprep.subr.bf16.mxu0 %v12691_v3  ;;  %v12733_v1 = vld [vmem:[%s18289_s27 + $0x238] ss:$20 sps:$4 sm:$0xff]   ;;  %v12742_v2 = vld [vmem:[%s18289_s27 + $0x1f0] ss:$20 sps:$4 sm:$0xff]   ;;  %v12743_v9 = vld [vmem:[%s18289_s27 + $0x1e8] ss:$20 sps:$4 sm:$0xff]  }
 0x1e2   :  { %1333 = vmatmul.mubr.bf16.gmra.mxu0 %v14254_v12  ;;  %v12738_v3 = vld [vmem:[%s18289_s27 + $0x210] ss:$20 sps:$4 sm:$0xff]  }
 0x1e3   :  { %1416 = vmatmul.mubr.bf16.gmra.mxu1 %v14254_v12  ;;  %10389 = vmatprep.mubr.msk.bf16.mxu0 %vm1228_vm9, %v14065_v25  ;;  %v12689_v25 = vld [vmem:[%s18289_s27 + $0x120] ss:$20 sps:$4 sm:$0xff]  }
 0x1e4   :  { %1949 = vmatpush2.bf16.msra.mxu1 %v1918_v10  ;;  %10475 = vmatprep.mubr.msk.bf16.mxu1 %vm1228_vm9, %v14040_v61  ;;  %v12750_v10 = vld [vmem:[%s18289_s27 + $0x1c4] ss:$20 sps:$4 sm:$0xff]  }
 0x1e5   :  { %1950 = vmatprep.subr.bf16.mxu1 %v12684_v11  ;;  %v12751_v11 = vld [vmem:[%s18289_s27 + $0x88] ss:$20 sps:$4 sm:$0xff]  }
 0x1e8   :  { %1951 = vmatpush2.bf16.msra.mxu1 %v12682_v13  ;;  %v12748_v13 = vld [vmem:[%s18289_s27 + $0x1c0] ss:$20 sps:$4 sm:$0xff]  }
 0x1e9   :  { %1952 = vmatprep.subr.bf16.mxu1 %v12688_v14  ;;  %v12755_v14 = vld [vmem:[%s18289_s27 + $0x19c] ss:$20 sps:$4 sm:$0xff]  }
 0x1ea   :  { %1459 = vmatmul.mubr.bf16.vlgmr.msra.gmra.mxu0 %v14068_v26  ;;  %v12703_v26 = vld [vmem:[%s18289_s27 + $0xd4] ss:$20 sps:$4 sm:$0xff]  }
 0x1eb   :  { %2016 = vmatpush1.bf16.msra.mxu0 %v12689_v25  ;;  %10390 = vmatprep.mubr.msk.bf16.mxu0 %vm1228_vm9, %v14113_v52  ;;  %v12701_v52 = vld [vmem:[%s18289_s27 + $0xd0] ss:$20 sps:$4 sm:$0xff]   ;;  %v12757_v25 = vld [vmem:[%s18289_s27 + $0x178] ss:$20 sps:$4 sm:$0xff]  }
 0x1ec   :  { %1953 = vmatpush2.bf16.msra.mxu1 %v12686_v15  ;;  %2017 = vmatprep.subr.bf16.mxu0 %v12697_v17  ;;  %v12756_v15 = vld [vmem:[%s18289_s27 + $0x60] ss:$20 sps:$4 sm:$0xff]  }
 0x1ed   :  { %1954 = vmatprep.subr.bf16.mxu1 %v12694_v16  ;;  %v12753_v16 = vld [vmem:[%s18289_s27 + $0x198] ss:$20 sps:$4 sm:$0xff]   ;;  %v12760_v17 = vld [vmem:[%s18289_s27 + $0x174] ss:$20 sps:$4 sm:$0xff]  }
 0x1ef   :  { %2018 = vmatpush1.bf16.msra.mxu0 %v12695_v22  ;;  %v12762_v22 = vld [vmem:[%s18289_s27 + $0x150] ss:$20 sps:$4 sm:$0xff]  }
 0x1f0   :  { %1955 = vmatpush2.bf16.msra.mxu1 %v12692_v21  ;;  %2019 = vmatprep.subr.bf16.mxu0 %v12703_v26  ;;  %v12761_v21 = vld [vmem:[%s18289_s27 + $0x38] ss:$20 sps:$4 sm:$0xff]  }
 0x1f1   :  { %1956 = vmatprep.subr.bf16.mxu1 %v12700_v27  ;;  %v12758_v27 = vld [vmem:[%s18289_s27 + $0x170] ss:$20 sps:$4 sm:$0xff]   ;;  %v12765_v26 = vld [vmem:[%s18289_s27 + $0x14c] ss:$20 sps:$4 sm:$0xff]  }
 0x1f2   :  { %1467 = vmatmul.mubr.bf16.gmra.mxu0 %v14116_v53  ;;  %v12715_v53 = vld [vmem:[%s18289_s27 + $0x84] ss:$20 sps:$4 sm:$0xff]  }
 0x1f3   :  { %2020 = vmatpush1.bf16.msra.mxu0 %v12701_v52  ;;  %10391 = vmatprep.mubr.msk.bf16.mxu0 %vm1228_vm9, %v14160_v19  ;;  %v12713_v19 = vld [vmem:[%s18289_s27 + $0x80] ss:$20 sps:$4 sm:$0xff]   ;;  %v12769_v52 = vld [vmem:[%s18289_s27 + $0x5fc] ss:$20 sps:$4 sm:$0xff]  }
 0x1f4   :  { %1957 = vmatpush2.bf16.msra.mxu1 %v12698_v28  ;;  %2021 = vmatprep.subr.bf16.mxu0 %v12709_v30  ;;  %v12766_v28 = vld [vmem:[%s18289_s27 + $0x10] ss:$20 sps:$4 sm:$0xff]   ;;  %v12772_v30 = vld [vmem:[%s18289_s27 + $0x5f4] ss:$20 sps:$4 sm:$0xff]  }
 0x1f5   :  { %1958 = vmatprep.subr.bf16.mxu1 %v12706_v29  ;;  %v12763_v29 = vld [vmem:[%s18289_s27 + $0x148] ss:$20 sps:$4 sm:$0xff]  }
 0x1f7   :  { %2022 = vmatpush1.bf16.msra.mxu0 %v12707_v34  ;;  %v12775_v34 = vld [vmem:[%s18289_s27 + $0x5d4] ss:$20 sps:$4 sm:$0xff]  }
 0x1f8   :  { %1959 = vmatpush2.bf16.msra.mxu1 %v12704_v33  ;;  %2023 = vmatprep.subr.bf16.mxu0 %v12715_v53  ;;  %v12767_v33 = vld [vmem:[%s18289_s27 + $0x5f8] ss:$20 sps:$4 sm:$0xff]   ;;  %v12773_v53 = vld [vmem:[%s18289_s27 + $0x5d0] ss:$20 sps:$4 sm:$0xff]  }
 0x1f9   :  { %1960 = vmatprep.subr.bf16.mxu1 %v12712_v35  ;;  %v12778_v35 = vld [vmem:[%s18289_s27 + $0x5cc] ss:$20 sps:$4 sm:$0xff]  }
 0x1fa   :  { %1475 = vmatmul.mubr.bf16.gmra.mxu0 %v14163_v20  ;;  %v12728_v20 = vld [vmem:[%s18289_s27 + $0x268] ss:$0 sps:$4 sm:$0x77]  }
 0x1fb   :  { %2024 = vmatpush1.bf16.msra.mxu0 %v12713_v19  ;;  %10392 = vmatprep.mubr.msk.bf16.mxu0 %vm1228_vm9, %v14208_v47  ;;  %v589_v47 = vld [vmem:[%s18289_s27 + $0x260] sm:$0x77] }
 0x1fc   :  { %1961 = vmatpush2.bf16.msra.mxu1 %v12710_v36  ;;  %2025 = vmatprep.subr.bf16.mxu0 %v12721_v38  ;;  %v10472_v54 = vcombine.high %v589_v47, %v589_v47  ;;  %v10471_v55 = vcombine.low %v589_v47, %v589_v47  ;;  %v12776_v36 = vld [vmem:[%s18289_s27 + $0x5c8] ss:$20 sps:$4 sm:$0xff]   ;;  %v12784_v19 = vld [vmem:[%s18289_s27 + $0x5a4] ss:$20 sps:$4 sm:$0xff]   ;;  %v12782_v38 = vld [vmem:[%s18289_s27 + $0x5a0] ss:$20 sps:$4 sm:$0xff]  }
 0x1fd   :  { %1962 = vmatprep.subr.bf16.mxu1 %v12718_v37  ;;  %v12779_v37 = vld [vmem:[%s18289_s27 + $0x5a8] ss:$20 sps:$4 sm:$0xff]   ;;  %v12791_v47 = vld [vmem:[%s18289_s27 + $0x558] ss:$20 sps:$4 sm:$0xff]  }
 0x1fe   :  { %v1924_v56 = vsel %vm1244_vm4, %v10471_v55, 0  ;;  %v12800_v55 = vld [vmem:[%s18289_s27 + $0x528] ss:$20 sps:$4 sm:$0xff]  }
 0x1ff   :  { %2026 = vmatpush1.bf16.msra.mxu0 %v12719_v40  ;;  %v12790_v40 = vld [vmem:[%s18289_s27 + $0x57c] ss:$20 sps:$4 sm:$0xff]  }
 0x200   :  { %1963 = vmatpush2.bf16.msra.mxu1 %v12716_v39  ;;  %2027 = vmatprep.subr.bf16.mxu0 %v12724_v41  ;;  %v12787_v39 = vld [vmem:[%s18289_s27 + $0x584] ss:$20 sps:$4 sm:$0xff]   ;;  %v12785_v41 = vld [vmem:[%s18289_s27 + $0x580] ss:$20 sps:$4 sm:$0xff]  }
 0x201   :  { %12324 = vmatprep.subr.msk.bf16.mxu1 %vm1244_vm4, %v12728_v20  ;;  %v12788_v20 = vld [vmem:[%s18289_s27 + $0x578] ss:$20 sps:$4 sm:$0xff]  }
 0x202   :  { %1483 = vmatmul.mubr.bf16.gmra.mxu0 %v14211_v48  ;;  %v12736_v48 = vld [vmem:[%s18289_s27 + $0x100] ss:$20 sps:$4 sm:$0xff]  }
 0x203   :  { %1965 = vmatmul.mubr.bf16.vlgmr.msra.gmra.mxu1 %v14037_v60  ;;  %2028 = vmatpush1.bf16.msra.mxu0 %v12722_v42  ;;  %v12793_v42 = vld [vmem:[%s18289_s27 + $0x55c] ss:$20 sps:$4 sm:$0xff]  }
 0x204   :  { %10476 = vmatprep.mubr.msk.bf16.mxu1 %vm1228_vm9, %v14048_v8  ;;  %10393 = vmatprep.mubr.msk.bf16.mxu0 %vm1228_vm9, %v14241_v4  ;;  %v12745_v4 = vld [vmem:[%s18289_s27 + $0x1ec] ss:$20 sps:$4 sm:$0xff]  }
 0x205   :  { %2029 = vmatprep.subr.bf16.mxu0 %v12727_v45  ;;  %11660 = vmatpush3.bf16.msra.mxu1 %v12730_v49  ;;  %v12796_v45 = vld [vmem:[%s18289_s27 + $0x554] ss:$20 sps:$4 sm:$0xff]   ;;  %v12794_v49 = vld [vmem:[%s18289_s27 + $0x550] ss:$20 sps:$4 sm:$0xff]  }
 0x206   :  { %11661 = vmatprep.subr.bf16.mxu1 %v12732_v50  ;;  %v12799_v50 = vld [vmem:[%s18289_s27 + $0x534] ss:$20 sps:$4 sm:$0xff]  }
 0x207   :  { %2030 = vmatpush1.bf16.msra.mxu0 %v12725_v51  ;;  %v12802_v51 = vld [vmem:[%s18289_s27 + $0x52c] ss:$20 sps:$4 sm:$0xff]  }
 0x208   :  { %10480 = vmatprep.subr.msk.bf16.mxu0 %vm1244_vm4, %v10472_v54  ;;  %v12797_v54 = vld [vmem:[%s18289_s27 + $0x530] ss:$20 sps:$4 sm:$0xff]  }
 0x209   :  { %11662 = vmatpush3.bf16.msra.mxu1 %v12736_v48  ;;  %v12805_v48 = vld [vmem:[%s18289_s27 + $0x50c] ss:$20 sps:$4 sm:$0xff]  }
 0x20a   :  { %1491 = vmatmul.mubr.bf16.gmra.mxu0 %v14254_v12  ;;  %11663 = vmatprep.subr.bf16.mxu1 %v12737_v63  ;;  %v12752_v12 = vld [vmem:[%s18289_s27 + $0x1a0] ss:$20 sps:$4 sm:$0xff]  }
 0x20b   :  { %1975 = vmatmul.mubr.bf16.gmra.mxu1 %v14046_v7  ;;  %2032 = vmatpush2.bf16.msra.mxu0 %v1924_v56  ;;  %v12808_v56 = vld [vmem:[%s18289_s27 + $0x504] ss:$20 sps:$4 sm:$0xff]   ;;  %v12806_v63 = vld [vmem:[%s18289_s27 + $0x500] ss:$20 sps:$4 sm:$0xff]  }
 0x20c   :  { %10477 = vmatprep.mubr.msk.bf16.mxu1 %vm1228_vm9, %v14082_v31  ;;  %10481 = vmatprep.mubr.msk.bf16.mxu0 %vm1228_vm9, %v14040_v61 }
 0x20d   :  { %2033 = vmatprep.subr.bf16.mxu0 %v12735_v57  ;;  %11664 = vmatpush3.bf16.msra.mxu1 %v12741_v0  ;;  %v12803_v57 = vld [vmem:[%s18289_s27 + $0x508] ss:$20 sps:$4 sm:$0xff]   ;;  %v12811_v0 = vld [vmem:[%s18289_s27 + $0x4e4] ss:$20 sps:$4 sm:$0xff]  }
 0x20e   :  { %11665 = vmatprep.subr.bf16.mxu1 %v12742_v2  ;;  %v10582_v2 = vld [vmem:[%s18289_s27 + $0x738] sm:$0x77] }
 0x20f   :  { %2034 = vmatpush2.bf16.msra.mxu0 %v12733_v1  ;;  %v12814_v1 = vld [vmem:[%s18289_s27 + $0x4dc] ss:$20 sps:$4 sm:$0xff]  }
 0x210   :  { %2035 = vmatprep.subr.bf16.mxu0 %v12740_v46  ;;  %v10581_v46 = vld [vmem:[%s18289_s27 + $0x730] sm:$0x77] }
 0x211   :  { %11666 = vmatpush3.bf16.msra.mxu1 %v12746_v5  ;;  %v12812_v5 = vld [vmem:[%s18289_s27 + $0x4d8] ss:$20 sps:$4 sm:$0xff]  }
 0x212   :  { %11667 = vmatprep.subr.bf16.mxu1 %v12747_v6  ;;  %v10664_v6 = vcombine.high %v10582_v2, %v10582_v2 }
 0x213   :  { %1985 = vmatmul.mubr.bf16.gmra.mxu1 %v14084_v32  ;;  %2036 = vmatpush2.bf16.msra.mxu0 %v12738_v3  ;;  %v12809_v3 = vld [vmem:[%s18289_s27 + $0x4e0] ss:$20 sps:$4 sm:$0xff]  }
 0x214   :  { %10478 = vmatprep.mubr.msk.bf16.mxu1 %vm1228_vm9, %v14130_v58  ;;  %2037 = vmatprep.subr.bf16.mxu0 %v12745_v4  ;;  %v14593_v4 = vld [vmem:[#allocation2] sm:$0xee] }
 0x215   :  { %11668 = vmatpush3.bf16.msra.mxu1 %v12751_v11  ;;  %v10662_v11 = vcombine.high %v10581_v46, %v10581_v46 }
 0x216   :  { %11669 = vmatprep.subr.bf16.mxu1 %v12752_v12  ;;  %v10661_v12 = vcombine.low %v10581_v46, %v10581_v46 }
 0x217   :  { %2038 = vmatpush2.bf16.msra.mxu0 %v12743_v9  ;;  %v10663_v9 = vcombine.low %v10582_v2, %v10582_v2  ;;  %v12866_v2 = vld [vmem:[%s18289_s27 + $0x5b0] ss:$20 sps:$4 sm:$0xff]  }
 0x218   :  { %2039 = vmatprep.subr.bf16.mxu0 %v12750_v10  ;;  %v10585_v10 = vcombine.high %v14593_v4, %v14032_v59 }
 0x219   :  { %11670 = vmatpush3.bf16.msra.mxu1 %v12756_v15 }
 0x21a   :  { %11671 = vmatprep.subr.bf16.mxu1 %v12757_v25  ;;  %v2275_v15 = vrot.slane %v10585_v10, 1  ;;  %v2718_v25 = vsel %vm1244_vm4, %v10661_v12, 0  ;;  %v2286_v12 = vrot.slane %v14179_v24, 1 }
 0x21b   :  { %1995 = vmatmul.mubr.bf16.gmra.mxu1 %v14132_v62  ;;  %2040 = vmatpush2.bf16.msra.mxu0 %v12748_v13  ;;  %v2276_v13 = vrot.slane %v14048_v8, 1 }
 0x21c   :  { %10479 = vmatprep.mubr.msk.bf16.mxu1 %vm1228_vm9, %v14177_v23  ;;  %2041 = vmatprep.subr.bf16.mxu0 %v12755_v14  ;;  %v2724_v14 = vsel %vm1244_vm4, %v10663_v9, 0  ;;  %v12870_v9 = vld [vmem:[%s18289_s27 + $0x560] ss:$20 sps:$4 sm:$0xff]  }
 0x21d   :  { %11672 = vmatpush3.bf16.msra.mxu1 %v12761_v21  ;;  %v14618_v21 = vsel %vm2271_vm13, %v2275_v15, %v2276_v13  ;;  %v12874_v15 = vld [vmem:[%s18289_s27 + $0x510] ss:$20 sps:$4 sm:$0xff]  }
 0x21e   :  { %11673 = vmatprep.subr.bf16.mxu1 %v12762_v22  ;;  %v12819_v22 = vld [vmem:[%s18289_s27 + $0x710] ss:$20 sps:$4 sm:$0xff]  }
 0x21f   :  { %2042 = vmatpush2.bf16.msra.mxu0 %v12753_v16  ;;  %v12821_v16 = vld [vmem:[%s18289_s27 + $0x714] ss:$20 sps:$4 sm:$0xff]  }
 0x220   :  { %2043 = vmatprep.subr.bf16.mxu0 %v12760_v17  ;;  %v12824_v17 = vld [vmem:[%s18289_s27 + $0x70c] ss:$20 sps:$4 sm:$0xff]  }
 0x221   :  { %11674 = vmatpush3.bf16.msra.mxu1 %v12766_v28  ;;  %v12830_v28 = vld [vmem:[%s18289_s27 + $0x6e4] ss:$20 sps:$4 sm:$0xff]  }
 0x222   :  { %2815 = vmatprep.subr.bf16.mxu1 %v12769_v52  ;;  %v12825_v52 = vld [vmem:[%s18289_s27 + $0x6e8] ss:$20 sps:$4 sm:$0xff]  }
 0x223   :  { %2005 = vmatmul.mubr.bf16.gmra.mxu1 %v14179_v24  ;;  %2044 = vmatpush2.bf16.msra.mxu0 %v12758_v27  ;;  %v12822_v27 = vld [vmem:[%s18289_s27 + $0x708] ss:$20 sps:$4 sm:$0xff]  }
 0x224   :  { %10486 = vmatprep.mubr.msk.bf16.mxu1 %vm1228_vm9, %v14040_v61  ;;  %2045 = vmatprep.subr.bf16.mxu0 %v12765_v26  ;;  %v12770_v61 = vld [vmem:[%s18289_s27 + $0x5f0] ss:$20 sps:$4 sm:$0xff]   ;;  %v12827_v26 = vld [vmem:[%s18289_s27 + $0x6ec] ss:$20 sps:$4 sm:$0xff]  }
 0x227   :  { %2046 = vmatpush2.bf16.msra.mxu0 %v12763_v29  ;;  %v12828_v29 = vld [vmem:[%s18289_s27 + $0x6e0] ss:$20 sps:$4 sm:$0xff]  }
 0x228   :  { %2732 = vmatprep.subr.bf16.mxu0 %v12772_v30  ;;  %v12833_v30 = vld [vmem:[%s18289_s27 + $0x6c4] ss:$20 sps:$4 sm:$0xff]  }
 0x22a   :  { %2048 = vmatmul.mubr.bf16.vlgmr.msra.gmra.mxu0 %v14037_v60 }
 0x22b   :  { %2131 = vmatmul.mubr.bf16.vlgmr.msra.gmra.mxu1 %v14037_v60  ;;  %10482 = vmatprep.mubr.msk.bf16.mxu0 %vm1228_vm9, %v14048_v8  ;;  %v12781_v60 = vld [vmem:[%s18289_s27 + $0x5ac] ss:$20 sps:$4 sm:$0xff]  }
 0x22c   :  { %2816 = vmatpush1.bf16.msra.mxu1 %v12767_v33  ;;  %10487 = vmatprep.mubr.msk.bf16.mxu1 %vm1228_vm9, %v14048_v8  ;;  %v12836_v33 = vld [vmem:[%s18289_s27 + $0x6bc] ss:$20 sps:$4 sm:$0xff]  }
 0x22d   :  { %2733 = vmatpush1.bf16.msra.mxu0 %v12770_v61  ;;  %2817 = vmatprep.subr.bf16.mxu1 %v12775_v34  ;;  %v12831_v61 = vld [vmem:[%s18289_s27 + $0x6c0] ss:$20 sps:$4 sm:$0xff]   ;;  %v12834_v34 = vld [vmem:[%s18289_s27 + $0x6b8] ss:$20 sps:$4 sm:$0xff]   ;;  %v12865_v8 = vld [vmem:[%s18289_s27 + $0x6f0] ss:$20 sps:$4 sm:$0xff]  }
 0x22e   :  { %2734 = vmatprep.subr.bf16.mxu0 %v12778_v35  ;;  %v12839_v35 = vld [vmem:[%s18289_s27 + $0x69c] ss:$20 sps:$4 sm:$0xff]  }
 0x230   :  { %2818 = vmatpush1.bf16.msra.mxu1 %v12773_v53  ;;  %v12842_v53 = vld [vmem:[%s18289_s27 + $0x694] ss:$20 sps:$4 sm:$0xff]  }
 0x231   :  { %2735 = vmatpush1.bf16.msra.mxu0 %v12776_v36  ;;  %2819 = vmatprep.subr.bf16.mxu1 %v12781_v60  ;;  %v12837_v36 = vld [vmem:[%s18289_s27 + $0x698] ss:$20 sps:$4 sm:$0xff]   ;;  %v12840_v60 = vld [vmem:[%s18289_s27 + $0x690] ss:$20 sps:$4 sm:$0xff]  }
 0x232   :  { %2736 = vmatprep.subr.bf16.mxu0 %v12784_v19  ;;  %2058 = vmatmul.mubr.bf16.gmra.mxu0 %v14046_v7  ;;  %v12845_v19 = vld [vmem:[%s18289_s27 + $0x674] ss:$20 sps:$4 sm:$0xff]  }
 0x233   :  { %2139 = vmatmul.mubr.bf16.gmra.mxu1 %v14046_v7  ;;  %10483 = vmatprep.mubr.msk.bf16.mxu0 %vm1228_vm9, %v14082_v31 }
 0x234   :  { %2820 = vmatpush1.bf16.msra.mxu1 %v12779_v37  ;;  %10488 = vmatprep.mubr.msk.bf16.mxu1 %vm1228_vm9, %v14082_v31  ;;  %v12848_v37 = vld [vmem:[%s18289_s27 + $0x66c] ss:$20 sps:$4 sm:$0xff]  }
 0x235   :  { %2737 = vmatpush1.bf16.msra.mxu0 %v12782_v38  ;;  %2821 = vmatprep.subr.bf16.mxu1 %v12787_v39  ;;  %v12843_v38 = vld [vmem:[%s18289_s27 + $0x670] ss:$20 sps:$4 sm:$0xff]   ;;  %v12846_v39 = vld [vmem:[%s18289_s27 + $0x668] ss:$20 sps:$4 sm:$0xff]  }
 0x236   :  { %2738 = vmatprep.subr.bf16.mxu0 %v12790_v40  ;;  %v12851_v40 = vld [vmem:[%s18289_s27 + $0x64c] ss:$20 sps:$4 sm:$0xff]  }
 0x238   :  { %2822 = vmatpush1.bf16.msra.mxu1 %v12785_v41  ;;  %v12854_v41 = vld [vmem:[%s18289_s27 + $0x644] ss:$20 sps:$4 sm:$0xff]  }
 0x239   :  { %2739 = vmatpush1.bf16.msra.mxu0 %v12788_v20  ;;  %2823 = vmatprep.subr.bf16.mxu1 %v12793_v42  ;;  %v12849_v20 = vld [vmem:[%s18289_s27 + $0x648] ss:$20 sps:$4 sm:$0xff]   ;;  %v12852_v42 = vld [vmem:[%s18289_s27 + $0x640] ss:$20 sps:$4 sm:$0xff]  }
 0x23a   :  { %2740 = vmatprep.subr.bf16.mxu0 %v12796_v45  ;;  %2068 = vmatmul.mubr.bf16.gmra.mxu0 %v14084_v32  ;;  %v12857_v45 = vld [vmem:[%s18289_s27 + $0x624] ss:$20 sps:$4 sm:$0xff]  }
 0x23b   :  { %2147 = vmatmul.mubr.bf16.gmra.mxu1 %v14084_v32  ;;  %10484 = vmatprep.mubr.msk.bf16.mxu0 %vm1228_vm9, %v14130_v58 }
 0x23c   :  { %2824 = vmatpush1.bf16.msra.mxu1 %v12791_v47  ;;  %10489 = vmatprep.mubr.msk.bf16.mxu1 %vm1228_vm9, %v14130_v58  ;;  %v12860_v47 = vld [vmem:[%s18289_s27 + $0x61c] ss:$20 sps:$4 sm:$0xff]  }
 0x23d   :  { %2741 = vmatpush1.bf16.msra.mxu0 %v12794_v49  ;;  %2825 = vmatprep.subr.bf16.mxu1 %v12799_v50  ;;  %v10584_v49 = vcombine.low %v14593_v4, %v14032_v59  ;;  %v12855_v50 = vld [vmem:[%s18289_s27 + $0x620] ss:$20 sps:$4 sm:$0xff]   ;;  %v2280_v59 = vrot.slane %v14082_v31, 1  ;;  %v2282_v4 = vrot.slane %v14132_v62, 1 }
 0x23e   :  { %2742 = vmatprep.subr.bf16.mxu0 %v12802_v51  ;;  %v12858_v51 = vld [vmem:[%s18289_s27 + $0x618] ss:$20 sps:$4 sm:$0xff]  }
 0x23f   :  { %v14723_v31 = vsel %vm2271_vm13, %v2276_v13, %v2280_v59  ;;  %v12873_v13 = vld [vmem:[%s18289_s27 + $0x650] ss:$20 sps:$4 sm:$0xff]  }
 0x240   :  { %2826 = vmatpush1.bf16.msra.mxu1 %v12797_v54  ;;  %v2273_v54 = vrot.slane %v14046_v7, 1  ;;  %v12863_v7 = vld [vmem:[%s18289_s27 + $0x718] ss:$20 sps:$4 sm:$0xff]  }
 0x241   :  { %2743 = vmatpush1.bf16.msra.mxu0 %v12800_v55  ;;  %2827 = vmatprep.subr.bf16.mxu1 %v12805_v48  ;;  %v12861_v55 = vld [vmem:[%s18289_s27 + $0x740] ss:$0 sps:$4 sm:$0x77]   ;;  %v2272_v48 = vrot.slane %v10584_v49, 1 }
 0x242   :  { %2744 = vmatprep.subr.bf16.mxu0 %v12808_v56  ;;  %2078 = vmatmul.mubr.bf16.gmra.mxu0 %v14132_v62  ;;  %v12862_v56 = vld [vmem:[%s18289_s27 + $0x600] ss:$20 sps:$4 sm:$0xff]  }
 0x243   :  { %2155 = vmatmul.mubr.bf16.gmra.mxu1 %v14132_v62  ;;  %10485 = vmatprep.mubr.msk.bf16.mxu0 %vm1228_vm9, %v14177_v23  ;;  %v12871_v62 = vld [vmem:[%s18289_s27 + $0x678] ss:$20 sps:$4 sm:$0xff]  }
 0x244   :  { %2828 = vmatpush1.bf16.msra.mxu1 %v12803_v57  ;;  %10490 = vmatprep.mubr.msk.bf16.mxu1 %vm1228_vm9, %v14177_v23  ;;  %v14713_v57 = vsel %vm2271_vm13, %v2272_v48, %v2273_v54 }
 0x245   :  { %2745 = vmatpush1.bf16.msra.mxu0 %v12806_v63  ;;  %2829 = vmatprep.subr.bf16.mxu1 %v12811_v0  ;;  %v12864_v63 = vld [vmem:[%s18289_s27 + $0x5d8] ss:$20 sps:$4 sm:$0xff]   ;;  %v2278_v0 = vrot.slane %v14084_v32, 1  ;;  %v12867_v32 = vld [vmem:[%s18289_s27 + $0x6c8] ss:$20 sps:$4 sm:$0xff]  }
 0x246   :  { %2746 = vmatprep.subr.bf16.mxu0 %v12814_v1  ;;  %v2284_v1 = vrot.slane %v14130_v58, 1  ;;  %v12868_v58 = vld [vmem:[%s18289_s27 + $0x588] ss:$20 sps:$4 sm:$0xff]  }
 0x247   :  { %v14742_v46 = vsel %vm2271_vm13, %v2273_v54, %v2278_v0  ;;  %v14768_v10 = vsel %vm2271_vm13, %v2278_v0, %v2282_v4 }
 0x248   :  { %2830 = vmatpush1.bf16.msra.mxu1 %v12809_v3  ;;  %v14749_v3 = vsel %vm2271_vm13, %v2280_v59, %v2284_v1 }
 0x249   :  { %2747 = vmatpush1.bf16.msra.mxu0 %v12812_v5  ;;  %10672 = vmatprep.subr.msk.bf16.mxu1 %vm1244_vm4, %v10664_v6  ;;  %v12869_v5 = vld [vmem:[%s18289_s27 + $0x6a0] ss:$20 sps:$4 sm:$0xff]   ;;  %v2288_v6 = vrot.slane %v14177_v23, 1  ;;  %v12872_v23 = vld [vmem:[%s18289_s27 + $0x538] ss:$20 sps:$4 sm:$0xff]  }
 0x24a   :  { %10666 = vmatprep.subr.msk.bf16.mxu0 %vm1244_vm4, %v10662_v11  ;;  %2088 = vmatmul.mubr.bf16.gmra.mxu0 %v14179_v24 }
 0x24b   :  { %2163 = vmatmul.mubr.bf16.gmra.mxu1 %v14179_v24  ;;  %10667 = vmatprep.mubr.msk.bf16.mxu0 %vm1228_vm9, %v14618_v21  ;;  %v14775_v11 = vsel %vm2271_vm13, %v2284_v1, %v2288_v6 }
 0x24c   :  { %2832 = vmatpush2.bf16.msra.mxu1 %v2724_v14  ;;  %10673 = vmatprep.mubr.msk.bf16.mxu1 %vm1228_vm9, %v14618_v21  ;;  %v2292_v14 = vrot.slane %v14200_v43, 1 }
 0x24d   :  { %2749 = vmatpush2.bf16.msra.mxu0 %v2718_v25  ;;  %2833 = vmatprep.subr.bf16.mxu1 %v12821_v16  ;;  %v2287_v25 = vsel %vm2271_vm13, %v2282_v4, %v2286_v12  ;;  %v12875_v16 = vld [vmem:[%s18289_s27 + $0x628] ss:$20 sps:$4 sm:$0xff]  }
 0x24e   :  { %2750 = vmatprep.subr.bf16.mxu0 %v12824_v17  ;;  %v2293_v24 = vsel %vm2271_vm13, %v2288_v6, %v2292_v14 }
 0x250   :  { %2834 = vmatpush2.bf16.msra.mxu1 %v12819_v22 }
 0x251   :  { %2751 = vmatpush2.bf16.msra.mxu0 %v12822_v27  ;;  %2835 = vmatprep.subr.bf16.mxu1 %v12827_v26  ;;  %v12876_v26 = vld [vmem:[%s18289_s27 + $0x4e8] ss:$20 sps:$4 sm:$0xff]  }
 0x252   :  { %2752 = vmatprep.subr.bf16.mxu0 %v12830_v28  ;;  %v2290_v28 = vrot.slane %v14202_v44, 1 }
 0x254   :  { %2836 = vmatpush2.bf16.msra.mxu1 %v12825_v52 }
 0x255   :  { %2753 = vmatpush2.bf16.msra.mxu0 %v12828_v29  ;;  %2837 = vmatprep.subr.bf16.mxu1 %v12833_v30 }
 0x256   :  { %2754 = vmatprep.subr.bf16.mxu0 %v12836_v33 }
 0x258   :  { %2838 = vmatpush2.bf16.msra.mxu1 %v12831_v61  ;;  %v2291_v61 = vsel %vm2271_vm13, %v2286_v12, %v2290_v28 }
 0x259   :  { %2755 = vmatpush2.bf16.msra.mxu0 %v12834_v34  ;;  %2839 = vmatprep.subr.bf16.mxu1 %v12839_v35 }
 0x25a   :  { %2756 = vmatprep.subr.bf16.mxu0 %v12842_v53 }
 0x25c   :  { %2840 = vmatpush2.bf16.msra.mxu1 %v12837_v36 }
 0x25d   :  { %2757 = vmatpush2.bf16.msra.mxu0 %v12840_v60  ;;  %2841 = vmatprep.subr.bf16.mxu1 %v12845_v19 }
 0x25e   :  { %2758 = vmatprep.subr.bf16.mxu0 %v12848_v37 }
 0x260   :  { %2842 = vmatpush2.bf16.msra.mxu1 %v12843_v38 }
 0x261   :  { %2759 = vmatpush2.bf16.msra.mxu0 %v12846_v39  ;;  %2843 = vmatprep.subr.bf16.mxu1 %v12851_v40 }
 0x262   :  { %2760 = vmatprep.subr.bf16.mxu0 %v12854_v41 }
 0x264   :  { %2844 = vmatpush2.bf16.msra.mxu1 %v12849_v20 }
 0x265   :  { %2761 = vmatpush2.bf16.msra.mxu0 %v12852_v42  ;;  %2845 = vmatprep.subr.bf16.mxu1 %v12857_v45 }
 0x266   :  { %2762 = vmatprep.subr.bf16.mxu0 %v12860_v47 }
 0x268   :  { %2846 = vmatpush2.bf16.msra.mxu1 %v12855_v50 }
 0x269   :  { %2763 = vmatpush2.bf16.msra.mxu0 %v12858_v51 }
 0x26a   :  { %12325 = vmatprep.subr.msk.bf16.mxu0 %vm1244_vm4, %v12861_v55 }
 0x26b   :  { %2848 = vmatmul.mubr.bf16.vlgmr.msra.gmra.mxu1 %v14713_v57 }
 0x26c   :  { %2765 = vmatmul.mubr.bf16.vlgmr.msra.gmra.mxu0 %v14713_v57  ;;  %10674 = vmatprep.mubr.msk.bf16.mxu1 %vm1228_vm9, %v14723_v31 }
 0x26d   :  { %10668 = vmatprep.mubr.msk.bf16.mxu0 %vm1228_vm9, %v14723_v31  ;;  %11706 = vmatpush3.bf16.msra.mxu0 %v12862_v56 }
 0x26e   :  { %11707 = vmatprep.subr.bf16.mxu0 %v12863_v7 }
 0x271   :  { %11708 = vmatpush3.bf16.msra.mxu0 %v12864_v63 }
 0x272   :  { %11709 = vmatprep.subr.bf16.mxu0 %v12865_v8 }
 0x273   :  { %2858 = vmatmul.mubr.bf16.gmra.mxu1 %v14742_v46 }
 0x274   :  { %2775 = vmatmul.mubr.bf16.gmra.mxu0 %v14742_v46  ;;  %10675 = vmatprep.mubr.msk.bf16.mxu1 %vm1228_vm9, %v14749_v3 }
 0x275   :  { %10669 = vmatprep.mubr.msk.bf16.mxu0 %vm1228_vm9, %v14749_v3  ;;  %11710 = vmatpush3.bf16.msra.mxu0 %v12866_v2 }
 0x276   :  { %11711 = vmatprep.subr.bf16.mxu0 %v12867_v32 }
 0x279   :  { %11712 = vmatpush3.bf16.msra.mxu0 %v12868_v58 }
 0x27a   :  { %11713 = vmatprep.subr.bf16.mxu0 %v12869_v5 }
 0x27b   :  { %2868 = vmatmul.mubr.bf16.gmra.mxu1 %v14768_v10 }
 0x27c   :  { %2785 = vmatmul.mubr.bf16.gmra.mxu0 %v14768_v10  ;;  %10676 = vmatprep.mubr.msk.bf16.mxu1 %vm1228_vm9, %v14775_v11 }
 0x27d   :  { %10670 = vmatprep.mubr.msk.bf16.mxu0 %vm1228_vm9, %v14775_v11  ;;  %11714 = vmatpush3.bf16.msra.mxu0 %v12870_v9 }
 0x27e   :  { %11715 = vmatprep.subr.bf16.mxu0 %v12871_v62 }
 0x281   :  { %11716 = vmatpush3.bf16.msra.mxu0 %v12872_v23 }
 0x282   :  { %11717 = vmatprep.subr.bf16.mxu0 %v12873_v13  ;;  %v14798_v17 = vpop.f32.mrf.mxu0  ;;  %v14800_v22 = vpop.f32.mrf.mxu1 }
 0x283   :  { %2878 = vmatmul.mubr.bf16.gmra.mxu1 %v2287_v25 }
 0x284   :  { %2795 = vmatmul.mubr.bf16.gmra.mxu0 %v2287_v25  ;;  %10677 = vmatprep.mubr.msk.bf16.mxu1 %vm1228_vm9, %v2293_v24  ;;  %v14804_v43 = vpop.f32.mrf.mxu0  ;;  %v14806_v27 = vpop.f32.mrf.mxu1 }
 0x285   :  { %10671 = vmatprep.mubr.msk.bf16.mxu0 %vm1228_vm9, %v2293_v24  ;;  %11718 = vmatpush3.bf16.msra.mxu0 %v12874_v15 }
 0x286   :  { %11719 = vmatprep.subr.bf16.mxu0 %v12875_v16  ;;  %v14812_v52 = vpop.f32.mrf.mxu0  ;;  %v14814_v29 = vpop.f32.mrf.mxu1 }
 0x288   :  { %v14816_v30 = vpop.f32.mrf.mxu0  ;;  %v14818_v33 = vpop.f32.mrf.mxu1 }
 0x289   :  { %18292 = vst [vmem:[#allocation12_spill] sm:$0xff] %v14818_v33  ;;  %11720 = vmatpush3.bf16.msra.mxu0 %v12876_v26 }
 0x28a   :  { %v14821_v34 = vpop.f32.mrf.mxu0  ;;  %v14823_v35 = vpop.f32.mrf.mxu1 }
 0x28b   :  { %2888 = vmatmul.mubr.bf16.gmra.mxu1 %v2291_v61 }
 0x28c   :  { %2805 = vmatmul.mubr.bf16.gmra.mxu0 %v2291_v61  ;;  %3791 = vmatprep.mubr.bf16.mxu1 %v18237_v18  ;;  %v14828_v44 = vpop.f32.mrf.mxu0  ;;  %v14830_v53 = vpop.f32.mrf.mxu1 }
 0x28d   :  { %10678 = vmatprep.mubr.msk.bf16.mxu0 %vm1228_vm9, %v14618_v21 }
 0x28e   :  { %v14832_v36 = vpop.f32.mrf.mxu0  ;;  %v14834_v60 = vpop.f32.mrf.mxu1 }
 0x290   :  { %v14836_v19 = vpop.f32.mrf.mxu0  ;;  %v14838_v37 = vpop.f32.mrf.mxu1 }
 0x291   :  { %18293 = vst [vmem:[#allocation13_spill] sm:$0xff] %v14838_v37 }
 0x292   :  { %v14840_v38 = vpop.f32.mrf.mxu0  ;;  %v14843_v39 = vpop.f32.mrf.mxu1 }
 0x294   :  { %2931 = vmatmul.mubr.bf16.vlgmr.msra.gmra.mxu0 %v14713_v57  ;;  %v14847_v21 = vpop.f32.mrf.mxu0  ;;  %v14851_v41 = vpop.f32.mrf.mxu1 }
 0x295   :  { %10679 = vmatprep.mubr.msk.bf16.mxu0 %vm1228_vm9, %v14723_v31 }
 0x296   :  { %v14849_v40 = vpop.f32.mrf.mxu0  ;;  %v14858_v45 = vpop.f32.mrf.mxu1 }
 0x298   :  { %v14853_v20 = vpop.f32.mrf.mxu0  ;;  %v14866_v50 = vpop.f32.mrf.mxu1 }
 0x29a   :  { %v14855_v42 = vpop.f32.mrf.mxu0 }
 0x29b   :  { %v14873_v55 = vpop.f32.mrf.mxu1 }
 0x29c   :  { %2939 = vmatmul.mubr.bf16.gmra.mxu0 %v14742_v46  ;;  %v14862_v47 = vpop.f32.mrf.mxu0 }
 0x29d   :  { %10680 = vmatprep.mubr.msk.bf16.mxu0 %vm1228_vm9, %v14749_v3  ;;  %v14881_v56 = vpop.f32.mrf.mxu1 }
 0x29e   :  { %v14864_v49 = vpop.f32.mrf.mxu0 }
 0x29f   :  { %v14885_v31 = vpop.f32.mrf.mxu1 }
 0x2a0   :  { %v14868_v51 = vpop.f32.mrf.mxu0 }
 0x2a1   :  { %v14892_v1 = vpop.f32.mrf.mxu1 }
 0x2a2   :  { %v14870_v54 = vpop.f32.mrf.mxu0 }
 0x2a3   :  { %v14896_v32 = vpop.f32.mrf.mxu1 }
 0x2a4   :  { %2947 = vmatmul.mubr.bf16.gmra.mxu0 %v14768_v10  ;;  %v14877_v59 = vpop.f32.mrf.mxu0 }
 0x2a5   :  { %10681 = vmatprep.mubr.msk.bf16.mxu0 %vm1228_vm9, %v14775_v11  ;;  %v14902_v5 = vpop.f32.mrf.mxu1 }
 0x2a6   :  { %v14879_v48 = vpop.f32.mrf.mxu0  ;;  %18294 = vst [vmem:[#allocation14_spill] sm:$0xff] %v14902_v5 }
 0x2a7   :  { %v14906_v10 = vpop.f32.mrf.mxu1 }
 0x2a8   :  { %v14883_v57 = vpop.f32.mrf.mxu0  ;;  %18295 = vst [vmem:[#allocation15_spill] sm:$0xff] %v14906_v10 }
 0x2a9   :  { %v14912_v12 = vpop.f32.mrf.mxu1 }
 0x2aa   :  { %v11629_v7 = vpop.f32.mrf.mxu0  ;;  %18296 = vst [vmem:[#allocation16_spill] sm:$0xff] %v14912_v12 }
 0x2ac   :  { %2955 = vmatmul.mubr.bf16.gmra.mxu0 %v2287_v25  ;;  %v11630_v63 = vpop.f32.mrf.mxu0 }
 0x2ad   :  { %10682 = vmatprep.mubr.msk.bf16.mxu0 %vm1228_vm9, %v2293_v24  ;;  %v14888_v0 = vadd.f32 %v11630_v63, %v11629_v7  ;;  %vm7594_vm9 = vcmask 318464  }
 0x2ae   :  { %v14890_v8 = vpop.f32.mrf.mxu0 }
 0x2b0   :  { %v14894_v2 = vpop.f32.mrf.mxu0 }
 0x2b2   :  { %v11635_v46 = vpop.f32.mrf.mxu0 }
 0x2b4   :  { %2963 = vmatmul.mubr.bf16.gmra.mxu0 %v2291_v61  ;;  %v11636_v3 = vpop.f32.mrf.mxu0 }
 0x2b5   :  { %v14898_v58 = vadd.f32 %v11636_v3, %v11635_v46 }
 0x2b6   :  { %v14900_v4 = vpop.f32.mrf.mxu0 }
 0x2b8   :  { %v14904_v6 = vpop.f32.mrf.mxu0 }
 0x2ba   :  { %v11641_v9 = vpop.f32.mrf.mxu0 }
 0x2bc   :  { %v11642_v62 = vpop.f32.mrf.mxu0 }
 0x2bd   :  { %v14908_v11 = vadd.f32 %v11642_v62, %v11641_v9 }
 0x2be   :  { %v14910_v23 = vpop.f32.mrf.mxu0 }
 0x2c0   :  { %v14914_v13 = vpop.f32.mrf.mxu0 }
 0x2c2   :  { %v11647_v15 = vpop.f32.mrf.mxu0 }
 0x2c3   :  { %v1966_v14 = vpop.f32.mrf.mxu1 }
 0x2c4   :  { %v14917_v25 = vadd.f32 %v1966_v14, %v14798_v17  ;;  %v11648_v24 = vpop.f32.mrf.mxu0 }
 0x2c5   :  { %v1968_v16 = vpop.f32.mrf.mxu1  ;;  %v14922_v28 = vadd.f32 %v11648_v24, %v11647_v15 }
 0x2c6   :  { %v14920_v26 = vadd.f32 %v1968_v16, %v14804_v43  ;;  %v14924_v7 = vpop.f32.mrf.mxu0 }
 0x2c7   :  { %v1970_v61 = vpop.f32.mrf.mxu1 }
 0x2c8   :  { %v14927_v63 = vadd.f32 %v1970_v61, %v14812_v52  ;;  %v14931_v3 = vpop.f32.mrf.mxu0 }
 0x2c9   :  { %v14929_v46 = vpop.f32.mrf.mxu1 }
 0x2ca   :  { %v11653_v17 = vpop.f32.mrf.mxu0 }
 0x2cb   :  { %v1976_v9 = vpop.f32.mrf.mxu1 }
 0x2cc   :  { %v14934_v62 = vadd.f32 %v1976_v9, %v14821_v34  ;;  %v11654_v43 = vpop.f32.mrf.mxu0 }
 0x2cd   :  { %v1978_v14 = vpop.f32.mrf.mxu1  ;;  %v14939_v16 = vadd.f32 %v11654_v43, %v11653_v17 }
 0x2ce   :  { %v14937_v15 = vadd.f32 %v1978_v14, %v14828_v44 }
 0x2cf   :  { %v1980_v24 = vpop.f32.mrf.mxu1 }
 0x2d0   :  { %v14942_v52 = vadd.f32 %v1980_v24, %v14832_v36 }
 0x2d1   :  { %v14944_v61 = vpop.f32.mrf.mxu1 }
 0x2d2   :  { %18297 = vst [vmem:[#allocation17_spill] sm:$0xff] %v14942_v52 }
 0x2d3   :  { %v1986_v18 = vpop.f32.mrf.mxu1 }
 0x2d4   :  { %v14947_v33 = vadd.f32 %v1986_v18, %v14840_v38 }
 0x2d5   :  { %v1988_v37 = vpop.f32.mrf.mxu1 }
 0x2d6   :  { %18298 = vst [vmem:[#allocation18_spill] sm:$0xff] %v14947_v33  ;;  %v14950_v34 = vadd.f32 %v1988_v37, %v14847_v21 }
 0x2d7   :  { %v1990_v9 = vpop.f32.mrf.mxu1 }
 0x2d8   :  { %18299 = vst [vmem:[#allocation19_spill] sm:$0xff] %v14950_v34  ;;  %v14953_v44 = vadd.f32 %v1990_v9, %v14849_v40  ;;  %v11656_v9 = vpop.f32.mrf.mxu0 }
 0x2d9   :  { %v14955_v17 = vpop.f32.mrf.mxu1 }
 0x2da   :  { %18300 = vst [vmem:[#allocation20_spill] sm:$0xff] %v14953_v44 }
 0x2db   :  { %v1996_v14 = vpop.f32.mrf.mxu1 }
 0x2dc   :  { %v14958_v36 = vadd.f32 %v1996_v14, %v14855_v42 }
 0x2dd   :  { %v1998_v43 = vpop.f32.mrf.mxu1 }
 0x2de   :  { %18301 = vst [vmem:[#allocation21_spill] sm:$0xff] %v14958_v36  ;;  %v14961_v24 = vadd.f32 %v1998_v43, %v14862_v47  ;;  %v11657_v47 = vpop.f32.mrf.mxu0 }
 0x2df   :  { %v2000_v18 = vpop.f32.mrf.mxu1 }
 0x2e0   :  { %18302 = vst [vmem:[#allocation22_spill] sm:$0xff] %v14961_v24  ;;  %v14964_v38 = vadd.f32 %v2000_v18, %v14864_v49 }
 0x2e1   :  { %v14966_v37 = vpop.f32.mrf.mxu1 }
 0x2e2   :  { %18303 = vst [vmem:[#allocation23_spill] sm:$0xff] %v14964_v38 }
 0x2e3   :  { %v2006_v21 = vpop.f32.mrf.mxu1 }
 0x2e4   :  { %v14969_v40 = vadd.f32 %v2006_v21, %v14870_v54 }
 0x2e5   :  { %v2008_v44 = vpop.f32.mrf.mxu1 }
 0x2e6   :  { %18304 = vst [vmem:[#allocation24_spill] sm:$0xff] %v14969_v40  ;;  %v14972_v34 = vadd.f32 %v2008_v44, %v14877_v59 }
 0x2e7   :  { %v2010_v42 = vpop.f32.mrf.mxu1 }
 0x2e8   :  { %18305 = vst [vmem:[#allocation25_spill] sm:$0xff] %v14972_v34  ;;  %v14975_v14 = vadd.f32 %v2010_v42, %v14879_v48  ;;  %v11634_v42 = vadd.f32 %v14894_v2, %v14890_v8  ;;  %v11640_v8 = vadd.f32 %v14904_v6, %v14900_v4 }
 0x2e9   :  { %v14977_v43 = vpop.f32.mrf.mxu1 }
 0x2ea   :  { %18306 = vst [vmem:[#allocation26_spill] sm:$0xff] %v14975_v14  ;;  %v14979_v49 = vpop.f32.mrf.mxu0 }
 0x2eb   :  { %v11675_v18 = vpop.f32.mrf.mxu1 }
 0x2ec   :  { %v14981_v36 = vpop.f32.mrf.mxu0 }
 0x2ed   :  { %v11676_v38 = vpop.f32.mrf.mxu1 }
 0x2ee   :  { %v11677_v54 = vadd.f32 %v11676_v38, %v11675_v18  ;;  %v14983_v21 = vpop.f32.mrf.mxu0 }
 0x2ef   :  { %v11678_v40 = vpop.f32.mrf.mxu1 }
 0x2f0   :  { %v14986_v59 = vadd.f32 %v11677_v54, %v14888_v0  ;;  %v14988_v44 = vpop.f32.mrf.mxu0 }
 0x2f1   :  { %18308 = vst [vmem:[#allocation28_spill] sm:$0xff] %v14988_v44  ;;  %v11679_v48 = vpop.f32.mrf.mxu1 }
 0x2f2   :  { %18307 = vst [vmem:[#allocation27_spill] sm:$0xff] %v14986_v59  ;;  %v11680_v14 = vadd.f32 %v11679_v48, %v11678_v40  ;;  %v14992_v34 = vpop.f32.mrf.mxu0 }
 0x2f3   :  { %v11681_v24 = vpop.f32.mrf.mxu1 }
 0x2f4   :  { %v14994_v33 = vadd.f32 %v11680_v14, %v11634_v42  ;;  %v14996_v12 = vpop.f32.mrf.mxu0 }
 0x2f5   :  { %v11682_v38 = vpop.f32.mrf.mxu1 }
 0x2f6   :  { %18309 = vst [vmem:[#allocation29_spill] sm:$0xff] %v14994_v33  ;;  %v11683_v18 = vadd.f32 %v11682_v38, %v11681_v24  ;;  %v14998_v52 = vpop.f32.mrf.mxu0 }
 0x2f7   :  { %v11684_v0 = vpop.f32.mrf.mxu1 }
 0x2f8   :  { %v15001_v54 = vadd.f32 %v11683_v18, %v14898_v58  ;;  %v15005_v2 = vpop.f32.mrf.mxu0  ;;  %v11646_v18 = vadd.f32 %v14914_v13, %v14910_v23 }
 0x2f9   :  { %v11685_v44 = vpop.f32.mrf.mxu1  ;;  %18311 = vst [vmem:[#allocation31_spill] sm:$0xff] %v15005_v2 }
 0x2fa   :  { %18310 = vst [vmem:[#allocation30_spill] sm:$0xff] %v15001_v54  ;;  %v11686_v40 = vadd.f32 %v11685_v44, %v11684_v0  ;;  %v15009_v33 = vpop.f32.mrf.mxu0 }
 0x2fb   :  { %v11687_v48 = vpop.f32.mrf.mxu1 }
 0x2fc   :  { %v15007_v14 = vadd.f32 %v11686_v40, %v11640_v8  ;;  %v15016_v54 = vpop.f32.mrf.mxu0 }
 0x2fd   :  { %v11688_v42 = vpop.f32.mrf.mxu1 }
 0x2fe   :  { %18312 = vst [vmem:[#allocation32_spill] sm:$0xff] %v15007_v14  ;;  %v11689_v24 = vadd.f32 %v11688_v42, %v11687_v48  ;;  %v15020_v8 = vpop.f32.mrf.mxu0  ;;  %v11652_v42 = vadd.f32 %v14931_v3, %v14924_v7 }
 0x2ff   :  { %v11690_v38 = vpop.f32.mrf.mxu1 }
 0x300   :  { %v15012_v59 = vadd.f32 %v11689_v24, %v14908_v11  ;;  %v15027_v24 = vpop.f32.mrf.mxu0 }
 0x301   :  { %v11691_v58 = vpop.f32.mrf.mxu1 }
 0x302   :  { %18313 = vst [vmem:[#allocation33_spill] sm:$0xff] %v15012_v59  ;;  %v11692_v4 = vadd.f32 %v11691_v58, %v11690_v38 }
 0x303   :  { %v11693_v6 = vpop.f32.mrf.mxu1 }
 0x304   :  { %v15018_v44 = vadd.f32 %v11692_v4, %v11646_v18  ;;  %v15031_v18 = vpop.f32.mrf.mxu0 }
 0x305   :  { %v11694_v0 = vpop.f32.mrf.mxu1 }
 0x306   :  { %18314 = vst [vmem:[#allocation34_spill] sm:$0xff] %v15018_v44  ;;  %v11695_v40 = vadd.f32 %v11694_v0, %v11693_v6  ;;  %v11658_v0 = vadd.f32 %v11657_v47, %v11656_v9  ;;  %v2052_v9 = vadd.f32 %v14981_v36, %v14806_v27  ;;  %v3021_v27 = vld [vmem:[%s18327_s0] sm:$0x1f]  ;;  %s18459_s0 = sld [smem:[#allocation64_spill]] }
 0x307   :  { %v11696_v2 = vpop.f32.mrf.mxu1 }
 0x308   :  { %v15023_v48 = vadd.f32 %v11695_v40, %v14922_v28  ;;  %v15036_v40 = vpop.f32.mrf.mxu0 }
 0x309   :  { %v11697_v11 = vpop.f32.mrf.mxu1 }
 0x30a   :  { %18315 = vst [vmem:[#allocation35_spill] sm:$0xff] %v15023_v48  ;;  %v11698_v23 = vadd.f32 %v11697_v11, %v11696_v2  ;;  %v15040_v3 = vpop.f32.mrf.mxu0 }
 0x30b   :  { %v11699_v13 = vpop.f32.mrf.mxu1 }
 0x30c   :  { %v15029_v38 = vadd.f32 %v11698_v23, %v11652_v42  ;;  %v15042_v2 = vpop.f32.mrf.mxu0 }
 0x30d   :  { %v11700_v58 = vpop.f32.mrf.mxu1 }
 0x30e   :  { %18316 = vst [vmem:[#allocation36_spill] sm:$0xff] %v15029_v38  ;;  %v11701_v4 = vadd.f32 %v11700_v58, %v11699_v13  ;;  %v15044_v11 = vpop.f32.mrf.mxu0  ;;  %v3023_v13 = vlaneseq }
 0x30f   :  { %v11702_v44 = vpop.f32.mrf.mxu1  ;;  %18319 = vst [vmem:[#allocation39_spill] sm:$0xff] %v15044_v11 }
 0x310   :  { %v15034_v6 = vadd.f32 %v11701_v4, %v14939_v16  ;;  %v15046_v42 = vpop.f32.mrf.mxu0 }
 0x311   :  { %v11703_v28 = vpop.f32.mrf.mxu1  ;;  %18320 = vst [vmem:[#allocation40_spill] sm:$0xff] %v15046_v42  ;;  %v2054_v42 = vadd.f32 %v14983_v21, %v14814_v29  ;;  %v2060_v21 = vadd.f32 %v14992_v34, %v14823_v35 }
 0x312   :  { %18317 = vst [vmem:[#allocation37_spill] sm:$0xff] %v15034_v6  ;;  %v11704_v48 = vadd.f32 %v11703_v28, %v11702_v44  ;;  %v15048_v23 = vpop.f32.mrf.mxu0  ;;  %v15054_v44 = vshrl.u32 %v3023_v13, 7 }
 0x313   :  { %18321 = vst [vmem:[#allocation41_spill] sm:$0xff] %v15048_v23 }
 0x314   :  { %v15038_v7 = vadd.f32 %v11704_v48, %v11658_v0  ;;  %v15050_v16 = vpop.f32.mrf.mxu0  ;;  %18323 = vst [vmem:[#allocation43_spill] sm:$0xff] %v15054_v44  ;;  %v15061_v59 = vsub.s32 0, %v15054_v44  ;;  %v3037_v36 = vsub.s32 3, %v15054_v44  ;;  %v3041_v38 = vsub.s32 4, %v15054_v44 }
 0x315   :  { %18322 = vst [vmem:[#allocation42_spill] sm:$0xff] %v15050_v16 }
 0x316   :  { %18318 = vst [vmem:[#allocation38_spill] sm:$0xff] %v15038_v7  ;;  %18325 = vst [vmem:[#allocation45_spill] sm:$0xff] %v15061_v59  ;;  %v15082_v23 = vrot.slane %v3021_v27, %v15061_v59  ;;  %v15086_v5 = vrot.slane %v3021_v27, %v3037_v36 }
 0x318   :  { %18330 = vst [vmem:[#allocation48_spill] sm:$0xff] %v15086_v5 }
 0x32b   :  { %v2849_v58 = vpop.f32.mrf.mxu1 }
 0x32c   :  { %v2766_v47 = vpop.f32.mrf.mxu0 }
 0x32d   :  { %v2971_v48 = vadd.f32 %v2766_v47, %v14917_v25  ;;  %v2851_v4 = vpop.f32.mrf.mxu1  ;;  %v15070_v25 = vsub.s32 1, %v15054_v44  ;;  %v2062_v47 = vadd.f32 %v14996_v12, %v14830_v53 }
 0x32e   :  { %v15057_v28 = vadd.f32 %v2851_v4, %v2052_v9  ;;  %v2768_v0 = vpop.f32.mrf.mxu0 }
 0x32f   :  { %v2853_v7 = vpop.f32.mrf.mxu1  ;;  %18328 = vst [vmem:[#allocation47_spill] sm:$0xff] %v15070_v25  ;;  %v15089_v53 = vrot.slane %v3021_v27, %v15070_v25  ;;  %v2972_v36 = vadd.f32 %v2768_v0, %v14920_v26  ;;  %v15104_v25 = vrot.slane %v3021_v27, %v3041_v38  ;;  %v2070_v26 = vadd.f32 %v15009_v33, %v14843_v39 }
 0x330   :  { %18324 = vst [vmem:[#allocation44_spill] sm:$0xff] %v15057_v28  ;;  %v2770_v6 = vpop.f32.mrf.mxu0  ;;  %v2050_v28 = vadd.f32 %v14979_v49, %v14800_v22  ;;  %v1973_v22 = vadd.f32 %v14929_v46, %v14816_v30  ;;  %v1983_v49 = vadd.f32 %v14944_v61, %v14836_v19  ;;  %v15108_v30 = vadd.f32 %v14966_v37, %v14868_v51 }
 0x331   :  { %v15063_v14 = vpop.f32.mrf.mxu1  ;;  %v15112_v19 = vadd.f32 %v14977_v43, %v14883_v57  ;;  %v2976_v46 = vadd.f32 %v2770_v6, %v14927_v63  ;;  %v2072_v37 = vadd.f32 %v15016_v54, %v14851_v41  ;;  %v15126_v57 = vadd.f32 %v15020_v8, %v14858_v45 }
 0x332   :  { %18326 = vst [vmem:[#allocation46_spill] sm:$0xff] %v15063_v14  ;;  %v2772_v13 = vpop.f32.mrf.mxu0  ;;  %v18329_v14 = vsub.s32 2, %v15054_v44  ;;  %v2973_v44 = vadd.f32 %v2849_v58, %v2050_v28  ;;  %v2080_v39 = vadd.f32 %v15031_v18, %v14873_v55  ;;  %v15141_v41 = vadd.f32 %v15089_v53, %v2972_v36 }
 0x333   :  { %v2859_v9 = vpop.f32.mrf.mxu1  ;;  %v2977_v61 = vadd.f32 %v2772_v13, %v1973_v22  ;;  %v2084_v43 = vadd.f32 %v15040_v3, %v14885_v31  ;;  %v15153_v54 = vadd.f32 %v15082_v23, %v2976_v46  ;;  %v15169_v31 = vadd.f32 %v15042_v2, %v14892_v1  ;;  %v18341_v3 = vld [vmem:[#allocation40_spill] sm:$0xff]  ;;  %v18343_v2 = vld [vmem:[#allocation15_spill] sm:$0xff] }
 0x334   :  { %v2776_v4 = vpop.f32.mrf.mxu0  ;;  %v15079_v16 = vrot.slane %v3021_v27, %v18329_v14  ;;  %v15099_v14 = vadd.f32 %v14955_v17, %v14853_v20  ;;  %v2064_v20 = vadd.f32 %v14998_v52, %v14834_v60  ;;  %v2983_v34 = vadd.f32 %v2859_v9, %v2060_v21  ;;  %18334 = vst [vmem:[#allocation52_spill] sm:$0xff] %v15141_v41  ;;  %v18344_v27 = vld [vmem:[#allocation41_spill] sm:$0xff] }
 0x335   :  { %v2861_v10 = vpop.f32.mrf.mxu1  ;;  %v2981_v17 = vadd.f32 %v2776_v4, %v14934_v62  ;;  %v15130_v60 = vadd.f32 %v15027_v24, %v14866_v50  ;;  %v15138_v62 = vadd.f32 %v15082_v23, %v2971_v48  ;;  %v15148_v50 = vadd.f32 %v15036_v40, %v14881_v56  ;;  %18336 = vst [vmem:[#allocation54_spill] sm:$0xff] %v15153_v54  ;;  %v18339_v40 = vld [vmem:[#allocation39_spill] sm:$0xff]  ;;  %v18345_v9 = vld [vmem:[#allocation17_spill] sm:$0xff] }
 0x336   :  { %v15091_v12 = vadd.f32 %v2861_v10, %v2062_v47  ;;  %v2778_v11 = vpop.f32.mrf.mxu0  ;;  %v2978_v10 = vadd.f32 %v2853_v7, %v2054_v42  ;;  %v15133_v63 = vadd.f32 %v15079_v16, %v2973_v44  ;;  %v15157_v24 = vadd.f32 %v15089_v53, %v2977_v61  ;;  %18338 = vst [vmem:[#allocation56_spill] sm:$0xff] %v15169_v31  ;;  %v18340_v7 = vld [vmem:[#allocation14_spill] sm:$0xff]  ;;  %v18347_v61 = vld [vmem:[#allocation16_spill] sm:$0xff] }
 0x337   :  { %v2863_v29 = vpop.f32.mrf.mxu1  ;;  %18333 = vst [vmem:[#allocation51_spill] sm:$0xff] %v15130_v60  ;;  %18335 = vst [vmem:[#allocation53_spill] sm:$0xff] %v15148_v50  ;;  %v2982_v55 = vadd.f32 %v2778_v11, %v14937_v15  ;;  %v15160_v38 = vadd.f32 %v15079_v16, %v2983_v34  ;;  %v15163_v18 = vadd.f32 %v15082_v23, %v2981_v17  ;;  %v18244_v44 = vmax.f32 %v15138_v62, 0.0  ;;  %v18348_v34 = vld [vmem:[#allocation42_spill] sm:$0xff] }
 0x338   :  { %18331 = vst [vmem:[#allocation49_spill] sm:$0xff] %v15091_v12  ;;  %v2780_v47 = vpop.f32.mrf.mxu0  ;;  %v15144_v45 = vadd.f32 %v15079_v16, %v2978_v10  ;;  %v15173_v15 = vadd.f32 %v18339_v40, %v14896_v32  ;;  %v15177_v11 = vadd.f32 %v18341_v3, %v18340_v7  ;;  %v18245_v42 = vmax.f32 %v15133_v63, 0.0 }
 0x339   :  { %v15117_v35 = vpop.f32.mrf.mxu1  ;;  %v18243_v48 = vmax.f32 %v15141_v41, 0.0  ;;  %v2988_v0 = vadd.f32 %v2863_v29, %v2064_v20  ;;  %v15185_v13 = vadd.f32 %v18344_v27, %v18343_v2  ;;  %v15188_v32 = vadd.f32 %v15089_v53, %v2982_v55  ;;  %v18350_v27 = vld [vmem:[#allocation19_spill] sm:$0xff] }
 0x33a   :  { %18332 = vst [vmem:[#allocation50_spill] sm:$0xff] %v15117_v35  ;;  %v2782_v51 = vpop.f32.mrf.mxu0  ;;  %18342 = vst [vmem:[#allocation39_spill] sm:$0xff] %v15177_v11  ;;  %v18246_v28 = vmax.f32 %v15144_v45, 0.0  ;;  %v2986_v4 = vadd.f32 %v2780_v47, %v18345_v9  ;;  %v18242_v36 = vmax.f32 %v15153_v54, 0.0  ;;  %v18247_v10 = vmax.f32 %v15157_v24, 0.0  ;;  %v18349_v47 = vld [vmem:[#allocation18_spill] sm:$0xff] }
 0x33b   :  { %v2869_v33 = vpop.f32.mrf.mxu1  ;;  %v2987_v22 = vadd.f32 %v2782_v51, %v1983_v49  ;;  %v18248_v46 = vmax.f32 %v15160_v38, 0.0  ;;  %v18249_v29 = vmax.f32 %v15163_v18, 0.0  ;;  %v15199_v17 = vadd.f32 %v18348_v34, %v18347_v61 }
 0x33c   :  { %v2786_v52 = vpop.f32.mrf.mxu0  ;;  %v2993_v49 = vadd.f32 %v2869_v33, %v2070_v26  ;;  %v15212_v40 = vrot.slane %v18243_v48, 1  ;;  %v15216_v7 = vrot.slane %v18246_v28, 1  ;;  %v15219_v3 = vadd.f32 %v15079_v16, %v2988_v0  ;;  %v18352_v48 = vld [vmem:[#allocation22_spill] sm:$0xff] }
 0x33d   :  { %v2871_v8 = vpop.f32.mrf.mxu1  ;;  %v2991_v51 = vadd.f32 %v2786_v52, %v18349_v47  ;;  %v15223_v33 = vadd.f32 %v15082_v23, %v2986_v4  ;;  %v15226_v52 = vadd.f32 %v15089_v53, %v2987_v22  ;;  %v15233_v34 = vrot.slane %v18242_v36, 1 }
 0x33e   :  { %v15165_v56 = vadd.f32 %v2871_v8, %v2072_v37  ;;  %v2788_v6 = vpop.f32.mrf.mxu0  ;;  %v15203_v37 = vrot.slane %v18245_v42, 1  ;;  %v15208_v8 = vrot.slane %v18244_v44, 1  ;;  %v15237_v0 = vrot.slane %v18247_v10, 1 }
 0x33f   :  { %v2873_v58 = vpop.f32.mrf.mxu1  ;;  %v2992_v9 = vadd.f32 %v2788_v6, %v18350_v27  ;;  %v15241_v47 = vrot.slane %v18248_v46, 1  ;;  %v15245_v4 = vrot.slane %v18249_v29, 1  ;;  %v15248_v6 = vadd.f32 %v15079_v16, %v2993_v49 }
 0x340   :  { %18337 = vst [vmem:[#allocation55_spill] sm:$0xff] %v15165_v56  ;;  %v2790_v1 = vpop.f32.mrf.mxu0  ;;  %v15251_v27 = vadd.f32 %v15082_v23, %v2991_v51  ;;  %v2998_v10 = vadd.f32 %v2873_v58, %v15126_v57  ;;  %v18353_v59 = vmax.f32 %v15188_v32, 0.0  ;;  %v18358_v58 = vld [vmem:[#allocation24_spill] sm:$0xff] }
 0x341   :  { %v15191_v21 = vpop.f32.mrf.mxu1 }
 0x342   :  { %18346 = vst [vmem:[#allocation14_spill] sm:$0xff] %v15191_v21  ;;  %v2792_v20 = vpop.f32.mrf.mxu0  ;;  %v15259_v12 = vrot.slane %v18353_v59, 1  ;;  %v15279_v28 = vadd.f32 %v15079_v16, %v2998_v10 }
 0x343   :  { %v2879_v55 = vpop.f32.mrf.mxu1  ;;  %v2997_v46 = vadd.f32 %v2792_v20, %v15099_v14 }
 0x344   :  { %v2796_v2 = vpop.f32.mrf.mxu0  ;;  %v3003_v36 = vadd.f32 %v2879_v55, %v2080_v39  ;;  %v15264_v39 = vadd.f32 %v15089_v53, %v2992_v9  ;;  %v18355_v55 = vld [vmem:[#allocation20_spill] sm:$0xff]  ;;  %v3125_v21 = vmax.f32 %v15279_v28, 0.0 }
 0x345   :  { %v15229_v61 = vpop.f32.mrf.mxu1 }
 0x346   :  { %18351 = vst [vmem:[#allocation40_spill] sm:$0xff] %v15229_v61  ;;  %v2798_v22 = vpop.f32.mrf.mxu0  ;;  %v3080_v51 = vadd.f32 %v15079_v16, %v3003_v36 }
 0x347   :  { %v3002_v44 = vadd.f32 %v2798_v22, %v18352_v48  ;;  %v2883_v42 = vpop.f32.mrf.mxu1  ;;  %v2996_v22 = vadd.f32 %v2790_v1, %v18355_v55  ;;  %v18357_v1 = vld [vmem:[#allocation21_spill] sm:$0xff] }
 0x348   :  { %v3008_v26 = vadd.f32 %v2883_v42, %v2084_v43  ;;  %v2800_v29 = vpop.f32.mrf.mxu0  ;;  %v18356_v43 = vld [vmem:[#allocation23_spill] sm:$0xff] }
 0x349   :  { %v15266_v48 = vpop.f32.mrf.mxu1  ;;  %v3079_v57 = vadd.f32 %v15089_v53, %v3002_v44  ;;  %v3006_v42 = vadd.f32 %v2800_v29, %v18356_v43  ;;  %v15282_v44 = vadd.f32 %v15089_v53, %v2997_v46  ;;  %v15293_v10 = vadd.f32 %v15082_v23, %v2996_v22 }
 0x34a   :  { %18354 = vst [vmem:[#allocation15_spill] sm:$0xff] %v15266_v48  ;;  %v15271_v14 = vadd.f32 %v15079_v16, %v3008_v26  ;;  %v2802_v59 = vpop.f32.mrf.mxu0  ;;  %v3001_v26 = vadd.f32 %v2796_v2, %v18357_v1 }
 0x34b   :  { %v3007_v9 = vadd.f32 %v2802_v59, %v15108_v30  ;;  %v2889_v49 = vpop.f32.mrf.mxu1  ;;  %v3129_v46 = vmax.f32 %v3079_v57, 0.0  ;;  %v15296_v56 = vadd.f32 %v15082_v23, %v3006_v42 }
 0x34c   :  { %v3013_v29 = vadd.f32 %v2889_v49, %v15173_v15  ;;  %v2806_v55 = vpop.f32.mrf.mxu0  ;;  %v3135_v20 = vmax.f32 %v15271_v14, 0.0  ;;  %v3130_v49 = vmax.f32 %v3080_v51, 0.0  ;;  %v3078_v22 = vadd.f32 %v15082_v23, %v3001_v26  ;;  %v18361_v51 = vld [vmem:[#allocation26_spill] sm:$0xff] }
 0x34d   :  { %v3084_v36 = vadd.f32 %v15089_v53, %v3007_v9  ;;  %v3011_v30 = vadd.f32 %v2806_v55, %v18358_v58  ;;  %v15290_v59 = vpop.f32.mrf.mxu1  ;;  %v18360_v9 = vld [vmem:[#allocation25_spill] sm:$0xff] }
 0x34e   :  { %18359 = vst [vmem:[#allocation41_spill] sm:$0xff] %v15290_v59  ;;  %v15299_v15 = vadd.f32 %v15079_v16, %v3013_v29  ;;  %v2808_v2 = vpop.f32.mrf.mxu0  ;;  %v3268_v61 = vrot.slane %v3135_v20, 1  ;;  %v15313_v26 = vrot.slane %v3130_v49, 1  ;;  %v3128_v59 = vmax.f32 %v3078_v22, 0.0 }
 0x34f   :  { %v3134_v1 = vmax.f32 %v3084_v36, 0.0  ;;  %v3088_v14 = vadd.f32 %v15082_v23, %v3011_v30  ;;  %v3012_v43 = vadd.f32 %v2808_v2, %v18360_v9  ;;  %v2893_v58 = vpop.f32.mrf.mxu1  ;;  %v3256_v30 = vrot.slane %v3129_v46, 1 }
 0x350   :  { %v3018_v42 = vadd.f32 %v2893_v58, %v15185_v13  ;;  %v2810_v35 = vpop.f32.mrf.mxu0  ;;  %v3133_v2 = vmax.f32 %v15296_v56, 0.0 }
 0x351   :  { %v3266_v29 = vrot.slane %v3134_v1, 1  ;;  %v15308_v50 = vadd.f32 %v15089_v53, %v3012_v43  ;;  %v3016_v36 = vadd.f32 %v2810_v35, %v18361_v51  ;;  %v3138_v9 = vmax.f32 %v3088_v14, 0.0 }
 0x352   :  { %v3095_v55 = vadd.f32 %v15079_v16, %v3018_v42  ;;  %v2812_v5 = vpop.f32.mrf.mxu0  ;;  %v18362_v43 = vmax.f32 %v15299_v15, 0.0  ;;  %v3264_v48 = vrot.slane %v3133_v2, 1 }
 0x353   :  { %v3139_v57 = vmax.f32 %v15308_v50, 0.0  ;;  %v3093_v13 = vadd.f32 %v15082_v23, %v3016_v36  ;;  %v3017_v58 = vadd.f32 %v2812_v5, %v15112_v19  ;;  %v3267_v56 = vsel %vm2271_vm13, %v3256_v30, %v3266_v29 }
 0x354   :  { %v3278_v11 = vrot.slane %v18362_v43, 1  ;;  %v3145_v35 = vmax.f32 %v3095_v55, 0.0  ;;  %v15320_v51 = vpop.f32.mrf.mxu0  ;;  %v3269_v50 = vsel %vm2271_vm13, %v15313_v26, %v3268_v61  ;;  %v3274_v23 = vrot.slane %v3138_v9, 1 }
 0x355   :  { %v3276_v14 = vrot.slane %v3139_v57, 1  ;;  %v3143_v16 = vmax.f32 %v3093_v13, 0.0  ;;  %v3094_v42 = vadd.f32 %v15089_v53, %v3017_v58  ;;  %v15326_v5 = vmax.f32 %v3129_v46, %v3267_v56 }
 0x356   :  { %v11722_v36 = vpop.f32.mrf.mxu0  ;;  %v15328_v19 = vmax.f32 %v3130_v49, %v3269_v50  ;;  %v3288_v22 = vrot.slane %v3145_v35, 1  ;;  %v15332_v13 = vrot.slane %v3128_v59, 1  ;;  %v3279_v60 = vsel %vm2271_vm13, %v3268_v61, %v3278_v11 }
 0x357   :  { %18363 = vst [vmem:[#allocation17_spill] sm:$0xff] %v15326_v5  ;;  %v3284_v55 = vrot.slane %v3143_v16, 1  ;;  %v3144_v43 = vmax.f32 %v3094_v42, 0.0  ;;  %v3277_v31 = vsel %vm2271_vm13, %v3266_v29, %v3276_v14  ;;  %v15343_v28 = vmax.f32 %v3135_v20, %v3279_v60 }
 0x358   :  { %18364 = vst [vmem:[#allocation16_spill] sm:$0xff] %v15328_v19  ;;  %v11724_v53 = vpop.f32.mrf.mxu0  ;;  %v12337_v58 = vpack.i.bf16 %v15328_v19, %v15326_v5  ;;  %v15340_v50 = vmax.f32 %v3134_v1, %v3277_v31  ;;  %v3265_v19 = vsel %vm2271_vm13, %v15332_v13, %v3264_v48  ;;  %v3275_v61 = vsel %vm2271_vm13, %v3264_v48, %v3274_v23 }
 0x359   :  { %v15338_v56 = vmax.f32 %v3143_v16, %v3284_v55  ;;  %v3286_v49 = vrot.slane %v3144_v43, 1  ;;  %18366 = vst [vmem:[#allocation18_spill] sm:$0xff] %v15343_v28  ;;  %v3285_v42 = vsel %vm2271_vm13, %v3274_v23, %v3284_v55  ;;  %v18367_v46 = vmax.f32 %v15282_v44, 0.0 }
 0x35a   :  { %18365 = vst [vmem:[#allocation42_spill] sm:$0xff] %v15340_v50  ;;  %12338 = vrot.lane.b32.xlu1 %v12337_v58, %s13616_s2  ;;  %v11725_v29 = vpop.f32.mrf.mxu0  ;;  %v15351_v5 = vmax.f32 %v3145_v35, %v3288_v22  ;;  %v15353_v31 = vmax.f32 %v3138_v9, %v3285_v42  ;;  %v12342_v60 = vpack.i.bf16 %v15343_v28, %v15340_v50  ;;  %v18370_v48 = vmax.f32 %v15219_v3, 0.0 }
 0x35b   :  { %v3246_v16 = vrot.slane %v18367_v46, 1  ;;  %v15355_v1 = vmax.f32 %v3144_v43, %v3286_v49  ;;  %v15359_v20 = vmax.f32 %v3128_v59, %v3265_v19  ;;  %v15361_v55 = vmax.f32 %v3133_v2, %v3275_v61 }
 0x35c   :  { %18368 = vst [vmem:[#allocation19_spill] sm:$0xff] %v15351_v5  ;;  %18369 = vst [vmem:[#allocation22_spill] sm:$0xff] %v15353_v31  ;;  %v11727_v58 = vpop.f32.mrf.mxu0  ;;  %v3287_v54 = vsel %vm2271_vm13, %v3276_v14, %v3286_v49  ;;  %v3228_v23 = vrot.slane %v18370_v48, 1  ;;  %v18371_v35 = vmax.f32 %v15223_v33, 0.0  ;;  %v3248_v9 = vrot.slane %v3125_v21, 1  ;;  %12343 = vrot.lane.b32.xlu0 %v12342_v60, %s13616_s2 }
 0x35d   :  { %v12347_v43 = vpack.i.bf16 %v15338_v56, %v15353_v31  ;;  %v18372_v42 = vmax.f32 %v15226_v52, 0.0  ;;  %v12357_v2 = vpack.i.bf16 %v15351_v5, %v15355_v1  ;;  %v3289_v14 = vsel %vm2271_vm13, %v3278_v11, %v3288_v22 }
 0x35e   :  { %v3224_v46 = vrot.slane %v18371_v35, 1  ;;  %v11728_v59 = vpop.f32.mrf.mxu0  ;;  %v3257_v19 = vsel %vm2271_vm13, %v3246_v16, %v3256_v30  ;;  %v18373_v49 = vmax.f32 %v15248_v6, 0.0  ;;  %v18374_v48 = vmax.f32 %v15264_v39, 0.0 }
 0x35f   :  { %v3226_v41 = vrot.slane %v18372_v42, 1  ;;  %v11729_v28 = vadd.f32 %v11728_v59, %v11727_v58  ;;  %12348 = vrot.lane.b32.xlu1 %v12347_v43, %s13616_s2  ;;  %v15382_v42 = vmax.f32 %v3139_v57, %v3287_v54  ;;  %v18375_v60 = vmax.f32 %v15251_v27, 0.0 }
 0x360   :  { %v3238_v61 = vrot.slane %v18373_v49, 1  ;;  %v3236_v35 = vrot.slane %v18374_v48, 1  ;;  %v18376_v5 = vmax.f32 %v15293_v10, 0.0  ;;  %v11730_v11 = vpop.f32.mrf.mxu0  ;;  %v12352_v30 = vpack.i.bf16 %v15361_v55, %v15359_v20  ;;  %12358 = vrot.lane.b32.xlu0 %v12357_v2, %s13616_s2 }
 0x361   :  { %v3234_v50 = vrot.slane %v18375_v60, 1  ;;  %v3259_v22 = vsel %vm2271_vm13, %v3248_v9, %v15313_v26  ;;  %v18377_v49 = vmax.f32 %v15299_v15, 0.0  ;;  %v18378_v54 = vmax.f32 %v15282_v44, 0.0 }
 0x362   :  { %v3244_v31 = vrot.slane %v18376_v5, 1  ;;  %v3247_v43 = vsel %vm2271_vm13, %v3236_v35, %v3246_v16  ;;  %v3249_v59 = vsel %vm2271_vm13, %v3238_v61, %v3248_v9  ;;  %v11723_v5 = vadd.f32 %v11722_v36, %v15320_v51  ;;  %v11731_v60 = vpop.f32.mrf.mxu0 }
 0x363   :  { %v15394_v58 = vmax.f32 %v18377_v49, %v3289_v14  ;;  %v15398_v57 = vmax.f32 %v18378_v54, %v3257_v19  ;;  %v11726_v48 = vadd.f32 %v11725_v29, %v11724_v53  ;;  %v3227_v26 = vsel %vm2271_vm13, %v15259_v12, %v3226_v41  ;;  %v18379_v14 = vld [vmem:[#allocation30_spill] sm:$0xff]  ;;  %12353 = vrot.lane.b32.xlu1 %v12352_v30, %s13616_s2 }
 0x364   :  { %v3229_v15 = vsel %vm2271_vm13, %v15241_v47, %v3228_v23  ;;  %v2985_v44 = vadd.f32 %v11729_v28, %v18379_v14  ;;  %v11732_v19 = vadd.f32 %v11731_v60, %v11730_v11  ;;  %v15412_v9 = vmax.f32 %v3125_v21, %v3259_v22  ;;  %v11733_v51 = vpop.f32.mrf.mxu0  ;;  %v18388_v14 = vld [vmem:[#allocation27_spill] sm:$0xff] }
 0x365   :  { %v12362_v16 = vpack.i.bf16 %v15394_v58, %v15382_v42  ;;  %v18380_v36 = vmax.f32 %v15264_v39, 0.0  ;;  %v18381_v29 = vmax.f32 %v15248_v6, 0.0  ;;  %v18382_v49 = vmax.f32 %v15160_v38, 0.0 }
 0x366   :  { %v3245_v11 = vsel %vm2271_vm13, %v3234_v50, %v3244_v31  ;;  %v12372_v30 = vpack.i.bf16 %v15412_v9, %v15398_v57  ;;  %v18384_v21 = vmax.f32 %v15188_v32, 0.0  ;;  %v3255_v39 = vsel %vm2271_vm13, %v3244_v31, %v15332_v13  ;;  %v18389_v31 = vld [vmem:[#allocation29_spill] sm:$0xff] }
 0x367   :  { %v15416_v53 = vmax.f32 %v18380_v36, %v3247_v43  ;;  %v15420_v2 = vmax.f32 %v18381_v29, %v3249_v59  ;;  %v15424_v28 = vmax.f32 %v18382_v49, %v3229_v15  ;;  %v18385_v6 = vmax.f32 %v15251_v27, 0.0  ;;  %v18386_v43 = vld [vmem:[#allocation32_spill] sm:$0xff]  ;;  %12363 = vrot.lane.b32.xlu0 %v12362_v16, %s13616_s2  ;;  %v11734_v59 = vpop.f32.mrf.mxu0 }
 0x368   :  { %v15431_v22 = vmax.f32 %v18384_v21, %v3227_v26  ;;  %v2990_v38 = vadd.f32 %v11732_v19, %v18386_v43  ;;  %v18387_v60 = vmax.f32 %v15293_v10, 0.0  ;;  %v3225_v32 = vsel %vm2271_vm13, %v15245_v4, %v3224_v46  ;;  %12373 = vrot.lane.b32.xlu1 %v12372_v30, %s13616_s2 }
 0x369   :  { %18383 = vst [vmem:[#allocation20_spill] sm:$0xff] %v15424_v28  ;;  %v15437_v54 = vmax.f32 %v18385_v6, %v3245_v11  ;;  %v3235_v26 = vsel %vm2271_vm13, %v3224_v46, %v3234_v50  ;;  %v2975_v13 = vadd.f32 %v11723_v5, %v18388_v14  ;;  %v2980_v27 = vadd.f32 %v11726_v48, %v18389_v31  ;;  %v11736_v29 = vpop.f32.mrf.mxu0  ;;  %v18392_v48 = vld [vmem:[#allocation33_spill] sm:$0xff]  ;;  %v18399_v31 = vld [vmem:[#allocation34_spill] sm:$0xff] }
 0x36a   :  { %v15443_v15 = vmax.f32 %v18387_v60, %v3255_v39  ;;  %v11735_v36 = vadd.f32 %v11734_v59, %v11733_v51  ;;  %v18390_v19 = vmax.f32 %v15163_v18, 0.0  ;;  %v12367_v10 = vpack.i.bf16 %v15420_v2, %v15416_v53 }
 0x36b   :  { %v18391_v49 = vmax.f32 %v15223_v33, 0.0  ;;  %v3237_v50 = vsel %vm2271_vm13, %v3226_v41, %v3236_v35  ;;  %v3239_v46 = vsel %vm2271_vm13, %v3228_v23, %v3238_v61  ;;  %v15464_v5 = vadd.f32 %v15104_v25, %v2985_v44  ;;  %v11737_v41 = vpop.f32.mrf.mxu0 }
 0x36c   :  { %v15453_v16 = vmax.f32 %v18390_v19, %v3225_v32  ;;  %v2995_v51 = vadd.f32 %v11735_v36, %v18392_v48  ;;  %v12382_v18 = vpack.i.bf16 %v15424_v28, %v15431_v22  ;;  %v18393_v30 = vmax.f32 %v15219_v3, 0.0  ;;  %12368 = vrot.lane.b32.xlu0 %v12367_v10, %s13616_s2 }
 0x36d   :  { %v15459_v11 = vmax.f32 %v18391_v49, %v3235_v26  ;;  %v15474_v33 = vadd.f32 %v15104_v25, %v2990_v38  ;;  %v12377_v23 = vpack.i.bf16 %v15443_v15, %v15437_v54  ;;  %v3217_v61 = vsel %vm2271_vm13, %v15237_v0, %v15259_v12  ;;  %v2895_v38 = vpop.f32.mrf.mxu1  ;;  %v11739_v59 = vpop.f32.mrf.mxu0 }
 0x36e   :  { %v15471_v21 = vmax.f32 %v18393_v30, %v3239_v46  ;;  %v3219_v35 = vsel %vm2271_vm13, %v15216_v7, %v15241_v47  ;;  %v3072_v3 = vadd.f32 %v15104_v25, %v2995_v51  ;;  %v11738_v44 = vadd.f32 %v11737_v41, %v11736_v29  ;;  %12383 = vrot.lane.b32.xlu1 %v12382_v18, %s13616_s2  ;;  %v18403_v51 = vld [vmem:[#allocation52_spill] sm:$0xff] }
 0x36f   :  { %v12392_v39 = vpack.i.bf16 %v15459_v11, %v15453_v16  ;;  %v18395_v6 = vmax.f32 %v15226_v52, 0.0  ;;  %v18396_v12 = vmax.f32 %v15157_v24, 0.0  ;;  %v18397_v47 = vmax.f32 %v15144_v45, 0.0 }
 0x370   :  { %18394 = vst [vmem:[#allocation23_spill] sm:$0xff] %v15471_v21  ;;  %v3204_v26 = vsel %vm2271_vm13, %v15212_v40, %v15237_v0  ;;  %v3207_v52 = vsel %vm2271_vm13, %v15203_v37, %v15216_v7  ;;  %v3122_v14 = vmax.f32 %v3072_v3, 0.0  ;;  %v3000_v36 = vadd.f32 %v11738_v44, %v18399_v31  ;;  %12378 = vrot.lane.b32.xlu0 %v12377_v23, %s13616_s2  ;;  %v11740_v0 = vpop.f32.mrf.mxu0  ;;  %v18410_v44 = vld [vmem:[#allocation56_spill] sm:$0xff] }
 0x371   :  { %v15491_v43 = vmax.f32 %v18395_v6, %v3237_v50  ;;  %v15495_v60 = vmax.f32 %v18396_v12, %v3217_v61  ;;  %v15499_v32 = vmax.f32 %v18397_v47, %v3219_v35  ;;  %v18400_v19 = vmax.f32 %v15133_v63, 0.0  ;;  %v18408_v61 = vld [vmem:[#allocation51_spill] sm:$0xff]  ;;  %v18409_v35 = vld [vmem:[#allocation14_spill] sm:$0xff] }
 0x372   :  { %v3201_v45 = vsel %vm2271_vm13, %v15208_v8, %v15233_v34  ;;  %v15516_v29 = vadd.f32 %v15104_v25, %v2980_v27  ;;  %v3117_v40 = vmax.f32 %v15474_v33, 0.0  ;;  %v3215_v37 = vsel %vm2271_vm13, %v15233_v34, %v15245_v4  ;;  %12393 = vrot.lane.b32.xlu1 %v12392_v39, %s13616_s2  ;;  %v11742_v46 = vpop.f32.mrf.mxu0  ;;  %v18407_v33 = vld [vmem:[#allocation35_spill] sm:$0xff] }
 0x373   :  { %18398 = vst [vmem:[#allocation21_spill] sm:$0xff] %v15499_v32  ;;  %v15510_v24 = vmax.f32 %v18400_v19, %v3207_v52  ;;  %v18402_v63 = vmax.f32 %v15138_v62, 0.0  ;;  %v3019_v10 = vadd.f32 %v2895_v38, %v15199_v17  ;;  %v3112_v8 = vmax.f32 %v15464_v5, 0.0  ;;  %v18405_v62 = vld [vmem:[#allocation54_spill] sm:$0xff]  ;;  %v18411_v39 = vld [vmem:[#allocation15_spill] sm:$0xff]  ;;  %v18414_v19 = vld [vmem:[#allocation48_spill] sm:$0xff] }
 0x374   :  { %v3077_v27 = vadd.f32 %v15104_v25, %v3000_v36  ;;  %v11741_v49 = vadd.f32 %v11740_v0, %v11739_v59  ;;  %v3242_v50 = vrot.slane %v3122_v14, 1  ;;  %v12387_v48 = vpack.i.bf16 %v15471_v21, %v15491_v43  ;;  %v11743_v12 = vpop.f32.mrf.mxu0  ;;  %v18412_v47 = vld [vmem:[#allocation39_spill] sm:$0xff]  ;;  %v18433_v21 = vld [vmem:[#allocation22_spill] sm:$0xff] }
 0x375   :  { %18401 = vst [vmem:[#allocation24_spill] sm:$0xff] %v15510_v24  ;;  %v15525_v7 = vmax.f32 %v18402_v63, %v3201_v45  ;;  %v18404_v34 = vmax.f32 %v18403_v51, 0.0  ;;  %v18406_v18 = vmax.f32 %v18405_v62, 0.0  ;;  %v3052_v17 = vadd.f32 %v15104_v25, %v2975_v13  ;;  %v18413_v13 = vld [vmem:[#allocation41_spill] sm:$0xff] }
 0x376   :  { %v3127_v5 = vmax.f32 %v3077_v27, 0.0  ;;  %v3005_v41 = vadd.f32 %v11741_v49, %v18407_v33  ;;  %v12402_v23 = vpack.i.bf16 %v15499_v32, %v15495_v60  ;;  %v2999_v3 = vadd.f32 %v18409_v35, %v18408_v61  ;;  %12388 = vrot.lane.b32.xlu0 %v12387_v48, %s13616_s2  ;;  %v18415_v48 = vld [vmem:[#allocation36_spill] sm:$0xff]  ;;  %v18416_v35 = vld [vmem:[#allocation53_spill] sm:$0xff] }
 0x377   :  { %v15535_v4 = vmax.f32 %v18404_v34, %v3204_v26  ;;  %v15539_v30 = vmax.f32 %v18406_v18, %v3215_v37  ;;  %v3009_v6 = vadd.f32 %v18411_v39, %v18410_v44  ;;  %v3107_v38 = vmax.f32 %v15516_v29, 0.0  ;;  %v11745_v37 = vpop.f32.mrf.mxu0  ;;  %v18417_v44 = vld [vmem:[#allocation40_spill] sm:$0xff] }
 0x378   :  { %v3232_v59 = vrot.slane %v3117_v40, 1  ;;  %v3014_v26 = vadd.f32 %v18413_v13, %v18412_v47  ;;  %v3252_v52 = vrot.slane %v3127_v5, 1  ;;  %v3082_v31 = vadd.f32 %v15104_v25, %v3005_v41  ;;  %12403 = vrot.lane.b32.xlu1 %v12402_v23, %s13616_s2 }
 0x379   :  { %v11744_v36 = vadd.f32 %v11743_v12, %v11742_v46  ;;  %v15556_v45 = vadd.f32 %v18414_v19, %v3019_v10  ;;  %v3222_v0 = vrot.slane %v3112_v8, 1  ;;  %v12397_v29 = vpack.i.bf16 %v15510_v24, %v15535_v4  ;;  %v11746_v46 = vpop.f32.mrf.mxu0 }
 0x37a   :  { %v3243_v63 = vsel %vm2271_vm13, %v3232_v59, %v3242_v50  ;;  %v3102_v27 = vmax.f32 %v3052_v17, 0.0  ;;  %v3132_v49 = vmax.f32 %v3082_v31, 0.0  ;;  %v3253_v34 = vsel %vm2271_vm13, %v3242_v50, %v3252_v52 }
 0x37b   :  { %v3010_v51 = vadd.f32 %v11744_v36, %v18415_v48  ;;  %v3212_v62 = vrot.slane %v3107_v38, 1  ;;  %12398 = vrot.lane.b32.xlu0 %v12397_v29, %s13616_s2  ;;  %v15564_v18 = vmax.f32 %v3122_v14, %v3253_v34  ;;  %v15566_v10 = vmax.f32 %v3117_v40, %v3243_v63  ;;  %v11748_v12 = vpop.f32.mrf.mxu0 }
 0x37c   :  { %v3233_v33 = vsel %vm2271_vm13, %v3222_v0, %v3232_v59  ;;  %v3262_v41 = vrot.slane %v3132_v49, 1  ;;  %v11747_v61 = vadd.f32 %v11746_v46, %v11745_v37  ;;  %v3004_v39 = vadd.f32 %v18417_v44, %v18416_v35  ;;  %v18418_v59 = vld [vmem:[#allocation37_spill] sm:$0xff]  ;;  %v18422_v35 = vld [vmem:[#allocation38_spill] sm:$0xff]  ;;  %v18423_v44 = vld [vmem:[#allocation12_spill] sm:$0xff] }
 0x37d   :  { %v3087_v23 = vadd.f32 %v15104_v25, %v3010_v51  ;;  %v15570_v17 = vmax.f32 %v3112_v8, %v3233_v33  ;;  %v3091_v50 = vadd.f32 %v18414_v19, %v3014_v26  ;;  %v12407_v14 = vpack.i.bf16 %v15539_v30, %v15525_v7  ;;  %v11749_v29 = vpop.f32.mrf.mxu0  ;;  %v18419_v46 = vld [vmem:[#allocation13_spill] sm:$0xff]  ;;  %v18420_v33 = vld [vmem:[#allocation31_spill] sm:$0xff] }
 0x37e   :  { %v3223_v40 = vsel %vm2271_vm13, %v3212_v62, %v3222_v0  ;;  %v3211_v47 = vrot.slane %v3102_v27, 1  ;;  %v3015_v31 = vadd.f32 %v11747_v61, %v18418_v59  ;;  %v3263_v36 = vsel %vm2271_vm13, %v3252_v52, %v3262_v41  ;;  %v18425_v59 = vld [vmem:[#allocation50_spill] sm:$0xff] }
 0x37f   :  { %v3137_v13 = vmax.f32 %v3087_v23, 0.0  ;;  %v3086_v8 = vadd.f32 %v18414_v19, %v3009_v6  ;;  %v3146_v37 = vmax.f32 %v15556_v45, 0.0  ;;  %12408 = vrot.lane.b32.xlu0 %v12407_v14, %s13616_s2  ;;  %v15583_v26 = vmax.f32 %v3127_v5, %v3263_v36  ;;  %v18424_v14 = vld [vmem:[#allocation28_spill] sm:$0xff] }
 0x380   :  { %v15585_v63 = vmax.f32 %v3107_v38, %v3223_v40  ;;  %v3092_v0 = vadd.f32 %v15104_v25, %v3015_v31  ;;  %v11750_v51 = vadd.f32 %v11749_v29, %v11748_v12  ;;  %v3213_v34 = vsel %vm2271_vm13, %v3211_v47, %v3212_v62 }
 0x381   :  { %v3272_v48 = vrot.slane %v3137_v13, 1  ;;  %v2066_v52 = vadd.f32 %v18420_v33, %v18419_v46  ;;  %v3081_v6 = vadd.f32 %v18414_v19, %v3004_v39  ;;  %v15592_v23 = vmax.f32 %v3102_v27, %v3213_v34 }
 0x382   :  { %v3141_v45 = vmax.f32 %v3091_v50, 0.0  ;;  %v3142_v61 = vmax.f32 %v3092_v0, 0.0  ;;  %v3020_v5 = vadd.f32 %v11750_v51, %v18422_v35  ;;  %v2056_v40 = vadd.f32 %v18424_v14, %v18423_v44  ;;  %v18426_v50 = vld [vmem:[#allocation46_spill] sm:$0xff]  ;;  %v18427_v0 = vld [vmem:[#allocation55_spill] sm:$0xff] }
 0x383   :  { %18421 = vst [vmem:[#allocation25_spill] sm:$0xff] %v15592_v23  ;;  %v3273_v38 = vsel %vm2271_vm13, %v3262_v41, %v3272_v48  ;;  %v2989_v12 = vadd.f32 %v18425_v59, %v2066_v52  ;;  %v3076_v62 = vadd.f32 %v18414_v19, %v2999_v3  ;;  %v3136_v31 = vmax.f32 %v3086_v8, 0.0 }
 0x384   :  { %v15600_v47 = vmax.f32 %v3132_v49, %v3273_v38  ;;  %v3290_v36 = vrot.slane %v3146_v37, 1  ;;  %v3282_v39 = vrot.slane %v3142_v61, 1  ;;  %v3097_v27 = vadd.f32 %v15104_v25, %v3020_v5  ;;  %v18428_v5 = vld [vmem:[#allocation49_spill] sm:$0xff] }
 0x385   :  { %v2979_v29 = vadd.f32 %v18426_v50, %v2056_v40  ;;  %v3071_v51 = vadd.f32 %v18414_v19, %v18427_v0  ;;  %v3131_v41 = vmax.f32 %v3081_v6, 0.0  ;;  %v3280_v34 = vrot.slane %v3141_v45, 1 }
 0x386   :  { %v3147_v46 = vmax.f32 %v3097_v27, 0.0  ;;  %v3283_v33 = vsel %vm2271_vm13, %v3272_v48, %v3282_v39  ;;  %v3066_v52 = vadd.f32 %v18414_v19, %v2989_v12  ;;  %v3126_v49 = vmax.f32 %v3076_v62, 0.0 }
 0x387   :  { %v15608_v3 = vmax.f32 %v3137_v13, %v3283_v33  ;;  %v3270_v8 = vrot.slane %v3136_v31, 1  ;;  %v3291_v38 = vsel %vm2271_vm13, %v3280_v34, %v3290_v36  ;;  %v3056_v25 = vadd.f32 %v18414_v19, %v2979_v29 }
 0x388   :  { %v3292_v35 = vrot.slane %v3147_v46, 1  ;;  %v3061_v44 = vadd.f32 %v18414_v19, %v18428_v5  ;;  %v3121_v14 = vmax.f32 %v3071_v51, 0.0  ;;  %v3260_v6 = vrot.slane %v3131_v41, 1 }
 0x389   :  { %v15614_v40 = vmax.f32 %v3146_v37, %v3290_v36  ;;  %v3116_v13 = vmax.f32 %v3066_v52, 0.0  ;;  %v15619_v12 = vmax.f32 %v3141_v45, %v3291_v38  ;;  %v3281_v27 = vsel %vm2271_vm13, %v3270_v8, %v3280_v34 }
 0x38a   :  { %v15616_v59 = vmax.f32 %v3147_v46, %v3292_v35  ;;  %v3293_v48 = vsel %vm2271_vm13, %v3282_v39, %v3292_v35  ;;  %v3250_v50 = vrot.slane %v3126_v49, 1  ;;  %v3271_v0 = vsel %vm2271_vm13, %v3260_v6, %v3270_v8  ;;  %v18429_v39 = vld [vmem:[#allocation44_spill] sm:$0xff] }
 0x38b   :  { %v15621_v62 = vmax.f32 %v3142_v61, %v3293_v48  ;;  %v18261_v36 = vmov 0.0   ;;  %v3051_v45 = vadd.f32 %v18414_v19, %v18429_v39  ;;  %v3111_v51 = vmax.f32 %v3061_v44, 0.0 }
 0x38c   :  { %v12417_v29 = vpack.i.bf16 %v15616_v59, %v15614_v40  ;;  %12048 = vmatprep.subr.bf16.mxu0 %v18261_v36  ;;  %v3240_v61 = vrot.slane %v3121_v14, 1  ;;  %v15633_v34 = vmax.f32 %v3136_v31, %v3281_v27  ;;  %v15636_v46 = vmax.f32 %v3131_v41, %v3271_v0  ;;  %12058 = vmatprep.mubr.msk.bf16.mxu0 %vm13618_vm14, %v18261_v36 }
 0x38d   :  { %v12412_v37 = vpack.i.bf16 %v15621_v62, %v15619_v12  ;;  %v3261_v33 = vsel %vm2271_vm13, %v3250_v50, %v3260_v6  ;;  %v3106_v52 = vmax.f32 %v3056_v25, 0.0  ;;  %v3230_v8 = vrot.slane %v3116_v13, 1 }
 0x38e   :  { %12418 = vrot.lane.b32.xlu0 %v12417_v29, %s13616_s2  ;;  %v12427_v35 = vpack.i.bf16 %v15608_v3, %v15633_v34  ;;  %v3251_v38 = vsel %vm2271_vm13, %v3240_v61, %v3250_v50  ;;  %v12422_v19 = vpack.i.bf16 %v15600_v47, %v15636_v46  ;;  %v3101_v5 = vmax.f32 %v3051_v45, 0.0 }
 0x38f   :  { %12413 = vrot.lane.b32.xlu1 %v12412_v37, %s13616_s2  ;;  %v3220_v44 = vrot.slane %v3111_v51, 1  ;;  %v15645_v31 = vmax.f32 %v3126_v49, %v3261_v33  ;;  %v15648_v41 = vmax.f32 %v3121_v14, %v3251_v38  ;;  %v3241_v25 = vsel %vm2271_vm13, %v3230_v8, %v3240_v61 }
 0x390   :  { %v3209_v6 = vrot.slane %v3106_v52, 1  ;;  %v3208_v29 = vrot.slane %v3101_v5, 1  ;;  %v15657_v49 = vmax.f32 %v3116_v13, %v3241_v25 }
 0x391   :  { %v12437_v48 = vpack.i.bf16 %v15583_v26, %v15645_v31  ;;  %v3231_v27 = vsel %vm2271_vm13, %v3220_v44, %v3230_v8  ;;  %v12432_v50 = vpack.i.bf16 %v15564_v18, %v15648_v41 }
 0x392   :  { %12428 = vrot.lane.b32.xlu0 %v12427_v35, %s13616_s2  ;;  %v15660_v14 = vmax.f32 %v3111_v51, %v3231_v27  ;;  %v3221_v0 = vsel %vm2271_vm13, %v3209_v6, %v3220_v44  ;;  %v12447_v37 = vpack.i.bf16 %v15566_v10, %v15657_v49  ;;  %v3210_v39 = vsel %vm2271_vm13, %v3208_v29, %v3209_v6 }
 0x393   :  { %12423 = vrot.lane.b32.xlu1 %v12422_v19, %s13616_s2  ;;  %v15669_v61 = vmax.f32 %v3106_v52, %v3221_v0  ;;  %v15672_v13 = vmax.f32 %v3101_v5, %v3210_v39 }
 0x394   :  { %v12442_v45 = vpack.i.bf16 %v15570_v17, %v15660_v14 }
 0x395   :  { %18430 = vst [vmem:[#allocation26_spill] sm:$0xff] %v15669_v61  ;;  %18431 = vst [vmem:[#allocation30_spill] sm:$0xff] %v15672_v13  ;;  %v12457_v51 = vpack.i.bf16 %v15585_v63, %v15669_v61  ;;  %v12452_v33 = vpack.i.bf16 %v15592_v23, %v15672_v13 }
 0x396   :  { %12438 = vrot.lane.b32.xlu0 %v12437_v48, %s13616_s2 }
 0x397   :  { %12433 = vrot.lane.b32.xlu1 %v12432_v50, %s13616_s2 }
 0x39a   :  { %12448 = vrot.lane.b32.xlu0 %v12447_v37, %s13616_s2  ;;  %v18265_v37 = vmov 65535  }
 0x39b   :  { %12443 = vrot.lane.b32.xlu1 %v12442_v45, %s13616_s2  ;;  %v3742_v39 = vsel %vm2271_vm13, 4294967295, %v18265_v37 }
 0x39e   :  { %12458 = vrot.lane.b32.xlu0 %v12457_v51, %s13616_s2 }
 0x39f   :  { %12453 = vrot.lane.b32.xlu1 %v12452_v33, %s13616_s2 }
 0x3cc   :  { %v15682_v52 = vpop.permute.xlu1 %12338 }
 0x3cd   :  { %v12340_v33 = vunpack.i.l.bf16 %v15682_v52 }
 0x3ce   :  { %v15684_v8 = vpop.permute.xlu0 %12343 }
 0x3cf   :  { %v12345_v48 = vunpack.i.l.bf16 %v15684_v8 }
 0x3d1   :  { %v12349_v35 = vpop.permute.xlu1 %12348 }
 0x3d2   :  { %v15686_v38 = vpop.permute.xlu0 %12358  ;;  %v12351_v19 = vunpack.i.h.bf16 %v12349_v35  ;;  %v12350_v36 = vunpack.i.l.bf16 %v12349_v35 }
 0x3d3   :  { %v18264_v5 = vunpack.i.h.bf16 %v15686_v38  ;;  %v12360_v44 = vunpack.i.l.bf16 %v15686_v38 }
 0x3d5   :  { %v12354_v25 = vpop.permute.xlu1 %12353  ;;  %v3581_v27 = vsel %vm3544_vm15, %v12351_v19, %v12360_v44  ;;  %v3582_v50 = vsel %vm3544_vm15, %v12360_v44, %v18264_v5  ;;  %v18432_v44 = vunpack.i.h.bf16 %v15684_v8 }
 0x3d6   :  { %v12356_v29 = vunpack.i.h.bf16 %v12354_v25  ;;  %v12355_v0 = vunpack.i.l.bf16 %v12354_v25  ;;  %v3680_v5 = vmax.f32 %v15338_v56, %v3581_v27  ;;  %v3681_v37 = vmax.f32 %v15355_v1, %v3582_v50 }
 0x3d7   :  { %v3574_v25 = vsel %vm3544_vm15, %v12345_v48, %v18432_v44 }
 0x3d8   :  { %v3573_v45 = vsel %vm3544_vm15, %v12356_v29, %v12345_v48  ;;  %v3569_v32 = vsel %vm3544_vm15, %v12355_v0, %v12340_v33  ;;  %v18434_v48 = vunpack.i.h.bf16 %v15682_v52  ;;  %v15730_v0 = vsel %vm3741_vm1, %v3742_v39, 0  ;;  %vm8087_vm1 = vmor %vm8086_vm12, %vm471_vm5 }
 0x3d9   :  { %v15699_v51 = vpop.permute.xlu0 %12363 }
 0x3da   :  { %v18272_v6 = vunpack.i.h.bf16 %v15699_v51  ;;  %v12365_v19 = vunpack.i.l.bf16 %v15699_v51  ;;  %v15704_v24 = vpop.permute.xlu1 %12373  ;;  %v3570_v27 = vsel %vm3544_vm15, %v12340_v33, %v18434_v48 }
 0x3db   :  { %v18275_v44 = vunpack.i.h.bf16 %v15704_v24  ;;  %v12375_v56 = vunpack.i.l.bf16 %v15704_v24 }
 0x3dc   :  { %v3577_v35 = vsel %vm3544_vm15, %v12350_v36, %v12365_v19  ;;  %v3578_v28 = vsel %vm3544_vm15, %v12365_v19, %v18272_v6  ;;  %v3665_v6 = vmax.f32 %v15359_v20, %v3569_v32 }
 0x3dd   :  { %v3675_v61 = vmax.f32 %v18433_v21, %v3577_v35  ;;  %v3676_v13 = vmax.f32 %v15382_v42, %v3578_v28  ;;  %v18435_v28 = vld [vmem:[#allocation42_spill] sm:$0xff]  ;;  %v3670_v35 = vmax.f32 %v15361_v55, %v3573_v45  ;;  %v3566_v48 = vsel %vm3544_vm15, %v12375_v56, %v18275_v44 }
 0x3de   :  { %v15721_v1 = vpop.permute.xlu0 %12368  ;;  %v3671_v19 = vmax.f32 %v18435_v28, %v3574_v25 }
 0x3df   :  { %v18274_v36 = vunpack.i.h.bf16 %v15721_v1  ;;  %v12370_v50 = vunpack.i.l.bf16 %v15721_v1  ;;  %v3705_v21 = vpack.c.bf16 %v3680_v5, %v3675_v61  ;;  %v3706_v42 = vpack.c.bf16 %v3681_v37, %v3676_v13  ;;  %v18436_v13 = vld [vmem:[#allocation17_spill] sm:$0xff] }
 0x3e0   :  { %v15728_v29 = vpop.permute.xlu1 %12383  ;;  %v3666_v5 = vmax.f32 %v18436_v13, %v3570_v27 }
 0x3e1   :  { %v3562_v33 = vsel %vm3544_vm15, %v12370_v50, %v18274_v36  ;;  %v3748_v39 = vand.u32 %v15730_v0, %v3706_v42  ;;  %v3745_v61 = vand.u32 %v15730_v0, %v3705_v21  ;;  %v12385_v55 = vunpack.i.l.bf16 %v15728_v29 }
 0x3e2   :  { %v12379_v23 = vpop.permute.xlu0 %12378  ;;  %v3701_v25 = vpack.c.bf16 %v3671_v19, %v3666_v5  ;;  %v3656_v28 = vmax.f32 %v15416_v53, %v3562_v33  ;;  %v3700_v42 = vpack.c.bf16 %v3670_v35, %v3665_v6  ;;  %v18437_v19 = vunpack.i.h.bf16 %v15728_v29 }
 0x3e3   :  { %v12381_v20 = vunpack.i.h.bf16 %v12379_v23  ;;  %v12380_v32 = vunpack.i.l.bf16 %v12379_v23  ;;  %3765 = vmatprep.subr.bf16.mxu1 %v3748_v39  ;;  %v3661_v23 = vmax.f32 %v15398_v57, %v3566_v48 }
 0x3e4   :  { %v12394_v45 = vpop.permute.xlu1 %12393  ;;  %3766 = vmatpush1.bf16.msra.mxu1 %v3745_v61  ;;  %v3554_v53 = vsel %vm3544_vm15, %v12385_v55, %v18437_v19 }
 0x3e5   :  { %v3565_v36 = vsel %vm3544_vm15, %v12381_v20, %v12375_v56  ;;  %v3561_v44 = vsel %vm3544_vm15, %v12380_v32, %v12370_v50  ;;  %v12395_v13 = vunpack.i.l.bf16 %v12394_v45  ;;  %3767 = vmatprep.subr.bf16.mxu1 %v3701_v25  ;;  %v12396_v33 = vunpack.i.h.bf16 %v12394_v45 }
 0x3e6   :  { %v3660_v21 = vmax.f32 %v15443_v15, %v3565_v36  ;;  %v3655_v27 = vmax.f32 %v15437_v54, %v3561_v44  ;;  %v3696_v44 = vpack.c.bf16 %v3661_v23, %v3656_v28  ;;  %v3646_v61 = vmax.f32 %v15431_v22, %v3554_v53 }
 0x3e7   :  { %v3553_v35 = vsel %vm3544_vm15, %v12395_v13, %v12385_v55 }
 0x3e8   :  { %v15751_v37 = vpop.permute.xlu0 %12388  ;;  %3768 = vmatpush1.bf16.msra.mxu1 %v3700_v42  ;;  %v3695_v39 = vpack.c.bf16 %v3660_v21, %v3655_v27  ;;  %v3645_v55 = vmax.f32 %v15453_v16, %v3553_v35 }
 0x3e9   :  { %v12391_v56 = vunpack.i.h.bf16 %v15751_v37  ;;  %v12390_v50 = vunpack.i.l.bf16 %v15751_v37  ;;  %3769 = vmatprep.subr.bf16.mxu1 %v3696_v44 }
 0x3ea   :  { %v15759_v6 = vpop.permute.xlu1 %12403 }
 0x3eb   :  { %v12406_v15 = vunpack.i.h.bf16 %v15759_v6  ;;  %v12405_v54 = vunpack.i.l.bf16 %v15759_v6  ;;  %v3557_v36 = vsel %vm3544_vm15, %v12396_v33, %v12390_v50  ;;  %v3558_v57 = vsel %vm3544_vm15, %v12390_v50, %v12391_v56 }
 0x3ec   :  { %v3651_v5 = vmax.f32 %v15491_v43, %v3558_v57  ;;  %v3650_v20 = vmax.f32 %v15459_v11, %v3557_v36  ;;  %3770 = vmatpush1.bf16.msra.mxu1 %v3695_v39 }
 0x3ed   :  { %v15768_v48 = vpop.permute.xlu0 %12398  ;;  %v3550_v32 = vsel %vm3544_vm15, %v12405_v54, %v12406_v15 }
 0x3ee   :  { %v12401_v45 = vunpack.i.h.bf16 %v15768_v48  ;;  %v12400_v25 = vunpack.i.l.bf16 %v15768_v48  ;;  %v3691_v28 = vpack.c.bf16 %v3651_v5, %v3646_v61  ;;  %v3641_v43 = vmax.f32 %v15495_v60, %v3550_v32  ;;  %v18441_v32 = vld [vmem:[#allocation19_spill] sm:$0xff] }
 0x3ef   :  { %v3690_v13 = vpack.c.bf16 %v3650_v20, %v3645_v55  ;;  %v18439_v60 = vmov 0   ;;  %v18440_v61 = vunpack.i.h.bf16 %v15686_v38  ;;  %v12910_v48 = vld [vmem:[%s18456_s9 + $0x228] ss:$12 sps:$4 sm:$0xff]  }
 0x3f0   :  { %v3546_v42 = vsel %vm3544_vm15, %v12400_v25, %v12401_v45  ;;  %3771 = vmatprep.subr.bf16.mxu1 %v3691_v28 }
 0x3f1   :  { %v12409_v22 = vpop.permute.xlu0 %12408  ;;  %v3636_v11 = vmax.f32 %v15535_v4, %v3546_v42  ;;  %3772 = vmatpush1.bf16.msra.mxu1 %v3690_v13  ;;  %v15791_v4 = vld [vmem:[%s18438_s7] sm:$0xff]   ;;  %v18442_v42 = vunpack.i.h.bf16 %v15699_v51 }
 0x3f2   :  { %v12411_v21 = vunpack.i.h.bf16 %v12409_v22  ;;  %v12410_v27 = vunpack.i.l.bf16 %v12409_v22 }
 0x3f3   :  { %v3686_v23 = vpack.c.bf16 %v3641_v43, %v3636_v11 }
 0x3f4   :  { %v3549_v19 = vsel %vm3544_vm15, %v12411_v21, %v12405_v54  ;;  %v3545_v53 = vsel %vm3544_vm15, %v12410_v27, %v12400_v25 }
 0x3f5   :  { %v3640_v16 = vmax.f32 %v15539_v30, %v3549_v19  ;;  %v3635_v33 = vmax.f32 %v15525_v7, %v3545_v53  ;;  %3773 = vmatprep.subr.bf16.mxu1 %v3686_v23  ;;  %v15799_v30 = vld [vmem:[%s18438_s7 + $0x8] sm:$0xff]   ;;  %v15821_v53 = vld [vmem:[%s18438_s7 + $0x10] sm:$0x1f]  }
 0x3f7   :  { %v3685_v50 = vpack.c.bf16 %v3640_v16, %v3635_v33 }
 0x3f9   :  { %3774 = vmatpush1.bf16.msra.mxu1 %v3685_v50 }
 0x3fc   :  { %10686 = vmatmul.mubr.msk.bf16.vlgmr.msra.gmra.mxu1 %vm3731_vm2, %v15791_v4 }
 0x3fd   :  { %3801 = vmatprep.mubr.bf16.mxu1 %v18439_v60 }
 0x400   :  { %v12419_v54 = vpop.permute.xlu0 %12418 }
 0x401   :  { %v12421_v7 = vunpack.i.h.bf16 %v12419_v54  ;;  %v12420_v44 = vunpack.i.l.bf16 %v12419_v54  ;;  %v12414_v36 = vpop.permute.xlu1 %12413 }
 0x402   :  { %v12416_v57 = vunpack.i.h.bf16 %v12414_v36  ;;  %v12415_v35 = vunpack.i.l.bf16 %v12414_v36 }
 0x403   :  { %v3684_v39 = vmax.f32 %v15616_v59, %v12421_v7  ;;  %v3583_v5 = vsel %vm3544_vm15, %v18440_v61, %v12420_v44  ;;  %v3584_v20 = vsel %vm3544_vm15, %v12420_v44, %v12421_v7  ;;  %v18444_v7 = vunpack.i.h.bf16 %v15682_v52 }
 0x404   :  { %v3682_v25 = vmax.f32 %v18441_v32, %v3583_v5  ;;  %v3683_v28 = vmax.f32 %v15614_v40, %v3584_v20  ;;  %v3679_v55 = vmax.f32 %v15621_v62, %v12416_v57  ;;  %v3579_v22 = vsel %vm3544_vm15, %v18442_v42, %v12415_v35  ;;  %10687 = vmatmul.mubr.msk.bf16.gmra.mxu1 %vm3731_vm2, %v15799_v30  ;;  %v12429_v59 = vpop.permute.xlu0 %12428  ;;  %v18446_v32 = vld [vmem:[#allocation16_spill] sm:$0xff] }
 0x405   :  { %v3580_v38 = vsel %vm3544_vm15, %v12415_v35, %v12416_v57  ;;  %v3677_v11 = vmax.f32 %v15394_v58, %v3579_v22  ;;  %v12431_v43 = vunpack.i.h.bf16 %v12429_v59  ;;  %v12430_v21 = vunpack.i.l.bf16 %v12429_v59  ;;  %v12424_v27 = vpop.permute.xlu1 %12423  ;;  %3811 = vmatprep.mubr.bf16.mxu1 %v18439_v60 }
 0x406   :  { %v3678_v40 = vmax.f32 %v15619_v12, %v3580_v38  ;;  %v3709_v62 = vpack.c.bf16 %v3684_v39, %v3679_v55  ;;  %v12426_v13 = vunpack.i.h.bf16 %v12424_v27  ;;  %v12425_v51 = vunpack.i.l.bf16 %v12424_v27 }
 0x407   :  { %v3707_v23 = vpack.c.bf16 %v3682_v25, %v3677_v11  ;;  %v3674_v16 = vmax.f32 %v15608_v3, %v12431_v43  ;;  %v18443_v58 = vunpack.i.h.bf16 %v15684_v8  ;;  %v3576_v3 = vsel %vm3544_vm15, %v12430_v21, %v12431_v43  ;;  %v18445_v8 = vld [vmem:[#allocation18_spill] sm:$0xff] }
 0x408   :  { %v12439_v19 = vpop.permute.xlu0 %12438  ;;  %v3669_v50 = vmax.f32 %v15600_v47, %v12426_v13  ;;  %v3757_v12 = vand.u32 %v15730_v0, %v3709_v62  ;;  %v3571_v44 = vsel %vm3544_vm15, %v18444_v7, %v12425_v51  ;;  %v3708_v57 = vpack.c.bf16 %v3683_v28, %v3678_v40 }
 0x409   :  { %v3575_v33 = vsel %vm3544_vm15, %v18443_v58, %v12430_v21  ;;  %v12434_v54 = vpop.permute.xlu1 %12433  ;;  %v12441_v36 = vunpack.i.h.bf16 %v12439_v19  ;;  %v3572_v35 = vsel %vm3544_vm15, %v12425_v51, %v12426_v13  ;;  %v12440_v39 = vunpack.i.l.bf16 %v12439_v19 }
 0x40a   :  { %v12436_v61 = vunpack.i.h.bf16 %v12434_v54  ;;  %12049 = vmatpush3.bf16.msra.mxu0 %v3757_v12  ;;  %v3672_v5 = vmax.f32 %v18445_v8, %v3575_v33  ;;  %v12435_v20 = vunpack.i.l.bf16 %v12434_v54  ;;  %v3751_v52 = vand.u32 %v15730_v0, %v3707_v23 }
 0x40b   :  { %v3667_v25 = vmax.f32 %v18446_v32, %v3571_v44  ;;  %v3704_v55 = vpack.c.bf16 %v3674_v16, %v3669_v50  ;;  %v3754_v28 = vand.u32 %v15730_v0, %v3708_v57  ;;  %v18447_v59 = vmov 0.0  }
 0x40c   :  { %10688 = vmatmul.mubr.msk.bf16.gmra.mxu1 %vm3731_vm2, %v15821_v53  ;;  %v12449_v47 = vpop.permute.xlu0 %12448  ;;  %12050 = vmatprep.subr.bf16.mxu0 %v18447_v59  ;;  %v3664_v38 = vmax.f32 %v15583_v26, %v12441_v36  ;;  %v3668_v21 = vmax.f32 %v15636_v46, %v3572_v35  ;;  %v18448_v27 = vunpack.i.h.bf16 %v15704_v24  ;;  %v3659_v62 = vmax.f32 %v15564_v18, %v12436_v61 }
 0x40d   :  { %v12451_v42 = vunpack.i.h.bf16 %v12449_v47  ;;  %v12444_v22 = vpop.permute.xlu1 %12443  ;;  %3854 = vmatprep.mubr.bf16.mxu1 %v18439_v60  ;;  %3828 = vmatprep.subr.bf16.mxu1 %v3754_v28  ;;  %v12450_v0 = vunpack.i.l.bf16 %v12449_v47  ;;  %v3673_v13 = vmax.f32 %v15633_v34, %v3576_v3  ;;  %v3568_v51 = vsel %vm3544_vm15, %v12440_v39, %v12441_v36 }
 0x40e   :  { %v12446_v11 = vunpack.i.h.bf16 %v12444_v22  ;;  %v12445_v43 = vunpack.i.l.bf16 %v12444_v22  ;;  %v3567_v40 = vsel %vm3544_vm15, %v18448_v27, %v12440_v39  ;;  %v18449_v23 = vunpack.i.h.bf16 %v15721_v1  ;;  %3829 = vmatpush1.bf16.msra.mxu1 %v3751_v52  ;;  %12051 = vmatpush3.bf16.msra.mxu0 %v3704_v55  ;;  %v12912_v22 = vld [vmem:[%s18456_s9 + $0x22c] ss:$12 sps:$4 sm:$0xff]  }
 0x40f   :  { %v3564_v19 = vsel %vm3544_vm15, %v12435_v20, %v12436_v61  ;;  %v3654_v46 = vmax.f32 %v15566_v10, %v12451_v42  ;;  %v3703_v58 = vpack.c.bf16 %v3673_v13, %v3668_v21  ;;  %v3702_v54 = vpack.c.bf16 %v3672_v5, %v3667_v25  ;;  %12052 = vmatprep.subr.bf16.mxu0 %v18447_v59  ;;  %v18454_v25 = vld [vmem:[#allocation23_spill] sm:$0xff]  ;;  %v18458_v21 = vld [vmem:[#allocation24_spill] sm:$0xff] }
 0x410   :  { %v3563_v26 = vsel %vm3544_vm15, %v18449_v23, %v12435_v20  ;;  %v12459_v24 = vpop.permute.xlu0 %12458  ;;  %v3649_v16 = vmax.f32 %v15570_v17, %v12446_v11  ;;  %v3556_v34 = vsel %vm3544_vm15, %v12445_v43, %v12446_v11  ;;  %v3699_v7 = vpack.c.bf16 %v3664_v38, %v3659_v62  ;;  %v18451_v20 = vld [vmem:[#allocation25_spill] sm:$0xff] }
 0x411   :  { %v12461_v18 = vunpack.i.h.bf16 %v12459_v24  ;;  %v12460_v33 = vunpack.i.l.bf16 %v12459_v24  ;;  %v12454_v50 = vpop.permute.xlu1 %12453  ;;  %v3560_v44 = vsel %vm3544_vm15, %v12450_v0, %v12451_v42  ;;  %3830 = vmatprep.subr.bf16.mxu1 %v3703_v58  ;;  %v3658_v10 = vmax.f32 %v15648_v41, %v3564_v19  ;;  %v12880_v13 = vld [vmem:[%s18456_s9 + $0xa8] ss:$12 sps:$4 sm:$0xff]   ;;  %v12883_v19 = vld [vmem:[%s18456_s9 + $0x90] ss:$12 sps:$4 sm:$0xff]   ;;  %v12928_v24 = vld [vmem:[%s18456_s9 + $0x1e0] ss:$12 sps:$4 sm:$0xff]  }
 0x412   :  { %v12456_v12 = vunpack.i.h.bf16 %v12454_v50  ;;  %v12455_v1 = vunpack.i.l.bf16 %v12454_v50  ;;  %v3662_v17 = vmax.f32 %v15412_v9, %v3567_v40  ;;  %v3657_v36 = vmax.f32 %v15420_v2, %v3563_v26  ;;  %3831 = vmatpush1.bf16.msra.mxu1 %v3702_v54  ;;  %12053 = vmatpush3.bf16.msra.mxu0 %v3699_v7  ;;  %v12882_v40 = vld [vmem:[%s18456_s9 + $0xac] ss:$12 sps:$4 sm:$0xff]   ;;  %v12924_v23 = vld [vmem:[%s18456_s9 + $0x1fc] ss:$12 sps:$4 sm:$0xff]   ;;  %v12891_v58 = vld [vmem:[%s18456_s9 + $0x64] ss:$12 sps:$4 sm:$0xff]  }
 0x413   :  { %v3552_v57 = vsel %vm3544_vm15, %v12460_v33, %v12461_v18  ;;  %v3559_v39 = vsel %vm3544_vm15, %v12391_v56, %v12450_v0  ;;  %v18450_v61 = vunpack.i.h.bf16 %v15728_v29  ;;  %v3663_v8 = vmax.f32 %v15645_v31, %v3568_v51  ;;  %12054 = vmatprep.subr.bf16.mxu0 %v18447_v59  ;;  %v18452_v56 = vld [vmem:[#allocation30_spill] sm:$0xff]  ;;  %v18455_v31 = vld [vmem:[#allocation20_spill] sm:$0xff] }
 0x414   :  { %v3548_v35 = vsel %vm3544_vm15, %v12455_v1, %v12456_v12  ;;  %v3648_v9 = vmax.f32 %v15660_v14, %v3556_v34  ;;  %v3694_v41 = vpack.c.bf16 %v3654_v46, %v3649_v16  ;;  %v3644_v2 = vmax.f32 %v15585_v63, %v12461_v18  ;;  %v18453_v29 = vld [vmem:[#allocation26_spill] sm:$0xff]  ;;  %v12922_v26 = vld [vmem:[%s18456_s9 + $0x1f8] ss:$12 sps:$4 sm:$0xff]  }
 0x415   :  { %v3555_v3 = vsel %vm3544_vm15, %v18450_v61, %v12445_v43  ;;  %v3653_v5 = vmax.f32 %v15657_v49, %v3560_v44  ;;  %v3639_v37 = vmax.f32 %v18451_v20, %v12456_v12  ;;  %v3698_v47 = vpack.c.bf16 %v3663_v8, %v3658_v10  ;;  %v18457_v43 = vld [vmem:[#allocation21_spill] sm:$0xff]  ;;  %v12916_v0 = vld [vmem:[%s18456_s9 + $0x210] ss:$12 sps:$4 sm:$0xff]   ;;  %v12885_v51 = vld [vmem:[%s18456_s9 + $0x94] ss:$12 sps:$4 sm:$0xff]  }
 0x416   :  { %v3638_v52 = vmax.f32 %v18452_v56, %v3548_v35  ;;  %v3643_v32 = vmax.f32 %v18453_v29, %v3552_v57  ;;  %v3652_v55 = vmax.f32 %v18454_v25, %v3559_v39  ;;  %v3647_v28 = vmax.f32 %v18455_v31, %v3555_v3  ;;  %12055 = vmatpush3.bf16.msra.mxu0 %v3694_v41  ;;  %v12930_v46 = vld [vmem:[%s18456_s9 + $0x1e4] ss:$12 sps:$4 sm:$0xff]   ;;  %v12936_v18 = vld [vmem:[%s18456_s9 + $0x1cc] ss:$12 sps:$4 sm:$0xff]   ;;  %v12897_v54 = vld [vmem:[%s18456_s9 + $0x34] ss:$12 sps:$4 sm:$0xff]  }
 0x417   :  { %v3697_v42 = vpack.c.bf16 %v3662_v17, %v3657_v36  ;;  %v3693_v14 = vpack.c.bf16 %v3653_v5, %v3648_v9  ;;  %v3551_v63 = vsel %vm3544_vm15, %v12406_v15, %v12460_v33  ;;  %v3547_v49 = vsel %vm3544_vm15, %v12401_v45, %v12455_v1  ;;  %3832 = vmatprep.subr.bf16.mxu1 %v3698_v47  ;;  %v12918_v45 = vld [vmem:[%s18456_s9 + $0x214] ss:$12 sps:$4 sm:$0xff]   ;;  %v12886_v16 = vld [vmem:[%s18456_s9 + $0x78] ss:$12 sps:$4 sm:$0xff]   ;;  %v12895_v12 = vld [vmem:[%s18456_s9 + $0x30] ss:$12 sps:$4 sm:$0xff]  }
 0x418   :  { %12056 = vmatprep.subr.bf16.mxu0 %v18447_v59  ;;  %v3689_v38 = vpack.c.bf16 %v3644_v2, %v3639_v37  ;;  %v3688_v11 = vpack.c.bf16 %v3643_v32, %v3638_v52  ;;  %v3642_v6 = vmax.f32 %v18457_v43, %v3551_v63  ;;  %v3637_v15 = vmax.f32 %v18458_v21, %v3547_v49  ;;  %v12934_v33 = vld [vmem:[%s18456_s9 + $0x1c8] ss:$12 sps:$4 sm:$0xff]   ;;  %v12889_v50 = vld [vmem:[%s18456_s9 + $0x60] ss:$12 sps:$4 sm:$0xff]   ;;  %v12898_v7 = vld [vmem:[%s18456_s9 + $0x18] ss:$12 sps:$4 sm:$0xff]  }
 0x419   :  { %3833 = vmatpush1.bf16.msra.mxu1 %v3697_v42  ;;  %v3692_v27 = vpack.c.bf16 %v3652_v55, %v3647_v28  ;;  %v12894_v34 = vld [vmem:[%s18456_s9 + $0x4c] ss:$12 sps:$4 sm:$0xff]   ;;  %v12900_v1 = vld [vmem:[%s18456_s9 + $0x1c] ss:$12 sps:$4 sm:$0xff]   ;;  %v12942_v17 = vld [vmem:[%s18456_s9 + $0x1b4] ss:$12 sps:$4 sm:$0xff]  }
 0x41a   :  { %3834 = vmatprep.subr.bf16.mxu1 %v3693_v14  ;;  %12057 = vmatpush3.bf16.msra.mxu0 %v3689_v38  ;;  %v3687_v62 = vpack.c.bf16 %v3642_v6, %v3637_v15  ;;  %v12901_v44 = vld [vmem:[%s18456_s9] ss:$12 sps:$4 sm:$0xff]   ;;  %v12940_v10 = vld [vmem:[%s18456_s9 + $0x1b0] ss:$12 sps:$4 sm:$0xff]   ;;  %v12904_v57 = vld [vmem:[%s18456_s9 + $0x168] ss:$12 sps:$4 sm:$0xff]  }
 0x41b   :  { %4828 = vmatprep.subr.bf16.mxu0 %v12912_v22  ;;  %v12906_v36 = vld [vmem:[%s18456_s9 + $0x16c] ss:$12 sps:$4 sm:$0xff]   ;;  %v12909_v35 = vld [vmem:[%s18456_s9 + $0x154] ss:$12 sps:$4 sm:$0xff]   ;;  %v12948_v61 = vld [vmem:[%s18456_s9 + $0x19c] ss:$12 sps:$4 sm:$0xff]  }
 0x41c   :  { %v12946_v39 = vld [vmem:[%s18456_s9 + $0x198] ss:$12 sps:$4 sm:$0xff]   ;;  %v12907_v3 = vld [vmem:[%s18456_s9 + $0x150] ss:$12 sps:$4 sm:$0xff]   ;;  %v12950_v8 = vld [vmem:[%s18456_s9 + $0x180] ss:$12 sps:$4 sm:$0xff]  }
 0x41d   :  { %3835 = vmatpush1.bf16.msra.mxu1 %v3692_v27  ;;  %12059 = vmatmul.mubr.msk.bf16.vlgmr.msra.gmra.mxu0 %vm3731_vm2, %v15791_v4  ;;  %v12952_v9 = vld [vmem:[%s18456_s9 + $0x184] ss:$12 sps:$4 sm:$0xff]   ;;  %v12915_v41 = vld [vmem:[%s18456_s9 + $0x13c] ss:$12 sps:$4 sm:$0xff]   ;;  %v12959_v37 = vld [vmem:[%s18456_s9 + $0x2ec] ss:$12 sps:$4 sm:$0xff]  }
 0x41e   :  { %3836 = vmatprep.subr.bf16.mxu1 %v3688_v11  ;;  %12062 = vmatprep.mubr.msk.bf16.mxu0 %vm13618_vm14, %v18447_v59  ;;  %v12913_v2 = vld [vmem:[%s18456_s9 + $0x138] ss:$12 sps:$4 sm:$0xff]   ;;  %v12957_v20 = vld [vmem:[%s18456_s9 + $0x2e8] ss:$12 sps:$4 sm:$0xff]   ;;  %v12919_v47 = vld [vmem:[%s18456_s9 + $0x120] ss:$12 sps:$4 sm:$0xff]  }
 0x41f   :  { %4829 = vmatpush1.bf16.msra.mxu0 %v12910_v48  ;;  %v12921_v5 = vld [vmem:[%s18456_s9 + $0x124] ss:$12 sps:$4 sm:$0xff]   ;;  %v12965_v52 = vld [vmem:[%s18456_s9 + $0x2d4] ss:$12 sps:$4 sm:$0xff]   ;;  %v12927_v29 = vld [vmem:[%s18456_s9 + $0x10c] ss:$12 sps:$4 sm:$0xff]  }
 0x420   :  { %4830 = vmatprep.subr.bf16.mxu0 %v12918_v45  ;;  %v12963_v56 = vld [vmem:[%s18456_s9 + $0x2d0] ss:$12 sps:$4 sm:$0xff]   ;;  %v12925_v32 = vld [vmem:[%s18456_s9 + $0x108] ss:$12 sps:$4 sm:$0xff]   ;;  %v12969_v55 = vld [vmem:[%s18456_s9 + $0x2b8] ss:$12 sps:$4 sm:$0xff]  }
 0x421   :  { %3837 = vmatpush1.bf16.msra.mxu1 %v3687_v62  ;;  %v12933_v25 = vld [vmem:[%s18456_s9 + $0xf4] ss:$12 sps:$4 sm:$0xff]   ;;  %v12971_v31 = vld [vmem:[%s18456_s9 + $0x2bc] ss:$12 sps:$4 sm:$0xff]   ;;  %v12977_v14 = vld [vmem:[%s18456_s9 + $0x2a4] ss:$12 sps:$4 sm:$0xff]  }
 0x422   :  { %4765 = vmatprep.subr.bf16.mxu1 %v12882_v40  ;;  %v12931_v28 = vld [vmem:[%s18456_s9 + $0xf0] ss:$12 sps:$4 sm:$0xff]   ;;  %v12975_v42 = vld [vmem:[%s18456_s9 + $0x2a0] ss:$12 sps:$4 sm:$0xff]   ;;  %v12937_v22 = vld [vmem:[%s18456_s9 + $0xd8] ss:$12 sps:$4 sm:$0xff]  }
 0x423   :  { %4831 = vmatpush1.bf16.msra.mxu0 %v12916_v0  ;;  %v12939_v63 = vld [vmem:[%s18456_s9 + $0xdc] ss:$12 sps:$4 sm:$0xff]   ;;  %v12983_v49 = vld [vmem:[%s18456_s9 + $0x28c] ss:$12 sps:$4 sm:$0xff]   ;;  %v12945_v11 = vld [vmem:[%s18456_s9 + $0xc4] ss:$12 sps:$4 sm:$0xff]  }
 0x424   :  { %10689 = vmatmul.mubr.msk.bf16.vlgmr.msra.gmra.mxu1 %vm3731_vm2, %v15791_v4  ;;  %v12888_v4 = vld [vmem:[%s18456_s9 + $0x7c] ss:$12 sps:$4 sm:$0xff]   ;;  %4832 = vmatprep.subr.bf16.mxu0 %v12924_v23  ;;  %v12989_v6 = vld [vmem:[%s18456_s9 + $0x274] ss:$12 sps:$4 sm:$0xff]   ;;  %v12993_v48 = vld [vmem:[%s18456_s9 + $0x258] ss:$12 sps:$4 sm:$0xff]  }
 0x425   :  { %3864 = vmatprep.mubr.bf16.mxu1 %v18439_v60  ;;  %4766 = vmatpush1.bf16.msra.mxu1 %v12880_v13  ;;  %v12981_v38 = vld [vmem:[%s18456_s9 + $0x288] ss:$12 sps:$4 sm:$0xff]   ;;  %v12943_v21 = vld [vmem:[%s18456_s9 + $0xc0] ss:$12 sps:$4 sm:$0xff]   ;;  %v12987_v15 = vld [vmem:[%s18456_s9 + $0x270] ss:$12 sps:$4 sm:$0xff]  }
 0x426   :  { %4767 = vmatprep.subr.bf16.mxu1 %v12885_v51  ;;  %12063 = vmatmul.mubr.msk.bf16.gmra.mxu0 %vm3731_vm2, %v15799_v30  ;;  %v4113_v43 = vld [vmem:[%s18456_s9 + $0x3a8] sm:$0xff]  ;;  %v12999_v62 = vld [vmem:[%s18456_s9 + $0x244] ss:$12 sps:$4 sm:$0xff]  }
 0x427   :  { %12066 = vmatprep.mubr.msk.bf16.mxu0 %vm13618_vm14, %v18447_v59  ;;  %4833 = vmatpush1.bf16.msra.mxu0 %v12922_v26  ;;  %v10813_v27 = vcombine.high %v4113_v43, %v4113_v43  ;;  %v12995_v45 = vld [vmem:[%s18456_s9 + $0x25c] ss:$12 sps:$4 sm:$0xff]   ;;  %v12997_v40 = vld [vmem:[%s18456_s9 + $0x240] ss:$12 sps:$4 sm:$0xff]   ;;  %v10812_v26 = vcombine.low %v4113_v43, %v4113_v43 }
 0x428   :  { %4834 = vmatprep.subr.bf16.mxu0 %v12930_v46  ;;  %v13002_v0 = vld [vmem:[%s18456_s9 + $0x170] ss:$12 sps:$4 sm:$0xff]  }
 0x429   :  { %4768 = vmatpush1.bf16.msra.mxu1 %v12883_v19  ;;  %v13004_v43 = vld [vmem:[%s18456_s9 + $0xb0] ss:$12 sps:$4 sm:$0xff]  }
 0x42a   :  { %4769 = vmatprep.subr.bf16.mxu1 %v12888_v4 }
 0x42b   :  { %4835 = vmatpush1.bf16.msra.mxu0 %v12928_v24 }
 0x42c   :  { %10690 = vmatmul.mubr.msk.bf16.gmra.mxu1 %vm3731_vm2, %v15799_v30  ;;  %4836 = vmatprep.subr.bf16.mxu0 %v12936_v18  ;;  %v12892_v30 = vld [vmem:[%s18456_s9 + $0x48] ss:$12 sps:$4 sm:$0xff]  }
 0x42d   :  { %3874 = vmatprep.mubr.bf16.mxu1 %v18439_v60  ;;  %4770 = vmatpush1.bf16.msra.mxu1 %v12886_v16  ;;  %v4757_v16 = vsel %vm471_vm5, %v10812_v26, 0  ;;  %v13010_v26 = vld [vmem:[%s18456_s9 + $0x140] ss:$12 sps:$4 sm:$0xff]  }
 0x42e   :  { %4771 = vmatprep.subr.bf16.mxu1 %v12891_v58  ;;  %12067 = vmatmul.mubr.msk.bf16.gmra.mxu0 %vm3731_vm2, %v15821_v53  ;;  %v12956_v58 = vld [vmem:[%s18456_s9 + $0x394] ss:$12 sps:$4 sm:$0xff]  }
 0x42f   :  { %4837 = vmatpush1.bf16.msra.mxu0 %v12934_v33  ;;  %v12954_v33 = vld [vmem:[%s18456_s9 + $0x390] ss:$12 sps:$4 sm:$0xff]  }
 0x430   :  { %4838 = vmatprep.subr.bf16.mxu0 %v12942_v17 }
 0x431   :  { %4772 = vmatpush1.bf16.msra.mxu1 %v12889_v50 }
 0x432   :  { %4773 = vmatprep.subr.bf16.mxu1 %v12894_v34  ;;  %v12962_v34 = vld [vmem:[%s18456_s9 + $0x37c] ss:$12 sps:$4 sm:$0xff]  }
 0x433   :  { %4839 = vmatpush1.bf16.msra.mxu0 %v12940_v10  ;;  %v12966_v10 = vld [vmem:[%s18456_s9 + $0x360] ss:$12 sps:$4 sm:$0xff]  }
 0x434   :  { %10691 = vmatmul.mubr.msk.bf16.gmra.mxu1 %vm3731_vm2, %v15821_v53  ;;  %v12903_v53 = vld [vmem:[%s18456_s9 + $0x4] ss:$12 sps:$4 sm:$0xff]   ;;  %4840 = vmatprep.subr.bf16.mxu0 %v12948_v61  ;;  %v12972_v61 = vld [vmem:[%s18456_s9 + $0x348] ss:$12 sps:$4 sm:$0xff]   ;;  %vm8090_vm2 = vcmask 391172  }
 0x435   :  { %4774 = vmatpush1.bf16.msra.mxu1 %v12892_v30 }
 0x436   :  { %4775 = vmatprep.subr.bf16.mxu1 %v12897_v54 }
 0x437   :  { %4841 = vmatpush1.bf16.msra.mxu0 %v12946_v39 }
 0x438   :  { %4842 = vmatprep.subr.bf16.mxu0 %v12952_v9  ;;  %v12986_v9 = vld [vmem:[%s18456_s9 + $0x31c] ss:$12 sps:$4 sm:$0xff]  }
 0x439   :  { %4776 = vmatpush1.bf16.msra.mxu1 %v12895_v12 }
 0x43a   :  { %4777 = vmatprep.subr.bf16.mxu1 %v12900_v1  ;;  %v12960_v1 = vld [vmem:[%s18456_s9 + $0x378] ss:$12 sps:$4 sm:$0xff]  }
 0x43b   :  { %4843 = vmatpush1.bf16.msra.mxu0 %v12950_v8  ;;  %v12978_v8 = vld [vmem:[%s18456_s9 + $0x330] ss:$12 sps:$4 sm:$0xff]  }
 0x43c   :  { %4844 = vmatprep.subr.bf16.mxu0 %v12959_v37  ;;  %v12996_v37 = vld [vmem:[%s18456_s9 + $0x2f0] ss:$12 sps:$4 sm:$0xff]  }
 0x43d   :  { %4778 = vmatpush1.bf16.msra.mxu1 %v12898_v7 }
 0x43e   :  { %4779 = vmatprep.subr.bf16.mxu1 %v12903_v53  ;;  %v12968_v53 = vld [vmem:[%s18456_s9 + $0x364] ss:$12 sps:$4 sm:$0xff]  }
 0x43f   :  { %4845 = vmatpush2.bf16.msra.mxu0 %v12957_v20 }
 0x440   :  { %4846 = vmatprep.subr.bf16.mxu0 %v12965_v52  ;;  %v13000_v52 = vld [vmem:[%s18456_s9 + $0x230] ss:$12 sps:$4 sm:$0xff]  }
 0x441   :  { %4780 = vmatpush1.bf16.msra.mxu1 %v12901_v44 }
 0x442   :  { %4781 = vmatprep.subr.bf16.mxu1 %v12906_v36  ;;  %v12974_v36 = vld [vmem:[%s18456_s9 + $0x34c] ss:$12 sps:$4 sm:$0xff]  }
 0x443   :  { %4847 = vmatpush2.bf16.msra.mxu0 %v12963_v56 }
 0x444   :  { %4848 = vmatprep.subr.bf16.mxu0 %v12971_v31 }
 0x445   :  { %4782 = vmatpush2.bf16.msra.mxu1 %v12904_v57 }
 0x446   :  { %4783 = vmatprep.subr.bf16.mxu1 %v12909_v35 }
 0x447   :  { %4849 = vmatpush2.bf16.msra.mxu0 %v12969_v55 }
 0x448   :  { %4850 = vmatprep.subr.bf16.mxu0 %v12977_v14 }
 0x449   :  { %4784 = vmatpush2.bf16.msra.mxu1 %v12907_v3  ;;  %v12980_v3 = vld [vmem:[%s18456_s9 + $0x334] ss:$12 sps:$4 sm:$0xff]  }
 0x44a   :  { %4785 = vmatprep.subr.bf16.mxu1 %v12915_v41  ;;  %v12984_v41 = vld [vmem:[%s18456_s9 + $0x318] ss:$12 sps:$4 sm:$0xff]  }
 0x44b   :  { %4851 = vmatpush2.bf16.msra.mxu0 %v12975_v42  ;;  %v13003_v42 = vld [vmem:[%s18456_s9 + $0x218] ss:$12 sps:$4 sm:$0xff]  }
 0x44c   :  { %4852 = vmatprep.subr.bf16.mxu0 %v12983_v49 }
 0x44d   :  { %4786 = vmatpush2.bf16.msra.mxu1 %v12913_v2  ;;  %v12992_v2 = vld [vmem:[%s18456_s9 + $0x304] ss:$12 sps:$4 sm:$0xff]  }
 0x44e   :  { %4787 = vmatprep.subr.bf16.mxu1 %v12921_v5  ;;  %v12990_v5 = vld [vmem:[%s18456_s9 + $0x300] ss:$12 sps:$4 sm:$0xff]  }
 0x44f   :  { %4853 = vmatpush2.bf16.msra.mxu0 %v12981_v38 }
 0x450   :  { %4854 = vmatprep.subr.bf16.mxu0 %v12989_v6  ;;  %v13007_v6 = vld [vmem:[%s18456_s9 + $0x200] ss:$12 sps:$4 sm:$0xff]  }
 0x451   :  { %4788 = vmatpush2.bf16.msra.mxu1 %v12919_v47 }
 0x452   :  { %4789 = vmatprep.subr.bf16.mxu1 %v12927_v29 }
 0x453   :  { %4855 = vmatpush2.bf16.msra.mxu0 %v12987_v15 }
 0x454   :  { %4856 = vmatprep.subr.bf16.mxu0 %v12995_v45  ;;  %v13009_v45 = vld [vmem:[%s18456_s9 + $0x2a8] ss:$12 sps:$4 sm:$0xff]  }
 0x455   :  { %4790 = vmatpush2.bf16.msra.mxu1 %v12925_v32 }
 0x456   :  { %4791 = vmatprep.subr.bf16.mxu1 %v12933_v25  ;;  %v13001_v25 = vld [vmem:[%s18456_s9 + $0x2d8] ss:$12 sps:$4 sm:$0xff]  }
 0x457   :  { %4857 = vmatpush2.bf16.msra.mxu0 %v12993_v48  ;;  %v13006_v48 = vld [vmem:[%s18456_s9 + $0x158] ss:$12 sps:$4 sm:$0xff]  }
 0x458   :  { %4858 = vmatprep.subr.bf16.mxu0 %v12999_v62 }
 0x459   :  { %4792 = vmatpush2.bf16.msra.mxu1 %v12931_v28 }
 0x45a   :  { %4793 = vmatprep.subr.bf16.mxu1 %v12939_v63  ;;  %v13005_v63 = vld [vmem:[%s18456_s9 + $0x2c0] ss:$12 sps:$4 sm:$0xff]  }
 0x45b   :  { %4859 = vmatpush2.bf16.msra.mxu0 %v12997_v40 }
 0x45c   :  { %11759 = vmatprep.subr.bf16.mxu0 %v13002_v0 }
 0x45d   :  { %4794 = vmatpush2.bf16.msra.mxu1 %v12937_v22 }
 0x45e   :  { %4795 = vmatprep.subr.bf16.mxu1 %v12945_v11 }
 0x461   :  { %4796 = vmatpush2.bf16.msra.mxu1 %v12943_v21 }
 0x462   :  { %10815 = vmatprep.subr.msk.bf16.mxu1 %vm471_vm5, %v10813_v27 }
 0x4bc   :  { %v3793_v13 = vpop.f32.mrf.mxu1 }
 0x4be   :  { %v3795_v51 = vpop.f32.mrf.mxu1 }
 0x4c0   :  { %v3797_v23 = vpop.f32.mrf.mxu1 }
 0x4c1   :  { %v16106_v19 = vpack.c.bf16 %v3797_v23, %v3793_v13  ;;  %v13008_v13 = vld [vmem:[%s18456_s9 + $0x98] ss:$12 sps:$4 sm:$0xff]  }
 0x4c2   :  { %v3799_v46 = vpop.f32.mrf.mxu1 }
 0x4c3   :  { %v16108_v4 = vpack.c.bf16 %v3799_v46, %v3795_v51  ;;  %v13011_v51 = vld [vmem:[%s18456_s9 + $0x1e8] ss:$12 sps:$4 sm:$0xff]   ;;  %v13013_v46 = vld [vmem:[%s18456_s9 + $0x290] ss:$12 sps:$4 sm:$0xff]  }
 0x4c4   :  { %v3803_v24 = vpop.f32.mrf.mxu1 }
 0x4c5   :  { %4797 = vmatprep.mubr.bf16.mxu1 %v16108_v4 }
 0x4c6   :  { %v3805_v18 = vpop.f32.mrf.mxu1  ;;  %4798 = vmatmul.mubr.bf16.vlgmr.msra.gmra.mxu1 %v16106_v19 }
 0x4c7   :  { %4892 = vmatpush1.bf16.msra.mxu1 %v4757_v16 }
 0x4c8   :  { %v3807_v50 = vpop.f32.mrf.mxu1  ;;  %4893 = vmatprep.subr.bf16.mxu1 %v12956_v58 }
 0x4c9   :  { %v16122_v30 = vpack.c.bf16 %v3807_v50, %v3803_v24  ;;  %v13012_v50 = vld [vmem:[%s18456_s9 + $0x80] ss:$12 sps:$4 sm:$0xff]  }
 0x4ca   :  { %v3809_v54 = vpop.f32.mrf.mxu1 }
 0x4cb   :  { %v16124_v12 = vpack.c.bf16 %v3809_v54, %v3805_v18  ;;  %4894 = vmatpush1.bf16.msra.mxu1 %v12954_v33 }
 0x4cc   :  { %v3813_v7 = vpop.f32.mrf.mxu1  ;;  %4895 = vmatprep.subr.bf16.mxu1 %v12962_v34  ;;  %v13015_v34 = vld [vmem:[%s18456_s9 + $0x1d0] ss:$12 sps:$4 sm:$0xff]  }
 0x4cd   :  { %4807 = vmatprep.mubr.bf16.mxu1 %v16124_v12 }
 0x4ce   :  { %v3815_v44 = vpop.f32.mrf.mxu1  ;;  %4808 = vmatmul.mubr.bf16.gmra.mxu1 %v16122_v30 }
 0x4cf   :  { %4896 = vmatpush1.bf16.msra.mxu1 %v12960_v1 }
 0x4d0   :  { %v3817_v17 = vpop.f32.mrf.mxu1  ;;  %4897 = vmatprep.subr.bf16.mxu1 %v12968_v53  ;;  %v13017_v53 = vld [vmem:[%s18456_s9 + $0x278] ss:$12 sps:$4 sm:$0xff]  }
 0x4d1   :  { %v16140_v57 = vpack.c.bf16 %v3817_v17, %v3813_v7  ;;  %v13014_v7 = vld [vmem:[%s18456_s9 + $0x128] ss:$12 sps:$4 sm:$0xff]  }
 0x4d2   :  { %v3819_v35 = vpop.f32.mrf.mxu1  ;;  %v13016_v17 = vld [vmem:[%s18456_s9 + $0x68] ss:$12 sps:$4 sm:$0xff]  }
 0x4d3   :  { %v16142_v39 = vpack.c.bf16 %v3819_v35, %v3815_v44  ;;  %4898 = vmatpush1.bf16.msra.mxu1 %v12966_v10 }
 0x4d4   :  { %4899 = vmatprep.subr.bf16.mxu1 %v12974_v36  ;;  %v13019_v36 = vld [vmem:[%s18456_s9 + $0x1b8] ss:$12 sps:$4 sm:$0xff]  }
 0x4d5   :  { %4817 = vmatprep.mubr.bf16.mxu1 %v16142_v39 }
 0x4d6   :  { %4818 = vmatmul.mubr.bf16.gmra.mxu1 %v16140_v57 }
 0x4d7   :  { %4900 = vmatpush1.bf16.msra.mxu1 %v12972_v61  ;;  %4923 = vmatprep.mubr.bf16.mxu1 %v18439_v60  ;;  %v13018_v61 = vld [vmem:[%s18456_s9 + $0x110] ss:$12 sps:$4 sm:$0xff]  }
 0x4d8   :  { %4901 = vmatprep.subr.bf16.mxu1 %v12980_v3  ;;  %v13021_v3 = vld [vmem:[%s18456_s9 + $0x260] ss:$12 sps:$4 sm:$0xff]  }
 0x4db   :  { %4902 = vmatpush1.bf16.msra.mxu1 %v12978_v8 }
 0x4dc   :  { %4903 = vmatprep.subr.bf16.mxu1 %v12986_v9 }
 0x4dd   :  { %v3919_v20 = vpop.f32.mrf.mxu0 }
 0x4df   :  { %4904 = vmatpush1.bf16.msra.mxu1 %v12984_v41  ;;  %v12060_v47 = vpop.f32.mrf.mxu0 }
 0x4e0   :  { %4905 = vmatprep.subr.bf16.mxu1 %v12992_v2  ;;  %v13020_v2 = vld [vmem:[%s18456_s9 + $0x50] ss:$12 sps:$4 sm:$0xff]   ;;  %v13024_v47 = vld [vmem:[%s18456_s9 + $0x38] ss:$12 sps:$4 sm:$0xff]  }
 0x4e1   :  { %v3922_v56 = vpop.f32.mrf.mxu0 }
 0x4e2   :  { %v16174_v32 = vpack.c.bf16 %v3922_v56, %v3919_v20  ;;  %v13023_v20 = vld [vmem:[%s18456_s9 + $0x1a0] ss:$12 sps:$4 sm:$0xff]  }
 0x4e3   :  { %4906 = vmatpush1.bf16.msra.mxu1 %v12990_v5  ;;  %v12061_v55 = vpop.f32.mrf.mxu0  ;;  %v13022_v5 = vld [vmem:[%s18456_s9 + $0xf8] ss:$12 sps:$4 sm:$0xff]   ;;  %v13026_v56 = vld [vmem:[%s18456_s9 + $0xe0] ss:$12 sps:$4 sm:$0xff]  }
 0x4e4   :  { %11793 = vmatprep.subr.bf16.mxu1 %v12996_v37  ;;  %v3856_v29 = vpop.f32.mrf.mxu1  ;;  %v13025_v37 = vld [vmem:[%s18456_s9 + $0x248] ss:$12 sps:$4 sm:$0xff]   ;;  %v13031_v55 = vld [vmem:[%s18456_s9 + $0x3b0] ss:$0 sps:$4 sm:$0xff]  }
 0x4e6   :  { %v3858_v31 = vpop.f32.mrf.mxu1  ;;  %10816 = vmatmul.mubr.msk.bf16.vlgmr.msra.gmra.mxu1 %vm3544_vm15, %v16174_v32  ;;  %v3927_v28 = vpop.f32.mrf.mxu0 }
 0x4e7   :  { %11794 = vmatpush3.bf16.msra.mxu1 %v13000_v52  ;;  %4933 = vmatprep.mubr.bf16.mxu1 %v18439_v60  ;;  %v13027_v52 = vld [vmem:[%s18456_s9 + $0x188] ss:$12 sps:$4 sm:$0xff]  }
 0x4e8   :  { %v3860_v14 = vpop.f32.mrf.mxu1  ;;  %11795 = vmatprep.subr.bf16.mxu1 %v13001_v25  ;;  %v12064_v49 = vpop.f32.mrf.mxu0  ;;  %v13030_v25 = vld [vmem:[%s18456_s9 + $0x8] ss:$12 sps:$4 sm:$0xff]  }
 0x4e9   :  { %v16194_v21 = vpack.c.bf16 %v3860_v14, %v3856_v29  ;;  %v13029_v29 = vld [vmem:[%s18456_s9 + $0xc8] ss:$12 sps:$4 sm:$0xff]   ;;  %v13032_v14 = vld [vmem:[%s18456_s9 + $0x398] ss:$12 sps:$4 sm:$0xff]  }
 0x4ea   :  { %v3862_v22 = vpop.f32.mrf.mxu1  ;;  %v3930_v11 = vpop.f32.mrf.mxu0  ;;  %v13047_v49 = vld [vmem:[%s18459_s0 + $0x274] ss:$12 sps:$4 sm:$0xff]  }
 0x4eb   :  { %v3945_v38 = vpack.c.bf16 %v3862_v22, %v3858_v31  ;;  %11796 = vmatpush3.bf16.msra.mxu1 %v13003_v42  ;;  %v16196_v27 = vpack.c.bf16 %v3930_v11, %v3927_v28  ;;  %v4763_v31 = vsel %vm471_vm5, %v13031_v55, 0  ;;  %v13041_v28 = vld [vmem:[%s18459_s0 + $0x2a4] ss:$12 sps:$4 sm:$0xff]   ;;  %v13039_v42 = vld [vmem:[%s18459_s0 + $0x2a0] ss:$12 sps:$4 sm:$0xff]  }
 0x4ec   :  { %v3866_v15 = vpop.f32.mrf.mxu1  ;;  %11797 = vmatprep.subr.bf16.mxu1 %v13005_v63  ;;  %v12065_v40 = vpop.f32.mrf.mxu0  ;;  %v13033_v63 = vld [vmem:[%s18456_s9 + $0x380] ss:$12 sps:$4 sm:$0xff]   ;;  %v13045_v22 = vld [vmem:[%s18459_s0 + $0x270] ss:$12 sps:$4 sm:$0xff]   ;;  %v13048_v11 = vld [vmem:[%s18459_s0 + $0x258] ss:$12 sps:$4 sm:$0xff]  }
 0x4ed   :  { %4860 = vmatprep.mubr.bf16.mxu0 %v3945_v38  ;;  %v13057_v40 = vld [vmem:[%s18459_s0 + $0x210] ss:$12 sps:$4 sm:$0xff]  }
 0x4ee   :  { %v3868_v62 = vpop.f32.mrf.mxu1  ;;  %4861 = vmatmul.mubr.bf16.vlgmr.msra.gmra.mxu0 %v16194_v21  ;;  %10817 = vmatmul.mubr.msk.bf16.gmra.mxu1 %vm3544_vm15, %v16196_v27  ;;  %v3935_v0 = vpop.f32.mrf.mxu0 }
 0x4ef   :  { %11760 = vmatpush3.bf16.msra.mxu0 %v13004_v43  ;;  %11798 = vmatpush3.bf16.msra.mxu1 %v13007_v6  ;;  %v13053_v43 = vld [vmem:[%s18459_s0 + $0x244] ss:$12 sps:$4 sm:$0xff]   ;;  %v13051_v6 = vld [vmem:[%s18459_s0 + $0x240] ss:$12 sps:$4 sm:$0xff]  }
 0x4f0   :  { %v3870_v23 = vpop.f32.mrf.mxu1  ;;  %11761 = vmatprep.subr.bf16.mxu0 %v13006_v48  ;;  %11799 = vmatprep.subr.bf16.mxu1 %v13009_v45  ;;  %v12068_v24 = vpop.f32.mrf.mxu0  ;;  %v13037_v48 = vld [vmem:[%s18456_s9 + $0x320] ss:$12 sps:$4 sm:$0xff]  }
 0x4f1   :  { %4943 = vmatprep.mubr.bf16.mxu1 %v18439_v60  ;;  %v16220_v16 = vpack.c.bf16 %v3870_v23, %v3866_v15  ;;  %v13056_v15 = vld [vmem:[%s18459_s0 + $0x22c] ss:$12 sps:$4 sm:$0xff]   ;;  %v13059_v45 = vld [vmem:[%s18459_s0 + $0x214] ss:$12 sps:$4 sm:$0xff]  }
 0x4f2   :  { %v3872_v58 = vpop.f32.mrf.mxu1  ;;  %v3938_v33 = vpop.f32.mrf.mxu0  ;;  %v13066_v23 = vld [vmem:[%s18459_s0 + $0x348] ss:$12 sps:$4 sm:$0xff]   ;;  %v13072_v24 = vld [vmem:[%s18459_s0 + $0x318] ss:$12 sps:$4 sm:$0xff]  }
 0x4f3   :  { %v3950_v18 = vpack.c.bf16 %v3872_v58, %v3868_v62  ;;  %11762 = vmatpush3.bf16.msra.mxu0 %v13008_v13  ;;  %11800 = vmatpush3.bf16.msra.mxu1 %v13011_v51  ;;  %v16228_v1 = vpack.c.bf16 %v3938_v33, %v3935_v0  ;;  %v13038_v62 = vld [vmem:[%s18456_s9 + $0x308] ss:$12 sps:$4 sm:$0xff]   ;;  %v13060_v0 = vld [vmem:[%s18459_s0 + $0x1f8] ss:$12 sps:$4 sm:$0xff]   ;;  %v13075_v58 = vld [vmem:[%s18459_s0 + $0x300] ss:$12 sps:$4 sm:$0xff]  }
 0x4f4   :  { %v3876_v54 = vpop.f32.mrf.mxu1  ;;  %11763 = vmatprep.subr.bf16.mxu0 %v13010_v26  ;;  %11801 = vmatprep.subr.bf16.mxu1 %v13013_v46  ;;  %v12069_v44 = vpop.f32.mrf.mxu0  ;;  %v13062_v13 = vld [vmem:[%s18459_s0 + $0x1fc] ss:$12 sps:$4 sm:$0xff]   ;;  %v13065_v51 = vld [vmem:[%s18459_s0 + $0x364] ss:$12 sps:$4 sm:$0xff]   ;;  %v13071_v46 = vld [vmem:[%s18459_s0 + $0x334] ss:$12 sps:$4 sm:$0xff]  }
 0x4f5   :  { %4870 = vmatprep.mubr.bf16.mxu0 %v3950_v18  ;;  %v13069_v26 = vld [vmem:[%s18459_s0 + $0x330] ss:$12 sps:$4 sm:$0xff]   ;;  %v13078_v33 = vld [vmem:[%s18459_s0 + $0x2e8] ss:$12 sps:$4 sm:$0xff]   ;;  %v13117_v44 = vld [vmem:[%s18459_s0 + $0x3d8] ss:$12 sps:$4 sm:$0xff]  }
 0x4f6   :  { %v3878_v10 = vpop.f32.mrf.mxu1  ;;  %4871 = vmatmul.mubr.bf16.gmra.mxu0 %v16220_v16  ;;  %10818 = vmatmul.mubr.msk.bf16.gmra.mxu1 %vm3544_vm15, %v16228_v1 }
 0x4f7   :  { %11764 = vmatpush3.bf16.msra.mxu0 %v13012_v50  ;;  %11802 = vmatpush3.bf16.msra.mxu1 %v13015_v34  ;;  %v13080_v50 = vld [vmem:[%s18459_s0 + $0x2ec] ss:$12 sps:$4 sm:$0xff]   ;;  %v13083_v34 = vld [vmem:[%s18459_s0 + $0x2d4] ss:$12 sps:$4 sm:$0xff]  }
 0x4f8   :  { %v3880_v35 = vpop.f32.mrf.mxu1  ;;  %11765 = vmatprep.subr.bf16.mxu0 %v13014_v7  ;;  %5043 = vmatprep.mubr.bf16.mxu1 %v3945_v38  ;;  %v13034_v38 = vld [vmem:[%s18456_s9 + $0x368] ss:$12 sps:$4 sm:$0xff]   ;;  %v13084_v7 = vld [vmem:[%s18459_s0 + $0x2b8] ss:$12 sps:$4 sm:$0xff]  }
 0x4f9   :  { %11803 = vmatprep.subr.bf16.mxu1 %v13017_v53  ;;  %v3954_v8 = vpack.c.bf16 %v3880_v35, %v3876_v54  ;;  %v13081_v54 = vld [vmem:[%s18459_s0 + $0x2d0] ss:$12 sps:$4 sm:$0xff]   ;;  %v13089_v53 = vld [vmem:[%s18459_s0 + $0xac] ss:$12 sps:$4 sm:$0xff]   ;;  %v13129_v35 = vld [vmem:[%s18459_s0 + $0x3a8] ss:$12 sps:$4 sm:$0xff]  }
 0x4fa   :  { %v3882_v9 = vpop.f32.mrf.mxu1 }
 0x4fb   :  { %v3955_v41 = vpack.c.bf16 %v3882_v9, %v3878_v10  ;;  %11766 = vmatpush3.bf16.msra.mxu0 %v13016_v17  ;;  %11804 = vmatpush3.bf16.msra.mxu1 %v13019_v36  ;;  %v13119_v10 = vld [vmem:[%s18459_s0 + $0x3dc] ss:$12 sps:$4 sm:$0xff]   ;;  %v13123_v17 = vld [vmem:[%s18459_s0 + $0x3c0] ss:$12 sps:$4 sm:$0xff]   ;;  %v13125_v36 = vld [vmem:[%s18459_s0 + $0x3c4] ss:$12 sps:$4 sm:$0xff]  }
 0x4fc   :  { %11767 = vmatprep.subr.bf16.mxu0 %v13018_v61  ;;  %11805 = vmatprep.subr.bf16.mxu1 %v13021_v3  ;;  %v13131_v61 = vld [vmem:[%s18459_s0 + $0x3ac] ss:$12 sps:$4 sm:$0xff]   ;;  %v13135_v9 = vld [vmem:[%s18459_s0 + $0x390] ss:$12 sps:$4 sm:$0xff]  }
 0x4fd   :  { %4880 = vmatprep.mubr.bf16.mxu0 %v3955_v41 }
 0x4fe   :  { %4881 = vmatmul.mubr.bf16.gmra.mxu0 %v3954_v8 }
 0x4ff   :  { %11768 = vmatpush3.bf16.msra.mxu0 %v13020_v2  ;;  %4986 = vmatprep.mubr.bf16.mxu0 %v16108_v4  ;;  %v13028_v4 = vld [vmem:[%s18456_s9 + $0x20] ss:$12 sps:$4 sm:$0xff]  }
 0x500   :  { %11769 = vmatprep.subr.bf16.mxu0 %v13022_v5  ;;  %11806 = vmatpush3.bf16.msra.mxu1 %v13023_v20  ;;  %v13143_v5 = vld [vmem:[%s18459_s0 + $0x37c] ss:$12 sps:$4 sm:$0xff]  }
 0x501   :  { %11807 = vmatprep.subr.bf16.mxu1 %v13025_v37  ;;  %v13141_v37 = vld [vmem:[%s18459_s0 + $0x378] ss:$12 sps:$4 sm:$0xff]  }
 0x503   :  { %11770 = vmatpush3.bf16.msra.mxu0 %v13024_v47  ;;  %v13147_v47 = vld [vmem:[%s18459_s0 + $0x368] ss:$12 sps:$4 sm:$0xff]  }
 0x504   :  { %11771 = vmatprep.subr.bf16.mxu0 %v13026_v56  ;;  %11808 = vmatpush3.bf16.msra.mxu1 %v13027_v52 }
 0x505   :  { %5840 = vmatprep.subr.bf16.mxu1 %v13041_v28 }
 0x507   :  { %11772 = vmatpush3.bf16.msra.mxu0 %v13028_v4  ;;  %5044 = vmatmul.mubr.bf16.vlgmr.msra.gmra.mxu1 %v16194_v21  ;;  %v13036_v21 = vld [vmem:[%s18456_s9 + $0x338] ss:$12 sps:$4 sm:$0xff]  }
 0x508   :  { %11773 = vmatprep.subr.bf16.mxu0 %v13029_v29  ;;  %5051 = vmatprep.mubr.bf16.mxu1 %v3950_v18  ;;  %v13077_v18 = vld [vmem:[%s18459_s0 + $0x304] ss:$12 sps:$4 sm:$0xff]  }
 0x509   :  { %5841 = vmatpush1.bf16.msra.mxu1 %v13039_v42 }
 0x50b   :  { %11774 = vmatpush3.bf16.msra.mxu0 %v13030_v25 }
 0x50c   :  { %12070 = vmatprep.subr.bf16.mxu0 %v18447_v59 }
 0x50e   :  { %4987 = vmatmul.mubr.bf16.vlgmr.msra.gmra.mxu0 %v16106_v19  ;;  %v13044_v19 = vld [vmem:[%s18459_s0 + $0x28c] ss:$12 sps:$4 sm:$0xff]  }
 0x50f   :  { %4994 = vmatprep.mubr.bf16.mxu0 %v16124_v12  ;;  %12071 = vmatpush3.bf16.msra.mxu0 %v4763_v31  ;;  %v13042_v12 = vld [vmem:[%s18459_s0 + $0x288] ss:$12 sps:$4 sm:$0xff]  }
 0x510   :  { %5052 = vmatmul.mubr.bf16.gmra.mxu1 %v16220_v16  ;;  %12072 = vmatprep.subr.bf16.mxu0 %v18447_v59  ;;  %v13074_v16 = vld [vmem:[%s18459_s0 + $0x31c] ss:$12 sps:$4 sm:$0xff]  }
 0x511   :  { %5059 = vmatprep.mubr.bf16.mxu1 %v3955_v41  ;;  %5842 = vmatprep.subr.bf16.mxu1 %v13044_v19  ;;  %v13137_v41 = vld [vmem:[%s18459_s0 + $0x394] ss:$12 sps:$4 sm:$0xff]  }
 0x512   :  { %5843 = vmatpush1.bf16.msra.mxu1 %v13042_v12 }
 0x513   :  { %12073 = vmatpush3.bf16.msra.mxu0 %v13032_v14  ;;  %5844 = vmatprep.subr.bf16.mxu1 %v13047_v49 }
 0x514   :  { %12074 = vmatprep.subr.bf16.mxu0 %v18447_v59 }
 0x516   :  { %4995 = vmatmul.mubr.bf16.gmra.mxu0 %v16122_v30  ;;  %v13050_v30 = vld [vmem:[%s18459_s0 + $0x25c] ss:$12 sps:$4 sm:$0xff]   ;;  %5845 = vmatpush1.bf16.msra.mxu1 %v13045_v22 }
 0x517   :  { %5002 = vmatprep.mubr.bf16.mxu0 %v16142_v39  ;;  %12075 = vmatpush3.bf16.msra.mxu0 %v13033_v63  ;;  %v13035_v39 = vld [vmem:[%s18456_s9 + $0x350] ss:$12 sps:$4 sm:$0xff]  }
 0x518   :  { %5060 = vmatmul.mubr.bf16.gmra.mxu1 %v3954_v8  ;;  %12076 = vmatprep.subr.bf16.mxu0 %v18447_v59 }
 0x519   :  { %5846 = vmatprep.subr.bf16.mxu1 %v13050_v30 }
 0x51a   :  { %5847 = vmatpush1.bf16.msra.mxu1 %v13048_v11 }
 0x51b   :  { %12077 = vmatpush3.bf16.msra.mxu0 %v13034_v38  ;;  %5848 = vmatprep.subr.bf16.mxu1 %v13053_v43 }
 0x51c   :  { %12078 = vmatprep.subr.bf16.mxu0 %v18447_v59 }
 0x51e   :  { %5003 = vmatmul.mubr.bf16.gmra.mxu0 %v16140_v57  ;;  %5849 = vmatpush1.bf16.msra.mxu1 %v13051_v6  ;;  %v13054_v57 = vld [vmem:[%s18459_s0 + $0x228] ss:$12 sps:$4 sm:$0xff]  }
 0x51f   :  { %12079 = vmatpush3.bf16.msra.mxu0 %v13035_v39  ;;  %12086 = vmatprep.mubr.msk.bf16.mxu0 %vm13618_vm14, %v18447_v59 }
 0x520   :  { %12080 = vmatprep.subr.bf16.mxu0 %v18447_v59  ;;  %5850 = vmatprep.subr.bf16.mxu1 %v13056_v15 }
 0x522   :  { %5851 = vmatpush1.bf16.msra.mxu1 %v13054_v57 }
 0x523   :  { %12081 = vmatpush3.bf16.msra.mxu0 %v13036_v21  ;;  %5852 = vmatprep.subr.bf16.mxu1 %v13059_v45 }
 0x524   :  { %12082 = vmatprep.subr.bf16.mxu0 %v18447_v59 }
 0x526   :  { %5853 = vmatpush1.bf16.msra.mxu1 %v13057_v40 }
 0x527   :  { %12083 = vmatpush3.bf16.msra.mxu0 %v13037_v48  ;;  %5854 = vmatprep.subr.bf16.mxu1 %v13062_v13 }
 0x528   :  { %12084 = vmatprep.subr.bf16.mxu0 %v18447_v59 }
 0x52a   :  { %5855 = vmatpush1.bf16.msra.mxu1 %v13060_v0 }
 0x52b   :  { %12085 = vmatpush3.bf16.msra.mxu0 %v13038_v62  ;;  %5856 = vmatprep.subr.bf16.mxu1 %v13065_v51 }
 0x52c   :  { %5907 = vmatprep.subr.bf16.mxu0 %v13119_v10 }
 0x52e   :  { %12087 = vmatmul.mubr.msk.bf16.vlgmr.msra.gmra.mxu0 %vm3544_vm15, %v16174_v32  ;;  %v13063_v32 = vld [vmem:[%s18459_s0 + $0x360] ss:$12 sps:$4 sm:$0xff]  }
 0x52f   :  { %12090 = vmatprep.mubr.msk.bf16.mxu0 %vm13618_vm14, %v18447_v59  ;;  %5857 = vmatpush2.bf16.msra.mxu1 %v13063_v32 }
 0x530   :  { %5908 = vmatpush1.bf16.msra.mxu0 %v13117_v44 }
 0x531   :  { %5909 = vmatprep.subr.bf16.mxu0 %v13125_v36 }
 0x534   :  { %5910 = vmatpush1.bf16.msra.mxu0 %v13123_v17 }
 0x535   :  { %5911 = vmatprep.subr.bf16.mxu0 %v13131_v61 }
 0x536   :  { %12091 = vmatmul.mubr.msk.bf16.gmra.mxu0 %vm3544_vm15, %v16196_v27  ;;  %v13068_v27 = vld [vmem:[%s18459_s0 + $0x34c] ss:$12 sps:$4 sm:$0xff]  }
 0x537   :  { %12094 = vmatprep.mubr.msk.bf16.mxu0 %vm13618_vm14, %v18447_v59  ;;  %5858 = vmatprep.subr.bf16.mxu1 %v13068_v27 }
 0x538   :  { %5859 = vmatpush2.bf16.msra.mxu1 %v13066_v23  ;;  %5912 = vmatpush1.bf16.msra.mxu0 %v13129_v35 }
 0x539   :  { %5860 = vmatprep.subr.bf16.mxu1 %v13071_v46  ;;  %5913 = vmatprep.subr.bf16.mxu0 %v13137_v41 }
 0x53c   :  { %5861 = vmatpush2.bf16.msra.mxu1 %v13069_v26  ;;  %5914 = vmatpush1.bf16.msra.mxu0 %v13135_v9 }
 0x53d   :  { %5862 = vmatprep.subr.bf16.mxu1 %v13074_v16  ;;  %5915 = vmatprep.subr.bf16.mxu0 %v13143_v5 }
 0x53e   :  { %12095 = vmatmul.mubr.msk.bf16.gmra.mxu0 %vm3544_vm15, %v16228_v1  ;;  %v13086_v1 = vld [vmem:[%s18459_s0 + $0x2bc] ss:$12 sps:$4 sm:$0xff]  }
 0x53f   :  { %5933 = vmatprep.mubr.bf16.mxu0 %v18439_v60 }
 0x540   :  { %5863 = vmatpush2.bf16.msra.mxu1 %v13072_v24  ;;  %5916 = vmatpush1.bf16.msra.mxu0 %v13141_v37 }
 0x541   :  { %5864 = vmatprep.subr.bf16.mxu1 %v13077_v18  ;;  %11838 = vmatprep.subr.bf16.mxu0 %v13147_v47 }
 0x544   :  { %5865 = vmatpush2.bf16.msra.mxu1 %v13075_v58 }
 0x545   :  { %5866 = vmatprep.subr.bf16.mxu1 %v13080_v50 }
 0x548   :  { %5867 = vmatpush2.bf16.msra.mxu1 %v13078_v33 }
 0x549   :  { %5868 = vmatprep.subr.bf16.mxu1 %v13083_v34 }
 0x54c   :  { %5869 = vmatpush2.bf16.msra.mxu1 %v13081_v54 }
 0x54d   :  { %5870 = vmatprep.subr.bf16.mxu1 %v13086_v1 }
 0x550   :  { %5871 = vmatpush2.bf16.msra.mxu1 %v13084_v7 }
 0x551   :  { %6426 = vmatprep.subr.bf16.mxu1 %v13089_v53 }
 0x586   :  { %v4799_v3 = vpop.f32.mrf.mxu1 }
 0x588   :  { %v4801_v8 = vpop.f32.mrf.mxu1 }
 0x58a   :  { %v4803_v2 = vpop.f32.mrf.mxu1 }
 0x58c   :  { %v4805_v20 = vpop.f32.mrf.mxu1 }
 0x58e   :  { %v4809_v56 = vpop.f32.mrf.mxu1 }
 0x590   :  { %v4811_v52 = vpop.f32.mrf.mxu1 }
 0x592   :  { %v4813_v4 = vpop.f32.mrf.mxu1 }
 0x594   :  { %v4815_v29 = vpop.f32.mrf.mxu1 }
 0x596   :  { %v4819_v25 = vpop.f32.mrf.mxu1 }
 0x598   :  { %v4821_v55 = vpop.f32.mrf.mxu1 }
 0x59a   :  { %v4823_v31 = vpop.f32.mrf.mxu1 }
 0x59c   :  { %v4825_v28 = vpop.f32.mrf.mxu1 }
 0x5a6   :  { %v4925_v42 = vpop.f32.mrf.mxu1 }
 0x5a8   :  { %v4927_v14 = vpop.f32.mrf.mxu1 }
 0x5aa   :  { %v4929_v19 = vpop.f32.mrf.mxu1 }
 0x5ac   :  { %v4931_v12 = vpop.f32.mrf.mxu1 }
 0x5ae   :  { %v4862_v63 = vpop.f32.mrf.mxu0  ;;  %v4935_v49 = vpop.f32.mrf.mxu1 }
 0x5af   :  { %v4863_v22 = vadd.f32 %v4862_v63, %v4799_v3  ;;  %v13087_v63 = vld [vmem:[%s18459_s0 + $0xa8] ss:$12 sps:$4 sm:$0xff]  }
 0x5b0   :  { %v4864_v38 = vpop.f32.mrf.mxu0  ;;  %v4937_v30 = vpop.f32.mrf.mxu1 }
 0x5b1   :  { %v4865_v11 = vadd.f32 %v4864_v38, %v4801_v8  ;;  %v4926_v6 = vadd.f32 %v4925_v42, %v4863_v22 }
 0x5b2   :  { %v4866_v39 = vpop.f32.mrf.mxu0  ;;  %v4939_v43 = vpop.f32.mrf.mxu1 }
 0x5b3   :  { %v4867_v21 = vadd.f32 %v4866_v39, %v4803_v2  ;;  %v4928_v15 = vadd.f32 %v4927_v14, %v4865_v11  ;;  %v13090_v39 = vld [vmem:[%s18459_s0 + $0x90] ss:$12 sps:$4 sm:$0xff]  }
 0x5b4   :  { %v4868_v57 = vpop.f32.mrf.mxu0  ;;  %v4941_v48 = vpop.f32.mrf.mxu1 }
 0x5b5   :  { %v11590_v45 = vpack.c.bf16 %v4928_v15, %v4926_v6  ;;  %v4869_v40 = vadd.f32 %v4868_v57, %v4805_v20  ;;  %v4930_v0 = vadd.f32 %v4929_v19, %v4867_v21  ;;  %v13093_v57 = vld [vmem:[%s18459_s0 + $0x78] ss:$12 sps:$4 sm:$0xff]  }
 0x5b6   :  { %v4872_v62 = vpop.f32.mrf.mxu0  ;;  %v4945_v23 = vpop.f32.mrf.mxu1 }
 0x5b7   :  { %5185 = vst [vmem:[#allocation3] sm:$0xff] %v11590_v45  ;;  %v4873_v13 = vadd.f32 %v4872_v62, %v4809_v56  ;;  %v4932_v32 = vadd.f32 %v4931_v12, %v4869_v40  ;;  %v16471_v34 = vpack.c.bf16 %v4930_v0, %v4926_v6 }
 0x5b8   :  { %v4874_v51 = vpop.f32.mrf.mxu0  ;;  %v4947_v50 = vpop.f32.mrf.mxu1 }
 0x5b9   :  { %v16467_v27 = vpack.c.bf16 %v4932_v32, %v4930_v0  ;;  %v4875_v26 = vadd.f32 %v4874_v51, %v4811_v52  ;;  %v4936_v24 = vadd.f32 %v4935_v49, %v4873_v13  ;;  %v16469_v18 = vpack.c.bf16 %v4932_v32, %v4928_v15 }
 0x5ba   :  { %v4876_v46 = vpop.f32.mrf.mxu0  ;;  %v4949_v36 = vpop.f32.mrf.mxu1  ;;  %v5422_v35 = vshll.u32 %v16471_v34, 16 }
 0x5bb   :  { %v4877_v16 = vadd.f32 %v4876_v46, %v4813_v4  ;;  %v4938_v58 = vadd.f32 %v4937_v30, %v4875_v26  ;;  %v5434_v7 = vshll.u32 %v16469_v18, 16  ;;  %v13092_v30 = vld [vmem:[%s18459_s0 + $0x94] ss:$12 sps:$4 sm:$0xff]  }
 0x5bc   :  { %v4878_v33 = vpop.f32.mrf.mxu0  ;;  %v4951_v47 = vpop.f32.mrf.mxu1  ;;  %v5424_v56 = vrot.slane %v5422_v35, 1 }
 0x5bd   :  { %v4879_v54 = vadd.f32 %v4878_v33, %v4815_v29  ;;  %v4940_v53 = vadd.f32 %v4939_v43, %v4877_v16  ;;  %v5436_v9 = vrot.slane %v5434_v7, 1  ;;  %v5432_v29 = vshrl.u32 %v16469_v18, 16  ;;  %v13095_v43 = vld [vmem:[%s18459_s0 + $0x7c] ss:$12 sps:$4 sm:$0xff]   ;;  %v13101_v16 = vld [vmem:[%s18459_s0 + $0x4c] ss:$12 sps:$4 sm:$0xff]  }
 0x5be   :  { %v4882_v1 = vpop.f32.mrf.mxu0 }
 0x5bf   :  { %v4883_v44 = vadd.f32 %v4882_v1, %v4819_v25  ;;  %v4942_v10 = vadd.f32 %v4941_v48, %v4879_v54  ;;  %v16479_v5 = vpack.c.bf16 %v4940_v53, %v4936_v24  ;;  %v5437_v19 = vor.u32 %v5436_v9, %v5432_v29  ;;  %v13098_v48 = vld [vmem:[%s18459_s0 + $0x64] ss:$12 sps:$4 sm:$0xff]  }
 0x5c0   :  { %v4884_v17 = vpop.f32.mrf.mxu0  ;;  %v13105_v29 = vld [vmem:[%s18459_s0 + $0x18] ss:$12 sps:$4 sm:$0xff]  }
 0x5c1   :  { %v4885_v61 = vadd.f32 %v4884_v17, %v4821_v55  ;;  %v16475_v3 = vadd.f32 %v4945_v23, %v4883_v44  ;;  %v16481_v20 = vpack.c.bf16 %v4942_v10, %v4938_v58  ;;  %v5420_v55 = vshrl.u32 %v16471_v34, 16  ;;  %v13096_v23 = vld [vmem:[%s18459_s0 + $0x60] ss:$12 sps:$4 sm:$0xff]   ;;  %v13099_v10 = vld [vmem:[%s18459_s0 + $0x48] ss:$12 sps:$4 sm:$0xff]  }
 0x5c2   :  { %v4886_v8 = vpop.f32.mrf.mxu0  ;;  %v5455_v46 = vshrl.u32 %v16479_v5, 16 }
 0x5c3   :  { %v4887_v41 = vadd.f32 %v4886_v8, %v4823_v31  ;;  %v16477_v2 = vadd.f32 %v4947_v50, %v4885_v61  ;;  %v5439_v25 = vshll.u32 %v16481_v20, 16  ;;  %v5427_v31 = vshll.u32 %v16479_v5, 16  ;;  %v13104_v61 = vld [vmem:[%s18459_s0 + $0x34] ss:$12 sps:$4 sm:$0xff]  }
 0x5c4   :  { %v4888_v37 = vpop.f32.mrf.mxu0  ;;  %v5425_v49 = vor.u32 %v5424_v56, %v5420_v55  ;;  %v5463_v51 = vshrl.u32 %v16481_v20, 16  ;;  %v13110_v55 = vld [vmem:[%s18459_s0 + $0x4] ss:$12 sps:$4 sm:$0xff]  }
 0x5c5   :  { %v11598_v52 = vpack.c.bf16 %v16477_v2, %v16475_v3  ;;  %v4889_v4 = vadd.f32 %v4888_v37, %v4825_v28  ;;  %v4950_v42 = vadd.f32 %v4949_v36, %v4887_v41  ;;  %v5441_v12 = vrot.slane %v5439_v25, 1  ;;  %v13102_v37 = vld [vmem:[%s18459_s0 + $0x30] ss:$12 sps:$4 sm:$0xff]  }
 0x5c6   :  { %v5429_v22 = vrot.slane %v5427_v31, 1 }
 0x5c7   :  { %v4952_v14 = vadd.f32 %v4951_v47, %v4889_v4  ;;  %v16493_v28 = vsel %vm731_vm8, %v5437_v19, %v5441_v12  ;;  %v16511_v21 = vpop.f32.mrf.mxu1  ;;  %v5465_v33 = vor.u32 %v5463_v51, %v5441_v12  ;;  %v13107_v47 = vld [vmem:[%s18459_s0 + $0x1c] ss:$12 sps:$4 sm:$0xff]   ;;  %v13113_v19 = vld [vmem:[%s18459_s0 + $0x16c] ss:$12 sps:$4 sm:$0xff]  }
 0x5c8   :  { %5872 = vmatprep.mubr.bf16.mxu1 %v16493_v28  ;;  %v16500_v11 = vsel %vm731_vm8, %v5425_v49, %v5429_v22  ;;  %v5457_v54 = vor.u32 %v5455_v46, %v5429_v22  ;;  %v13111_v49 = vld [vmem:[%s18459_s0 + $0x168] ss:$12 sps:$4 sm:$0xff]  }
 0x5c9   :  { %v11600_v38 = vpack.c.bf16 %v4952_v14, %v4950_v42  ;;  %5873 = vmatmul.mubr.bf16.vlgmr.msra.gmra.mxu1 %v16500_v11  ;;  %v11810_v13 = vpop.f32.mrf.mxu1  ;;  %v13108_v14 = vld [vmem:[%s18459_s0] ss:$12 sps:$4 sm:$0xff]  }
 0x5ca   :  { %6427 = vmatpush1.bf16.msra.mxu1 %v13087_v63 }
 0x5cb   :  { %5196 = vst [vmem:[#allocation3 + $0x3c] sm:$0x11] %v11600_v38  ;;  %6428 = vmatprep.subr.bf16.mxu1 %v13092_v30  ;;  %v11812_v53 = vpop.f32.mrf.mxu1  ;;  %v13116_v38 = vld [vmem:[%s18459_s0 + $0x154] ss:$12 sps:$4 sm:$0xff]   ;;  %v11811_v30 = vadd.f32 %v11810_v13, %v16511_v21  ;;  %v13120_v13 = vld [vmem:[%s18459_s0 + $0x138] ss:$12 sps:$4 sm:$0xff]  }
 0x5cd   :  { %v11813_v9 = vpop.f32.mrf.mxu1 }
 0x5ce   :  { %v16509_v6 = vpop.f32.mrf.mxu0  ;;  %6429 = vmatpush1.bf16.msra.mxu1 %v13090_v39  ;;  %v11814_v51 = vadd.f32 %v11813_v9, %v11812_v53 }
 0x5cf   :  { %6430 = vmatprep.subr.bf16.mxu1 %v13095_v43 }
 0x5d0   :  { %v16513_v15 = vpop.f32.mrf.mxu0 }
 0x5d1   :  { %v11777_v22 = vadd.f32 %v16513_v15, %v16509_v6  ;;  %v13122_v6 = vld [vmem:[%s18459_s0 + $0x13c] ss:$12 sps:$4 sm:$0xff]  }
 0x5d2   :  { %v16521_v45 = vpop.f32.mrf.mxu0  ;;  %v5293_v40 = vld [vmem:[#allocation3 + $0x3c] sm:$0x11]  ;;  %6431 = vmatpush1.bf16.msra.mxu1 %v13093_v57  ;;  %v13114_v57 = vld [vmem:[%s18459_s0 + $0x150] ss:$12 sps:$4 sm:$0xff]  }
 0x5d3   :  { %v16523_v62 = vcombine.high %v11598_v52, %v5293_v40  ;;  %v16525_v0 = vcombine.low %v11598_v52, %v5293_v40  ;;  %6432 = vmatprep.subr.bf16.mxu1 %v13098_v48  ;;  %v11815_v52 = vpop.f32.mrf.mxu1  ;;  %v5046_v40 = vadd.f32 %v11811_v30, %v11777_v22  ;;  %v13138_v22 = vld [vmem:[%s18459_s0 + $0xf0] ss:$12 sps:$4 sm:$0xff]  }
 0x5d4   :  { %v11779_v32 = vpop.f32.mrf.mxu0  ;;  %v13146_v30 = vld [vmem:[%s18459_s0 + $0xdc] ss:$12 sps:$4 sm:$0xff]  }
 0x5d5   :  { %v5467_v26 = vshll.u32 %v16523_v62, 16  ;;  %v5459_v24 = vshll.u32 %v16525_v0, 16  ;;  %v5482_v7 = vshrl.u32 %v16523_v62, 16  ;;  %v5479_v56 = vshrl.u32 %v16525_v0, 16  ;;  %v11816_v31 = vpop.f32.mrf.mxu1 }
 0x5d6   :  { %v16537_v58 = vpop.f32.mrf.mxu0  ;;  %6433 = vmatpush1.bf16.msra.mxu1 %v13096_v23  ;;  %v11780_v48 = vadd.f32 %v11779_v32, %v16521_v45 }
 0x5d7   :  { %v5469_v50 = vrot.slane %v5467_v26, 1  ;;  %v5461_v1 = vrot.slane %v5459_v24, 1  ;;  %6434 = vmatprep.subr.bf16.mxu1 %v13101_v16  ;;  %v11818_v12 = vpop.f32.mrf.mxu1  ;;  %v13128_v24 = vld [vmem:[%s18459_s0 + $0x124] ss:$12 sps:$4 sm:$0xff]  }
 0x5d8   :  { %v11782_v44 = vpop.f32.mrf.mxu0  ;;  %v5049_v32 = vadd.f32 %v11814_v51, %v11780_v48 }
 0x5d9   :  { %v16544_v17 = vsel %vm731_vm8, %v5465_v33, %v5469_v50  ;;  %v16547_v36 = vsel %vm731_vm8, %v5457_v54, %v5461_v1  ;;  %v16549_v35 = vor.u32 %v5482_v7, %v5469_v50  ;;  %v16571_v25 = vor.u32 %v5479_v56, %v5461_v1  ;;  %v11819_v39 = vpop.f32.mrf.mxu1  ;;  %v13126_v7 = vld [vmem:[%s18459_s0 + $0x120] ss:$12 sps:$4 sm:$0xff]  }
 0x5da   :  { %v16554_v8 = vpop.f32.mrf.mxu0  ;;  %5882 = vmatprep.mubr.bf16.mxu1 %v16544_v17  ;;  %6435 = vmatpush1.bf16.msra.mxu1 %v13099_v10  ;;  %v11783_v46 = vadd.f32 %v11782_v44, %v16537_v58  ;;  %v11817_v33 = vadd.f32 %v11816_v31, %v11815_v52  ;;  %v13134_v10 = vld [vmem:[%s18459_s0 + $0x10c] ss:$12 sps:$4 sm:$0xff]   ;;  %v11820_v9 = vadd.f32 %v11819_v39, %v11818_v12  ;;  %v13132_v52 = vld [vmem:[%s18459_s0 + $0x108] ss:$12 sps:$4 sm:$0xff]  }
 0x5db   :  { %5883 = vmatmul.mubr.bf16.gmra.mxu1 %v16547_v36  ;;  %6436 = vmatprep.subr.bf16.mxu1 %v13104_v61  ;;  %v11821_v26 = vpop.f32.mrf.mxu1 }
 0x5dc   :  { %v11785_v41 = vpop.f32.mrf.mxu0  ;;  %5892 = vmatprep.mubr.bf16.mxu1 %v16549_v35  ;;  %v5054_v44 = vadd.f32 %v11817_v33, %v11783_v46 }
 0x5dd   :  { %v11822_v54 = vpop.f32.mrf.mxu1  ;;  %v11786_v58 = vadd.f32 %v11785_v41, %v16554_v8 }
 0x5de   :  { %v16566_v4 = vpop.f32.mrf.mxu0  ;;  %6437 = vmatpush1.bf16.msra.mxu1 %v13102_v37 }
 0x5df   :  { %6438 = vmatprep.subr.bf16.mxu1 %v13107_v47  ;;  %v11824_v47 = vpop.f32.mrf.mxu1 }
 0x5e0   :  { %v11788_v42 = vpop.f32.mrf.mxu0 }
 0x5e1   :  { %v11789_v8 = vadd.f32 %v11788_v42, %v16566_v4  ;;  %v11825_v12 = vpop.f32.mrf.mxu1 }
 0x5e2   :  { %6439 = vmatpush1.bf16.msra.mxu1 %v13105_v29  ;;  %v11790_v63 = vpop.f32.mrf.mxu0  ;;  %v5057_v29 = vadd.f32 %v11820_v9, %v11786_v58  ;;  %v13155_v9 = vld [vmem:[%s18459_s0 + $0x290] ss:$12 sps:$4 sm:$0xff]  }
 0x5e3   :  { %5893 = vmatmul.mubr.bf16.gmra.mxu1 %v16571_v25  ;;  %6440 = vmatprep.subr.bf16.mxu1 %v13110_v55  ;;  %v13140_v55 = vld [vmem:[%s18459_s0 + $0xf4] ss:$12 sps:$4 sm:$0xff]  }
 0x5e4   :  { %6458 = vmatprep.mubr.bf16.mxu1 %v16469_v18  ;;  %v11791_v43 = vpop.f32.mrf.mxu0 }
 0x5e5   :  { %v11792_v4 = vadd.f32 %v11791_v43, %v11790_v63  ;;  %v13144_v63 = vld [vmem:[%s18459_s0 + $0xd8] ss:$12 sps:$4 sm:$0xff]  }
 0x5e6   :  { %6441 = vmatpush1.bf16.msra.mxu1 %v13108_v14  ;;  %v11823_v14 = vadd.f32 %v11822_v54, %v11821_v26  ;;  %v13153_v26 = vld [vmem:[%s18459_s0 + $0xc4] ss:$12 sps:$4 sm:$0xff]  }
 0x5e7   :  { %6442 = vmatprep.subr.bf16.mxu1 %v13113_v19 }
 0x5ea   :  { %6443 = vmatpush2.bf16.msra.mxu1 %v13111_v49 }
 0x5eb   :  { %6444 = vmatprep.subr.bf16.mxu1 %v13116_v38  ;;  %v5062_v38 = vadd.f32 %v11823_v14, %v11789_v8  ;;  %v13165_v8 = vld [vmem:[%s18459_s0 + $0x1b8] ss:$12 sps:$4 sm:$0xff]  }
 0x5ee   :  { %v5102_v15 = vpop.f32.mrf.mxu0  ;;  %6445 = vmatpush2.bf16.msra.mxu1 %v13114_v57 }
 0x5ef   :  { %v5103_v23 = vadd.f32 %v5102_v15, %v5046_v40  ;;  %6446 = vmatprep.subr.bf16.mxu1 %v13122_v6  ;;  %v11826_v40 = vadd.f32 %v11825_v12, %v11824_v47  ;;  %v13160_v12 = vld [vmem:[%s18459_s0 + $0x320] ss:$12 sps:$4 sm:$0xff]  }
 0x5f0   :  { %v12088_v21 = vpop.f32.mrf.mxu0 }
 0x5f1   :  { %v11591_v45 = vpack.c.bf16 %v5103_v23, %v5103_v23  ;;  %v5065_v23 = vadd.f32 %v11826_v40, %v11792_v4  ;;  %v13163_v4 = vld [vmem:[%s18459_s0 + $0x308] ss:$12 sps:$4 sm:$0xff]  }
 0x5f2   :  { %v5105_v16 = vpop.f32.mrf.mxu0  ;;  %6447 = vmatpush2.bf16.msra.mxu1 %v13120_v13 }
 0x5f3   :  { %5187 = vst.msk [vmem:[#allocation3 + $0x8] sm:$0xf] %vm5186_vm3, %v11591_v45  ;;  %v5106_v50 = vadd.f32 %v5105_v16, %v5049_v32  ;;  %6448 = vmatprep.subr.bf16.mxu1 %v13128_v24  ;;  %v13151_v32 = vld [vmem:[%s18459_s0 + $0xc0] ss:$12 sps:$4 sm:$0xff]  }
 0x5f4   :  { %v12089_v1 = vpop.f32.mrf.mxu0 }
 0x5f5   :  { %v11593_v53 = vpack.c.bf16 %v5106_v50, %v5106_v50  ;;  %v13159_v1 = vld [vmem:[%s18459_s0 + $0x1e8] ss:$12 sps:$4 sm:$0xff]  }
 0x5f6   :  { %v5110_v61 = vpop.f32.mrf.mxu0  ;;  %6449 = vmatpush2.bf16.msra.mxu1 %v13126_v7 }
 0x5f7   :  { %5189 = vst.msk [vmem:[#allocation3 + $0x14] sm:$0xf] %vm5186_vm3, %v11593_v53  ;;  %v5111_v37 = vadd.f32 %v5110_v61, %v5054_v44  ;;  %6450 = vmatprep.subr.bf16.mxu1 %v13134_v10  ;;  %v13150_v53 = vld [vmem:[%s18459_s0 + $0x2a8] ss:$12 sps:$4 sm:$0xff]   ;;  %v13154_v44 = vld [vmem:[%s18459_s0 + $0x350] ss:$12 sps:$4 sm:$0xff]  }
 0x5f8   :  { %v12092_v56 = vpop.f32.mrf.mxu0  ;;  %v13162_v61 = vld [vmem:[%s18459_s0 + $0x1d0] ss:$12 sps:$4 sm:$0xff]  }
 0x5f9   :  { %v11595_v41 = vpack.c.bf16 %v5111_v37, %v5111_v37  ;;  %v13156_v56 = vld [vmem:[%s18459_s0 + $0x338] ss:$12 sps:$4 sm:$0xff]  }
 0x5fa   :  { %v5113_v31 = vpop.f32.mrf.mxu0  ;;  %6451 = vmatpush2.bf16.msra.mxu1 %v13132_v52  ;;  %v5200_v57 = vld [vmem:[#allocation3 + $0x8] sm:$0xf] }
 0x5fb   :  { %5191 = vst.msk [vmem:[#allocation3 + $0x20] sm:$0xf] %vm5186_vm3, %v11595_v41  ;;  %v5114_v19 = vadd.f32 %v5113_v31, %v5057_v29  ;;  %6452 = vmatprep.subr.bf16.mxu1 %v13140_v55  ;;  %v16692_v55 = vpack.c.bf16 %v16477_v2, %v16477_v2  ;;  %v13168_v2 = vld [vmem:[%s18459_s0 + $0x1a0] ss:$12 sps:$4 sm:$0xff]  }
 0x5fc   :  { %v12093_v49 = vpop.f32.mrf.mxu0 }
 0x5fd   :  { %v11597_v42 = vpack.c.bf16 %v5114_v19, %v5114_v19  ;;  %v13158_v19 = vld [vmem:[%s18459_s0 + $0x278] ss:$12 sps:$4 sm:$0xff]  }
 0x5fe   :  { %v5118_v39 = vpop.f32.mrf.mxu0  ;;  %v16630_v48 = vld [vmem:[#allocation3 + $0x14] sm:$0xf]  ;;  %6453 = vmatpush2.bf16.msra.mxu1 %v13138_v22 }
 0x5ff   :  { %5193 = vst.msk [vmem:[#allocation3 + $0x2c] sm:$0xf] %vm5186_vm3, %v11597_v42  ;;  %v5119_v6 = vadd.f32 %v5118_v39, %v5062_v38  ;;  %v16634_v15 = vcombine.low %v5200_v57, %v16630_v48  ;;  %6454 = vmatprep.subr.bf16.mxu1 %v13146_v30  ;;  %v13161_v22 = vld [vmem:[%s18459_s0 + $0x260] ss:$12 sps:$4 sm:$0xff]   ;;  %v13171_v42 = vld [vmem:[%s18459_s0 + $0x188] ss:$12 sps:$4 sm:$0xff]   ;;  %v16723_v38 = vpack.c.bf16 %v16475_v3, %v16475_v3 }
 0x600   :  { %v12096_v51 = vpop.f32.mrf.mxu0  ;;  %v13176_v30 = vld [vmem:[%s18459_s0 + $0x5d4] ss:$12 sps:$4 sm:$0xff]   ;;  %v13166_v3 = vld [vmem:[%s18459_s0 + $0x2f0] ss:$12 sps:$4 sm:$0xff]  }
 0x601   :  { %v11599_v43 = vpack.c.bf16 %v5119_v6, %v5119_v6  ;;  %v5446_v13 = vshll.u32 %v16634_v15, 16  ;;  %v5444_v50 = vshrl.u32 %v16634_v15, 16  ;;  %v13164_v57 = vld [vmem:[%s18459_s0 + $0x248] ss:$12 sps:$4 sm:$0xff]   ;;  %v13167_v6 = vld [vmem:[%s18459_s0 + $0x230] ss:$12 sps:$4 sm:$0xff]  }
 0x602   :  { %v5121_v21 = vpop.f32.mrf.mxu0  ;;  %6455 = vmatpush2.bf16.msra.mxu1 %v13144_v63  ;;  %v13169_v51 = vld [vmem:[%s18459_s0 + $0x2d8] ss:$12 sps:$4 sm:$0xff]   ;;  %v13174_v63 = vld [vmem:[%s18459_s0 + $0x5d0] ss:$12 sps:$4 sm:$0xff]  }
 0x603   :  { %5195 = vst.msk [vmem:[#allocation3 + $0x38] sm:$0xf] %vm5186_vm3, %v11599_v43  ;;  %v5122_v46 = vadd.f32 %v5121_v21, %v5065_v23  ;;  %6456 = vmatprep.subr.bf16.mxu1 %v13153_v26  ;;  %v5448_v33 = vrot.slane %v5446_v13, 1  ;;  %v13180_v43 = vld [vmem:[%s18459_s0 + $0x5bc] ss:$12 sps:$4 sm:$0xff]   ;;  %vm8091_vm3 = vmor %vm8090_vm2, %vm1244_vm4 }
 0x604   :  { %v12097_v45 = vpop.f32.mrf.mxu0  ;;  %v13172_v23 = vld [vmem:[%s18459_s0 + $0x2c0] ss:$12 sps:$4 sm:$0xff]   ;;  %v13178_v26 = vld [vmem:[%s18459_s0 + $0x5b8] ss:$12 sps:$4 sm:$0xff]  }
 0x605   :  { %v11601_v24 = vpack.c.bf16 %v5122_v46, %v5122_v46  ;;  %v5449_v7 = vor.u32 %v5448_v33, %v5444_v50  ;;  %v13184_v21 = vld [vmem:[%s18459_s0 + $0x5a4] ss:$12 sps:$4 sm:$0xff]   ;;  %v13173_v13 = vld [vmem:[%s18459_s0 + $0x200] ss:$12 sps:$4 sm:$0xff]   ;;  %v13181_v50 = vld [vmem:[%s18459_s0 + $0x3c8] ss:$12 sps:$4 sm:$0xff]  }
 0x606   :  { %v16647_v16 = vld [vmem:[#allocation3 + $0x20] ss:$12 sps:$4 sm:$0xff]   ;;  %6457 = vmatpush2.bf16.msra.mxu1 %v13151_v32  ;;  %v13182_v46 = vld [vmem:[%s18459_s0 + $0x5a0] ss:$12 sps:$4 sm:$0xff]  }
 0x607   :  { %5198 = vst.msk [vmem:[#allocation3 + $0x44] sm:$0x1] %vm5197_vm6, %v11601_v24  ;;  %v5451_v54 = vshll.u32 %v16647_v16, 16  ;;  %12120 = vmatprep.subr.bf16.mxu1 %v18447_v59  ;;  %v5471_v41 = vshrl.u32 %v16647_v16, 16  ;;  %v13188_v45 = vld [vmem:[%s18459_s0 + $0x58c] ss:$12 sps:$4 sm:$0xff]  }
 0x608   :  { %v13177_v32 = vld [vmem:[%s18459_s0 + $0x3e0] ss:$12 sps:$4 sm:$0xff]   ;;  %v13186_v24 = vld [vmem:[%s18459_s0 + $0x588] ss:$12 sps:$4 sm:$0xff]   ;;  %vm8297_vm6 = vcmask 392192  }
 0x609   :  { %v5453_v58 = vrot.slane %v5451_v54, 1  ;;  %6459 = vmatmul.mubr.bf16.vlgmr.msra.gmra.mxu1 %v16471_v34  ;;  %v13193_v33 = vld [vmem:[%s18459_s0 + $0x574] ss:$12 sps:$4 sm:$0xff]   ;;  %v13191_v54 = vld [vmem:[%s18459_s0 + $0x570] ss:$12 sps:$4 sm:$0xff]  }
 0x60a   :  { %6468 = vmatprep.mubr.bf16.mxu1 %v16481_v20  ;;  %12121 = vmatpush3.bf16.msra.mxu1 %v13159_v1  ;;  %v16676_v37 = vld [vmem:[#allocation3 + $0x38] sm:$0xf] }
 0x60b   :  { %v16663_v10 = vsel %vm731_vm8, %v5449_v7, %v5453_v58  ;;  %12122 = vmatprep.subr.bf16.mxu1 %v18447_v59  ;;  %v5473_v31 = vor.u32 %v5471_v41, %v5453_v58  ;;  %v16806_v1 = vcombine.low %v16676_v37, %v16676_v37  ;;  %v6661_v7 = vld [vmem:[#allocation3 + $0x8] sm:$0xe]  ;;  %v13204_v41 = vld [vmem:[%s18459_s0 + $0x470] ss:$12 sps:$4 sm:$0xff]  }
 0x60c   :  { %10990 = vmatmul.mubr.msk.bf16.vlgmr.msra.gmra.mxu0 %vm5830_vm7, %v16663_v10  ;;  %v11154_v58 = vcombine.low %v6661_v7, %v16630_v48  ;;  %v13197_v48 = vld [vmem:[%s18459_s0 + $0x4a0] ss:$12 sps:$4 sm:$0xff]   ;;  %v13234_v7 = vld [vmem:[%s18459_s0 + $0x68] ss:$12 sps:$4 sm:$0xff]  }
 0x60d   :  { %11839 = vmatpush3.bf16.msra.mxu0 %v13150_v53  ;;  %5943 = vmatprep.mubr.bf16.mxu0 %v18439_v60  ;;  %v6762_v53 = vrot.slane %v16647_v16, 1 }
 0x60e   :  { %v5294_v47 = vld [vmem:[#allocation3 + $0x44] sm:$0x1]  ;;  %11840 = vmatprep.subr.bf16.mxu0 %v13154_v44  ;;  %12123 = vmatpush3.bf16.msra.mxu1 %v13162_v61  ;;  %v13190_v44 = vld [vmem:[%s18459_s0 + $0x398] ss:$12 sps:$4 sm:$0xff]   ;;  %v6761_v61 = vrot.slane %v11154_v58, 1 }
 0x60f   :  { %v16682_v52 = vcombine.low %v16676_v37, %v5294_v47  ;;  %12124 = vmatprep.subr.bf16.mxu1 %v18447_v59  ;;  %v13199_v37 = vld [vmem:[%s18459_s0 + $0x488] ss:$12 sps:$4 sm:$0xff]   ;;  %v13202_v47 = vld [vmem:[%s18459_s0 + $0x1e4] ss:$12 sps:$4 sm:$0xff]  }
 0x610   :  { %v13235_v58 = vld [vmem:[%s18459_s0 + $0x110] ss:$12 sps:$4 sm:$0xff]  }
 0x611   :  { %v5475_v29 = vshll.u32 %v16682_v52, 16  ;;  %11841 = vmatpush3.bf16.msra.mxu0 %v13155_v9  ;;  %6469 = vmatmul.mubr.bf16.gmra.mxu1 %v16479_v5  ;;  %v5485_v39 = vshrl.u32 %v16682_v52, 16  ;;  %v16833_v9 = vsel %vm2271_vm13, %v6761_v61, %v6762_v53  ;;  %v13239_v61 = vld [vmem:[%s18459_s0 + $0xe0] ss:$12 sps:$4 sm:$0xff]  }
 0x612   :  { %11842 = vmatprep.subr.bf16.mxu0 %v13156_v56  ;;  %6478 = vmatprep.mubr.bf16.mxu1 %v16692_v55  ;;  %v13203_v56 = vld [vmem:[%s18459_s0 + $0x530] ss:$12 sps:$4 sm:$0xff]  }
 0x613   :  { %v5477_v14 = vrot.slane %v5475_v29, 1  ;;  %12125 = vmatpush3.bf16.msra.mxu1 %v13165_v8  ;;  %v16853_v8 = vrot.slane %v16682_v52, 1  ;;  %v13208_v29 = vld [vmem:[%s18459_s0 + $0x518] ss:$12 sps:$4 sm:$0xff]   ;;  %v13200_v52 = vld [vmem:[%s18459_s0 + $0x1e0] ss:$12 sps:$4 sm:$0xff]  }
 0x614   :  { %12126 = vmatprep.subr.bf16.mxu1 %v18447_v59 }
 0x615   :  { %v16706_v49 = vsel %vm731_vm8, %v5473_v31, %v5477_v14  ;;  %11843 = vmatpush3.bf16.msra.mxu0 %v13158_v19  ;;  %v16734_v40 = vor.u32 %v5485_v39, %v5477_v14  ;;  %v6660_v31 = vld [vmem:[#allocation3] sm:$0xee] }
 0x616   :  { %10991 = vmatmul.mubr.msk.bf16.gmra.mxu0 %vm5830_vm7, %v16706_v49  ;;  %11844 = vmatprep.subr.bf16.mxu0 %v13160_v12  ;;  %v13207_v14 = vld [vmem:[%s18459_s0 + $0x1cc] ss:$12 sps:$4 sm:$0xff]  }
 0x617   :  { %5953 = vmatprep.mubr.bf16.mxu0 %v18439_v60  ;;  %12127 = vmatpush3.bf16.msra.mxu1 %v13168_v2  ;;  %v13209_v19 = vld [vmem:[%s18459_s0 + $0x458] ss:$12 sps:$4 sm:$0xff]   ;;  %v13213_v12 = vld [vmem:[%s18459_s0 + $0x500] ss:$12 sps:$4 sm:$0xff]   ;;  %v11153_v2 = vcombine.high %v6660_v31, %v16467_v27 }
 0x618   :  { %12128 = vmatprep.subr.bf16.mxu1 %v18447_v59 }
 0x619   :  { %11845 = vmatpush3.bf16.msra.mxu0 %v13161_v22  ;;  %6479 = vmatmul.mubr.bf16.gmra.mxu1 %v16723_v38  ;;  %v13205_v22 = vld [vmem:[%s18459_s0 + $0x1c8] ss:$12 sps:$4 sm:$0xff]   ;;  %v6758_v39 = vrot.slane %v11153_v2, 1 }
 0x61a   :  { %11846 = vmatprep.subr.bf16.mxu0 %v13163_v4  ;;  %12130 = vmatprep.mubr.msk.bf16.mxu1 %vm13618_vm14, %v18447_v59  ;;  %v13212_v4 = vld [vmem:[%s18459_s0 + $0x1b4] ss:$12 sps:$4 sm:$0xff]  }
 0x61b   :  { %12129 = vmatpush3.bf16.msra.mxu1 %v13171_v42  ;;  %v6759_v42 = vrot.slane %v16481_v20, 1 }
 0x61c   :  { %7188 = vmatprep.subr.bf16.mxu1 %v13176_v30  ;;  %v13218_v30 = vld [vmem:[%s18459_s0 + $0x4e8] ss:$12 sps:$4 sm:$0xff]  }
 0x61d   :  { %11847 = vmatpush3.bf16.msra.mxu0 %v13164_v57  ;;  %v13210_v57 = vld [vmem:[%s18459_s0 + $0x1b0] ss:$12 sps:$4 sm:$0xff]  }
 0x61e   :  { %10992 = vmatmul.mubr.msk.bf16.gmra.mxu0 %vm5830_vm7, %v16734_v40  ;;  %11848 = vmatprep.subr.bf16.mxu0 %v13166_v3  ;;  %v13217_v3 = vld [vmem:[%s18459_s0 + $0x19c] ss:$12 sps:$4 sm:$0xff]  }
 0x61f   :  { %5994 = vmatprep.mubr.bf16.mxu0 %v16493_v28  ;;  %v13170_v28 = vld [vmem:[%s18459_s0 + $0x218] ss:$12 sps:$4 sm:$0xff]  }
 0x621   :  { %11849 = vmatpush3.bf16.msra.mxu0 %v13167_v6  ;;  %12131 = vmatmul.mubr.msk.bf16.vlgmr.msra.gmra.mxu1 %vm5830_vm7, %v16634_v15  ;;  %v16909_v6 = vsel %vm2271_vm13, %v6758_v39, %v6759_v42  ;;  %v13272_v39 = vld [vmem:[%s18459_s0 + $0x544] ss:$12 sps:$4 sm:$0xff]  }
 0x622   :  { %11850 = vmatprep.subr.bf16.mxu0 %v13169_v51  ;;  %7189 = vmatpush1.bf16.msra.mxu1 %v13174_v63  ;;  %v13219_v51 = vld [vmem:[%s18459_s0 + $0x428] ss:$12 sps:$4 sm:$0xff]   ;;  %v13223_v63 = vld [vmem:[%s18459_s0 + $0x4d0] ss:$12 sps:$4 sm:$0xff]  }
 0x623   :  { %12134 = vmatprep.mubr.msk.bf16.mxu1 %vm13618_vm14, %v18447_v59  ;;  %7190 = vmatprep.subr.bf16.mxu1 %v13180_v43  ;;  %v13215_v43 = vld [vmem:[%s18459_s0 + $0x198] ss:$12 sps:$4 sm:$0xff]  }
 0x625   :  { %11851 = vmatpush3.bf16.msra.mxu0 %v13170_v28  ;;  %v13222_v28 = vld [vmem:[%s18459_s0 + $0x184] ss:$12 sps:$4 sm:$0xff]  }
 0x626   :  { %11852 = vmatprep.subr.bf16.mxu0 %v13172_v23  ;;  %7191 = vmatpush1.bf16.msra.mxu1 %v13178_v26  ;;  %v13224_v23 = vld [vmem:[%s18459_s0 + $0x410] ss:$12 sps:$4 sm:$0xff]   ;;  %v13220_v26 = vld [vmem:[%s18459_s0 + $0x180] ss:$12 sps:$4 sm:$0xff]  }
 0x627   :  { %7192 = vmatprep.subr.bf16.mxu1 %v13184_v21  ;;  %v11152_v21 = vcombine.low %v6660_v31, %v16467_v27  ;;  %v16949_v27 = vrot.slane %v16523_v62, 1  ;;  %v13229_v62 = vld [vmem:[%s18459_s0 + $0x158] ss:$12 sps:$4 sm:$0xff]   ;;  %v13258_v31 = vld [vmem:[%s18459_s0 + $0x420] ss:$12 sps:$4 sm:$0xff]  }
 0x629   :  { %11853 = vmatpush3.bf16.msra.mxu0 %v13173_v13  ;;  %12135 = vmatmul.mubr.msk.bf16.gmra.mxu1 %vm5830_vm7, %v16647_v16  ;;  %v13225_v13 = vld [vmem:[%s18459_s0 + $0x170] ss:$12 sps:$4 sm:$0xff]  }
 0x62a   :  { %12098 = vmatprep.subr.bf16.mxu0 %v18447_v59  ;;  %7193 = vmatpush1.bf16.msra.mxu1 %v13182_v46  ;;  %v13228_v46 = vld [vmem:[%s18459_s0 + $0x3f8] ss:$12 sps:$4 sm:$0xff]  }
 0x62b   :  { %12138 = vmatprep.mubr.msk.bf16.mxu1 %vm13618_vm14, %v18447_v59  ;;  %7194 = vmatprep.subr.bf16.mxu1 %v13188_v45  ;;  %v6756_v45 = vrot.slane %v16479_v5, 1 }
 0x62c   :  { %5995 = vmatmul.mubr.bf16.vlgmr.msra.gmra.mxu0 %v16500_v11  ;;  %v13195_v11 = vld [vmem:[%s18459_s0 + $0x560] ss:$12 sps:$4 sm:$0xff]  }
 0x62d   :  { %6002 = vmatprep.mubr.bf16.mxu0 %v16544_v17  ;;  %12099 = vmatpush3.bf16.msra.mxu0 %v13177_v32  ;;  %v13185_v17 = vld [vmem:[%s18459_s0 + $0x3b0] ss:$12 sps:$4 sm:$0xff]   ;;  %v6755_v32 = vrot.slane %v11152_v21, 1 }
 0x62e   :  { %12100 = vmatprep.subr.bf16.mxu0 %v18447_v59  ;;  %7195 = vmatpush1.bf16.msra.mxu1 %v13186_v24  ;;  %v13276_v21 = vld [vmem:[%s18459_s0 + $0x510] ss:$12 sps:$4 sm:$0xff]  }
 0x62f   :  { %7196 = vmatprep.subr.bf16.mxu1 %v13193_v33  ;;  %v16952_v24 = vsel %vm2271_vm13, %v6755_v32, %v6756_v45  ;;  %v13226_v33 = vld [vmem:[%s18459_s0 + $0xb0] ss:$12 sps:$4 sm:$0xff]  }
 0x630   :  { %v13284_v32 = vld [vmem:[%s18459_s0 + $0x4e4] ss:$12 sps:$4 sm:$0xff]  }
 0x631   :  { %12101 = vmatpush3.bf16.msra.mxu0 %v13181_v50  ;;  %12139 = vmatmul.mubr.msk.bf16.gmra.mxu1 %vm5830_vm7, %v16806_v1  ;;  %v16969_v50 = vrot.slane %v16525_v0, 1  ;;  %v13232_v0 = vld [vmem:[%s18459_s0 + $0x80] ss:$12 sps:$4 sm:$0xff]  }
 0x632   :  { %12102 = vmatprep.subr.bf16.mxu0 %v18447_v59  ;;  %7197 = vmatpush1.bf16.msra.mxu1 %v13191_v54  ;;  %v13230_v54 = vld [vmem:[%s18459_s0 + $0x98] ss:$12 sps:$4 sm:$0xff]  }
 0x633   :  { %7214 = vmatprep.mubr.bf16.mxu1 %v18439_v60  ;;  %11922 = vmatprep.subr.bf16.mxu1 %v13195_v11  ;;  %v13231_v11 = vld [vmem:[%s18459_s0 + $0x140] ss:$12 sps:$4 sm:$0xff]  }
 0x634   :  { %6003 = vmatmul.mubr.bf16.gmra.mxu0 %v16547_v36  ;;  %v13198_v36 = vld [vmem:[%s18459_s0 + $0x548] ss:$12 sps:$4 sm:$0xff]  }
 0x635   :  { %6010 = vmatprep.mubr.bf16.mxu0 %v16549_v35  ;;  %12103 = vmatpush3.bf16.msra.mxu0 %v13185_v17  ;;  %v13194_v35 = vld [vmem:[%s18459_s0 + $0x380] ss:$12 sps:$4 sm:$0xff]   ;;  %v16980_v17 = vsel %vm2271_vm13, %v6756_v45, %v16969_v50  ;;  %v13279_v45 = vld [vmem:[%s18459_s0 + $0x4f8] ss:$12 sps:$4 sm:$0xff]  }
 0x636   :  { %12104 = vmatprep.subr.bf16.mxu0 %v18447_v59 }
 0x639   :  { %12105 = vmatpush3.bf16.msra.mxu0 %v13190_v44  ;;  %11218 = vmatmul.mubr.msk.bf16.vlgmr.msra.gmra.mxu1 %vm5830_vm7, %v16833_v9  ;;  %v13238_v44 = vld [vmem:[%s18459_s0 + $0x38] ss:$12 sps:$4 sm:$0xff]  }
 0x63a   :  { %12106 = vmatprep.subr.bf16.mxu0 %v18447_v59  ;;  %11923 = vmatpush3.bf16.msra.mxu1 %v13197_v48  ;;  %v13240_v48 = vld [vmem:[%s18459_s0 + $0x20] ss:$12 sps:$4 sm:$0xff]  }
 0x63b   :  { %11924 = vmatprep.subr.bf16.mxu1 %v13198_v36  ;;  %7224 = vmatprep.mubr.bf16.mxu1 %v18439_v60  ;;  %v13245_v36 = vld [vmem:[%s18459_s0 + $0x49c] ss:$12 sps:$4 sm:$0xff]  }
 0x63c   :  { %6011 = vmatmul.mubr.bf16.gmra.mxu0 %v16571_v25  ;;  %v16865_v25 = vsel %vm2271_vm13, %v6762_v53, %v16853_v8  ;;  %v13236_v53 = vld [vmem:[%s18459_s0 + $0x50] ss:$12 sps:$4 sm:$0xff]  }
 0x63d   :  { %12107 = vmatpush3.bf16.msra.mxu0 %v13194_v35  ;;  %12108 = vmatprep.mubr.msk.bf16.mxu0 %vm13618_vm14, %v18447_v59  ;;  %v13243_v35 = vld [vmem:[%s18459_s0 + $0x498] ss:$12 sps:$4 sm:$0xff]  }
 0x63e   :  { %11925 = vmatpush3.bf16.msra.mxu1 %v13199_v37  ;;  %6493 = vmatprep.subr.bf16.mxu0 %v13202_v47  ;;  %v13248_v37 = vld [vmem:[%s18459_s0 + $0x484] ss:$12 sps:$4 sm:$0xff]   ;;  %v13246_v47 = vld [vmem:[%s18459_s0 + $0x480] ss:$12 sps:$4 sm:$0xff]  }
 0x63f   :  { %11926 = vmatprep.subr.bf16.mxu1 %v13203_v56  ;;  %v13251_v56 = vld [vmem:[%s18459_s0 + $0x46c] ss:$12 sps:$4 sm:$0xff]  }
 0x641   :  { %11219 = vmatmul.mubr.msk.bf16.gmra.mxu1 %vm5830_vm7, %v16865_v25 }
 0x642   :  { %11927 = vmatpush3.bf16.msra.mxu1 %v13204_v41  ;;  %7234 = vmatprep.mubr.bf16.mxu1 %v18439_v60  ;;  %v13249_v41 = vld [vmem:[%s18459_s0 + $0x468] ss:$12 sps:$4 sm:$0xff]  }
 0x643   :  { %11928 = vmatprep.subr.bf16.mxu1 %v13208_v29  ;;  %v13257_v29 = vld [vmem:[%s18459_s0 + $0x43c] ss:$12 sps:$4 sm:$0xff]  }
 0x644   :  { %12109 = vmatmul.mubr.msk.bf16.vlgmr.msra.gmra.mxu0 %vm5830_vm7, %v16663_v10  ;;  %v13214_v10 = vld [vmem:[%s18459_s0 + $0x440] ss:$12 sps:$4 sm:$0xff]  }
 0x645   :  { %6494 = vmatpush1.bf16.msra.mxu0 %v13200_v52  ;;  %12112 = vmatprep.mubr.msk.bf16.mxu0 %vm13618_vm14, %v18447_v59  ;;  %v13255_v52 = vld [vmem:[%s18459_s0 + $0x438] ss:$12 sps:$4 sm:$0xff]  }
 0x646   :  { %6495 = vmatprep.subr.bf16.mxu0 %v13207_v14  ;;  %11929 = vmatpush3.bf16.msra.mxu1 %v13209_v19  ;;  %v13263_v14 = vld [vmem:[%s18459_s0 + $0x40c] ss:$12 sps:$4 sm:$0xff]  }
 0x647   :  { %11930 = vmatprep.subr.bf16.mxu1 %v13213_v12  ;;  %v13261_v12 = vld [vmem:[%s18459_s0 + $0x408] ss:$12 sps:$4 sm:$0xff]  }
 0x649   :  { %6496 = vmatpush1.bf16.msra.mxu0 %v13205_v22  ;;  %11220 = vmatmul.mubr.msk.bf16.gmra.mxu1 %vm5830_vm7, %v16853_v8  ;;  %v13264_v22 = vld [vmem:[%s18459_s0 + $0x3f0] ss:$12 sps:$4 sm:$0xff]  }
 0x64a   :  { %6497 = vmatprep.subr.bf16.mxu0 %v13212_v4  ;;  %11931 = vmatpush3.bf16.msra.mxu1 %v13214_v10  ;;  %v13269_v4 = vld [vmem:[%s18459_s0 + $0x55c] ss:$12 sps:$4 sm:$0xff]  }
 0x64b   :  { %7275 = vmatprep.mubr.bf16.mxu1 %v16909_v6  ;;  %11932 = vmatprep.subr.bf16.mxu1 %v13218_v30  ;;  %v13267_v30 = vld [vmem:[%s18459_s0 + $0x558] ss:$12 sps:$4 sm:$0xff]  }
 0x64c   :  { %12113 = vmatmul.mubr.msk.bf16.gmra.mxu0 %vm5830_vm7, %v16706_v49  ;;  %v13227_v49 = vld [vmem:[%s18459_s0 + $0x4b8] ss:$12 sps:$4 sm:$0xff]  }
 0x64d   :  { %6498 = vmatpush1.bf16.msra.mxu0 %v13210_v57  ;;  %12116 = vmatprep.mubr.msk.bf16.mxu0 %vm13618_vm14, %v18447_v59 }
 0x64e   :  { %6499 = vmatprep.subr.bf16.mxu0 %v13217_v3  ;;  %11933 = vmatpush3.bf16.msra.mxu1 %v13219_v51  ;;  %v13275_v51 = vld [vmem:[%s18459_s0 + $0x52c] ss:$12 sps:$4 sm:$0xff]  }
 0x64f   :  { %11934 = vmatprep.subr.bf16.mxu1 %v13223_v63 }
 0x651   :  { %6500 = vmatpush1.bf16.msra.mxu0 %v13215_v43 }
 0x652   :  { %6501 = vmatprep.subr.bf16.mxu0 %v13222_v28  ;;  %11935 = vmatpush3.bf16.msra.mxu1 %v13224_v23  ;;  %v13273_v28 = vld [vmem:[%s18459_s0 + $0x528] ss:$12 sps:$4 sm:$0xff]  }
 0x653   :  { %11936 = vmatprep.subr.bf16.mxu1 %v13227_v49  ;;  %v13278_v23 = vld [vmem:[%s18459_s0 + $0x514] ss:$12 sps:$4 sm:$0xff]  }
 0x654   :  { %12117 = vmatmul.mubr.msk.bf16.gmra.mxu0 %vm5830_vm7, %v16734_v40  ;;  %v16960_v40 = vsel %vm2271_vm13, %v6759_v42, %v16949_v27 }
 0x655   :  { %6502 = vmatpush1.bf16.msra.mxu0 %v13220_v26  ;;  %6519 = vmatprep.mubr.bf16.mxu0 %v18439_v60 }
 0x656   :  { %11880 = vmatprep.subr.bf16.mxu0 %v13225_v13  ;;  %11937 = vmatpush3.bf16.msra.mxu1 %v13228_v46  ;;  %v13281_v13 = vld [vmem:[%s18459_s0 + $0x4fc] ss:$12 sps:$4 sm:$0xff]  }
 0x659   :  { %7276 = vmatmul.mubr.bf16.vlgmr.msra.gmra.mxu1 %v16952_v24 }
 0x65a   :  { %7283 = vmatprep.mubr.bf16.mxu1 %v16960_v40 }
 0x65c   :  { %11062 = vmatmul.mubr.msk.bf16.vlgmr.msra.gmra.mxu0 %vm5830_vm7, %v16634_v15  ;;  %v13233_v15 = vld [vmem:[%s18459_s0 + $0x128] ss:$12 sps:$4 sm:$0xff]  }
 0x65d   :  { %11881 = vmatpush3.bf16.msra.mxu0 %v13226_v33  ;;  %6529 = vmatprep.mubr.bf16.mxu0 %v18439_v60  ;;  %v13282_v33 = vld [vmem:[%s18459_s0 + $0x4e0] ss:$12 sps:$4 sm:$0xff]  }
 0x65e   :  { %11882 = vmatprep.subr.bf16.mxu0 %v13229_v62  ;;  %v13287_v62 = vld [vmem:[%s18459_s0 + $0x4cc] ss:$12 sps:$4 sm:$0xff]  }
 0x661   :  { %11883 = vmatpush3.bf16.msra.mxu0 %v13230_v54  ;;  %7284 = vmatmul.mubr.bf16.gmra.mxu1 %v16980_v17  ;;  %v13285_v54 = vld [vmem:[%s18459_s0 + $0x4c8] ss:$12 sps:$4 sm:$0xff]  }
 0x662   :  { %11884 = vmatprep.subr.bf16.mxu0 %v13231_v11  ;;  %7291 = vmatprep.mubr.bf16.mxu1 %v16949_v27  ;;  %v13290_v11 = vld [vmem:[%s18459_s0 + $0x4b4] ss:$12 sps:$4 sm:$0xff]  }
 0x664   :  { %11063 = vmatmul.mubr.msk.bf16.gmra.mxu0 %vm5830_vm7, %v16647_v16  ;;  %v13237_v16 = vld [vmem:[%s18459_s0 + $0xf8] ss:$12 sps:$4 sm:$0xff]  }
 0x665   :  { %11885 = vmatpush3.bf16.msra.mxu0 %v13232_v0  ;;  %6539 = vmatprep.mubr.bf16.mxu0 %v18439_v60  ;;  %v13288_v0 = vld [vmem:[%s18459_s0 + $0x4b0] ss:$12 sps:$4 sm:$0xff]  }
 0x666   :  { %11886 = vmatprep.subr.bf16.mxu0 %v13233_v15  ;;  %v13291_v15 = vld [vmem:[%s18459_s0 + $0x5d8] ss:$12 sps:$4 sm:$0xff]  }
 0x669   :  { %11887 = vmatpush3.bf16.msra.mxu0 %v13234_v7  ;;  %7292 = vmatmul.mubr.bf16.gmra.mxu1 %v16969_v50  ;;  %v13292_v7 = vld [vmem:[%s18459_s0 + $0x5c0] ss:$12 sps:$4 sm:$0xff]  }
 0x66a   :  { %11888 = vmatprep.subr.bf16.mxu0 %v13235_v58  ;;  %7644 = vmatprep.mubr.bf16.mxu1 %v18439_v60  ;;  %v13293_v58 = vld [vmem:[%s18459_s0 + $0x5a8] ss:$12 sps:$4 sm:$0xff]  }
 0x66c   :  { %11064 = vmatmul.mubr.msk.bf16.gmra.mxu0 %vm5830_vm7, %v16806_v1  ;;  %v13241_v1 = vld [vmem:[%s18459_s0 + $0xc8] ss:$12 sps:$4 sm:$0xff]  }
 0x66d   :  { %11889 = vmatpush3.bf16.msra.mxu0 %v13236_v53  ;;  %6580 = vmatprep.mubr.bf16.mxu0 %v16469_v18  ;;  %v13242_v18 = vld [vmem:[%s18459_s0 + $0x8] ss:$12 sps:$4 sm:$0xff]  }
 0x66e   :  { %11890 = vmatprep.subr.bf16.mxu0 %v13237_v16 }
 0x671   :  { %11891 = vmatpush3.bf16.msra.mxu0 %v13238_v44 }
 0x672   :  { %11892 = vmatprep.subr.bf16.mxu0 %v13239_v61 }
 0x675   :  { %11893 = vmatpush3.bf16.msra.mxu0 %v13240_v48 }
 0x676   :  { %11894 = vmatprep.subr.bf16.mxu0 %v13241_v1 }
 0x679   :  { %11895 = vmatpush3.bf16.msra.mxu0 %v13242_v18 }
 0x67a   :  { %7121 = vmatprep.subr.bf16.mxu0 %v13245_v36 }
 0x67c   :  { %6581 = vmatmul.mubr.bf16.vlgmr.msra.gmra.mxu0 %v16471_v34  ;;  %v13254_v34 = vld [vmem:[%s18459_s0 + $0x454] ss:$12 sps:$4 sm:$0xff]  }
 0x67d   :  { %6588 = vmatprep.mubr.bf16.mxu0 %v16481_v20  ;;  %7122 = vmatpush1.bf16.msra.mxu0 %v13243_v35  ;;  %v13252_v20 = vld [vmem:[%s18459_s0 + $0x450] ss:$12 sps:$4 sm:$0xff]  }
 0x67e   :  { %7123 = vmatprep.subr.bf16.mxu0 %v13248_v37 }
 0x681   :  { %7124 = vmatpush1.bf16.msra.mxu0 %v13246_v47 }
 0x682   :  { %7125 = vmatprep.subr.bf16.mxu0 %v13251_v56 }
 0x684   :  { %6589 = vmatmul.mubr.bf16.gmra.mxu0 %v16479_v5  ;;  %v13260_v5 = vld [vmem:[%s18459_s0 + $0x424] ss:$12 sps:$4 sm:$0xff]  }
 0x685   :  { %6596 = vmatprep.mubr.bf16.mxu0 %v16692_v55  ;;  %7126 = vmatpush1.bf16.msra.mxu0 %v13249_v41 }
 0x686   :  { %7127 = vmatprep.subr.bf16.mxu0 %v13254_v34 }
 0x689   :  { %7128 = vmatpush1.bf16.msra.mxu0 %v13252_v20  ;;  %v17062_v55 = vpop.f32.mrf.mxu1 }
 0x68a   :  { %7129 = vmatprep.subr.bf16.mxu0 %v13257_v29 }
 0x68b   :  { %v17072_v19 = vpop.f32.mrf.mxu1 }
 0x68c   :  { %6597 = vmatmul.mubr.bf16.gmra.mxu0 %v16723_v38  ;;  %v13266_v38 = vld [vmem:[%s18459_s0 + $0x3f4] ss:$12 sps:$4 sm:$0xff]  }
 0x68d   :  { %7130 = vmatpush1.bf16.msra.mxu0 %v13255_v52  ;;  %7153 = vmatprep.mubr.bf16.mxu0 %v16909_v6  ;;  %v17080_v2 = vpop.f32.mrf.mxu1  ;;  %v13270_v6 = vld [vmem:[%s18459_s0 + $0x540] ss:$12 sps:$4 sm:$0xff]  }
 0x68e   :  { %7131 = vmatprep.subr.bf16.mxu0 %v13260_v5 }
 0x68f   :  { %v17088_v10 = vpop.f32.mrf.mxu1 }
 0x691   :  { %7132 = vmatpush1.bf16.msra.mxu0 %v13258_v31 }
 0x692   :  { %7133 = vmatprep.subr.bf16.mxu0 %v13263_v14 }
 0x695   :  { %7134 = vmatpush1.bf16.msra.mxu0 %v13261_v12 }
 0x696   :  { %7135 = vmatprep.subr.bf16.mxu0 %v13266_v38 }
 0x699   :  { %7136 = vmatpush1.bf16.msra.mxu0 %v13264_v22 }
 0x69a   :  { %7137 = vmatprep.subr.bf16.mxu0 %v13269_v4 }
 0x69b   :  { %v17090_v42 = vpop.f32.mrf.mxu1 }
 0x69d   :  { %v17098_v57 = vpop.f32.mrf.mxu1  ;;  %7138 = vmatpush2.bf16.msra.mxu0 %v13267_v30 }
 0x69e   :  { %7139 = vmatprep.subr.bf16.mxu0 %v13272_v39 }
 0x69f   :  { %v17100_v3 = vpop.f32.mrf.mxu1 }
 0x6a1   :  { %v17108_v63 = vpop.f32.mrf.mxu1  ;;  %7140 = vmatpush2.bf16.msra.mxu0 %v13270_v6 }
 0x6a2   :  { %7141 = vmatprep.subr.bf16.mxu0 %v13275_v51 }
 0x6a3   :  { %v17110_v43 = vpop.f32.mrf.mxu1 }
 0x6a5   :  { %v17118_v49 = vpop.f32.mrf.mxu1  ;;  %7142 = vmatpush2.bf16.msra.mxu0 %v13273_v28 }
 0x6a6   :  { %7143 = vmatprep.subr.bf16.mxu0 %v13278_v23 }
 0x6a7   :  { %v5898_v26 = vpop.f32.mrf.mxu1 }
 0x6a9   :  { %v5899_v46 = vpop.f32.mrf.mxu1  ;;  %7144 = vmatpush2.bf16.msra.mxu0 %v13276_v21 }
 0x6aa   :  { %7145 = vmatprep.subr.bf16.mxu0 %v13281_v13 }
 0x6ad   :  { %7146 = vmatpush2.bf16.msra.mxu0 %v13279_v45 }
 0x6ae   :  { %7147 = vmatprep.subr.bf16.mxu0 %v13284_v32 }
 0x6b1   :  { %7148 = vmatpush2.bf16.msra.mxu0 %v13282_v33 }
 0x6b2   :  { %7149 = vmatprep.subr.bf16.mxu0 %v13287_v62 }
 0x6b5   :  { %7150 = vmatpush2.bf16.msra.mxu0 %v13285_v54 }
 0x6b6   :  { %7151 = vmatprep.subr.bf16.mxu0 %v13290_v11 }
 0x6b9   :  { %7152 = vmatpush2.bf16.msra.mxu0 %v13288_v0 }
 0x6ba   :  { %12142 = vmatprep.subr.bf16.mxu0 %v18447_v59 }
 0x6bc   :  { %7154 = vmatmul.mubr.bf16.vlgmr.msra.gmra.mxu0 %v16952_v24  ;;  %v13294_v24 = vld [vmem:[%s18459_s0 + $0x590] ss:$12 sps:$4 sm:$0xff]  }
 0x6bd   :  { %7163 = vmatprep.mubr.bf16.mxu0 %v16960_v40  ;;  %12143 = vmatpush3.bf16.msra.mxu0 %v13291_v15  ;;  %v13295_v40 = vld [vmem:[%s18459_s0 + $0x578] ss:$12 sps:$4 sm:$0xff]  }
 0x6be   :  { %12144 = vmatprep.subr.bf16.mxu0 %v18447_v59 }
 0x6c1   :  { %12145 = vmatpush3.bf16.msra.mxu0 %v13292_v7 }
 0x6c2   :  { %12146 = vmatprep.subr.bf16.mxu0 %v18447_v59 }
 0x6c4   :  { %7164 = vmatmul.mubr.bf16.gmra.mxu0 %v16980_v17 }
 0x6c5   :  { %7173 = vmatprep.mubr.bf16.mxu0 %v16949_v27  ;;  %12147 = vmatpush3.bf16.msra.mxu0 %v13293_v58 }
 0x6c6   :  { %12148 = vmatprep.subr.bf16.mxu0 %v18447_v59 }
 0x6c9   :  { %12149 = vmatpush3.bf16.msra.mxu0 %v13294_v24  ;;  %v6460_v53 = vpop.f32.mrf.mxu1 }
 0x6ca   :  { %12150 = vmatprep.subr.bf16.mxu0 %v18447_v59 }
 0x6cb   :  { %v6462_v44 = vpop.f32.mrf.mxu1 }
 0x6cc   :  { %v5935_v16 = vpop.f32.mrf.mxu0  ;;  %7174 = vmatmul.mubr.bf16.gmra.mxu0 %v16969_v50 }
 0x6cd   :  { %v5936_v27 = vadd.f32 %v5935_v16, %v17062_v55  ;;  %12151 = vmatpush3.bf16.msra.mxu0 %v13295_v40  ;;  %12152 = vmatprep.mubr.msk.bf16.mxu0 %vm13618_vm14, %v18447_v59  ;;  %v6464_v61 = vpop.f32.mrf.mxu1 }
 0x6ce   :  { %v5937_v17 = vpop.f32.mrf.mxu0 }
 0x6cf   :  { %v5938_v48 = vadd.f32 %v5937_v17, %v17072_v19  ;;  %v17176_v1 = vadd.f32 %v6460_v53, %v5936_v27  ;;  %v6466_v36 = vpop.f32.mrf.mxu1 }
 0x6d0   :  { %v5939_v18 = vpop.f32.mrf.mxu0 }
 0x6d1   :  { %v5940_v35 = vadd.f32 %v5939_v18, %v17080_v2  ;;  %v17179_v37 = vadd.f32 %v6462_v44, %v5938_v48  ;;  %v6470_v50 = vpop.f32.mrf.mxu1 }
 0x6d2   :  { %v5941_v47 = vpop.f32.mrf.mxu0 }
 0x6d3   :  { %v5942_v56 = vadd.f32 %v5941_v47, %v17088_v10  ;;  %v17182_v41 = vadd.f32 %v6464_v61, %v5940_v35  ;;  %v6472_v34 = vpop.f32.mrf.mxu1 }
 0x6d4   :  { %12153 = vmatmul.mubr.msk.bf16.vlgmr.msra.gmra.mxu0 %vm5830_vm7, %v16833_v9 }
 0x6d5   :  { %v17186_v29 = vadd.f32 %v6466_v36, %v5942_v56  ;;  %12156 = vmatprep.mubr.msk.bf16.mxu0 %vm13618_vm14, %v18447_v59  ;;  %v6474_v5 = vpop.f32.mrf.mxu1 }
 0x6d6   :  { %v5945_v20 = vpop.f32.mrf.mxu0 }
 0x6d7   :  { %v5946_v52 = vadd.f32 %v5945_v20, %v17090_v42  ;;  %v6476_v19 = vpop.f32.mrf.mxu1 }
 0x6d8   :  { %v5947_v55 = vpop.f32.mrf.mxu0 }
 0x6d9   :  { %v5948_v31 = vadd.f32 %v5947_v55, %v17098_v57  ;;  %v17192_v14 = vadd.f32 %v6470_v50, %v5946_v52  ;;  %v6480_v9 = vpop.f32.mrf.mxu1 }
 0x6da   :  { %v5949_v12 = vpop.f32.mrf.mxu0 }
 0x6db   :  { %v5950_v38 = vadd.f32 %v5949_v12, %v17100_v3  ;;  %v17195_v2 = vadd.f32 %v6472_v34, %v5948_v31  ;;  %v6482_v42 = vpop.f32.mrf.mxu1 }
 0x6dc   :  { %v5951_v22 = vpop.f32.mrf.mxu0  ;;  %12157 = vmatmul.mubr.msk.bf16.gmra.mxu0 %vm5830_vm7, %v16865_v25 }
 0x6dd   :  { %v5952_v4 = vadd.f32 %v5951_v22, %v17108_v63  ;;  %v17198_v10 = vadd.f32 %v6474_v5, %v5950_v38  ;;  %12160 = vmatprep.mubr.msk.bf16.mxu0 %vm13618_vm14, %v18447_v59  ;;  %v6484_v3 = vpop.f32.mrf.mxu1 }
 0x6de   :  { %v5955_v30 = vpop.f32.mrf.mxu0 }
 0x6df   :  { %v5956_v39 = vadd.f32 %v5955_v30, %v17110_v43  ;;  %v17203_v57 = vadd.f32 %v6476_v19, %v5952_v4  ;;  %v6485_v63 = vpop.f32.mrf.mxu1 }
 0x6e0   :  { %v5957_v6 = vpop.f32.mrf.mxu0 }
 0x6e1   :  { %v5958_v51 = vadd.f32 %v5957_v6, %v17118_v49  ;;  %v17208_v28 = vadd.f32 %v6480_v9, %v5956_v39  ;;  %v17212_v21 = vpop.f32.mrf.mxu1 }
 0x6e2   :  { %v5959_v23 = vpop.f32.mrf.mxu0 }
 0x6e3   :  { %v17210_v26 = vadd.f32 %v6482_v42, %v5958_v51  ;;  %v12132_v13 = vpop.f32.mrf.mxu1 }
 0x6e4   :  { %v5960_v25 = vpop.f32.mrf.mxu0  ;;  %12161 = vmatmul.mubr.msk.bf16.gmra.mxu0 %vm5830_vm7, %v16853_v8 }
 0x6e5   :  { %v17216_v43 = vpop.f32.mrf.mxu1 }
 0x6e7   :  { %v12133_v46 = vpop.f32.mrf.mxu1 }
 0x6e9   :  { %v17218_v45 = vpop.f32.mrf.mxu1 }
 0x6eb   :  { %v12136_v32 = vpop.f32.mrf.mxu1 }
 0x6ec   :  { %v11854_v49 = vpop.f32.mrf.mxu0 }
 0x6ed   :  { %v17220_v33 = vpop.f32.mrf.mxu1 }
 0x6ee   :  { %v11855_v62 = vpop.f32.mrf.mxu0 }
 0x6ef   :  { %v11856_v54 = vadd.f32 %v11855_v62, %v11854_v49  ;;  %v12137_v11 = vpop.f32.mrf.mxu1 }
 0x6f0   :  { %v11857_v0 = vpop.f32.mrf.mxu0 }
 0x6f1   :  { %v17222_v15 = vpop.f32.mrf.mxu1 }
 0x6f2   :  { %v11858_v7 = vpop.f32.mrf.mxu0 }
 0x6f3   :  { %v12140_v58 = vpop.f32.mrf.mxu1  ;;  %v11859_v19 = vadd.f32 %v11858_v7, %v11857_v0 }
 0x6f4   :  { %v11860_v24 = vpop.f32.mrf.mxu0 }
 0x6f5   :  { %v6657_v40 = vpop.f32.mrf.mxu1 }
 0x6f6   :  { %v11861_v8 = vpop.f32.mrf.mxu0 }
 0x6f7   :  { %v11862_v53 = vadd.f32 %v11861_v8, %v11860_v24  ;;  %v12141_v16 = vpop.f32.mrf.mxu1 }
 0x6f8   :  { %v11863_v44 = vpop.f32.mrf.mxu0 }
 0x6f9   :  { %v17224_v27 = vpop.f32.mrf.mxu1 }
 0x6fa   :  { %v11864_v17 = vpop.f32.mrf.mxu0 }
 0x6fb   :  { %v17226_v61 = vpop.f32.mrf.mxu1  ;;  %v11865_v51 = vadd.f32 %v11864_v17, %v11863_v44 }
 0x6fc   :  { %v11866_v48 = vpop.f32.mrf.mxu0 }
 0x6fd   :  { %v17228_v18 = vpop.f32.mrf.mxu1 }
 0x6fe   :  { %v11867_v36 = vpop.f32.mrf.mxu0 }
 0x6ff   :  { %v11868_v35 = vadd.f32 %v11867_v36, %v11866_v48  ;;  %v17230_v47 = vpop.f32.mrf.mxu1 }
 0x700   :  { %v11869_v50 = vpop.f32.mrf.mxu0 }
 0x701   :  { %v17232_v56 = vpop.f32.mrf.mxu1 }
 0x702   :  { %v11870_v34 = vpop.f32.mrf.mxu0 }
 0x703   :  { %v17234_v20 = vpop.f32.mrf.mxu1 }
 0x704   :  { %v6052_v52 = vpop.f32.mrf.mxu0 }
 0x705   :  { %v17236_v5 = vadd.f32 %v11856_v54, %v6052_v52  ;;  %v17238_v55 = vpop.f32.mrf.mxu1 }
 0x706   :  { %v12110_v31 = vpop.f32.mrf.mxu0 }
 0x707   :  { %v17240_v12 = vpop.f32.mrf.mxu1 }
 0x708   :  { %v6055_v38 = vpop.f32.mrf.mxu0 }
 0x709   :  { %v17242_v9 = vadd.f32 %v11859_v19, %v6055_v38  ;;  %v17244_v22 = vpop.f32.mrf.mxu1 }
 0x70a   :  { %v12111_v4 = vpop.f32.mrf.mxu0 }
 0x70b   :  { %v17246_v42 = vpop.f32.mrf.mxu1 }
 0x70c   :  { %v6060_v30 = vpop.f32.mrf.mxu0 }
 0x70d   :  { %v17248_v39 = vadd.f32 %v11862_v53, %v6060_v30  ;;  %v7240_v3 = vpop.f32.mrf.mxu1 }
 0x70e   :  { %v12114_v6 = vpop.f32.mrf.mxu0 }
 0x70f   :  { %v7241_v63 = vpop.f32.mrf.mxu1 }
 0x710   :  { %v6063_v23 = vpop.f32.mrf.mxu0 }
 0x711   :  { %v6064_v25 = vadd.f32 %v11865_v51, %v6063_v23 }
 0x712   :  { %v12115_v13 = vpop.f32.mrf.mxu0 }
 0x714   :  { %v6068_v46 = vpop.f32.mrf.mxu0 }
 0x715   :  { %v17250_v32 = vadd.f32 %v11868_v35, %v6068_v46 }
 0x716   :  { %v12118_v49 = vpop.f32.mrf.mxu0 }
 0x718   :  { %v6071_v62 = vpop.f32.mrf.mxu0 }
 0x719   :  { %v11938_v54 = vpop.f32.mrf.mxu1 }
 0x71a   :  { %v12119_v11 = vpop.f32.mrf.mxu0 }
 0x71b   :  { %v11939_v0 = vpop.f32.mrf.mxu1 }
 0x71c   :  { %v6521_v7 = vpop.f32.mrf.mxu0  ;;  %v17252_v58 = vadd.f32 %v11939_v0, %v11938_v54 }
 0x71d   :  { %v6522_v24 = vadd.f32 %v6521_v7, %v17176_v1  ;;  %v11941_v40 = vpop.f32.mrf.mxu1 }
 0x71e   :  { %v6523_v8 = vpop.f32.mrf.mxu0 }
 0x71f   :  { %v17256_v53 = vadd.f32 %v6523_v8, %v17179_v37  ;;  %v11942_v16 = vpop.f32.mrf.mxu1 }
 0x720   :  { %v6525_v44 = vpop.f32.mrf.mxu0  ;;  %v17258_v17 = vadd.f32 %v11942_v16, %v11941_v40 }
 0x721   :  { %v17261_v48 = vadd.f32 %v6525_v44, %v17182_v41  ;;  %v11944_v36 = vpop.f32.mrf.mxu1 }
 0x722   :  { %v6527_v35 = vpop.f32.mrf.mxu0 }
 0x723   :  { %v17264_v50 = vadd.f32 %v6527_v35, %v17186_v29  ;;  %v11945_v34 = vpop.f32.mrf.mxu1 }
 0x724   :  { %v6531_v52 = vpop.f32.mrf.mxu0  ;;  %v17266_v1 = vadd.f32 %v11945_v34, %v11944_v36 }
 0x725   :  { %v17269_v31 = vadd.f32 %v6531_v52, %v17192_v14  ;;  %v11947_v37 = vpop.f32.mrf.mxu1 }
 0x726   :  { %v6533_v19 = vpop.f32.mrf.mxu0 }
 0x727   :  { %v17272_v38 = vadd.f32 %v6533_v19, %v17195_v2  ;;  %v11948_v4 = vpop.f32.mrf.mxu1 }
 0x728   :  { %v6535_v41 = vpop.f32.mrf.mxu0  ;;  %v17274_v30 = vadd.f32 %v11948_v4, %v11947_v37 }
 0x729   :  { %v17277_v3 = vadd.f32 %v6535_v41, %v17198_v10  ;;  %v11950_v29 = vpop.f32.mrf.mxu1 }
 0x72a   :  { %v6537_v6 = vpop.f32.mrf.mxu0 }
 0x72b   :  { %v17280_v51 = vadd.f32 %v6537_v6, %v17203_v57  ;;  %v11951_v63 = vpop.f32.mrf.mxu1 }
 0x72c   :  { %v6541_v14 = vpop.f32.mrf.mxu0  ;;  %v17282_v23 = vadd.f32 %v11951_v63, %v11950_v29 }
 0x72d   :  { %v17285_v13 = vadd.f32 %v6541_v14, %v17208_v28  ;;  %v11953_v2 = vpop.f32.mrf.mxu1 }
 0x72e   :  { %v6543_v46 = vpop.f32.mrf.mxu0  ;;  %v18461_v2 = vld [vmem:[#allocation45_spill] sm:$0xff] }
 0x72f   :  { %v17288_v49 = vadd.f32 %v6543_v46, %v17210_v26  ;;  %v11954_v62 = vpop.f32.mrf.mxu1 }
 0x730   :  { %v6545_v10 = vpop.f32.mrf.mxu0 }
 0x732   :  { %v6546_v54 = vpop.f32.mrf.mxu0 }
 0x733   :  { %v18462_v54 = vld [vmem:[#allocation47_spill] sm:$0xff] }
 0x73c   :  { %v11896_v11 = vpop.f32.mrf.mxu0 }
 0x73e   :  { %v11897_v0 = vpop.f32.mrf.mxu0 }
 0x73f   :  { %v11898_v7 = vadd.f32 %v11897_v0, %v11896_v11 }
 0x740   :  { %v11899_v57 = vpop.f32.mrf.mxu0 }
 0x741   :  { %v17291_v40 = vadd.f32 %v11898_v7, %v17236_v5 }
 0x742   :  { %v11900_v8 = vpop.f32.mrf.mxu0 }
 0x743   :  { %v11901_v16 = vadd.f32 %v11900_v8, %v11899_v57 }
 0x744   :  { %v11902_v44 = vpop.f32.mrf.mxu0 }
 0x745   :  { %v17294_v28 = vadd.f32 %v11901_v16, %v17242_v9  ;;  %v17307_v9 = vld [vmem:[%s18460_s26] sm:$0x7] }
 0x746   :  { %v11903_v36 = vpop.f32.mrf.mxu0  ;;  %v7375_v46 = vrot.slane %v17307_v9, %v18461_v2 }
 0x747   :  { %v11904_v35 = vadd.f32 %v11903_v36, %v11902_v44 }
 0x748   :  { %v11905_v26 = vpop.f32.mrf.mxu0 }
 0x749   :  { %v17297_v34 = vadd.f32 %v11904_v35, %v17248_v39 }
 0x74a   :  { %v11906_v52 = vpop.f32.mrf.mxu0 }
 0x74b   :  { %v11907_v37 = vadd.f32 %v11906_v52, %v11905_v26 }
 0x74c   :  { %v11908_v19 = vpop.f32.mrf.mxu0 }
 0x74d   :  { %v17299_v4 = vadd.f32 %v11907_v37, %v6064_v25 }
 0x74e   :  { %v11909_v41 = vpop.f32.mrf.mxu0 }
 0x74f   :  { %v11910_v5 = vadd.f32 %v11909_v41, %v11908_v19 }
 0x750   :  { %v11911_v29 = vpop.f32.mrf.mxu0 }
 0x751   :  { %v17302_v6 = vadd.f32 %v11910_v5, %v17250_v32  ;;  %v17315_v32 = vrot.slane %v17307_v9, %v18462_v54 }
 0x752   :  { %v11912_v63 = vpop.f32.mrf.mxu0 }
 0x77c   :  { %v7155_v14 = vpop.f32.mrf.mxu0 }
 0x77d   :  { %v7217_v39 = vadd.f32 %v17224_v27, %v7155_v14 }
 0x77e   :  { %v7157_v25 = vpop.f32.mrf.mxu0 }
 0x77f   :  { %v7355_v62 = vadd.f32 %v7217_v39, %v6522_v24  ;;  %v7219_v10 = vadd.f32 %v17226_v61, %v7157_v25 }
 0x780   :  { %v7159_v11 = vpop.f32.mrf.mxu0 }
 0x781   :  { %v7356_v0 = vadd.f32 %v7219_v10, %v17256_v53  ;;  %v7221_v7 = vadd.f32 %v17228_v18, %v7159_v11  ;;  %v7387_v57 = vadd.f32 %v7375_v46, %v7355_v62 }
 0x782   :  { %v7161_v8 = vpop.f32.mrf.mxu0 }
 0x783   :  { %v7358_v27 = vadd.f32 %v7221_v7, %v17261_v48  ;;  %v7223_v16 = vadd.f32 %v17230_v47, %v7161_v8  ;;  %v7388_v44 = vadd.f32 %v17315_v32, %v7356_v0  ;;  %v7402_v35 = vmax.f32 %v7387_v57, 0.0 }
 0x784   :  { %v7165_v24 = vpop.f32.mrf.mxu0 }
 0x785   :  { %v7390_v36 = vadd.f32 %v7375_v46, %v7358_v27  ;;  %v7359_v61 = vadd.f32 %v7223_v16, %v17264_v50  ;;  %v7227_v26 = vadd.f32 %v17232_v56, %v7165_v24  ;;  %v7403_v19 = vmax.f32 %v7388_v44, 0.0 }
 0x786   :  { %v7167_v52 = vpop.f32.mrf.mxu0  ;;  %v7432_v50 = vrot.slane %v7402_v35, 1 }
 0x787   :  { %v7405_v37 = vmax.f32 %v7390_v36, 0.0  ;;  %v7391_v53 = vadd.f32 %v17315_v32, %v7359_v61  ;;  %v7229_v18 = vadd.f32 %v17234_v20, %v7167_v52  ;;  %v7361_v48 = vadd.f32 %v7227_v26, %v17269_v31 }
 0x788   :  { %v7169_v41 = vpop.f32.mrf.mxu0  ;;  %v7435_v10 = vrot.slane %v7403_v19, 1 }
 0x789   :  { %v7433_v47 = vrot.slane %v7405_v37, 1  ;;  %v7406_v5 = vmax.f32 %v7391_v53, 0.0  ;;  %v7362_v29 = vadd.f32 %v7229_v18, %v17272_v38  ;;  %v7231_v63 = vadd.f32 %v17238_v55, %v7169_v41 }
 0x78a   :  { %v7393_v14 = vadd.f32 %v7375_v46, %v7361_v48  ;;  %v7171_v39 = vpop.f32.mrf.mxu0 }
 0x78b   :  { %v7436_v56 = vrot.slane %v7406_v5, 1  ;;  %v7394_v25 = vadd.f32 %v17315_v32, %v7362_v29  ;;  %v7364_v62 = vadd.f32 %v7231_v63, %v17277_v3  ;;  %v7233_v20 = vadd.f32 %v17240_v12, %v7171_v39 }
 0x78c   :  { %v7408_v11 = vmax.f32 %v7393_v14, 0.0  ;;  %v7175_v31 = vpop.f32.mrf.mxu0  ;;  %v7434_v0 = vsel %vm2271_vm13, %v7432_v50, %v7433_v47  ;;  %v18463_v14 = vld [vmem:[#allocation43_spill] sm:$0xff] }
 0x78d   :  { %v7409_v7 = vmax.f32 %v7394_v25, 0.0  ;;  %v7396_v57 = vadd.f32 %v7375_v46, %v7364_v62  ;;  %v7365_v38 = vadd.f32 %v7233_v20, %v17280_v51  ;;  %v7237_v55 = vadd.f32 %v17244_v22, %v7175_v31 }
 0x78e   :  { %v7441_v8 = vrot.slane %v7408_v11, 1  ;;  %v7177_v27 = vpop.f32.mrf.mxu0  ;;  %v7437_v16 = vsel %vm2271_vm13, %v7435_v10, %v7436_v56  ;;  %v17336_v44 = vmax.f32 %v7402_v35, %v7434_v0  ;;  %v18464_v39 = vsub.s32 2, %v18463_v14 }
 0x78f   :  { %v7443_v3 = vrot.slane %v7409_v7, 1  ;;  %v7411_v24 = vmax.f32 %v7396_v57, 0.0  ;;  %v7397_v12 = vadd.f32 %v17315_v32, %v7365_v38  ;;  %v7367_v36 = vadd.f32 %v7237_v55, %v17285_v13 }
 0x790   :  { %v7239_v61 = vadd.f32 %v17246_v42, %v7177_v27  ;;  %v7179_v26 = vpop.f32.mrf.mxu0  ;;  %v17341_v52 = vmax.f32 %v7403_v19, %v7437_v16  ;;  %v7442_v51 = vsel %vm2271_vm13, %v7433_v47, %v7441_v8 }
 0x791   :  { %v7447_v22 = vrot.slane %v7411_v24, 1  ;;  %v7412_v53 = vmax.f32 %v7397_v12, 0.0  ;;  %v7399_v18 = vadd.f32 %v7375_v46, %v7367_v36  ;;  %v7444_v48 = vsel %vm2271_vm13, %v7436_v56, %v7443_v3 }
 0x792   :  { %v7368_v35 = vadd.f32 %v7239_v61, %v17288_v49  ;;  %v7180_v41 = vpop.f32.mrf.mxu0  ;;  %v17346_v29 = vmax.f32 %v7406_v5, %v7444_v48  ;;  %v17348_v63 = vmax.f32 %v7405_v37, %v7442_v51  ;;  %v7383_v46 = vrot.slane %v17307_v9, %v18464_v39 }
 0x793   :  { %v7449_v13 = vrot.slane %v7412_v53, 1  ;;  %v7414_v50 = vmax.f32 %v7399_v18, 0.0  ;;  %v7448_v42 = vsel %vm2271_vm13, %v7441_v8, %v7447_v22  ;;  %v6639_v5 = vadd.f32 %v17212_v21, %v17291_v40 }
 0x794   :  { %v17352_v19 = vadd.f32 %v17315_v32, %v7368_v35  ;;  %v7333_v47 = vpop.f32.mrf.mxu0  ;;  %v17357_v56 = vmax.f32 %v7408_v11, %v7448_v42  ;;  %v6642_v21 = vadd.f32 %v17216_v43, %v17294_v28  ;;  %v6647_v12 = vadd.f32 %v17218_v45, %v17297_v34 }
 0x795   :  { %v7453_v49 = vrot.slane %v7414_v50, 1  ;;  %v7334_v37 = vadd.f32 %v17252_v58, %v7333_v47  ;;  %v7450_v25 = vsel %vm2271_vm13, %v7443_v3, %v7449_v13  ;;  %v6650_v61 = vadd.f32 %v17220_v33, %v17299_v4 }
 0x796   :  { %v7415_v62 = vmax.f32 %v17352_v19, 0.0  ;;  %v12154_v20 = vpop.f32.mrf.mxu0  ;;  %v17364_v32 = vmax.f32 %v7409_v7, %v7450_v25  ;;  %v6655_v42 = vadd.f32 %v17222_v15, %v17302_v6 }
 0x797   :  { %v7357_v10 = vadd.f32 %v7334_v37, %v6639_v5  ;;  %v17366_v31 = vmax.f32 %v7414_v50, %v7453_v49  ;;  %v7454_v9 = vsel %vm2271_vm13, %v7447_v22, %v7453_v49 }
 0x798   :  { %v7455_v11 = vrot.slane %v7415_v62, 1  ;;  %v7336_v0 = vpop.f32.mrf.mxu0  ;;  %v17369_v57 = vmax.f32 %v7411_v24, %v7454_v9 }
 0x799   :  { %v7389_v38 = vadd.f32 %v7383_v46, %v7357_v10  ;;  %v7337_v58 = vadd.f32 %v17258_v17, %v7336_v0  ;;  %v12462_v40 = vpack.i.bf16 %v17364_v32, %v17366_v31 }
 0x79a   :  { %v12155_v7 = vpop.f32.mrf.mxu0  ;;  %v7456_v55 = vsel %vm2271_vm13, %v7449_v13, %v7455_v11  ;;  %v17398_v15 = vmax.f32 %v7415_v62, %v7455_v11 }
 0x79b   :  { %v7360_v8 = vadd.f32 %v7337_v58, %v6642_v21  ;;  %12463 = vrot.lane.b32.xlu0 %v12462_v40, %s13616_s2  ;;  %v17378_v27 = vmax.f32 %v7412_v53, %v7456_v55  ;;  %v7404_v3 = vmax.f32 %v7389_v38, 0.0  ;;  %v12477_v21 = vpack.i.bf16 %v17341_v52, %v17369_v57  ;;  %v13298_v40 = vld [vmem:[%s18213_s10 + $0x70] ss:$8 sps:$4 sm:$0xff]   ;;  %v13300_v7 = vld [vmem:[%s18213_s10 + $0x74] ss:$8 sps:$4 sm:$0xff]  }
 0x79c   :  { %v7341_v16 = vpop.f32.mrf.mxu0  ;;  %v13303_v55 = vld [vmem:[%s18213_s10 + $0x64] ss:$8 sps:$4 sm:$0xff]   ;;  %7964 = vmatprep.subr.bf16.mxu0 %v13300_v7 }
 0x79d   :  { %v7392_v24 = vadd.f32 %v7383_v46, %v7360_v8  ;;  %v7342_v43 = vadd.f32 %v17266_v1, %v7341_v16  ;;  %v7438_v51 = vrot.slane %v7404_v3, 1  ;;  %7965 = vmatpush1.bf16.msra.mxu0 %v13298_v40  ;;  %v13301_v8 = vld [vmem:[%s18213_s10 + $0x60] ss:$8 sps:$4 sm:$0xff]   ;;  %v13306_v16 = vld [vmem:[%s18213_s10 + $0x54] ss:$8 sps:$4 sm:$0xff]  }
 0x79e   :  { %v12158_v17 = vpop.f32.mrf.mxu0  ;;  %7966 = vmatprep.subr.bf16.mxu0 %v13303_v55 }
 0x79f   :  { %v7407_v28 = vmax.f32 %v7392_v24, 0.0  ;;  %v7363_v36 = vadd.f32 %v7342_v43, %v6647_v12  ;;  %v13309_v24 = vld [vmem:[%s18213_s10 + $0x44] ss:$8 sps:$4 sm:$0xff]   ;;  %v13307_v12 = vld [vmem:[%s18213_s10 + $0x40] ss:$8 sps:$4 sm:$0xff]  }
 0x7a0   :  { %v7344_v26 = vpop.f32.mrf.mxu0  ;;  %v13312_v43 = vld [vmem:[%s18213_s10 + $0x34] ss:$8 sps:$4 sm:$0xff]   ;;  %v13310_v17 = vld [vmem:[%s18213_s10 + $0x30] ss:$8 sps:$4 sm:$0xff]  }
 0x7a1   :  { %v7439_v22 = vrot.slane %v7407_v28, 1  ;;  %v7395_v18 = vadd.f32 %v7383_v46, %v7363_v36  ;;  %v7345_v53 = vadd.f32 %v17274_v30, %v7344_v26  ;;  %7967 = vmatpush1.bf16.msra.mxu0 %v13301_v8  ;;  %v13313_v36 = vld [vmem:[%s18213_s10 + $0x20] ss:$8 sps:$4 sm:$0xff]   ;;  %v13316_v26 = vld [vmem:[%s18213_s10 + $0x10] ss:$8 sps:$4 sm:$0xff]  }
 0x7a2   :  { %v12159_v48 = vpop.f32.mrf.mxu0  ;;  %7968 = vmatprep.subr.bf16.mxu0 %v13306_v16 }
 0x7a3   :  { %v7410_v35 = vmax.f32 %v7395_v18, 0.0  ;;  %v7366_v41 = vadd.f32 %v7345_v53, %v6650_v61  ;;  %v7440_v13 = vsel %vm2271_vm13, %v7438_v51, %v7439_v22  ;;  %v13318_v61 = vld [vmem:[%s18213_s10 + $0x14] ss:$8 sps:$4 sm:$0xff]   ;;  %v13321_v51 = vld [vmem:[%s18213_s10 + $0x4] ss:$8 sps:$4 sm:$0xff]  }
 0x7a4   :  { %v7349_v45 = vpop.f32.mrf.mxu0  ;;  %v17387_v34 = vmax.f32 %v7404_v3, %v7440_v13  ;;  %v13304_v3 = vld [vmem:[%s18213_s10 + $0x50] ss:$8 sps:$4 sm:$0xff]   ;;  %v13324_v18 = vld [vmem:[%s18213_s10 + $0xf4] ss:$8 sps:$4 sm:$0xff]   ;;  %v13327_v48 = vld [vmem:[%s18213_s10 + $0xe4] ss:$8 sps:$4 sm:$0xff]  }
 0x7a5   :  { %v7445_v1 = vrot.slane %v7410_v35, 1  ;;  %v7398_v50 = vadd.f32 %v7383_v46, %v7366_v41  ;;  %v7350_v33 = vadd.f32 %v17282_v23, %v7349_v45  ;;  %7969 = vmatpush1.bf16.msra.mxu0 %v13304_v3  ;;  %v13322_v53 = vld [vmem:[%s18213_s10 + $0xf0] ss:$8 sps:$4 sm:$0xff]   ;;  %v13330_v41 = vld [vmem:[%s18213_s10 + $0xd4] ss:$8 sps:$4 sm:$0xff]  }
 0x7a6   :  { %v12162_v4 = vpop.f32.mrf.mxu0  ;;  %v12487_v11 = vpack.i.bf16 %v17346_v29, %v17387_v34  ;;  %7970 = vmatprep.subr.bf16.mxu0 %v13309_v24  ;;  %v13328_v13 = vld [vmem:[%s18213_s10 + $0xd0] ss:$8 sps:$4 sm:$0xff]   ;;  %v13333_v45 = vld [vmem:[%s18213_s10 + $0xc4] ss:$8 sps:$4 sm:$0xff]  }
 0x7a7   :  { %v7413_v19 = vmax.f32 %v7398_v50, 0.0  ;;  %v7369_v47 = vadd.f32 %v7350_v33, %v6655_v42  ;;  %v7446_v30 = vsel %vm2271_vm13, %v7439_v22, %v7445_v1  ;;  %v13319_v22 = vld [vmem:[%s18213_s10] ss:$8 sps:$4 sm:$0xff]   ;;  %v13336_v50 = vld [vmem:[%s18213_s10 + $0xb4] ss:$8 sps:$4 sm:$0xff]  }
 0x7a8   :  { %v7352_v14 = vpop.f32.mrf.mxu0  ;;  %v17393_v39 = vmax.f32 %v7407_v28, %v7446_v30  ;;  %v13315_v28 = vld [vmem:[%s18213_s10 + $0x24] ss:$8 sps:$4 sm:$0xff]   ;;  %v13334_v42 = vld [vmem:[%s18213_s10 + $0xb0] ss:$8 sps:$4 sm:$0xff]   ;;  %v13337_v4 = vld [vmem:[%s18213_s10 + $0xa0] ss:$8 sps:$4 sm:$0xff]  }
 0x7a9   :  { %v7451_v49 = vrot.slane %v7413_v19, 1  ;;  %v7401_v5 = vadd.f32 %v7383_v46, %v7369_v47  ;;  %7971 = vmatpush1.bf16.msra.mxu0 %v13307_v12  ;;  %v13339_v33 = vld [vmem:[%s18213_s10 + $0xa4] ss:$8 sps:$4 sm:$0xff]  }
 0x7aa   :  { %v12163_v37 = vpop.f32.mrf.mxu0  ;;  %v12492_v58 = vpack.i.bf16 %v17336_v44, %v17393_v39  ;;  %7972 = vmatprep.subr.bf16.mxu0 %v13312_v43 }
 0x7ab   :  { %v7416_v25 = vmax.f32 %v7401_v5, 0.0  ;;  %v7452_v20 = vsel %vm2271_vm13, %v7445_v1, %v7451_v49  ;;  %v13331_v1 = vld [vmem:[%s18213_s10 + $0xc0] ss:$8 sps:$4 sm:$0xff]   ;;  %v18465_v37 = vmov 65535  }
 0x7ac   :  { %v17396_v10 = vmax.f32 %v7410_v35, %v7452_v20  ;;  %v13325_v35 = vld [vmem:[%s18213_s10 + $0xe0] ss:$8 sps:$4 sm:$0xff]  }
 0x7ad   :  { %v7457_v9 = vrot.slane %v7416_v25, 1  ;;  %7973 = vmatpush1.bf16.msra.mxu0 %v13310_v17 }
 0x7ae   :  { %v12472_v62 = vpack.i.bf16 %v17378_v27, %v17396_v10  ;;  %7974 = vmatprep.subr.bf16.mxu0 %v13315_v28 }
 0x7af   :  { %v17400_v23 = vmax.f32 %v7416_v25, %v7457_v9  ;;  %v7458_v6 = vsel %vm2271_vm13, %v7451_v49, %v7457_v9  ;;  %v7601_v25 = vsel %vm1244_vm4, 4294967295, %v18465_v37  ;;  %vm8967_vm4 = vcmask 195584  }
 0x7b0   :  { %v17403_v0 = vmax.f32 %v7413_v19, %v7458_v6 }
 0x7b1   :  { %v12467_v38 = vpack.i.bf16 %v17400_v23, %v17398_v15  ;;  %7975 = vmatpush1.bf16.msra.mxu0 %v13313_v36 }
 0x7b2   :  { %v12482_v46 = vpack.i.bf16 %v17357_v56, %v17403_v0  ;;  %7976 = vmatprep.subr.bf16.mxu0 %v13318_v61 }
 0x7b3   :  { %12468 = vrot.lane.b32.xlu1 %v12467_v38, %s13616_s2 }
 0x7b4   :  { %12483 = vrot.lane.b32.xlu0 %v12482_v46, %s13616_s2 }
 0x7b5   :  { %7977 = vmatpush1.bf16.msra.mxu0 %v13316_v26 }
 0x7b6   :  { %7978 = vmatprep.subr.bf16.mxu0 %v13321_v51 }
 0x7b7   :  { %12473 = vrot.lane.b32.xlu1 %v12472_v62, %s13616_s2 }
 0x7b8   :  { %12488 = vrot.lane.b32.xlu0 %v12487_v11, %s13616_s2  ;;  %v7602_v11 = vsel %vm471_vm5, %v7601_v25, 0  ;;  %v13297_v25 = vld [vmem:[%s18466_s4 + $0x8] ss:$0 sps:$4 sm:$0x77]  }
 0x7b9   :  { %7979 = vmatpush1.bf16.msra.mxu0 %v13319_v22 }
 0x7ba   :  { %7980 = vmatprep.subr.bf16.mxu0 %v13324_v18 }
 0x7bb   :  { %12478 = vrot.lane.b32.xlu1 %v12477_v21, %s13616_s2 }
 0x7bc   :  { %7510 = vrot.lane.b32.xlu0 %v17348_v63, %s13616_s2 }
 0x7bd   :  { %7981 = vmatpush2.bf16.msra.mxu0 %v13322_v53 }
 0x7be   :  { %7982 = vmatprep.subr.bf16.mxu0 %v13327_v48 }
 0x7bf   :  { %12493 = vrot.lane.b32.xlu1 %v12492_v58, %s13616_s2 }
 0x7c1   :  { %7983 = vmatpush2.bf16.msra.mxu0 %v13325_v35 }
 0x7c2   :  { %7984 = vmatprep.subr.bf16.mxu0 %v13330_v41 }
 0x7c5   :  { %7985 = vmatpush2.bf16.msra.mxu0 %v13328_v13 }
 0x7c6   :  { %7986 = vmatprep.subr.bf16.mxu0 %v13333_v45 }
 0x7c9   :  { %7987 = vmatpush2.bf16.msra.mxu0 %v13331_v1 }
 0x7ca   :  { %7988 = vmatprep.subr.bf16.mxu0 %v13336_v50 }
 0x7cd   :  { %7989 = vmatpush2.bf16.msra.mxu0 %v13334_v42 }
 0x7ce   :  { %7990 = vmatprep.subr.bf16.mxu0 %v13339_v33 }
 0x7d1   :  { %7991 = vmatpush2.bf16.msra.mxu0 %v13337_v4 }
 0x80d   :  { %v12464_v19 = vpop.permute.xlu0 %12463 }
 0x80e   :  { %v12465_v30 = vunpack.i.l.bf16 %v12464_v19  ;;  %v12466_v6 = vunpack.i.h.bf16 %v12464_v19 }
 0x825   :  { %v12469_v47 = vpop.permute.xlu1 %12468 }
 0x826   :  { %v12471_v14 = vunpack.i.h.bf16 %v12469_v47  ;;  %v12470_v49 = vunpack.i.l.bf16 %v12469_v47  ;;  %v12484_v5 = vpop.permute.xlu0 %12483 }
 0x827   :  { %v12486_v21 = vunpack.i.h.bf16 %v12484_v5  ;;  %v12485_v58 = vunpack.i.l.bf16 %v12484_v5  ;;  %v13296_v5 = vld [vmem:[%s18466_s4] sm:$0xff]  }
 0x828   :  { %v7542_v20 = vsel %vm3544_vm15, %v12465_v30, %v12470_v49  ;;  %v7543_v9 = vsel %vm3544_vm15, %v12470_v49, %v12471_v14  ;;  %v7573_v26 = vmax.f32 %v17400_v23, %v12471_v14 }
 0x829   :  { %v7571_v38 = vmax.f32 %v17366_v31, %v7542_v20  ;;  %v12474_v46 = vpop.permute.xlu1 %12473  ;;  %v7572_v62 = vmax.f32 %v17398_v15, %v7543_v9  ;;  %v7538_v15 = vsel %vm3544_vm15, %v12486_v21, %v12466_v6  ;;  %v13345_v20 = vld [vmem:[%s18213_s10 + $0x84] ss:$8 sps:$4 sm:$0xff]   ;;  %v7755_v9 = vld [vmem:[%s18213_s10 + $0x130] sm:$0xff] }
 0x82a   :  { %v12476_v40 = vunpack.i.h.bf16 %v12474_v46  ;;  %v12475_v7 = vunpack.i.l.bf16 %v12474_v46  ;;  %v12489_v55 = vpop.permute.xlu0 %12488  ;;  %v7565_v35 = vmax.f32 %v17357_v56, %v7538_v15  ;;  %v7582_v50 = vpack.c.bf16 %v7573_v26, %v7573_v26  ;;  %v13354_v26 = vld [vmem:[%s18213_s10 + $0x100] ss:$8 sps:$4 sm:$0xff]  }
 0x82b   :  { %v7580_v8 = vpack.c.bf16 %v7571_v38, %v7571_v38  ;;  %v7581_v16 = vpack.c.bf16 %v7572_v62, %v7572_v62  ;;  %v12491_v22 = vunpack.i.h.bf16 %v12489_v55  ;;  %v12490_v18 = vunpack.i.l.bf16 %v12489_v55 }
 0x82c   :  { %v7539_v3 = vsel %vm3544_vm15, %v12466_v6, %v12475_v7  ;;  %v7541_v24 = vsel %vm3544_vm15, %v12476_v40, %v12485_v58  ;;  %v7567_v14 = vmax.f32 %v17396_v10, %v12475_v7  ;;  %v7610_v49 = vand.u32 %v7602_v11, %v7582_v50  ;;  %v13371_v50 = vld [vmem:[%s18214_s11 + $0x114] ss:$8 sps:$4 sm:$0xff]  }
 0x82d   :  { %v12479_v12 = vpop.permute.xlu1 %12478  ;;  %v7607_v43 = vand.u32 %v7602_v11, %v7581_v16  ;;  %v7604_v17 = vand.u32 %v7602_v11, %v7580_v8  ;;  %v7566_v31 = vmax.f32 %v17364_v32, %v7539_v3  ;;  %v7569_v61 = vmax.f32 %v17378_v27, %v7541_v24  ;;  %v13350_v8 = vld [vmem:[%s18213_s10 + $0x124] ss:$8 sps:$4 sm:$0xff]   ;;  %v13348_v24 = vld [vmem:[%s18213_s10 + $0x120] ss:$8 sps:$4 sm:$0xff]  }
 0x82e   :  { %v12481_v28 = vunpack.i.h.bf16 %v12479_v12  ;;  %v12480_v36 = vunpack.i.l.bf16 %v12479_v12  ;;  %v7511_v51 = vpop.permute.xlu0 %7510  ;;  %v11269_v6 = vcombine.high %v7755_v9, %v7755_v9  ;;  %v11268_v11 = vcombine.low %v7755_v9, %v7755_v9  ;;  %v13404_v9 = vld [vmem:[%s18214_s11 + $0xa4] ss:$8 sps:$4 sm:$0xff]  }
 0x82f   :  { %7622 = vmatprep.subr.bf16.mxu1 %v7607_v43  ;;  %v7578_v48 = vpack.c.bf16 %v7569_v61, %v7566_v31  ;;  %v7536_v45 = vsel %vm3544_vm15, %v7511_v51, %v12491_v22  ;;  %v13353_v43 = vld [vmem:[%s18213_s10 + $0x114] ss:$8 sps:$4 sm:$0xff]   ;;  %v13351_v31 = vld [vmem:[%s18213_s10 + $0x110] ss:$8 sps:$4 sm:$0xff]  }
 0x830   :  { %v7540_v53 = vsel %vm3544_vm15, %v12480_v36, %v12476_v40  ;;  %7623 = vmatpush1.bf16.msra.mxu1 %v7604_v17  ;;  %v7535_v13 = vsel %vm3544_vm15, %v12481_v28, %v12490_v18  ;;  %v7562_v4 = vmax.f32 %v17348_v63, %v7536_v45  ;;  %v7570_v63 = vmax.f32 %v17403_v0, %v12485_v58  ;;  %v13343_v0 = vld [vmem:[%s18213_s10 + $0x80] ss:$8 sps:$4 sm:$0xff]   ;;  %v13356_v36 = vld [vmem:[%s18213_s10 + $0x104] ss:$8 sps:$4 sm:$0xff]  }
 0x831   :  { %v7568_v32 = vmax.f32 %v17369_v57, %v7540_v53  ;;  %v12494_v41 = vpop.permute.xlu1 %12493  ;;  %7624 = vmatprep.subr.bf16.mxu1 %v7578_v48  ;;  %v7560_v57 = vmax.f32 %v17341_v52, %v7535_v13  ;;  %v7959_v55 = vsel %vm471_vm5, %v11268_v11, 0  ;;  %v13357_v48 = vld [vmem:[%s18214_s11 + $0x70] ss:$8 sps:$4 sm:$0xff]   ;;  %v13363_v13 = vld [vmem:[%s18214_s11 + $0x120] ss:$8 sps:$4 sm:$0xff]  }
 0x832   :  { %v12496_v27 = vunpack.i.h.bf16 %v12494_v41  ;;  %v12495_v23 = vunpack.i.l.bf16 %v12494_v41  ;;  %v7579_v52 = vpack.c.bf16 %v7570_v63, %v7567_v14  ;;  %v13365_v45 = vld [vmem:[%s18214_s11 + $0x124] ss:$8 sps:$4 sm:$0xff]   ;;  %v13384_v14 = vld [vmem:[%s18214_s11 + $0x20] ss:$8 sps:$4 sm:$0xff]   ;;  %v13413_v11 = vld [vmem:[%s18214_s11 + $0x154] ss:$8 sps:$4 sm:$0xff]  }
 0x833   :  { %v7577_v1 = vpack.c.bf16 %v7568_v32, %v7565_v35  ;;  %v13362_v35 = vld [vmem:[%s18214_s11 + $0x64] ss:$8 sps:$4 sm:$0xff]   ;;  %v13360_v32 = vld [vmem:[%s18214_s11 + $0x60] ss:$8 sps:$4 sm:$0xff]  }
 0x834   :  { %v7534_v42 = vsel %vm3544_vm15, %v12496_v27, %v12481_v28  ;;  %v7537_v33 = vsel %vm3544_vm15, %v12491_v22, %v12495_v23  ;;  %v13359_v22 = vld [vmem:[%s18214_s11 + $0x74] ss:$8 sps:$4 sm:$0xff]   ;;  %v13366_v27 = vld [vmem:[%s18214_s11 + $0x50] ss:$8 sps:$4 sm:$0xff]   ;;  %v13389_v63 = vld [vmem:[%s18214_s11 + $0xe4] ss:$8 sps:$4 sm:$0xff]  }
 0x835   :  { %v7559_v56 = vmax.f32 %v17336_v44, %v7534_v42  ;;  %7625 = vmatpush1.bf16.msra.mxu1 %v7577_v1  ;;  %v7563_v19 = vmax.f32 %v17346_v29, %v7537_v33  ;;  %v7564_v44 = vmax.f32 %v17393_v39, %v12495_v23  ;;  %v7561_v29 = vmax.f32 %v17387_v34, %v12490_v18  ;;  %v13340_v39 = vld [vmem:[%s18213_s10 + $0x90] ss:$8 sps:$4 sm:$0xff]   ;;  %v13342_v34 = vld [vmem:[%s18213_s10 + $0x94] ss:$8 sps:$4 sm:$0xff]   ;;  %v13372_v42 = vld [vmem:[%s18214_s11 + $0x40] ss:$8 sps:$4 sm:$0xff]  }
 0x836   :  { %7992 = vmatprep.subr.bf16.mxu0 %v13342_v34  ;;  %v13368_v23 = vld [vmem:[%s18214_s11 + $0x54] ss:$8 sps:$4 sm:$0xff]   ;;  %v13369_v1 = vld [vmem:[%s18214_s11 + $0x110] ss:$8 sps:$4 sm:$0xff]   ;;  %v13374_v33 = vld [vmem:[%s18214_s11 + $0x44] ss:$8 sps:$4 sm:$0xff]  }
 0x837   :  { %v7575_v47 = vpack.c.bf16 %v7563_v19, %v7560_v57  ;;  %v7574_v30 = vpack.c.bf16 %v7562_v4, %v7559_v56  ;;  %v7576_v10 = vpack.c.bf16 %v7564_v44, %v7561_v29  ;;  %7993 = vmatpush2.bf16.msra.mxu0 %v13340_v39  ;;  %v13375_v4 = vld [vmem:[%s18214_s11 + $0x100] ss:$8 sps:$4 sm:$0xff]   ;;  %v13377_v56 = vld [vmem:[%s18214_s11 + $0x104] ss:$8 sps:$4 sm:$0xff]   ;;  %v13378_v57 = vld [vmem:[%s18214_s11 + $0x30] ss:$8 sps:$4 sm:$0xff]  }
 0x838   :  { %7994 = vmatprep.subr.bf16.mxu0 %v13345_v20  ;;  %v13380_v19 = vld [vmem:[%s18214_s11 + $0x34] ss:$8 sps:$4 sm:$0xff]   ;;  %v13390_v44 = vld [vmem:[%s18214_s11 + $0x10] ss:$8 sps:$4 sm:$0xff]   ;;  %v13398_v39 = vld [vmem:[%s18214_s11 + $0x4] ss:$8 sps:$4 sm:$0xff]  }
 0x839   :  { %7626 = vmatprep.subr.bf16.mxu1 %v7575_v47  ;;  %v13381_v47 = vld [vmem:[%s18214_s11 + $0xf0] ss:$8 sps:$4 sm:$0xff]   ;;  %v13399_v34 = vld [vmem:[%s18214_s11 + $0xc0] ss:$8 sps:$4 sm:$0xff]  }
 0x83a   :  { %7627 = vmatpush1.bf16.msra.mxu1 %v7574_v30  ;;  %v13383_v30 = vld [vmem:[%s18214_s11 + $0xf4] ss:$8 sps:$4 sm:$0xff]   ;;  %v13393_v29 = vld [vmem:[%s18214_s11 + $0xd0] ss:$8 sps:$4 sm:$0xff]   ;;  %v13402_v20 = vld [vmem:[%s18214_s11 + $0xa0] ss:$8 sps:$4 sm:$0xff]  }
 0x83b   :  { %12164 = vmatprep.subr.bf16.mxu1 %v7610_v49  ;;  %7995 = vmatpush2.bf16.msra.mxu0 %v13343_v0  ;;  %v13401_v0 = vld [vmem:[%s18214_s11 + $0xc4] ss:$8 sps:$4 sm:$0xff]  }
 0x83c   :  { %11270 = vmatprep.subr.msk.bf16.mxu0 %vm471_vm5, %v11269_v6  ;;  %v13407_v6 = vld [vmem:[%s18214_s11 + $0xb4] ss:$8 sps:$4 sm:$0xff]  }
 0x83d   :  { %11226 = vmatmul.mubr.msk.bf16.vlgmr.msra.gmra.mxu1 %vm7594_vm9, %v13296_v5 }
 0x83e   :  { %12165 = vmatpush3.bf16.msra.mxu1 %v7610_v49  ;;  %7654 = vmatprep.mubr.bf16.mxu1 %v18439_v60  ;;  %v13386_v49 = vld [vmem:[%s18214_s11 + $0x24] ss:$8 sps:$4 sm:$0xff]  }
 0x83f   :  { %12166 = vmatprep.subr.bf16.mxu1 %v7579_v52 }
 0x842   :  { %12167 = vmatpush3.bf16.msra.mxu1 %v7579_v52  ;;  %v13392_v52 = vld [vmem:[%s18214_s11 + $0x14] ss:$8 sps:$4 sm:$0xff]  }
 0x843   :  { %12168 = vmatprep.subr.bf16.mxu1 %v7576_v10 }
 0x845   :  { %11227 = vmatmul.mubr.msk.bf16.gmra.mxu1 %vm7594_vm9, %v13297_v25 }
 0x846   :  { %12169 = vmatpush3.bf16.msra.mxu1 %v7576_v10  ;;  %12170 = vmatprep.mubr.msk.bf16.mxu1 %vm7594_vm9, %v13296_v5  ;;  %v13387_v5 = vld [vmem:[%s18214_s11 + $0xe0] ss:$8 sps:$4 sm:$0xff]   ;;  %v13395_v10 = vld [vmem:[%s18214_s11 + $0xd4] ss:$8 sps:$4 sm:$0xff]  }
 0x847   :  { %8304 = vmatprep.subr.bf16.mxu1 %v13365_v45 }
 0x84d   :  { %12171 = vmatmul.mubr.msk.bf16.vlgmr.msra.gmra.mxu1 %vm7594_vm9, %v13297_v25  ;;  %v13396_v25 = vld [vmem:[%s18214_s11] ss:$8 sps:$4 sm:$0xff]  }
 0x84e   :  { %8305 = vmatpush1.bf16.msra.mxu1 %v13363_v13 }
 0x84f   :  { %8306 = vmatprep.subr.bf16.mxu1 %v13371_v50 }
 0x852   :  { %8307 = vmatpush1.bf16.msra.mxu1 %v13369_v1 }
 0x853   :  { %8308 = vmatprep.subr.bf16.mxu1 %v13377_v56 }
 0x856   :  { %8309 = vmatpush1.bf16.msra.mxu1 %v13375_v4 }
 0x857   :  { %8310 = vmatprep.subr.bf16.mxu1 %v13383_v30 }
 0x85a   :  { %8311 = vmatpush1.bf16.msra.mxu1 %v13381_v47 }
 0x85b   :  { %8312 = vmatprep.subr.bf16.mxu1 %v13389_v63 }
 0x85e   :  { %8313 = vmatpush1.bf16.msra.mxu1 %v13387_v5 }
 0x85f   :  { %8314 = vmatprep.subr.bf16.mxu1 %v13395_v10 }
 0x862   :  { %8315 = vmatpush1.bf16.msra.mxu1 %v13393_v29 }
 0x863   :  { %8316 = vmatprep.subr.bf16.mxu1 %v13401_v0 }
 0x866   :  { %8317 = vmatpush1.bf16.msra.mxu1 %v13399_v34 }
 0x867   :  { %8318 = vmatprep.subr.bf16.mxu1 %v13407_v6 }
 0x8fd   :  { %v7646_v38 = vpop.f32.mrf.mxu1 }
 0x8ff   :  { %v7648_v46 = vpop.f32.mrf.mxu1 }
 0x901   :  { %v7650_v62 = vpop.f32.mrf.mxu1 }
 0x902   :  { %v7711_v40 = vpack.c.bf16 %v7650_v62, %v7646_v38  ;;  %v13410_v38 = vld [vmem:[%s18214_s11 + $0x94] ss:$8 sps:$4 sm:$0xff]   ;;  %v13408_v62 = vld [vmem:[%s18214_s11 + $0x90] ss:$8 sps:$4 sm:$0xff]  }
 0x903   :  { %v7652_v21 = vpop.f32.mrf.mxu1 }
 0x904   :  { %v7712_v58 = vpack.c.bf16 %v7652_v21, %v7648_v46  ;;  %v13405_v46 = vld [vmem:[%s18214_s11 + $0xb0] ss:$8 sps:$4 sm:$0xff]   ;;  %v13416_v21 = vld [vmem:[%s18214_s11 + $0x84] ss:$8 sps:$4 sm:$0xff]  }
 0x905   :  { %v7656_v7 = vpop.f32.mrf.mxu1  ;;  %8319 = vmatpush1.bf16.msra.mxu1 %v13405_v46  ;;  %v13429_v46 = vld [vmem:[%s18214_s11 + $0x1d0] ss:$8 sps:$4 sm:$0xff]  }
 0x906   :  { %7996 = vmatprep.mubr.bf16.mxu0 %v7712_v58  ;;  %v7714_v15 = vpack.c.bf16 %v7656_v7, %v7656_v7  ;;  %v13411_v58 = vld [vmem:[%s18214_s11 + $0x150] ss:$8 sps:$4 sm:$0xff]   ;;  %8330 = vmatprep.subr.bf16.mxu1 %v13413_v11  ;;  %v13421_v7 = vld [vmem:[%s18214_s11 + $0x144] ss:$8 sps:$4 sm:$0xff]  }
 0x907   :  { %v7658_v16 = vpop.f32.mrf.mxu1  ;;  %7997 = vmatmul.mubr.bf16.vlgmr.msra.gmra.mxu0 %v7711_v40  ;;  %v13414_v40 = vld [vmem:[%s18214_s11 + $0x80] ss:$8 sps:$4 sm:$0xff]  }
 0x908   :  { %v7715_v3 = vpack.c.bf16 %v7658_v16, %v7658_v16  ;;  %8024 = vmatpush1.bf16.msra.mxu0 %v7959_v55  ;;  %v13419_v55 = vld [vmem:[%s18214_s11 + $0x140] ss:$8 sps:$4 sm:$0xff]   ;;  %v13423_v16 = vld [vmem:[%s18214_s11 + $0x130] ss:$8 sps:$4 sm:$0xff]  }
 0x909   :  { %v7660_v12 = vpop.f32.mrf.mxu1  ;;  %8025 = vmatprep.subr.bf16.mxu0 %v13350_v8  ;;  %8331 = vmatpush2.bf16.msra.mxu1 %v13411_v58  ;;  %v13425_v8 = vld [vmem:[%s18214_s11 + $0x134] ss:$8 sps:$4 sm:$0xff]   ;;  %v13434_v58 = vld [vmem:[%s18214_s11 + $0x1c4] ss:$8 sps:$4 sm:$0xff]  }
 0x90a   :  { %8006 = vmatprep.mubr.bf16.mxu0 %v7715_v3  ;;  %8332 = vmatprep.subr.bf16.mxu1 %v13421_v7  ;;  %v13431_v3 = vld [vmem:[%s18214_s11 + $0x1d4] ss:$8 sps:$4 sm:$0xff]  }
 0x90b   :  { %v7661_v17 = vpop.f32.mrf.mxu1 }
 0x90c   :  { %8026 = vmatpush1.bf16.msra.mxu0 %v13348_v24 }
 0x90d   :  { %v12172_v28 = vpop.f32.mrf.mxu1  ;;  %8027 = vmatprep.subr.bf16.mxu0 %v13353_v43  ;;  %8333 = vmatpush2.bf16.msra.mxu1 %v13419_v55  ;;  %v13437_v55 = vld [vmem:[%s18214_s11 + $0x1b4] ss:$8 sps:$4 sm:$0xff]  }
 0x90e   :  { %v7716_v41 = vpack.c.bf16 %v12172_v28, %v12172_v28  ;;  %8334 = vmatprep.subr.bf16.mxu1 %v13425_v8 }
 0x90f   :  { %v7697_v61 = vpop.f32.mrf.mxu1  ;;  %8007 = vmatmul.mubr.bf16.gmra.mxu0 %v7714_v15 }
 0x910   :  { %8028 = vmatpush1.bf16.msra.mxu0 %v13351_v31  ;;  %8047 = vmatprep.mubr.bf16.mxu0 %v18439_v60 }
 0x911   :  { %v12173_v51 = vpop.f32.mrf.mxu1  ;;  %8029 = vmatprep.subr.bf16.mxu0 %v13356_v36  ;;  %8335 = vmatpush2.bf16.msra.mxu1 %v13423_v16 }
 0x912   :  { %8681 = vmatprep.subr.bf16.mxu1 %v13431_v3 }
 0x913   :  { %v7700_v18 = vpop.f32.mrf.mxu1 }
 0x914   :  { %v7713_v53 = vpack.c.bf16 %v7700_v18, %v7697_v61  ;;  %8030 = vmatpush1.bf16.msra.mxu0 %v13354_v26 }
 0x915   :  { %8477 = vmatprep.subr.bf16.mxu0 %v13359_v22 }
 0x917   :  { %11271 = vmatmul.mubr.msk.bf16.vlgmr.msra.gmra.mxu0 %vm7951_vm11, %v7713_v53 }
 0x918   :  { %8057 = vmatprep.mubr.bf16.mxu0 %v18439_v60  ;;  %8478 = vmatpush1.bf16.msra.mxu0 %v13357_v48 }
 0x919   :  { %8479 = vmatprep.subr.bf16.mxu0 %v13362_v35 }
 0x91c   :  { %8480 = vmatpush1.bf16.msra.mxu0 %v13360_v32 }
 0x91d   :  { %8481 = vmatprep.subr.bf16.mxu0 %v13368_v23 }
 0x91f   :  { %11272 = vmatmul.mubr.msk.bf16.gmra.mxu0 %vm7951_vm11, %v7716_v41 }
 0x920   :  { %8482 = vmatpush1.bf16.msra.mxu0 %v13366_v27 }
 0x921   :  { %8483 = vmatprep.subr.bf16.mxu0 %v13374_v33 }
 0x924   :  { %8484 = vmatpush1.bf16.msra.mxu0 %v13372_v42 }
 0x925   :  { %8485 = vmatprep.subr.bf16.mxu0 %v13380_v19 }
 0x928   :  { %8486 = vmatpush1.bf16.msra.mxu0 %v13378_v57 }
 0x929   :  { %8487 = vmatprep.subr.bf16.mxu0 %v13386_v49 }
 0x92c   :  { %8488 = vmatpush1.bf16.msra.mxu0 %v13384_v14 }
 0x92d   :  { %8489 = vmatprep.subr.bf16.mxu0 %v13392_v52 }
 0x930   :  { %8490 = vmatpush1.bf16.msra.mxu0 %v13390_v44 }
 0x931   :  { %8491 = vmatprep.subr.bf16.mxu0 %v13398_v39 }
 0x934   :  { %8492 = vmatpush1.bf16.msra.mxu0 %v13396_v25 }
 0x935   :  { %8503 = vmatprep.subr.bf16.mxu0 %v13404_v9 }
 0x938   :  { %8504 = vmatpush2.bf16.msra.mxu0 %v13402_v20 }
 0x939   :  { %8505 = vmatprep.subr.bf16.mxu0 %v13410_v38 }
 0x93c   :  { %8506 = vmatpush2.bf16.msra.mxu0 %v13408_v62 }
 0x93d   :  { %8507 = vmatprep.subr.bf16.mxu0 %v13416_v21 }
 0x940   :  { %8508 = vmatpush2.bf16.msra.mxu0 %v13414_v40  ;;  %v13432_v40 = vld [vmem:[%s18214_s11 + $0x1c0] ss:$8 sps:$4 sm:$0xff]  }
 0x9c7   :  { %v7998_v24 = vpop.f32.mrf.mxu0 }
 0x9c9   :  { %v8000_v12 = vpop.f32.mrf.mxu0 }
 0x9cb   :  { %v8002_v43 = vpop.f32.mrf.mxu0 }
 0x9cd   :  { %v8004_v17 = vpop.f32.mrf.mxu0 }
 0x9cf   :  { %v8008_v31 = vpop.f32.mrf.mxu0 }
 0x9d1   :  { %v8010_v15 = vpop.f32.mrf.mxu0 }
 0x9d3   :  { %v8012_v28 = vpop.f32.mrf.mxu0 }
 0x9d4   :  { %v13445_v28 = vld [vmem:[%s18214_s11 + $0x194] ss:$8 sps:$4 sm:$0xff]  }
 0x9d5   :  { %v8013_v36 = vpop.f32.mrf.mxu0 }
 0x9d6   :  { %v13443_v36 = vld [vmem:[%s18214_s11 + $0x190] ss:$8 sps:$4 sm:$0xff]  }
 0x9d7   :  { %v8049_v61 = vpop.f32.mrf.mxu0 }
 0x9d8   :  { %v8050_v51 = vadd.f32 %v8049_v61, %v7998_v24  ;;  %v13435_v24 = vld [vmem:[%s18214_s11 + $0x1b0] ss:$8 sps:$4 sm:$0xff]   ;;  %v13448_v61 = vld [vmem:[%s18214_s11 + $0x184] ss:$8 sps:$4 sm:$0xff]  }
 0x9d9   :  { %v8051_v26 = vpop.f32.mrf.mxu0 }
 0x9da   :  { %v8052_v22 = vadd.f32 %v8051_v26, %v8000_v12  ;;  %v13446_v26 = vld [vmem:[%s18214_s11 + $0x180] ss:$8 sps:$4 sm:$0xff]  }
 0x9db   :  { %v8053_v18 = vpop.f32.mrf.mxu0 }
 0x9dc   :  { %v11602_v53 = vpack.c.bf16 %v8052_v22, %v8050_v51  ;;  %v8054_v35 = vadd.f32 %v8053_v18, %v8002_v43  ;;  %v13451_v51 = vld [vmem:[%s18214_s11 + $0x174] ss:$8 sps:$4 sm:$0xff]   ;;  %v13449_v22 = vld [vmem:[%s18214_s11 + $0x170] ss:$8 sps:$4 sm:$0xff]   ;;  %v13454_v18 = vld [vmem:[%s18214_s11 + $0x164] ss:$8 sps:$4 sm:$0xff]  }
 0x9dd   :  { %v8055_v48 = vpop.f32.mrf.mxu0 }
 0x9de   :  { %8088 = vst.msk [vmem:[#allocation4] sm:$0xff] %vm8087_vm1, %v11602_v53  ;;  %v8056_v32 = vadd.f32 %v8055_v48, %v8004_v17  ;;  %v13442_v17 = vld [vmem:[%s18214_s11 + $0x1a4] ss:$8 sps:$4 sm:$0xff]   ;;  %v13452_v53 = vld [vmem:[%s18214_s11 + $0x160] ss:$8 sps:$4 sm:$0xff]  }
 0x9df   :  { %v8059_v41 = vpop.f32.mrf.mxu0  ;;  %v13457_v48 = vld [vmem:[%s18214_s11 + $0x204] ss:$8 sps:$4 sm:$0xff]  }
 0x9e0   :  { %v11603_v13 = vpack.c.bf16 %v8056_v32, %v8054_v35  ;;  %v8060_v27 = vadd.f32 %v8059_v41, %v8008_v31  ;;  %v13455_v35 = vld [vmem:[%s18214_s11 + $0x200] ss:$8 sps:$4 sm:$0xff]   ;;  %v13460_v32 = vld [vmem:[%s18214_s11 + $0x1f4] ss:$8 sps:$4 sm:$0xff]   ;;  %v13458_v41 = vld [vmem:[%s18214_s11 + $0x1f0] ss:$8 sps:$4 sm:$0xff]  }
 0x9e1   :  { %v8061_v45 = vpop.f32.mrf.mxu0 }
 0x9e2   :  { %8089 = vst.msk [vmem:[#allocation4 + $0x8] sm:$0xff] %vm8087_vm1, %v11603_v13  ;;  %v8062_v23 = vadd.f32 %v8061_v45, %v8010_v15  ;;  %v13440_v15 = vld [vmem:[%s18214_s11 + $0x1a0] ss:$8 sps:$4 sm:$0xff]   ;;  %v13463_v13 = vld [vmem:[%s18214_s11 + $0x1e4] ss:$8 sps:$4 sm:$0xff]  }
 0x9e3   :  { %v8063_v1 = vpop.f32.mrf.mxu0 }
 0x9e4   :  { %v11604_v50 = vpack.c.bf16 %v8062_v23, %v8060_v27  ;;  %v13461_v27 = vld [vmem:[%s18214_s11 + $0x1e0] ss:$8 sps:$4 sm:$0xff]  }
 0x9e5   :  { %v8064_v42 = vpop.f32.mrf.mxu0  ;;  %v8093_v33 = vld [vmem:[#allocation4] sm:$0xff] }
 0x9e6   :  { %8092 = vst.msk [vmem:[#allocation4 + $0x10] sm:$0x77] %vm8091_vm3, %v11604_v50  ;;  %v8528_v7 = vld [vmem:[#allocation4] sm:$0xee] }
 0x9e9   :  { %v17722_v4 = vld [vmem:[#allocation4 + $0x8] sm:$0xff] }
 0x9ea   :  { %v11298_v56 = vcombine.low %v8093_v33, %v17722_v4  ;;  %v11299_v57 = vcombine.high %v8093_v33, %v17722_v4  ;;  %v11375_v8 = vcombine.high %v8528_v7, %v17722_v4  ;;  %v11374_v45 = vcombine.low %v8528_v7, %v17722_v4 }
 0x9ec   :  { %11350 = vmatprep.mubr.msk.bf16.mxu0 %vm8297_vm6, %v11299_v57  ;;  %v8170_v19 = vshll.u32 %v11299_v57, 16  ;;  %v8158_v47 = vshll.u32 %v11298_v56, 16  ;;  %v8168_v52 = vshrl.u32 %v11299_v57, 16  ;;  %v8156_v25 = vshrl.u32 %v11298_v56, 16 }
 0x9ed   :  { %8510 = vmatmul.mubr.bf16.vlgmr.msra.gmra.mxu0 %v11298_v56  ;;  %v8095_v30 = vld [vmem:[#allocation4 + $0x10] sm:$0x33]  ;;  %v8560_v43 = vrot.slane %v11375_v8, 1  ;;  %v8557_v1 = vrot.slane %v11374_v45, 1 }
 0x9ee   :  { %v8118_v14 = vld [vmem:[#allocation4 + $0x10] sm:$0x77]  ;;  %v11327_v49 = vcombine.high %v8095_v30, %v8095_v30  ;;  %v8172_v44 = vrot.slane %v8170_v19, 1  ;;  %v8160_v29 = vrot.slane %v8158_v47, 1  ;;  %v11326_v38 = vcombine.low %v8095_v30, %v8095_v30 }
 0x9ef   :  { %v17727_v5 = vcombine.low %v8118_v14, %v8118_v14  ;;  %v17729_v63 = vcombine.high %v8118_v14, %v8118_v14 }
 0x9f0   :  { %11351 = vmatprep.mubr.msk.bf16.mxu0 %vm8297_vm6, %v11327_v49  ;;  %v8173_v34 = vor.u32 %v8172_v44, %v8168_v52  ;;  %v8161_v20 = vor.u32 %v8160_v29, %v8156_v25  ;;  %v8738_v25 = vld [vmem:[%s18215_s12] sm:$0x3] }
 0x9f1   :  { %v8175_v10 = vshll.u32 %v17729_v63, 16  ;;  %v8163_v39 = vshll.u32 %v17727_v5, 16  ;;  %v8182_v6 = vshrl.u32 %v17729_v63, 16  ;;  %v8179_v16 = vshrl.u32 %v17727_v5, 16 }
 0x9f2   :  { %v8561_v3 = vrot.slane %v17729_v63, 1  ;;  %v8558_v23 = vrot.slane %v17727_v5, 1 }
 0x9f3   :  { %v8177_v0 = vrot.slane %v8175_v10, 1  ;;  %v8165_v9 = vrot.slane %v8163_v39, 1 }
 0x9f4   :  { %v8562_v31 = vsel %vm2271_vm13, %v8560_v43, %v8561_v3  ;;  %v8559_v50 = vsel %vm2271_vm13, %v8557_v1, %v8558_v23 }
 0x9f5   :  { %v8178_v62 = vsel %vm731_vm8, %v8173_v34, %v8177_v0  ;;  %v8166_v11 = vsel %vm731_vm8, %v8161_v20, %v8165_v9  ;;  %v8184_v21 = vor.u32 %v8182_v6, %v8177_v0  ;;  %8520 = vmatmul.mubr.bf16.gmra.mxu0 %v11326_v38  ;;  %v8181_v12 = vor.u32 %v8179_v16, %v8165_v9 }
 0x9f6   :  { %11324 = vmatprep.mubr.msk.bf16.mxu1 %vm8297_vm6, %v8178_v62  ;;  %8878 = vmatprep.mubr.bf16.mxu0 %v18439_v60  ;;  %v8743_v34 = vrot.slane %v8738_v25, %v18461_v2  ;;  %v8747_v6 = vrot.slane %v8738_v25, %v18462_v54  ;;  %v13472_v25 = vld [vmem:[%s18217_s14] sm:$0xff]   ;;  %vm10038_vm8 = vcmask 253952  }
 0x9f7   :  { %8337 = vmatmul.mubr.bf16.vlgmr.msra.gmra.mxu1 %v8166_v11 }
 0x9f8   :  { %8682 = vmatpush1.bf16.msra.mxu1 %v13429_v46  ;;  %11325 = vmatprep.mubr.msk.bf16.mxu1 %vm8297_vm6, %v8184_v21 }
 0x9f9   :  { %8683 = vmatprep.subr.bf16.mxu1 %v13434_v58 }
 0x9fc   :  { %8684 = vmatpush1.bf16.msra.mxu1 %v13432_v40 }
 0x9fd   :  { %8685 = vmatprep.subr.bf16.mxu1 %v13437_v55 }
 0x9ff   :  { %8347 = vmatmul.mubr.bf16.gmra.mxu1 %v8181_v12 }
 0xa00   :  { %8686 = vmatpush1.bf16.msra.mxu1 %v13435_v24  ;;  %11398 = vmatprep.mubr.msk.bf16.mxu1 %vm8297_vm6, %v8562_v31 }
 0xa01   :  { %8687 = vmatprep.subr.bf16.mxu1 %v13442_v17 }
 0xa04   :  { %8688 = vmatpush1.bf16.msra.mxu1 %v13440_v15 }
 0xa05   :  { %8689 = vmatprep.subr.bf16.mxu1 %v13445_v28 }
 0xa08   :  { %8690 = vmatpush1.bf16.msra.mxu1 %v13443_v36 }
 0xa09   :  { %8691 = vmatprep.subr.bf16.mxu1 %v13448_v61 }
 0xa0c   :  { %8692 = vmatpush1.bf16.msra.mxu1 %v13446_v26 }
 0xa0d   :  { %8693 = vmatprep.subr.bf16.mxu1 %v13451_v51 }
 0xa10   :  { %8694 = vmatpush1.bf16.msra.mxu1 %v13449_v22 }
 0xa11   :  { %8695 = vmatprep.subr.bf16.mxu1 %v13454_v18 }
 0xa14   :  { %8696 = vmatpush1.bf16.msra.mxu1 %v13452_v53 }
 0xa15   :  { %8707 = vmatprep.subr.bf16.mxu1 %v13457_v48 }
 0xa18   :  { %8708 = vmatpush2.bf16.msra.mxu1 %v13455_v35 }
 0xa19   :  { %8709 = vmatprep.subr.bf16.mxu1 %v13460_v32 }
 0xa1c   :  { %8710 = vmatpush2.bf16.msra.mxu1 %v13458_v41 }
 0xa1d   :  { %8711 = vmatprep.subr.bf16.mxu1 %v13463_v13 }
 0xa20   :  { %8712 = vmatpush2.bf16.msra.mxu1 %v13461_v27 }
 0xa21   :  { %8974 = vmatprep.subr.bf16.mxu1 %v18439_v60 }
 0xa23   :  { %8714 = vmatmul.mubr.bf16.vlgmr.msra.gmra.mxu1 %v8559_v50 }
 0xa24   :  { %11399 = vmatprep.mubr.msk.bf16.mxu1 %vm8297_vm6, %v8561_v3 }
 0xa2b   :  { %8724 = vmatmul.mubr.bf16.gmra.mxu1 %v8558_v23 }
 0xaad   :  { %v8511_v42 = vpop.f32.mrf.mxu0 }
 0xaaf   :  { %v8513_v33 = vpop.f32.mrf.mxu0 }
 0xab1   :  { %v8515_v4 = vpop.f32.mrf.mxu0 }
 0xab3   :  { %v8517_v56 = vpop.f32.mrf.mxu0 }
 0xab5   :  { %v8521_v57 = vpop.f32.mrf.mxu0 }
 0xab7   :  { %v8338_v19 = vpop.f32.mrf.mxu1  ;;  %v8523_v47 = vpop.f32.mrf.mxu0 }
 0xab8   :  { %v8512_v39 = vadd.f32 %v8511_v42, %v8338_v19 }
 0xab9   :  { %v8340_v30 = vpop.f32.mrf.mxu1  ;;  %v8525_v14 = vpop.f32.mrf.mxu0 }
 0xaba   :  { %v8514_v20 = vadd.f32 %v8513_v33, %v8340_v30 }
 0xabb   :  { %v8342_v49 = vpop.f32.mrf.mxu1  ;;  %v8526_v5 = vpop.f32.mrf.mxu0 }
 0xabc   :  { %v8516_v46 = vadd.f32 %v8515_v4, %v8342_v49  ;;  %v13465_v49 = vld [vmem:[%s18217_s14 + $0x38] sm:$0xff]   ;;  %v13466_v5 = vld [vmem:[%s18217_s14 + $0x30] sm:$0xff]  }
 0xabd   :  { %v8344_v63 = vpop.f32.mrf.mxu1  ;;  %8975 = vmatpush1.bf16.msra.mxu1 %v13465_v49 }
 0xabe   :  { %v8518_v58 = vadd.f32 %v8517_v56, %v8344_v63  ;;  %8976 = vmatprep.subr.bf16.mxu1 %v18439_v60  ;;  %v13467_v63 = vld [vmem:[%s18217_s14 + $0x28] sm:$0xff]  }
 0xabf   :  { %v8348_v44 = vpop.f32.mrf.mxu1 }
 0xac0   :  { %v8522_v16 = vadd.f32 %v8521_v57, %v8348_v44  ;;  %v13468_v44 = vld [vmem:[%s18217_s14 + $0x20] sm:$0xff]  }
 0xac1   :  { %v8350_v52 = vpop.f32.mrf.mxu1  ;;  %8977 = vmatpush1.bf16.msra.mxu1 %v13466_v5  ;;  %v13487_v5 = vld [vmem:[%s18218_s15 + $0x90] sm:$0xff]  }
 0xac2   :  { %v8524_v43 = vadd.f32 %v8523_v47, %v8350_v52  ;;  %8978 = vmatprep.subr.bf16.mxu1 %v18439_v60  ;;  %v13469_v52 = vld [vmem:[%s18217_s14 + $0x18] sm:$0xff]  }
 0xac3   :  { %v8352_v29 = vpop.f32.mrf.mxu1 }
 0xac4   :  { %v13470_v29 = vld [vmem:[%s18217_s14 + $0x10] sm:$0xff]  }
 0xac5   :  { %v8353_v10 = vpop.f32.mrf.mxu1  ;;  %8979 = vmatpush1.bf16.msra.mxu1 %v13467_v63  ;;  %v13488_v63 = vld [vmem:[%s18218_s15 + $0x180] sm:$0xff]  }
 0xac6   :  { %8980 = vmatprep.subr.bf16.mxu1 %v18439_v60  ;;  %v13471_v10 = vld [vmem:[%s18217_s14 + $0x8] sm:$0xff]  }
 0xac9   :  { %8981 = vmatpush1.bf16.msra.mxu1 %v13468_v44  ;;  %v13489_v44 = vld [vmem:[%s18218_s15 + $0x88] sm:$0xff]  }
 0xaca   :  { %8982 = vmatprep.subr.bf16.mxu1 %v18439_v60 }
 0xacd   :  { %8983 = vmatpush1.bf16.msra.mxu1 %v13469_v52  ;;  %v13490_v52 = vld [vmem:[%s18218_s15 + $0x178] sm:$0xff]  }
 0xace   :  { %8984 = vmatprep.subr.bf16.mxu1 %v18439_v60 }
 0xad1   :  { %8985 = vmatpush1.bf16.msra.mxu1 %v13470_v29  ;;  %v13491_v29 = vld [vmem:[%s18218_s15 + $0x80] sm:$0xff]  }
 0xad2   :  { %8986 = vmatprep.subr.bf16.mxu1 %v18439_v60 }
 0xad5   :  { %8987 = vmatpush1.bf16.msra.mxu1 %v13471_v10  ;;  %v13492_v10 = vld [vmem:[%s18218_s15 + $0x170] sm:$0xff]  }
 0xad6   :  { %8988 = vmatprep.subr.bf16.mxu1 %v18439_v60 }
 0xad9   :  { %8989 = vmatpush1.bf16.msra.mxu1 %v13472_v25  ;;  %v13493_v25 = vld [vmem:[%s18218_s15 + $0x78] sm:$0xff]  }
 0xada   :  { %9002 = vmatprep.subr.bf16.mxu1 %v18439_v60 }
 0xae3   :  { %v8715_v0 = vpop.f32.mrf.mxu1 }
 0xae4   :  { %v8732_v9 = vadd.f32 %v8715_v0, %v8512_v39  ;;  %v8838_v0 = vsel %vm484_vm10, 4294967295, %v18465_v37 }
 0xae5   :  { %v8717_v38 = vpop.f32.mrf.mxu1 }
 0xae6   :  { %v8750_v62 = vadd.f32 %v8743_v34, %v8732_v9  ;;  %v8733_v11 = vadd.f32 %v8717_v38, %v8514_v20 }
 0xae7   :  { %v8719_v21 = vpop.f32.mrf.mxu1 }
 0xae8   :  { %v8751_v40 = vadd.f32 %v8747_v6, %v8733_v11  ;;  %v8734_v7 = vadd.f32 %v8719_v21, %v8516_v46  ;;  %v8756_v55 = vmax.f32 %v8750_v62, 0.0  ;;  %v8839_v11 = vsel %vm150_vm0, %v8838_v0, 0 }
 0xae9   :  { %v8721_v8 = vpop.f32.mrf.mxu1  ;;  %vm8834_vm0 = vcmask 154624  }
 0xaea   :  { %v8752_v3 = vadd.f32 %v8743_v34, %v8734_v7  ;;  %v8735_v24 = vadd.f32 %v8721_v8, %v8518_v58  ;;  %v8757_v12 = vmax.f32 %v8751_v40, 0.0  ;;  %v8768_v54 = vrot.slane %v8756_v55, 1 }
 0xaeb   :  { %v8725_v2 = vpop.f32.mrf.mxu1 }
 0xaec   :  { %v8758_v17 = vmax.f32 %v8752_v3, 0.0  ;;  %v8753_v31 = vadd.f32 %v8747_v6, %v8735_v24  ;;  %v8736_v15 = vadd.f32 %v8725_v2, %v8522_v16  ;;  %v8771_v22 = vrot.slane %v8757_v12, 1 }
 0xaed   :  { %v8727_v28 = vpop.f32.mrf.mxu1 }
 0xaee   :  { %v8769_v36 = vrot.slane %v8758_v17, 1  ;;  %v8759_v61 = vmax.f32 %v8753_v31, 0.0  ;;  %v8754_v26 = vadd.f32 %v8743_v34, %v8736_v15  ;;  %v8737_v51 = vadd.f32 %v8727_v28, %v8524_v43  ;;  %v13473_v28 = vld [vmem:[%s18217_s14 + $0x48] ss:$0 sps:$4 sm:$0xff]  }
 0xaef   :  { %v8729_v18 = vpop.f32.mrf.mxu1 }
 0xaf0   :  { %v8772_v53 = vrot.slane %v8759_v61, 1  ;;  %v8760_v48 = vmax.f32 %v8754_v26, 0.0  ;;  %v8755_v35 = vadd.f32 %v8747_v6, %v8737_v51  ;;  %v8770_v32 = vsel %vm2271_vm13, %v8768_v54, %v8769_v36  ;;  %v13464_v54 = vld [vmem:[%s18216_s13] sm:$0x1f]   ;;  %v13475_v26 = vld [vmem:[%s18218_s15 + $0x48] sm:$0xff]  }
 0xaf1   :  { %v8730_v41 = vpop.f32.mrf.mxu1  ;;  %v17820_v23 = vmax.f32 %v8756_v55, %v8770_v32  ;;  %v13477_v51 = vld [vmem:[%s18218_s15 + $0x40] sm:$0xff]  }
 0xaf2   :  { %v8774_v13 = vrot.slane %v8760_v48, 1  ;;  %v8761_v45 = vmax.f32 %v8755_v35, 0.0  ;;  %v8773_v27 = vsel %vm2271_vm13, %v8771_v22, %v8772_v53  ;;  %v13479_v22 = vld [vmem:[%s18218_s15 + $0x38] sm:$0xff]   ;;  %v13476_v41 = vld [vmem:[%s18218_s15 + $0xe8] sm:$0xff]  }
 0xaf3   :  { %v8785_v1 = vmax.f32 %v8757_v12, %v8773_v27  ;;  %v13480_v27 = vld [vmem:[%s18218_s15 + $0xd8] sm:$0xff]  }
 0xaf4   :  { %v8776_v50 = vrot.slane %v8761_v45, 1  ;;  %v8788_v33 = vmax.f32 %v8760_v48, %v8774_v13  ;;  %v8775_v57 = vsel %vm2271_vm13, %v8769_v36, %v8774_v13  ;;  %v8972_v36 = vsel %vm471_vm5, %v13473_v28, 0  ;;  %v13516_v28 = vld [vmem:[%s18218_s15 + $0xb8] sm:$0xff]  }
 0xaf5   :  { %v12502_v42 = vpack.i.bf16 %v8785_v1, %v17820_v23  ;;  %v8786_v30 = vmax.f32 %v8758_v17, %v8775_v57  ;;  %9003 = vmatpush2.bf16.msra.mxu1 %v8972_v36  ;;  %v13517_v36 = vld [vmem:[%s18218_s15 + $0xb0] sm:$0xff]   ;;  %vm9957_vm5 = vcmask 261120  }
 0xaf6   :  { %v8789_v4 = vmax.f32 %v8761_v45, %v8776_v50  ;;  %v8777_v56 = vsel %vm2271_vm13, %v8772_v53, %v8776_v50  ;;  %9004 = vmatprep.subr.bf16.mxu1 %v18439_v60  ;;  %v13478_v45 = vld [vmem:[%s18218_s15 + $0xe0] sm:$0xff]   ;;  %v13483_v50 = vld [vmem:[%s18218_s15 + $0x28] sm:$0xff]  }
 0xaf7   :  { %12503 = vrot.lane.b32.xlu0 %v12502_v42, %s13616_s2  ;;  %v8787_v47 = vmax.f32 %v8759_v61, %v8777_v56  ;;  %v13474_v61 = vld [vmem:[%s18217_s14 + $0x40] sm:$0xff]   ;;  %v13484_v42 = vld [vmem:[%s18218_s15 + $0xc8] sm:$0xff]  }
 0xaf8   :  { %v12497_v19 = vpack.i.bf16 %v8789_v4, %v8788_v33 }
 0xaf9   :  { %v12507_v14 = vpack.i.bf16 %v8787_v47, %v8786_v30  ;;  %9005 = vmatpush2.bf16.msra.mxu1 %v13474_v61  ;;  %v13518_v61 = vld [vmem:[%s18218_s15 + $0xa8] sm:$0xff]  }
 0xafa   :  { %12498 = vrot.lane.b32.xlu1 %v12497_v19, %s13616_s2  ;;  %12202 = vmatprep.subr.bf16.mxu1 %v18447_v59 }
 0xafe   :  { %12508 = vrot.lane.b32.xlu1 %v12507_v14, %s13616_s2  ;;  %v13486_v14 = vld [vmem:[%s18218_s15 + $0x188] sm:$0xff]  }
 0xb69   :  { %v12504_v39 = vpop.permute.xlu0 %12503 }
 0xb6a   :  { %v12506_v6 = vunpack.i.h.bf16 %v12504_v39  ;;  %v12505_v38 = vunpack.i.l.bf16 %v12504_v39  ;;  %v13494_v39 = vld [vmem:[%s18218_s15 + $0x168] sm:$0xff]  }
 0xb6c   :  { %v12499_v34 = vpop.permute.xlu1 %12498  ;;  %v8818_v8 = vmax.f32 %v8785_v1, %v12506_v6  ;;  %v8808_v3 = vsel %vm3544_vm15, %v12505_v38, %v12506_v6  ;;  %v13482_v1 = vld [vmem:[%s18218_s15 + $0xd0] sm:$0xff]   ;;  %v13498_v38 = vld [vmem:[%s18218_s15 + $0x68] sm:$0xff]  }
 0xb6d   :  { %v12501_v20 = vunpack.i.h.bf16 %v12499_v34  ;;  %v12500_v9 = vunpack.i.l.bf16 %v12499_v34  ;;  %v8817_v31 = vmax.f32 %v17820_v23, %v8808_v3  ;;  %v13481_v23 = vld [vmem:[%s18218_s15 + $0x30] sm:$0xff]   ;;  %v13495_v34 = vld [vmem:[%s18218_s15 + $0x138] sm:$0xff]  }
 0xb6e   :  { %v13497_v6 = vld [vmem:[%s18218_s15 + $0x130] sm:$0xff]   ;;  %v13507_v3 = vld [vmem:[%s18218_s15 + $0x18] sm:$0xff]  }
 0xb6f   :  { %v8822_v46 = vmax.f32 %v8789_v4, %v12501_v20  ;;  %v8810_v62 = vsel %vm3544_vm15, %v12500_v9, %v12501_v20  ;;  %v13496_v20 = vld [vmem:[%s18218_s15 + $0x70] sm:$0xff]  }
 0xb70   :  { %v8821_v21 = vmax.f32 %v8788_v33, %v8810_v62  ;;  %v12509_v58 = vpop.permute.xlu1 %12508  ;;  %v13500_v62 = vld [vmem:[%s18218_s15 + $0x60] sm:$0xff]  }
 0xb71   :  { %v8826_v40 = vpack.c.bf16 %v8822_v46, %v8822_v46  ;;  %v12511_v7 = vunpack.i.h.bf16 %v12509_v58  ;;  %v12510_v55 = vunpack.i.l.bf16 %v12509_v58  ;;  %v13499_v46 = vld [vmem:[%s18218_s15 + $0x128] sm:$0xff]   ;;  %v13503_v58 = vld [vmem:[%s18218_s15 + $0x118] sm:$0xff]  }
 0xb72   :  { %v8825_v16 = vpack.c.bf16 %v8821_v21, %v8821_v21  ;;  %v13502_v21 = vld [vmem:[%s18218_s15 + $0x58] sm:$0xff]  }
 0xb73   :  { %v8820_v24 = vmax.f32 %v8787_v47, %v12511_v7  ;;  %v8809_v37 = vsel %vm3544_vm15, %v12510_v55, %v12511_v7  ;;  %v8844_v12 = vand.u32 %v8839_v11, %v8826_v40  ;;  %v13485_v47 = vld [vmem:[%s18218_s15 + $0x98] sm:$0xff]   ;;  %v13504_v40 = vld [vmem:[%s18218_s15 + $0x50] sm:$0xff]   ;;  %v13505_v7 = vld [vmem:[%s18218_s15 + $0x20] sm:$0xff]  }
 0xb74   :  { %v8819_v2 = vmax.f32 %v8786_v30, %v8809_v37  ;;  %v8841_v43 = vand.u32 %v8839_v11, %v8825_v16  ;;  %v13501_v11 = vld [vmem:[%s18218_s15 + $0x120] sm:$0xff]   ;;  %v13509_v37 = vld [vmem:[%s18218_s15 + $0x10] sm:$0xff]  }
 0xb75   :  { %8858 = vmatprep.subr.bf16.mxu0 %v8844_v12  ;;  %v8824_v17 = vpack.c.bf16 %v8820_v24, %v8818_v8  ;;  %v13506_v8 = vld [vmem:[%s18218_s15 + $0x110] sm:$0xff]   ;;  %v13508_v24 = vld [vmem:[%s18218_s15 + $0x108] sm:$0xff]   ;;  %v13510_v12 = vld [vmem:[%s18218_s15 + $0x100] sm:$0xff]  }
 0xb76   :  { %8859 = vmatpush1.bf16.msra.mxu0 %v8841_v43  ;;  %v8823_v15 = vpack.c.bf16 %v8819_v2, %v8817_v31  ;;  %v13511_v2 = vld [vmem:[%s18218_s15 + $0x8] sm:$0xff]   ;;  %v13512_v43 = vld [vmem:[%s18218_s15 + $0xf8] sm:$0xff]   ;;  %v13514_v31 = vld [vmem:[%s18218_s15 + $0xf0] sm:$0xff]  }
 0xb77   :  { %8860 = vmatprep.subr.bf16.mxu0 %v8824_v17  ;;  %v13513_v17 = vld [vmem:[%s18218_s15] sm:$0xff]  }
 0xb7a   :  { %8861 = vmatpush1.bf16.msra.mxu0 %v8823_v15  ;;  %v13515_v15 = vld [vmem:[%s18218_s15 + $0xc0] sm:$0xff]  }
 0xb7b   :  { %12174 = vmatprep.subr.bf16.mxu0 %v18447_v59 }
 0xb7d   :  { %11401 = vmatmul.mubr.msk.bf16.vlgmr.msra.gmra.mxu0 %vm8834_vm0, %v13464_v54 }
 0xb7e   :  { %12184 = vmatprep.mubr.msk.bf16.mxu0 %vm13618_vm14, %v18447_v59  ;;  %12175 = vmatpush3.bf16.msra.mxu0 %v13475_v26  ;;  %v13519_v26 = vld [vmem:[%s18218_s15 + $0xa0] sm:$0xff]  }
 0xb7f   :  { %12176 = vmatprep.subr.bf16.mxu0 %v18447_v59 }
 0xb82   :  { %12177 = vmatpush3.bf16.msra.mxu0 %v13477_v51  ;;  %v13520_v51 = vld [vmem:[%s18218_s15 + $0x160] sm:$0xff]  }
 0xb83   :  { %12178 = vmatprep.subr.bf16.mxu0 %v18447_v59 }
 0xb86   :  { %12179 = vmatpush3.bf16.msra.mxu0 %v13479_v22 }
 0xb87   :  { %12180 = vmatprep.subr.bf16.mxu0 %v18447_v59 }
 0xb8a   :  { %12181 = vmatpush3.bf16.msra.mxu0 %v13481_v23  ;;  %v13529_v23 = vld [vmem:[%s18220_s17 + $0x18] sm:$0xff]  }
 0xb8b   :  { %12182 = vmatprep.subr.bf16.mxu0 %v18447_v59 }
 0xb8e   :  { %12183 = vmatpush3.bf16.msra.mxu0 %v13483_v50  ;;  %v13531_v50 = vld [vmem:[%s18220_s17 + $0x8] sm:$0xff]  }
 0xb8f   :  { %12188 = vmatprep.subr.bf16.mxu0 %v18447_v59 }
 0xc3d   :  { %v8880_v18 = vpop.f32.mrf.mxu0 }
 0xc3f   :  { %v8882_v53 = vpop.f32.mrf.mxu0 }
 0xc41   :  { %v8884_v48 = vpop.f32.mrf.mxu0 }
 0xc42   :  { %v8889_v13 = vpack.c.bf16 %v8884_v48, %v8880_v18  ;;  %v13521_v18 = vld [vmem:[%s18218_s15 + $0x158] sm:$0xff]   ;;  %v13523_v48 = vld [vmem:[%s18218_s15 + $0x148] sm:$0xff]  }
 0xc43   :  { %v8886_v35 = vpop.f32.mrf.mxu0 }
 0xc44   :  { %v8890_v32 = vpack.c.bf16 %v8886_v35, %v8882_v53  ;;  %v13522_v53 = vld [vmem:[%s18218_s15 + $0x150] sm:$0xff]   ;;  %v13524_v35 = vld [vmem:[%s18218_s15 + $0x140] sm:$0xff]  }
 0xc46   :  { %11412 = vmatprep.mubr.msk.bf16.mxu1 %vm8967_vm4, %v8890_v32 }
 0xc47   :  { %9007 = vmatmul.mubr.bf16.vlgmr.msra.gmra.mxu1 %v8889_v13  ;;  %v13526_v13 = vld [vmem:[%s18220_s17 + $0x30] sm:$0xff]  }
 0xc48   :  { %12203 = vmatpush3.bf16.msra.mxu1 %v13476_v41  ;;  %12212 = vmatprep.mubr.msk.bf16.mxu1 %vm13618_vm14, %v18447_v59  ;;  %v13525_v41 = vld [vmem:[%s18220_s17 + $0x38] sm:$0xff]  }
 0xc49   :  { %12204 = vmatprep.subr.bf16.mxu1 %v18447_v59 }
 0xc4c   :  { %12205 = vmatpush3.bf16.msra.mxu1 %v13478_v45  ;;  %v13527_v45 = vld [vmem:[%s18220_s17 + $0x28] sm:$0xff]  }
 0xc4d   :  { %12206 = vmatprep.subr.bf16.mxu1 %v18447_v59 }
 0xc50   :  { %12207 = vmatpush3.bf16.msra.mxu1 %v13480_v27  ;;  %v13528_v27 = vld [vmem:[%s18220_s17 + $0x20] sm:$0xff]  }
 0xc51   :  { %12208 = vmatprep.subr.bf16.mxu1 %v18447_v59 }
 0xc54   :  { %12209 = vmatpush3.bf16.msra.mxu1 %v13482_v1  ;;  %v13530_v1 = vld [vmem:[%s18220_s17 + $0x10] sm:$0xff]  }
 0xc55   :  { %12210 = vmatprep.subr.bf16.mxu1 %v18447_v59 }
 0xc58   :  { %12211 = vmatpush3.bf16.msra.mxu1 %v13484_v42  ;;  %v13532_v42 = vld [vmem:[%s18220_s17] sm:$0xff]  }
 0xc59   :  { %12230 = vmatprep.subr.bf16.mxu1 %v18447_v59 }
 0xd07   :  { %v9008_v33 = vpop.f32.mrf.mxu1 }
 0xd09   :  { %v9010_v4 = vpop.f32.mrf.mxu1 }
 0xd0a   :  { %v13533_v4 = vld [vmem:[%s18220_s17 + $0x48] sm:$0xff]  }
 0xd0b   :  { %v9011_v56 = vpop.f32.mrf.mxu1 }
 0xd0c   :  { %v17924_v57 = vpack.c.bf16 %v9011_v56, %v9008_v33  ;;  %v9873_v33 = vld [vmem:[%s18224_s21] sm:$0x1] }
 0xd0d   :  { %v9013_v19 = vpop.f32.mrf.mxu1  ;;  %v9875_v56 = vpack.c.bf16 %v9873_v33, %v9873_v33 }
 0xd0e   :  { %v17930_v30 = vshrl.u32 %v17924_v57, 16  ;;  %v9570_v16 = vrot.slane %v17924_v57, 1  ;;  %v9718_v54 = vrot.slane %v17924_v57, 3  ;;  %v9644_v22 = vrot.slane %v17924_v57, 2  ;;  %v13534_v19 = vld [vmem:[%s18220_s17 + $0x40] sm:$0xff]  }
 0xd0f   :  { %v9792_v32 = vrot.slane %v17924_v57, 4 }
 0xd10   :  { %12185 = vmatmul.mubr.msk.bf16.vlgmr.msra.gmra.mxu0 %vm5830_vm7, %v17930_v30  ;;  %v9231_v49 = vrot.slane %v17930_v30, 2  ;;  %v9135_v0 = vrot.slane %v17930_v30, 1  ;;  %v9423_v9 = vrot.slane %v17930_v30, 4  ;;  %v9327_v55 = vrot.slane %v17930_v30, 3 }
 0xd11   :  { %12189 = vmatpush3.bf16.msra.mxu0 %v13485_v47  ;;  %12198 = vmatprep.mubr.msk.bf16.mxu0 %vm13618_vm14, %v18447_v59 }
 0xd12   :  { %12213 = vmatmul.mubr.msk.bf16.vlgmr.msra.gmra.mxu1 %vm5830_vm7, %v9231_v49  ;;  %12190 = vmatprep.subr.bf16.mxu0 %v18447_v59 }
 0xd13   :  { %12231 = vmatpush3.bf16.msra.mxu1 %v13486_v14  ;;  %12240 = vmatprep.mubr.msk.bf16.mxu1 %vm13618_vm14, %v18447_v59 }
 0xd14   :  { %12232 = vmatprep.subr.bf16.mxu1 %v18447_v59 }
 0xd15   :  { %12191 = vmatpush3.bf16.msra.mxu0 %v13487_v5 }
 0xd16   :  { %12192 = vmatprep.subr.bf16.mxu0 %v18447_v59 }
 0xd17   :  { %12233 = vmatpush3.bf16.msra.mxu1 %v13488_v63 }
 0xd18   :  { %12234 = vmatprep.subr.bf16.mxu1 %v18447_v59 }
 0xd19   :  { %12193 = vmatpush3.bf16.msra.mxu0 %v13489_v44 }
 0xd1a   :  { %12194 = vmatprep.subr.bf16.mxu0 %v18447_v59 }
 0xd1b   :  { %12235 = vmatpush3.bf16.msra.mxu1 %v13490_v52 }
 0xd1c   :  { %12236 = vmatprep.subr.bf16.mxu1 %v18447_v59 }
 0xd1d   :  { %12195 = vmatpush3.bf16.msra.mxu0 %v13491_v29 }
 0xd1e   :  { %12196 = vmatprep.subr.bf16.mxu0 %v18447_v59 }
 0xd1f   :  { %12237 = vmatpush3.bf16.msra.mxu1 %v13492_v10 }
 0xd20   :  { %12238 = vmatprep.subr.bf16.mxu1 %v18447_v59 }
 0xd21   :  { %12197 = vmatpush3.bf16.msra.mxu0 %v13493_v25 }
 0xd22   :  { %12216 = vmatprep.subr.bf16.mxu0 %v18447_v59 }
 0xd23   :  { %12239 = vmatpush3.bf16.msra.mxu1 %v13494_v39 }
 0xd24   :  { %12199 = vmatmul.mubr.msk.bf16.vlgmr.msra.gmra.mxu0 %vm5830_vm7, %v9135_v0  ;;  %12258 = vmatprep.subr.bf16.mxu1 %v18447_v59 }
 0xd25   :  { %12217 = vmatpush3.bf16.msra.mxu0 %v13495_v34  ;;  %12226 = vmatprep.mubr.msk.bf16.mxu0 %vm13618_vm14, %v18447_v59 }
 0xd26   :  { %12241 = vmatmul.mubr.msk.bf16.vlgmr.msra.gmra.mxu1 %vm5830_vm7, %v9423_v9  ;;  %12218 = vmatprep.subr.bf16.mxu0 %v18447_v59 }
 0xd27   :  { %12259 = vmatpush3.bf16.msra.mxu1 %v13496_v20  ;;  %12268 = vmatprep.mubr.msk.bf16.mxu1 %vm13618_vm14, %v18447_v59 }
 0xd28   :  { %12260 = vmatprep.subr.bf16.mxu1 %v18447_v59 }
 0xd29   :  { %12219 = vmatpush3.bf16.msra.mxu0 %v13497_v6 }
 0xd2a   :  { %12220 = vmatprep.subr.bf16.mxu0 %v18447_v59 }
 0xd2b   :  { %12261 = vmatpush3.bf16.msra.mxu1 %v13498_v38 }
 0xd2c   :  { %12262 = vmatprep.subr.bf16.mxu1 %v18447_v59 }
 0xd2d   :  { %12221 = vmatpush3.bf16.msra.mxu0 %v13499_v46 }
 0xd2e   :  { %12222 = vmatprep.subr.bf16.mxu0 %v18447_v59 }
 0xd2f   :  { %12263 = vmatpush3.bf16.msra.mxu1 %v13500_v62 }
 0xd30   :  { %12264 = vmatprep.subr.bf16.mxu1 %v18447_v59 }
 0xd31   :  { %12223 = vmatpush3.bf16.msra.mxu0 %v13501_v11 }
 0xd32   :  { %12224 = vmatprep.subr.bf16.mxu0 %v18447_v59 }
 0xd33   :  { %12265 = vmatpush3.bf16.msra.mxu1 %v13502_v21 }
 0xd34   :  { %12266 = vmatprep.subr.bf16.mxu1 %v18447_v59 }
 0xd35   :  { %12225 = vmatpush3.bf16.msra.mxu0 %v13503_v58 }
 0xd36   :  { %12244 = vmatprep.subr.bf16.mxu0 %v18447_v59 }
 0xd37   :  { %12267 = vmatpush3.bf16.msra.mxu1 %v13504_v40 }
 0xd38   :  { %12227 = vmatmul.mubr.msk.bf16.vlgmr.msra.gmra.mxu0 %vm5830_vm7, %v9327_v55  ;;  %12286 = vmatprep.subr.bf16.mxu1 %v18447_v59 }
 0xd39   :  { %12245 = vmatpush3.bf16.msra.mxu0 %v13505_v7  ;;  %12254 = vmatprep.mubr.msk.bf16.mxu0 %vm13618_vm14, %v18447_v59 }
 0xd3a   :  { %12269 = vmatmul.mubr.msk.bf16.vlgmr.msra.gmra.mxu1 %vm5830_vm7, %v9570_v16  ;;  %12246 = vmatprep.subr.bf16.mxu0 %v18447_v59 }
 0xd3b   :  { %12287 = vmatpush3.bf16.msra.mxu1 %v13506_v8  ;;  %12296 = vmatprep.mubr.msk.bf16.mxu1 %vm13618_vm14, %v18447_v59 }
 0xd3c   :  { %12288 = vmatprep.subr.bf16.mxu1 %v18447_v59 }
 0xd3d   :  { %12247 = vmatpush3.bf16.msra.mxu0 %v13507_v3 }
 0xd3e   :  { %12248 = vmatprep.subr.bf16.mxu0 %v18447_v59 }
 0xd3f   :  { %12289 = vmatpush3.bf16.msra.mxu1 %v13508_v24 }
 0xd40   :  { %12290 = vmatprep.subr.bf16.mxu1 %v18447_v59 }
 0xd41   :  { %12249 = vmatpush3.bf16.msra.mxu0 %v13509_v37 }
 0xd42   :  { %12250 = vmatprep.subr.bf16.mxu0 %v18447_v59 }
 0xd43   :  { %12291 = vmatpush3.bf16.msra.mxu1 %v13510_v12 }
 0xd44   :  { %12292 = vmatprep.subr.bf16.mxu1 %v18447_v59 }
 0xd45   :  { %12251 = vmatpush3.bf16.msra.mxu0 %v13511_v2 }
 0xd46   :  { %12252 = vmatprep.subr.bf16.mxu0 %v18447_v59 }
 0xd47   :  { %12293 = vmatpush3.bf16.msra.mxu1 %v13512_v43 }
 0xd48   :  { %12294 = vmatprep.subr.bf16.mxu1 %v18447_v59 }
 0xd49   :  { %12253 = vmatpush3.bf16.msra.mxu0 %v13513_v17 }
 0xd4a   :  { %12272 = vmatprep.subr.bf16.mxu0 %v18447_v59 }
 0xd4b   :  { %12295 = vmatpush3.bf16.msra.mxu1 %v13514_v31 }
 0xd4c   :  { %12255 = vmatmul.mubr.msk.bf16.vlgmr.msra.gmra.mxu0 %vm5830_vm7, %v17924_v57  ;;  %9961 = vmatprep.subr.bf16.mxu1 %v18439_v60  ;;  %v11575_v57 = vld [vmem:[%s18225_s22] ss:$0 sm:$0xff] }
 0xd4d   :  { %12273 = vmatpush3.bf16.msra.mxu0 %v13515_v15  ;;  %12282 = vmatprep.mubr.msk.bf16.mxu0 %vm13618_vm14, %v18447_v59 }
 0xd4e   :  { %12297 = vmatmul.mubr.msk.bf16.vlgmr.msra.gmra.mxu1 %vm5830_vm7, %v9718_v54  ;;  %12274 = vmatprep.subr.bf16.mxu0 %v18447_v59 }
 0xd4f   :  { %9962 = vmatpush1.bf16.msra.mxu1 %v13525_v41  ;;  %10014 = vrot.lane.b32.xlu1 %v11575_v57, %s13620_s1 }
 0xd50   :  { %9963 = vmatprep.subr.bf16.mxu1 %v18439_v60  ;;  %11573 = vmatprep.mubr.msk.bf16.mxu1 %vm9957_vm5, %v9875_v56 }
 0xd51   :  { %12275 = vmatpush3.bf16.msra.mxu0 %v13516_v28 }
 0xd52   :  { %12276 = vmatprep.subr.bf16.mxu0 %v18447_v59 }
 0xd53   :  { %9964 = vmatpush1.bf16.msra.mxu1 %v13526_v13 }
 0xd54   :  { %9965 = vmatprep.subr.bf16.mxu1 %v18439_v60 }
 0xd55   :  { %12277 = vmatpush3.bf16.msra.mxu0 %v13517_v36 }
 0xd56   :  { %12278 = vmatprep.subr.bf16.mxu0 %v18447_v59 }
 0xd57   :  { %9966 = vmatpush1.bf16.msra.mxu1 %v13527_v45 }
 0xd58   :  { %9967 = vmatprep.subr.bf16.mxu1 %v18439_v60 }
 0xd59   :  { %12279 = vmatpush3.bf16.msra.mxu0 %v13518_v61 }
 0xd5a   :  { %12280 = vmatprep.subr.bf16.mxu0 %v18447_v59 }
 0xd5b   :  { %9968 = vmatpush1.bf16.msra.mxu1 %v13528_v27  ;;  %v9896_v27 = vld [vmem:[%s18221_s18] sm:$0x1] }
 0xd5c   :  { %9969 = vmatprep.subr.bf16.mxu1 %v18439_v60 }
 0xd5d   :  { %12281 = vmatpush3.bf16.msra.mxu0 %v13519_v26 }
 0xd5e   :  { %12300 = vmatprep.subr.bf16.mxu0 %v18447_v59 }
 0xd5f   :  { %9970 = vmatpush1.bf16.msra.mxu1 %v13529_v23 }
 0xd60   :  { %12283 = vmatmul.mubr.msk.bf16.vlgmr.msra.gmra.mxu0 %vm5830_vm7, %v9644_v22  ;;  %9971 = vmatprep.subr.bf16.mxu1 %v18439_v60 }
 0xd61   :  { %12301 = vmatpush3.bf16.msra.mxu0 %v13520_v51  ;;  %12310 = vmatprep.mubr.msk.bf16.mxu0 %vm13618_vm14, %v18447_v59 }
 0xd62   :  { %12302 = vmatprep.subr.bf16.mxu0 %v18447_v59 }
 0xd63   :  { %9972 = vmatpush1.bf16.msra.mxu1 %v13530_v1 }
 0xd64   :  { %9973 = vmatprep.subr.bf16.mxu1 %v18439_v60 }
 0xd65   :  { %12303 = vmatpush3.bf16.msra.mxu0 %v13521_v18  ;;  %v9870_v18 = vld [vmem:[%s18219_s16] sm:$0x1]  ;;  %s13621_s16 = smov 64  }
 0xd66   :  { %12304 = vmatprep.subr.bf16.mxu0 %v18447_v59 }
 0xd67   :  { %9974 = vmatpush1.bf16.msra.mxu1 %v13531_v50 }
 0xd68   :  { %9975 = vmatprep.subr.bf16.mxu1 %v18439_v60 }
 0xd69   :  { %12305 = vmatpush3.bf16.msra.mxu0 %v13522_v53 }
 0xd6a   :  { %12306 = vmatprep.subr.bf16.mxu0 %v18447_v59 }
 0xd6b   :  { %9976 = vmatpush1.bf16.msra.mxu1 %v13532_v42 }
 0xd6c   :  { %9989 = vmatprep.subr.bf16.mxu1 %v18439_v60 }
 0xd6d   :  { %12307 = vmatpush3.bf16.msra.mxu0 %v13523_v48 }
 0xd6e   :  { %12308 = vmatprep.subr.bf16.mxu0 %v18447_v59 }
 0xd6f   :  { %9990 = vmatpush2.bf16.msra.mxu1 %v13533_v4 }
 0xd70   :  { %9991 = vmatprep.subr.bf16.mxu1 %v18439_v60 }
 0xd71   :  { %12309 = vmatpush3.bf16.msra.mxu0 %v13524_v35 }
 0xd72   :  { %12314 = vmatprep.subr.bf16.mxu0 %v18447_v59 }
 0xd73   :  { %9992 = vmatpush2.bf16.msra.mxu1 %v13534_v19 }
 0xd74   :  { %12311 = vmatmul.mubr.msk.bf16.vlgmr.msra.gmra.mxu0 %vm5830_vm7, %v9792_v32 }
 0xd75   :  { %12318 = vmatprep.mubr.msk.bf16.mxu0 %vm13618_vm14, %v18447_v59 }
 0xdd0   :  { %v9107_v47 = vpop.f32.mrf.mxu0 }
 0xdd2   :  { %v12186_v30 = vpop.f32.mrf.mxu0  ;;  %v9299_v14 = vpop.f32.mrf.mxu1 }
 0xdd4   :  { %v9110_v49 = vpop.f32.mrf.mxu0  ;;  %v12214_v5 = vpop.f32.mrf.mxu1 }
 0xdd5   :  { %v10015_v49 = vpop.permute.xlu1 %10014 }
 0xdd6   :  { %v12187_v63 = vpop.f32.mrf.mxu0  ;;  %v9302_v44 = vpop.f32.mrf.mxu1 }
 0xdd8   :  { %v12215_v52 = vpop.f32.mrf.mxu1 }
 0xdd9   :  { %v13535_v52 = vld [vmem:[%s18222_s19 + $0x8] sm:$0xff]  }
 0xdda   :  { %12315 = vmatpush3.bf16.msra.mxu0 %v13535_v52 }
 0xddb   :  { %12316 = vmatprep.subr.bf16.mxu0 %v18447_v59 }
 0xde4   :  { %v9203_v29 = vpop.f32.mrf.mxu0 }
 0xde6   :  { %v12200_v10 = vpop.f32.mrf.mxu0  ;;  %v9491_v25 = vpop.f32.mrf.mxu1 }
 0xde8   :  { %v9206_v39 = vpop.f32.mrf.mxu0  ;;  %v12242_v34 = vpop.f32.mrf.mxu1 }
 0xdea   :  { %v12201_v0 = vpop.f32.mrf.mxu0  ;;  %v9494_v20 = vpop.f32.mrf.mxu1 }
 0xdec   :  { %v12243_v9 = vpop.f32.mrf.mxu1 }
 0xdf8   :  { %v9395_v6 = vpop.f32.mrf.mxu0 }
 0xdfa   :  { %v12228_v38 = vpop.f32.mrf.mxu0  ;;  %v9638_v60 = vpop.f32.mrf.mxu1 }
 0xdfb   :  { %v9639_v7 = vadd.f32 %v9638_v60, %v9203_v29  ;;  %v13536_v29 = vld [vmem:[%s18222_s19] sm:$0xff]   ;;  %s13623_s19 = smov [#allocation7]  }
 0xdfc   :  { %v9398_v46 = vpop.f32.mrf.mxu0  ;;  %v12270_v62 = vpop.f32.mrf.mxu1  ;;  %12317 = vmatpush3.bf16.msra.mxu0 %v13536_v29  ;;  %s10127_s10 = sshll.u32 %s13623_s19, 4  ;;  %s10128_s10 = int_to_ptr.vmem [resolvable:$true] %s10127_s10 }
 0xdfd   :  { %s13551_s5 = scalar_lea.vmem %s10128_s10, 16  ;;  %s13555_s27 = scalar_lea.vmem %s10128_s10, 32 }
 0xdfe   :  { %v12229_v11 = vpop.f32.mrf.mxu0  ;;  %v9641_v21 = vpop.f32.mrf.mxu1  ;;  %p13552_p0 = scmp.ne.s32.totalorder %s10128_s10, %s13551_s5  ;;  %p13556_p1 = scmp.lt.s32.totalorder %s10128_s10, %s10128_s10 }
 0xdff   :  { %p13557_p2 = scmp.lt.s32.totalorder %s13555_s27, %s13551_s5 }
 0xe00   :  { %v12271_v58 = vpop.f32.mrf.mxu1 }
 0xe01   :  { %p13558_p3 = por %p13557_p2, %p13556_p1 }
 0xe03   :  { %p13559_p4 = pnand %p13558_p3, %p13552_p0 }
 0xe0c   :  { %v9563_v40 = vpop.f32.mrf.mxu0 }
 0xe0d   :  { %v9564_v55 = vadd.f32 %v9563_v40, %v9107_v47 }
 0xe0e   :  { %v12256_v8 = vpop.f32.mrf.mxu0  ;;  %v9786_v16 = vpop.f32.mrf.mxu1 }
 0xe0f   :  { %v9866_v3 = vadd.f32 %v9639_v7, %v9564_v55  ;;  %v9787_v36 = vadd.f32 %v9786_v16, %v9395_v6 }
 0xe10   :  { %v9566_v24 = vpop.f32.mrf.mxu0  ;;  %v12298_v37 = vpop.f32.mrf.mxu1 }
 0xe12   :  { %v12257_v12 = vpop.f32.mrf.mxu0  ;;  %v9789_v2 = vpop.f32.mrf.mxu1 }
 0xe14   :  { %v12299_v43 = vpop.f32.mrf.mxu1 }
 0xe20   :  { %v9712_v17 = vpop.f32.mrf.mxu0 }
 0xe21   :  { %v9713_v28 = vadd.f32 %v9712_v17, %v9299_v14 }
 0xe22   :  { %v12284_v31 = vpop.f32.mrf.mxu0 }
 0xe23   :  { %v9867_v61 = vadd.f32 %v9787_v36, %v9713_v28 }
 0xe24   :  { %v9715_v15 = vpop.f32.mrf.mxu0 }
 0xe25   :  { %v9868_v22 = vadd.f32 %v9867_v61, %v9866_v3 }
 0xe26   :  { %v12285_v54 = vpop.f32.mrf.mxu0 }
 0xe34   :  { %v9860_v26 = vpop.f32.mrf.mxu0 }
 0xe35   :  { %v9861_v51 = vadd.f32 %v9860_v26, %v9491_v25 }
 0xe36   :  { %v12312_v53 = vpop.f32.mrf.mxu0 }
 0xe37   :  { %v9869_v48 = vadd.f32 %v9868_v22, %v9861_v51 }
 0xe38   :  { %v9863_v35 = vpop.f32.mrf.mxu0 }
 0xe39   :  { %v9871_v32 = vadd.f32 %v9870_v18, %v9869_v48 }
 0xe3a   :  { %v12313_v41 = vpop.f32.mrf.mxu0 }
 0xe3b   :  { %v9872_v13 = vmax.f32 %v9871_v32, 0.0 }
 0xe3d   :  { %v9874_v45 = vpack.c.bf16 %v9872_v13, %v9872_v13 }
 0xe3f   :  { %9994 = vmatmul.mubr.bf16.vlgmr.msra.gmra.mxu1 %v9874_v45 }
 0xeff   :  { %v9995_v23 = vpop.f32.mrf.mxu1 }
 0xf00   :  { %v9996_v1 = vadd.f32 %v9995_v23, %v9896_v27 }
 0xf01   :  { %v9997_v50 = vpop.f32.mrf.mxu1 }
 0xf02   :  { %13537 = vtanh.f32 %v9996_v1  ;;  %v11574_v56 = vmul.f32 -1.442695, %v9996_v1 }
 0xf03   :  { %v9998_v42 = vpop.f32.mrf.mxu1 }
 0xf04   :  { %13539 = vpow2.f32 %v11574_v56 }
 0xf05   :  { %v9999_v33 = vpop.f32.mrf.mxu1 }
 0xf0f   :  { %v13538_v4 = vpop.eup %13537 }
 0xf10   :  { %10019 = vrot.lane.b32.xlu0 %v13538_v4, %s13621_s16 }
 0xf11   :  { %v13540_v57 = vpop.eup %13539 }
 0xf12   :  { %v10004_v19 = vadd.f32 1.0, %v13540_v57 }
 0xf14   :  { %13541 = vrcp.f32 %v10004_v19 }
 0xf21   :  { %v13542_v47 = vpop.eup %13541 }
 0xf22   :  { %v10017_v5 = vmul.f32 %v13542_v47, %v10015_v49 }
 0xf82   :  { %v10020_v30 = vpop.permute.xlu0 %10019 }
 0xf83   :  { %v10022_v14 = vmul.f32 %v13542_v47, %v10020_v30 }
 0xf85   :  { %10024 = vrot.lane.b32.xlu0 %v10022_v14, %s13620_s1 }
 0xff7   :  { %v10025_v63 = vpop.permute.xlu0 %10024 }
 0xff8   :  { %v10027_v44 = vadd.f32 %v10025_v63, %v10017_v5 }
 0xffa   :  { %13543 = vtanh.f32 %v10027_v44 }
0x1007   :  { %v13544_v10 = vpop.eup %13543 }
0x1008   :  { %10030 = vrot.lane.b32.xlu1 %v13544_v10, %s13621_s16 }
0x107a   :  { %v10031_v25 = vpop.permute.xlu1 %10030 }
0x107b   :  { %v10033_v39 = vmul.f32 %v13542_v47, %v10031_v25 }
0x107d   :  { %v10045_v34 = vpack.c.bf16 %v10033_v39, %v10033_v39  ;;  %10041 = vrot.lane.b32.xlu1 %v10033_v39, %s13620_s1 }
0x107f   :  { %10052 = vrot.lane.b32.xlu0 %v10045_v34, %s13620_s1 }
0x1083   :  { %10035 = vrot.lane.b32.xlu0 %v10027_v44, %s13622_s28 }
0x10ef   :  { %v10042_v0 = vpop.permute.xlu1 %10041 }
0x10f0   :  { %10044 = vst.msk [vmem:[#allocation7] sm:$0x1] %vm10038_vm8, %v10042_v0 }
0x10f1   :  { %v10053_v20 = vpop.permute.xlu0 %10052 }
0x10f2   :  { %12319 = vmatmul.mubr.msk.bf16.vlgmr.msra.gmra.mxu0 %vm9957_vm5, %v10053_v20 }
0x10f5   :  { %v10036_v9 = vpop.permute.xlu0 %10035 }
0x10f6   :  { %10039 = vst.msk [vmem:[#allocation9] sm:$0x1] %vm10038_vm8, %v10036_v9 }
0x10f7   :  { %13562 = shalt.err (!%p13559_p4)
}
0x10f8   :  { %10130 = dma.vmem_to_hbm [thread:$0]  %s10128_s10, 16, %s18227_s24, [#allocation8]  }
0x10f9   :  { %s13624_s30 = smov [#allocation9]  }
0x10fa   :  { %s10137_s11 = sshll.u32 %s13624_s30, 4  ;;  %s10138_s11 = int_to_ptr.vmem [resolvable:$true] %s10137_s11 }
0x10fb   :  { %s13571_s7 = scalar_lea.vmem %s10138_s11, 16  ;;  %s13575_s12 = scalar_lea.vmem %s10138_s11, 32 }
0x10fc   :  { %p13572_p5 = scmp.ne.s32.totalorder %s10138_s11, %s13571_s7  ;;  %p13576_p6 = scmp.lt.s32.totalorder %s10138_s11, %s10138_s11 }
0x10fd   :  { %p13577_p7 = scmp.lt.s32.totalorder %s13575_s12, %s13571_s7 }
0x10ff   :  { %p13578_p8 = por %p13577_p7, %p13576_p6 }
0x1101   :  { %p13579_p9 = pnand %p13578_p8, %p13572_p5 }
0x1103   :  { %13582 = shalt.err (!%p13579_p9)
}
0x1104   :  { %10140 = dma.vmem_to_hbm [thread:$0]  %s10138_s11, 16, %s18228_s25, [#allocation8]   ;;  %v10050_v59 = vld [vmem:[%s18223_s20] sm:$0x1]  ;;  %vm10109_vm10 = vcmask 24576  }
0x1105   :  { %s13625_s24 = smov [#allocation5]  }
0x1106   :  { %s10117_s1 = sshll.u32 %s13625_s24, 4  ;;  %s10118_s1 = int_to_ptr.vmem [resolvable:$true] %s10117_s1 }
0x1107   :  { %s13591_s21 = scalar_lea.vmem %s10118_s1, 16  ;;  %s13595_s8 = scalar_lea.vmem %s10118_s1, 32 }
0x1108   :  { %p13592_p10 = scmp.ne.s32.totalorder %s10118_s1, %s13591_s21  ;;  %p13596_p11 = scmp.lt.s32.totalorder %s10118_s1, %s10118_s1 }
0x1109   :  { %p13597_p12 = scmp.lt.s32.totalorder %s13595_s8, %s13591_s21 }
0x110b   :  { %p13598_p13 = por %p13597_p12, %p13596_p11 }
0x110d   :  { %p13599_p0 = pnand %p13598_p13, %p13592_p10 }
0x11b2   :  { %v10103_v6 = vpop.f32.mrf.mxu0 }
0x11b3   :  { %v10104_v38 = vadd.f32 %v10103_v6, %v10050_v59 }
0x11b4   :  { %v12320_v60 = vpop.f32.mrf.mxu0 }
0x11b5   :  { %10110 = vst.msk [vmem:[#allocation5] sm:$0x1] %vm10109_vm10, %v10104_v38 }
0x11b6   :  { %v10106_v46 = vpop.f32.mrf.mxu0 }
0x11b7   :  { %13602 = shalt.err (!%p13599_p0)
}
0x11b8   :  { %10120 = dma.vmem_to_hbm [thread:$0]  %s10118_s1, 16, %s18226_s23, [#allocation6]   ;;  %v12321_v62 = vpop.f32.mrf.mxu0 }
0x11b9   :  { %13611 = dma.done.wait [#allocation6], 16  }
0x11ba   :  { %13612 = vsyncadd [#allocation6], 4294967280 }
0x11bb   :  { %13613 = dma.done.wait [#allocation8], 32  }
0x11bc   :  { %13614 = vsyncadd [#allocation8], 4294967264 }
0x11bd   :  { %10150 = vsyncpa [#allocation6], 1 }
0x11be   :  { %10151 = vsyncpa [#allocation8], 1 }

</bundles_post_ra>
